<compile_context>
chip_gen: v7x
topology: tpu7x:2x2x1
jax: 0.10.0
libtpu: 0.0.40
codegen_flags: <defaults>
</compile_context>

<pallas_src>
import functools

import jax
import jax.numpy as jnp
from jax.experimental import pallas as pl
from jax.experimental.pallas import tpu as pltpu

NN = 160        # hidden width (the script instantiates Net(160))
N_HIDDEN = 9    # number of NN->NN hidden layers (h1..h9)


def mlp_kernel(x_ref, w0_ref, b0_ref, wh_ref, bh_ref, wo_ref, bo_ref, o_ref):
    """Whole 11-layer MLP for one lane-dense batch tile, entirely in VMEM."""
    x = x_ref[...]                                        # (1, TB) f32, batch on lanes

    # --- layer 0: Linear(1, NN).  K=1 matmul == outer product -> do it on the
    #     VPU as a broadcast multiply instead of wasting an MXU push.
    h = jnp.tanh(w0_ref[...] * x + b0_ref[...])           # (NN, TB) f32

    # --- 9 hidden Linear(NN, NN) layers: bf16 MXU matmuls with f32 accumulation,
    #     bias-add + tanh in f32 (portable to v5e which has no bf16 VPU/EUP).
    for l in range(N_HIDDEN):
        w = wh_ref[l]                                     # (NN, NN) bf16, static index
        z = jnp.dot(w, h.astype(jnp.bfloat16),
                    preferred_element_type=jnp.float32)   # (NN, TB) f32
        # TODO(synk): on v6e/v7x a bf16 tanh would halve EUP work; kept f32 for v5e portability.
        h = jnp.tanh(z + bh_ref[l])                       # (NN, TB) f32

    # --- output layer: Linear(NN, 1).  N=1 matmul -> lane-dense sublane reduction
    #     (XLU) so the result stays (1, TB) and the store is a full-lane vst.
    out = jnp.sum(wo_ref[...] * h, axis=0, keepdims=True) + bo_ref[...]
    o_ref[...] = out                                      # (1, TB) f32


@functools.partial(jax.jit, static_argnames=("tb",))
def mlp_forward(x, params, tb=512):
    """x: (B, 1) float32.

    params = (w0, b0, wh, bh, wo, bo) with
      w0: (NN, 1) f32       b0: (NN, 1) f32        -- input layer
      wh: (9, NN, NN) bf16  bh: (9, NN, 1) f32     -- hidden layers, PyTorch (out, in) layout
      wo: (NN, 1) f32       bo: (1, 1) f32         -- output layer (weight stored transposed)

    tb: batch tile on the lane axis (multiple of 128).  Pick it so B/tb >= 2 (and even)
    when targeting v7x so both TensorCores get grid steps.
    """
    assert tb % 128 == 0, "batch tile must be lane-aligned (multiple of 128)"
    w0, b0, wh, bh, wo, bo = params
    B = x.shape[0]
    grid_len = -(-B // tb)                    # ceil division
    b_pad = grid_len * tb

    # Lane-dense input slab: (1, B_pad) with the batch on the lane axis.
    x_row = jnp.pad(x.reshape(-1), (0, b_pad - B)).reshape(1, b_pad)

    const2 = lambda *_: (0, 0)
    const3 = lambda *_: (0, 0, 0)

    out_row = pl.pallas_call(
        mlp_kernel,
        grid=(grid_len,),
        in_specs=[
            pl.BlockSpec((1, tb), lambda i: (0, i)),        # x tile (lane-dense)
            pl.BlockSpec((NN, 1), const2),                  # w0
            pl.BlockSpec((NN, 1), const2),                  # b0
            pl.BlockSpec((N_HIDDEN, NN, NN), const3),       # stacked hidden weights (bf16)
            pl.BlockSpec((N_HIDDEN, NN, 1), const3),        # stacked hidden biases
            pl.BlockSpec((NN, 1), const2),                  # wo (stored transposed)
            pl.BlockSpec((1, 1), const2),                   # bo
        ],
        out_specs=pl.BlockSpec((1, tb), lambda i: (0, i)),  # lane-dense output
        out_shape=jax.ShapeDtypeStruct((1, b_pad), jnp.float32),
        compiler_params=pltpu.CompilerParams(
            dimension_semantics=("parallel",)),             # shard batch axis across TCs
    )(x_row, w0, b0, wh, bh, wo, bo)

    return out_row.reshape(-1)[:B].reshape(B, 1)


def init_params(key, nn_width):
    """Deterministic init matching PyTorch nn.Linear default:
    U(-1/sqrt(fan_in), 1/sqrt(fan_in)) for both weight and bias.
    Weights kept in PyTorch (out, in) orientation (output weight stored transposed)."""
    def unif(k, shape, fan_in):
        bound = 1.0 / (fan_in ** 0.5)
        return jax.random.uniform(k, shape, jnp.float32, -bound, bound)

    keys = jax.random.split(key, 6)
    w0 = unif(keys[0], (nn_width, 1), 1)                     # (out=NN, in=1)
    b0 = unif(keys[1], (nn_width, 1), 1)
    wh = unif(keys[2], (N_HIDDEN, nn_width, nn_width), nn_width).astype(jnp.bfloat16)
    bh = unif(keys[3], (N_HIDDEN, nn_width, 1), nn_width)
    wo = unif(keys[4], (nn_width, 1), nn_width)               # output weight, transposed
    bo = unif(keys[5], (1, 1), nn_width)
    return (w0, b0, wh, bh, wo, bo)


def reference_forward(x, params):
    """Pure-JAX reference using the same mixed-precision recipe as the kernel
    (bf16 matmul inputs, f32 accumulation, f32 bias + tanh)."""
    w0, b0, wh, bh, wo, bo = params
    h = jnp.tanh(w0 * x.reshape(1, -1) + b0)                  # (NN, B)
    for l in range(N_HIDDEN):
        z = jnp.dot(wh[l], h.astype(jnp.bfloat16),
                    preferred_element_type=jnp.float32)
        h = jnp.tanh(z + bh[l])
    out = jnp.sum(wo * h, axis=0, keepdims=True) + bo         # (1, B)
    return out.reshape(-1, 1)


if __name__ == "__main__":
    key = jax.random.PRNGKey(0)
    key, kx = jax.random.split(key)

    B = 2048                                     # grid of 4 tiles at tb=512
    x = jax.random.uniform(kx, (B, 1), jnp.float32, -6.0, 6.0)

    params = init_params(key, NN)

    out = mlp_forward(x, params, tb=512)
    out = jax.block_until_ready(out)

    ref = reference_forward(x, params)
    assert out.shape == (B, 1)
    assert jnp.allclose(out, ref, atol=1e-2, rtol=1e-2), "mismatch vs JAX reference"

    print("KERNEL_OK")
</pallas_src>

<mosaic_0001>
module attributes {stable_mosaic.version = 11 : i64} {
  func.func @mlp_kernel(%arg0: i32, %arg1: memref<1x512xf32, #tpu.memory_space<vmem>>, %arg2: memref<160x1xf32, #tpu.memory_space<vmem>>, %arg3: memref<160x1xf32, #tpu.memory_space<vmem>>, %arg4: memref<9x160x160xbf16, #tpu.memory_space<vmem>>, %arg5: memref<9x160x1xf32, #tpu.memory_space<vmem>>, %arg6: memref<160x1xf32, #tpu.memory_space<vmem>>, %arg7: memref<1x1xf32, #tpu.memory_space<vmem>>, %arg8: memref<1x512xf32, #tpu.memory_space<vmem>>) attributes {dimension_semantics = [#tpu.dimension_semantics<parallel>], iteration_bounds = array<i64: 4>, scalar_prefetch = 0 : i64, scratch_operands = 0 : i64, tpu.core_type = #tpu.core_type<tc>, window_params = [{transform_indices = @transform_0, window_bounds = array<i64: 1, 512>}, {pipeline_mode = #tpu.pipeline_mode<synchronous>, transform_indices = @transform_1, window_bounds = array<i64: 160, 1>}, {pipeline_mode = #tpu.pipeline_mode<synchronous>, transform_indices = @transform_2, window_bounds = array<i64: 160, 1>}, {pipeline_mode = #tpu.pipeline_mode<synchronous>, transform_indices = @transform_3, window_bounds = array<i64: 9, 160, 160>}, {pipeline_mode = #tpu.pipeline_mode<synchronous>, transform_indices = @transform_4, window_bounds = array<i64: 9, 160, 1>}, {pipeline_mode = #tpu.pipeline_mode<synchronous>, transform_indices = @transform_5, window_bounds = array<i64: 160, 1>}, {pipeline_mode = #tpu.pipeline_mode<synchronous>, transform_indices = @transform_6, window_bounds = array<i64: 1, 1>}, {transform_indices = @transform_7, window_bounds = array<i64: 1, 512>}]} {
    %c0 = arith.constant 0 : index
    %c0_0 = arith.constant 0 : index
    %0 = vector.load %arg1[%c0, %c0_0] : memref<1x512xf32, #tpu.memory_space<vmem>>, vector<1x512xf32>
    %c0_1 = arith.constant 0 : index
    %c0_2 = arith.constant 0 : index
    %1 = vector.load %arg2[%c0_1, %c0_2] : memref<160x1xf32, #tpu.memory_space<vmem>>, vector<160x1xf32>
    %2 = vector.broadcast %1 : vector<160x1xf32> to vector<160x512xf32>
    %3 = vector.broadcast %0 : vector<1x512xf32> to vector<160x512xf32>
    %4 = arith.mulf %2, %3 : vector<160x512xf32>
    %c0_3 = arith.constant 0 : index
    %c0_4 = arith.constant 0 : index
    %5 = vector.load %arg3[%c0_3, %c0_4] : memref<160x1xf32, #tpu.memory_space<vmem>>, vector<160x1xf32>
    %6 = vector.broadcast %5 : vector<160x1xf32> to vector<160x512xf32>
    %7 = arith.addf %4, %6 : vector<160x512xf32>
    %8 = math.tanh %7 : vector<160x512xf32>
    %c0_5 = arith.constant 0 : index
    %c0_6 = arith.constant 0 : index
    %c0_7 = arith.constant 0 : index
    %9 = vector.load %arg4[%c0_5, %c0_6, %c0_7] : memref<9x160x160xbf16, #tpu.memory_space<vmem>>, vector<1x160x160xbf16>
    %10 = vector.shape_cast %9 : vector<1x160x160xbf16> to vector<160x160xbf16>
    %11 = arith.truncf %8 : vector<160x512xf32> to vector<160x512xbf16>
    %cst = arith.constant dense<0.000000e+00> : vector<160x512xf32>
    %12 = tpu.matmul %10, %11, %cst {dimension_numbers = #tpu.dot_dimension_numbers<[1], [0], [0], [1], [0, 0, 1, 1], [], []>} : vector<160x160xbf16>, vector<160x512xbf16>, vector<160x512xf32> -> vector<160x512xf32>
    %c0_8 = arith.constant 0 : index
    %c0_9 = arith.constant 0 : index
    %c0_10 = arith.constant 0 : index
    %13 = vector.load %arg5[%c0_8, %c0_9, %c0_10] : memref<9x160x1xf32, #tpu.memory_space<vmem>>, vector<1x160x1xf32>
    %14 = vector.shape_cast %13 : vector<1x160x1xf32> to vector<160x1xf32>
    %15 = vector.broadcast %14 : vector<160x1xf32> to vector<160x512xf32>
    %16 = arith.addf %12, %15 : vector<160x512xf32>
    %17 = math.tanh %16 : vector<160x512xf32>
    %c1 = arith.constant 1 : index
    %c0_11 = arith.constant 0 : index
    %c0_12 = arith.constant 0 : index
    %18 = vector.load %arg4[%c1, %c0_11, %c0_12] : memref<9x160x160xbf16, #tpu.memory_space<vmem>>, vector<1x160x160xbf16>
    %19 = vector.shape_cast %18 : vector<1x160x160xbf16> to vector<160x160xbf16>
    %20 = arith.truncf %17 : vector<160x512xf32> to vector<160x512xbf16>
    %cst_13 = arith.constant dense<0.000000e+00> : vector<160x512xf32>
    %21 = tpu.matmul %19, %20, %cst_13 {dimension_numbers = #tpu.dot_dimension_numbers<[1], [0], [0], [1], [0, 0, 1, 1], [], []>} : vector<160x160xbf16>, vector<160x512xbf16>, vector<160x512xf32> -> vector<160x512xf32>
    %c1_14 = arith.constant 1 : index
    %c0_15 = arith.constant 0 : index
    %c0_16 = arith.constant 0 : index
    %22 = vector.load %arg5[%c1_14, %c0_15, %c0_16] : memref<9x160x1xf32, #tpu.memory_space<vmem>>, vector<1x160x1xf32>
    %23 = vector.shape_cast %22 : vector<1x160x1xf32> to vector<160x1xf32>
    %24 = vector.broadcast %23 : vector<160x1xf32> to vector<160x512xf32>
    %25 = arith.addf %21, %24 : vector<160x512xf32>
    %26 = math.tanh %25 : vector<160x512xf32>
    %c2 = arith.constant 2 : index
    %c0_17 = arith.constant 0 : index
    %c0_18 = arith.constant 0 : index
    %27 = vector.load %arg4[%c2, %c0_17, %c0_18] : memref<9x160x160xbf16, #tpu.memory_space<vmem>>, vector<1x160x160xbf16>
    %28 = vector.shape_cast %27 : vector<1x160x160xbf16> to vector<160x160xbf16>
    %29 = arith.truncf %26 : vector<160x512xf32> to vector<160x512xbf16>
    %cst_19 = arith.constant dense<0.000000e+00> : vector<160x512xf32>
    %30 = tpu.matmul %28, %29, %cst_19 {dimension_numbers = #tpu.dot_dimension_numbers<[1], [0], [0], [1], [0, 0, 1, 1], [], []>} : vector<160x160xbf16>, vector<160x512xbf16>, vector<160x512xf32> -> vector<160x512xf32>
    %c2_20 = arith.constant 2 : index
    %c0_21 = arith.constant 0 : index
    %c0_22 = arith.constant 0 : index
    %31 = vector.load %arg5[%c2_20, %c0_21, %c0_22] : memref<9x160x1xf32, #tpu.memory_space<vmem>>, vector<1x160x1xf32>
    %32 = vector.shape_cast %31 : vector<1x160x1xf32> to vector<160x1xf32>
    %33 = vector.broadcast %32 : vector<160x1xf32> to vector<160x512xf32>
    %34 = arith.addf %30, %33 : vector<160x512xf32>
    %35 = math.tanh %34 : vector<160x512xf32>
    %c3 = arith.constant 3 : index
    %c0_23 = arith.constant 0 : index
    %c0_24 = arith.constant 0 : index
    %36 = vector.load %arg4[%c3, %c0_23, %c0_24] : memref<9x160x160xbf16, #tpu.memory_space<vmem>>, vector<1x160x160xbf16>
    %37 = vector.shape_cast %36 : vector<1x160x160xbf16> to vector<160x160xbf16>
    %38 = arith.truncf %35 : vector<160x512xf32> to vector<160x512xbf16>
    %cst_25 = arith.constant dense<0.000000e+00> : vector<160x512xf32>
    %39 = tpu.matmul %37, %38, %cst_25 {dimension_numbers = #tpu.dot_dimension_numbers<[1], [0], [0], [1], [0, 0, 1, 1], [], []>} : vector<160x160xbf16>, vector<160x512xbf16>, vector<160x512xf32> -> vector<160x512xf32>
    %c3_26 = arith.constant 3 : index
    %c0_27 = arith.constant 0 : index
    %c0_28 = arith.constant 0 : index
    %40 = vector.load %arg5[%c3_26, %c0_27, %c0_28] : memref<9x160x1xf32, #tpu.memory_space<vmem>>, vector<1x160x1xf32>
    %41 = vector.shape_cast %40 : vector<1x160x1xf32> to vector<160x1xf32>
    %42 = vector.broadcast %41 : vector<160x1xf32> to vector<160x512xf32>
    %43 = arith.addf %39, %42 : vector<160x512xf32>
    %44 = math.tanh %43 : vector<160x512xf32>
    %c4 = arith.constant 4 : index
    %c0_29 = arith.constant 0 : index
    %c0_30 = arith.constant 0 : index
    %45 = vector.load %arg4[%c4, %c0_29, %c0_30] : memref<9x160x160xbf16, #tpu.memory_space<vmem>>, vector<1x160x160xbf16>
    %46 = vector.shape_cast %45 : vector<1x160x160xbf16> to vector<160x160xbf16>
    %47 = arith.truncf %44 : vector<160x512xf32> to vector<160x512xbf16>
    %cst_31 = arith.constant dense<0.000000e+00> : vector<160x512xf32>
    %48 = tpu.matmul %46, %47, %cst_31 {dimension_numbers = #tpu.dot_dimension_numbers<[1], [0], [0], [1], [0, 0, 1, 1], [], []>} : vector<160x160xbf16>, vector<160x512xbf16>, vector<160x512xf32> -> vector<160x512xf32>
    %c4_32 = arith.constant 4 : index
    %c0_33 = arith.constant 0 : index
    %c0_34 = arith.constant 0 : index
    %49 = vector.load %arg5[%c4_32, %c0_33, %c0_34] : memref<9x160x1xf32, #tpu.memory_space<vmem>>, vector<1x160x1xf32>
    %50 = vector.shape_cast %49 : vector<1x160x1xf32> to vector<160x1xf32>
    %51 = vector.broadcast %50 : vector<160x1xf32> to vector<160x512xf32>
    %52 = arith.addf %48, %51 : vector<160x512xf32>
    %53 = math.tanh %52 : vector<160x512xf32>
    %c5 = arith.constant 5 : index
    %c0_35 = arith.constant 0 : index
    %c0_36 = arith.constant 0 : index
    %54 = vector.load %arg4[%c5, %c0_35, %c0_36] : memref<9x160x160xbf16, #tpu.memory_space<vmem>>, vector<1x160x160xbf16>
    %55 = vector.shape_cast %54 : vector<1x160x160xbf16> to vector<160x160xbf16>
    %56 = arith.truncf %53 : vector<160x512xf32> to vector<160x512xbf16>
    %cst_37 = arith.constant dense<0.000000e+00> : vector<160x512xf32>
    %57 = tpu.matmul %55, %56, %cst_37 {dimension_numbers = #tpu.dot_dimension_numbers<[1], [0], [0], [1], [0, 0, 1, 1], [], []>} : vector<160x160xbf16>, vector<160x512xbf16>, vector<160x512xf32> -> vector<160x512xf32>
    %c5_38 = arith.constant 5 : index
    %c0_39 = arith.constant 0 : index
    %c0_40 = arith.constant 0 : index
    %58 = vector.load %arg5[%c5_38, %c0_39, %c0_40] : memref<9x160x1xf32, #tpu.memory_space<vmem>>, vector<1x160x1xf32>
    %59 = vector.shape_cast %58 : vector<1x160x1xf32> to vector<160x1xf32>
    %60 = vector.broadcast %59 : vector<160x1xf32> to vector<160x512xf32>
    %61 = arith.addf %57, %60 : vector<160x512xf32>
    %62 = math.tanh %61 : vector<160x512xf32>
    %c6 = arith.constant 6 : index
    %c0_41 = arith.constant 0 : index
    %c0_42 = arith.constant 0 : index
    %63 = vector.load %arg4[%c6, %c0_41, %c0_42] : memref<9x160x160xbf16, #tpu.memory_space<vmem>>, vector<1x160x160xbf16>
    %64 = vector.shape_cast %63 : vector<1x160x160xbf16> to vector<160x160xbf16>
    %65 = arith.truncf %62 : vector<160x512xf32> to vector<160x512xbf16>
    %cst_43 = arith.constant dense<0.000000e+00> : vector<160x512xf32>
    %66 = tpu.matmul %64, %65, %cst_43 {dimension_numbers = #tpu.dot_dimension_numbers<[1], [0], [0], [1], [0, 0, 1, 1], [], []>} : vector<160x160xbf16>, vector<160x512xbf16>, vector<160x512xf32> -> vector<160x512xf32>
    %c6_44 = arith.constant 6 : index
    %c0_45 = arith.constant 0 : index
    %c0_46 = arith.constant 0 : index
    %67 = vector.load %arg5[%c6_44, %c0_45, %c0_46] : memref<9x160x1xf32, #tpu.memory_space<vmem>>, vector<1x160x1xf32>
    %68 = vector.shape_cast %67 : vector<1x160x1xf32> to vector<160x1xf32>
    %69 = vector.broadcast %68 : vector<160x1xf32> to vector<160x512xf32>
    %70 = arith.addf %66, %69 : vector<160x512xf32>
    %71 = math.tanh %70 : vector<160x512xf32>
    %c7 = arith.constant 7 : index
    %c0_47 = arith.constant 0 : index
    %c0_48 = arith.constant 0 : index
    %72 = vector.load %arg4[%c7, %c0_47, %c0_48] : memref<9x160x160xbf16, #tpu.memory_space<vmem>>, vector<1x160x160xbf16>
    %73 = vector.shape_cast %72 : vector<1x160x160xbf16> to vector<160x160xbf16>
    %74 = arith.truncf %71 : vector<160x512xf32> to vector<160x512xbf16>
    %cst_49 = arith.constant dense<0.000000e+00> : vector<160x512xf32>
    %75 = tpu.matmul %73, %74, %cst_49 {dimension_numbers = #tpu.dot_dimension_numbers<[1], [0], [0], [1], [0, 0, 1, 1], [], []>} : vector<160x160xbf16>, vector<160x512xbf16>, vector<160x512xf32> -> vector<160x512xf32>
    %c7_50 = arith.constant 7 : index
    %c0_51 = arith.constant 0 : index
    %c0_52 = arith.constant 0 : index
    %76 = vector.load %arg5[%c7_50, %c0_51, %c0_52] : memref<9x160x1xf32, #tpu.memory_space<vmem>>, vector<1x160x1xf32>
    %77 = vector.shape_cast %76 : vector<1x160x1xf32> to vector<160x1xf32>
    %78 = vector.broadcast %77 : vector<160x1xf32> to vector<160x512xf32>
    %79 = arith.addf %75, %78 : vector<160x512xf32>
    %80 = math.tanh %79 : vector<160x512xf32>
    %c8 = arith.constant 8 : index
    %c0_53 = arith.constant 0 : index
    %c0_54 = arith.constant 0 : index
    %81 = vector.load %arg4[%c8, %c0_53, %c0_54] : memref<9x160x160xbf16, #tpu.memory_space<vmem>>, vector<1x160x160xbf16>
    %82 = vector.shape_cast %81 : vector<1x160x160xbf16> to vector<160x160xbf16>
    %83 = arith.truncf %80 : vector<160x512xf32> to vector<160x512xbf16>
    %cst_55 = arith.constant dense<0.000000e+00> : vector<160x512xf32>
    %84 = tpu.matmul %82, %83, %cst_55 {dimension_numbers = #tpu.dot_dimension_numbers<[1], [0], [0], [1], [0, 0, 1, 1], [], []>} : vector<160x160xbf16>, vector<160x512xbf16>, vector<160x512xf32> -> vector<160x512xf32>
    %c8_56 = arith.constant 8 : index
    %c0_57 = arith.constant 0 : index
    %c0_58 = arith.constant 0 : index
    %85 = vector.load %arg5[%c8_56, %c0_57, %c0_58] : memref<9x160x1xf32, #tpu.memory_space<vmem>>, vector<1x160x1xf32>
    %86 = vector.shape_cast %85 : vector<1x160x1xf32> to vector<160x1xf32>
    %87 = vector.broadcast %86 : vector<160x1xf32> to vector<160x512xf32>
    %88 = arith.addf %84, %87 : vector<160x512xf32>
    %89 = math.tanh %88 : vector<160x512xf32>
    %c0_59 = arith.constant 0 : index
    %c0_60 = arith.constant 0 : index
    %90 = vector.load %arg6[%c0_59, %c0_60] : memref<160x1xf32, #tpu.memory_space<vmem>>, vector<160x1xf32>
    %91 = vector.broadcast %90 : vector<160x1xf32> to vector<160x512xf32>
    %92 = arith.mulf %91, %89 : vector<160x512xf32>
    %cst_61 = arith.constant dense<0.000000e+00> : vector<512xf32>
    %93 = vector.multi_reduction <add>, %92, %cst_61 [0] : vector<160x512xf32> to vector<512xf32>
    %94 = vector.shape_cast %93 : vector<512xf32> to vector<1x512xf32>
    %c0_62 = arith.constant 0 : index
    %c0_63 = arith.constant 0 : index
    %95 = vector.load %arg7[%c0_62, %c0_63] : memref<1x1xf32, #tpu.memory_space<vmem>>, vector<1x1xf32>
    %96 = vector.broadcast %95 : vector<1x1xf32> to vector<1x512xf32>
    %97 = arith.addf %94, %96 : vector<1x512xf32>
    %c0_64 = arith.constant 0 : index
    %c0_65 = arith.constant 0 : index
    %98 = vector.load %arg8[%c0_64, %c0_65] : memref<1x512xf32, #tpu.memory_space<vmem>>, vector<1x512xf32>
    tpu.vector_store %arg8[%c0_64, %c0_65], %97 {strides = array<i32>} : memref<1x512xf32, #tpu.memory_space<vmem>>, vector<1x512xf32>,
    return
  }
  func.func @transform_0(%arg0: i32) -> (i32, i32) {
    %c0_i32 = arith.constant 0 : i32
    %c0_i32_0 = arith.constant 0 : i32
    return %c0_i32, %arg0 : i32, i32
  }
  func.func @transform_1(%arg0: i32) -> (i32, i32) {
    %c0_i32 = arith.constant 0 : i32
    %c0_i32_0 = arith.constant 0 : i32
    %c0_i32_1 = arith.constant 0 : i32
    return %c0_i32, %c0_i32_0 : i32, i32
  }
  func.func @transform_2(%arg0: i32) -> (i32, i32) {
    %c0_i32 = arith.constant 0 : i32
    %c0_i32_0 = arith.constant 0 : i32
    %c0_i32_1 = arith.constant 0 : i32
    return %c0_i32, %c0_i32_0 : i32, i32
  }
  func.func @transform_3(%arg0: i32) -> (i32, i32, i32) {
    %c0_i32 = arith.constant 0 : i32
    %c0_i32_0 = arith.constant 0 : i32
    %c0_i32_1 = arith.constant 0 : i32
    %c0_i32_2 = arith.constant 0 : i32
    return %c0_i32, %c0_i32_0, %c0_i32_1 : i32, i32, i32
  }
  func.func @transform_4(%arg0: i32) -> (i32, i32, i32) {
    %c0_i32 = arith.constant 0 : i32
    %c0_i32_0 = arith.constant 0 : i32
    %c0_i32_1 = arith.constant 0 : i32
    %c0_i32_2 = arith.constant 0 : i32
    return %c0_i32, %c0_i32_0, %c0_i32_1 : i32, i32, i32
  }
  func.func @transform_5(%arg0: i32) -> (i32, i32) {
    %c0_i32 = arith.constant 0 : i32
    %c0_i32_0 = arith.constant 0 : i32
    %c0_i32_1 = arith.constant 0 : i32
    return %c0_i32, %c0_i32_0 : i32, i32
  }
  func.func @transform_6(%arg0: i32) -> (i32, i32) {
    %c0_i32 = arith.constant 0 : i32
    %c0_i32_0 = arith.constant 0 : i32
    %c0_i32_1 = arith.constant 0 : i32
    return %c0_i32, %c0_i32_0 : i32, i32
  }
  func.func @transform_7(%arg0: i32) -> (i32, i32) {
    %c0_i32 = arith.constant 0 : i32
    %c0_i32_0 = arith.constant 0 : i32
    return %c0_i32, %arg0 : i32, i32
  }
}

</mosaic_0001>

<bundles_post_ra>
// kernel: mlp_forward.1
= control target key start
LH: loop header
LB: loop body
LE: loop exit
PB: predicated region body
PF: predicated region fallthrough
CT: control target
= control target key end

     0   :  { %s12197_s0 = inlined_call_operand.vmem [shape: f32[1,2048], index: 0, kind: input, shape index: {}]   ;;  %s12198_s1 = inlined_call_operand.vmem [shape: f32[160,1], index: 1, kind: input, shape index: {}]   ;;  %s12199_s2 = inlined_call_operand.vmem [shape: f32[160,1], index: 2, kind: input, shape index: {}]   ;;  %s12200_s3 = inlined_call_operand.vmem [shape: bf16[9,160,160], index: 3, kind: input, shape index: {}]   ;;  %s12201_s4 = inlined_call_operand.vmem [shape: f32[9,160,1], index: 4, kind: input, shape index: {}]   ;;  %s12202_s5 = inlined_call_operand.vmem [shape: f32[160,1], index: 5, kind: input, shape index: {}]   ;;  %s12203_s6 = inlined_call_operand.<no memory space> [shape: f32[1,1], index: 6, kind: input, shape index: {}]   ;;  %s12204_s7 = inlined_call_operand.hbm [shape: f32[1,2048], index: 7, kind: output, shape index: {}]  }
   0x1   :  { %v12_v0 = vstv %s12203_s6 }
   0x2   :  { %13 = vst [vmem:[#allocation2] sm:$0x1] %v12_v0 }
   0x3   :  { %14 = vsyncpa [#allocation4], 0 }
   0x4   :  { %16 = vsyncpa [#allocation4 + $0x1], 0  ;;  %s9747_s26 = smov 0   ;;  %s9749_s27 = smov 0  }
   0x5   :  { %s9751_s28 = smov 0   ;;  %s9753_s29 = smov 0  }
   0x6 LB: > { %s9768_s6 = sadd.s32 4294967295, %s9699_s29   ;;  %s7032_s30 = sadd.s32 4294967294, %s9699_s29   ;;  %s9699_s29 = sphi %s9753_s29, %s12377_s29   ;;  %s9695_s28 = sphi %s9751_s28, %s12376_s28   ;;  %s9691_s27 = sphi %s9749_s27, %s12375_s27   ;;  %s9687_s26 = sphi %s9747_s26, %s12374_s26  }
   0x7   : > { %s9772_s8 = sadd.s32 1, %s9699_s29   ;;  %s181_s9 = sadd.s32 1, %s9695_s28 }
   0x8   : > { %s178_s10 = ssub.s32 %s9699_s29, %s9772_s8  ;;  %p191_p0 = scmp.ne.s32.totalorder %s9695_s28, %s9691_s27 }
   0x9   : > { %p179_p1 = scmp.eq.s32.totalorder %s178_s10, 0  ;;  %p192_p2 = scmp.eq.s32.totalorder %s9768_s6, 3 }
   0xa   : > { %p197_p3 = scmp.ne.s32.totalorder %s9691_s27, %s9687_s26  ;;  %p198_p4 = scmp.eq.s32.totalorder %s7032_s30, 3 }
   0xb   : > { %s9783_s11 = scalar_select %p179_p1, %s9695_s28, %s181_s9  }
   0xc   : > { %p9785_p5 = por %p192_p2, %p191_p0  ;;  %p9789_p6 = por %p198_p4, %p197_p3 }
   0xd   : > { %p7035_p7 = scmp.ge.s32.totalorder %s9699_s29, 1  ;;  %p242_p8 = scmp.lt.s32.totalorder %s9699_s29, 5 }
   0xf   : > { %p243_p9 = pnand %p7035_p7, %p242_p8 }
  0x11   : > { %246 = sbr.rel (%p243_p9) target bundleno = 3111 (0xc27), region = 48 }
  0x18   : > { %v502_v1 = vld [vmem:[%s12199_s2] sm:$0xff]  ;;  %v9701_v3 = vmov 0   ;;  %v503_v4 = vld [vmem:[%s12199_s2 + $0x8] sm:$0xff]  ;;  %v284_v6 = vld [vmem:[%s12198_s1 + $0x18] sm:$0xff]  ;;  %vm1052_vm0 = vcmask 261120   ;;  %s7037_s23 = sshll.u32 %s9768_s6, 2  ;;  %v12205_v61 = vlaneseq }
  0x19   : > { %v281_v2 = vld [vmem:[%s12198_s1] sm:$0xff]  ;;  %7766 = vset.pattern.permute.xlu1 %v9701_v3  ;;  %7765 = vset.pattern.permute.xlu0 %v9701_v3  ;;  %v282_v5 = vld [vmem:[%s12198_s1 + $0x8] sm:$0xff]  ;;  %v283_v7 = vld [vmem:[%s12198_s1 + $0x10] sm:$0xff]  ;;  %p274_p10 = scmp.lt.s32.totalorder %s7037_s23, 15  ;;  %s270_s18 = sand.u32 1, %s9691_s27  }
  0x1a   : > { %524 = vperm.xlu1 %7766, %v502_v1   ;;  %303 = vperm.xlu0 %7765, %v281_v2   ;;  %v505_v8 = vld [vmem:[%s12199_s2 + $0x18] sm:$0xff]  ;;  %v504_v9 = vld [vmem:[%s12199_s2 + $0x10] sm:$0xff]  ;;  %v286_v10 = vld [vmem:[%s12198_s1 + $0x28] sm:$0xff]  ;;  %v9982_v0 = vshrl.u32 %v12205_v61, 7  ;;  %s7036_s19 = sshll.u32 %s270_s18, 2  ;;  %s7723_s20 = sshll.u32 %s9768_s6, 6 }
  0x1b   : > { %v285_v11 = vld [vmem:[%s12198_s1 + $0x20] sm:$0xff]  ;;  %v507_v12 = vld [vmem:[%s12199_s2 + $0x28] sm:$0xff]  ;;  %v288_v14 = vld [vmem:[%s12198_s1 + $0x38] sm:$0xff]  ;;  %s12379_s23 = smov (!%p274_p10, %s7037_s23), 15  ;;  %s272_s21 = scalar_lea.vmem [#allocation3], %s7036_s19 }
  0x1c   : > { %v506_v13 = vld [vmem:[%s12199_s2 + $0x20] sm:$0xff]  ;;  %v287_v15 = vld [vmem:[%s12198_s1 + $0x30] sm:$0xff]  ;;  %v509_v16 = vld [vmem:[%s12199_s2 + $0x38] sm:$0xff]  ;;  %12264 = vst [vmem:[#allocation6_spill] sm:$0xff] %v9982_v0  ;;  %s276_s24 = scalar_lea.vmem %s12197_s0, %s12379_s23  ;;  %v12206_v3 = vsub.s32 0, %v9982_v0  ;;  %s6976_s22 = sshll.u32 %s272_s21, 4  ;;  %s12157_s22 = int_to_ptr.vmem [resolvable:$true] %s6976_s22 }
  0x1d   : > { %v508_v17 = vld [vmem:[%s12199_s2 + $0x30] sm:$0xff]  ;;  %v290_v18 = vld [vmem:[%s12198_s1 + $0x48] sm:$0xff]  ;;  %v289_v19 = vld [vmem:[%s12198_s1 + $0x40] sm:$0xff]  ;;  %s12155_s30 = scalar_lea.hbm %s12204_s7, %s7723_s20  ;;  %s6962_s9 = scalar_lea.sflag [#allocation4], %s270_s18 }
  0x1e   : > { %529 = vperm.xlu1 %7766, %v503_v4   ;;  %308 = vperm.xlu0 %7765, %v282_v5   ;;  %v511_v20 = vld [vmem:[%s12199_s2 + $0x48] sm:$0xff]  ;;  %v510_v21 = vld [vmem:[%s12199_s2 + $0x40] sm:$0xff]  ;;  %v292_v22 = vld [vmem:[%s12198_s1 + $0x58] sm:$0xff]  ;;  %v408_v4 = vsub.s32 1, %v9982_v0  ;;  %v412_v5 = vsub.s32 2, %v9982_v0  ;;  %s9637_s10 = scalar_lea.vmem %s12157_s22, 64 }
  0x1f   : > { %v291_v23 = vld [vmem:[%s12198_s1 + $0x50] sm:$0xff]  ;;  %v513_v24 = vld [vmem:[%s12199_s2 + $0x58] sm:$0xff]  ;;  %v294_v26 = vld [vmem:[%s12198_s1 + $0x68] sm:$0xff]  ;;  %p9638_p11 = scmp.ne.s32.totalorder %s12157_s22, %s9637_s10  ;;  %s9703_s6 = smov [#allocation3]  }
  0x20   : > { %v512_v25 = vld [vmem:[%s12199_s2 + $0x50] sm:$0xff]  ;;  %v293_v27 = vld [vmem:[%s12198_s1 + $0x60] sm:$0xff]  ;;  %v515_v28 = vld [vmem:[%s12199_s2 + $0x68] sm:$0xff]  ;;  %s9641_s23 = sshll.u32 %s9703_s6, 4  ;;  %s9642_s23 = int_to_ptr.vmem [resolvable:$false] %s9641_s23 }
  0x21   : > { %v514_v29 = vld [vmem:[%s12199_s2 + $0x60] sm:$0xff]  ;;  %v296_v30 = vld [vmem:[%s12198_s1 + $0x78] sm:$0xff]  ;;  %v295_v31 = vld [vmem:[%s12198_s1 + $0x70] sm:$0xff]  ;;  %p9639_p12 = pnand %p9638_p11, %p9785_p5  ;;  %s9643_s14 = scalar_lea.vmem %s9642_s23, 128 }
  0x22   : > { %318 = vperm.xlu1 %7766, %v284_v6   ;;  %313 = vperm.xlu0 %7765, %v283_v7   ;;  %v517_v32 = vld [vmem:[%s12199_s2 + $0x78] sm:$0xff]  ;;  %v516_v33 = vld [vmem:[%s12199_s2 + $0x70] sm:$0xff]  ;;  %v298_v34 = vld [vmem:[%s12198_s1 + $0x88] sm:$0xff]  ;;  %v416_v6 = vsub.s32 3, %v9982_v0  ;;  %p9644_p0 = scmp.lt.s32.totalorder %s12157_s22, %s9642_s23  ;;  %p9645_p1 = scmp.lt.s32.totalorder %s9643_s14, %s9637_s10 }
  0x23   : > { %v297_v35 = vld [vmem:[%s12198_s1 + $0x80] sm:$0xff]  ;;  %v519_v36 = vld [vmem:[%s12199_s2 + $0x88] sm:$0xff]  ;;  %v300_v38 = vld [vmem:[%s12198_s1 + $0x98] sm:$0xff]  ;;  %p9640_p13 = pneg %p9639_p12 }
  0x24   : > { %v518_v37 = vld [vmem:[%s12199_s2 + $0x80] sm:$0xff]  ;;  %v299_v39 = vld [vmem:[%s12198_s1 + $0x90] sm:$0xff]  ;;  %v521_v40 = vld [vmem:[%s12199_s2 + $0x98] sm:$0xff]  ;;  %p9646_p2 = por %p9645_p1, %p9644_p0 }
  0x25   : > { %v520_v41 = vld [vmem:[%s12199_s2 + $0x90] sm:$0xff]  ;;  %v843_v42 = vld [vmem:[%s12201_s4 + $0x8] sm:$0xff]  ;;  %v842_v43 = vld [vmem:[%s12201_s4] sm:$0xff] }
  0x26   : > { %539 = vperm.xlu1 %7766, %v505_v8   ;;  %534 = vperm.xlu0 %7765, %v504_v9   ;;  %v845_v44 = vld [vmem:[%s12201_s4 + $0x18] sm:$0xff]  ;;  %v844_v45 = vld [vmem:[%s12201_s4 + $0x10] sm:$0xff]  ;;  %v847_v46 = vld [vmem:[%s12201_s4 + $0x28] sm:$0xff]  ;;  %p9647_p3 = pnand %p9646_p2, %p9640_p13 }
  0x27   : > { %v846_v47 = vld [vmem:[%s12201_s4 + $0x20] sm:$0xff]  ;;  %v849_v48 = vld [vmem:[%s12201_s4 + $0x38] sm:$0xff]  ;;  %v848_v49 = vld [vmem:[%s12201_s4 + $0x30] sm:$0xff] }
  0x28   : > { %v851_v50 = vld [vmem:[%s12201_s4 + $0x48] sm:$0xff]  ;;  %v850_v51 = vld [vmem:[%s12201_s4 + $0x40] sm:$0xff]  ;;  %v853_v52 = vld [vmem:[%s12201_s4 + $0x58] sm:$0xff] }
  0x29   : > { %v852_v53 = vld [vmem:[%s12201_s4 + $0x50] sm:$0xff]  ;;  %v7769_v54 = vld [vmem:[%s12200_s3 + $0x4] ss:$8 sps:$4 sm:$0xff]   ;;  %v857_v57 = vld [vmem:[%s12201_s4 + $0x78] sm:$0xff] }
  0x2a   : > { %328 = vperm.xlu1 %7766, %v286_v10   ;;  %323 = vperm.xlu0 %7765, %v285_v11   ;;  %v855_v55 = vld [vmem:[%s12201_s4 + $0x68] sm:$0xff]  ;;  %v854_v56 = vld [vmem:[%s12201_s4 + $0x60] sm:$0xff]  ;;  %v856_v58 = vld [vmem:[%s12201_s4 + $0x70] sm:$0xff] }
  0x2b   : > { %7058 = vmatprep.mubr.msk.bf16.mxu0 %vm1052_vm0, %v7769_v54  ;;  %7068 = vmatprep.mubr.msk.bf16.mxu1 %vm1052_vm0, %v7769_v54  ;;  %v859_v59 = vld [vmem:[%s12201_s4 + $0x88] sm:$0xff]  ;;  %v858_v60 = vld [vmem:[%s12201_s4 + $0x80] sm:$0xff]  ;;  %v861_v62 = vld [vmem:[%s12201_s4 + $0x98] sm:$0xff] }
  0x2c   : > { %v860_v63 = vld [vmem:[%s12201_s4 + $0x90] sm:$0xff]  ;;  %v7099_v1 = vld [vmem:[%s12201_s4 + $0xa8] sm:$0xff]  ;;  %v7098_v2 = vld [vmem:[%s12201_s4 + $0xa0] sm:$0xff] }
  0x2d   : > { %v280_v7 = vld [vmem:[%s276_s24] sm:$0xf]  ;;  %v7101_v8 = vld [vmem:[%s12201_s4 + $0xb8] sm:$0xff]  ;;  %v7100_v9 = vld [vmem:[%s12201_s4 + $0xb0] sm:$0xff] }
  0x2e   : > { %549 = vperm.xlu1 %7766, %v507_v12   ;;  %544 = vperm.xlu0 %7765, %v506_v13   ;;  %v10005_v10 = vrot.slane %v280_v7, %v12206_v3  ;;  %v10007_v11 = vrot.slane %v280_v7, %v408_v4  ;;  %v10009_v12 = vrot.slane %v280_v7, %v412_v5  ;;  %v7509_v61 = vld [vmem:[%s12201_s4 + $0x418] sm:$0xff]  ;;  %v7510_v0 = vld [vmem:[%s12201_s4 + $0x420] sm:$0xff] }
  0x2f   : > { %v10011_v13 = vrot.slane %v280_v7, %v416_v6 }
  0x32   : > { %338 = vperm.xlu1 %7766, %v288_v14   ;;  %333 = vperm.xlu0 %7765, %v287_v15   ;;  %v7103_v14 = vld [vmem:[%s12201_s4 + $0xc8] sm:$0xff]  ;;  %v7102_v15 = vld [vmem:[%s12201_s4 + $0xc0] sm:$0xff] }
  0x36   : > { %559 = vperm.xlu1 %7766, %v509_v16   ;;  %554 = vperm.xlu0 %7765, %v508_v17  }
  0x3a   : > { %348 = vperm.xlu1 %7766, %v290_v18   ;;  %343 = vperm.xlu0 %7765, %v289_v19  }
  0x3e   : > { %569 = vperm.xlu1 %7766, %v511_v20   ;;  %564 = vperm.xlu0 %7765, %v510_v21  }
  0x42   : > { %358 = vperm.xlu1 %7766, %v292_v22   ;;  %353 = vperm.xlu0 %7765, %v291_v23   ;;  %v7105_v22 = vld [vmem:[%s12201_s4 + $0xd8] sm:$0xff] }
  0x46   : > { %579 = vperm.xlu1 %7766, %v513_v24   ;;  %574 = vperm.xlu0 %7765, %v512_v25  }
  0x4a   : > { %368 = vperm.xlu1 %7766, %v294_v26   ;;  %363 = vperm.xlu0 %7765, %v293_v27   ;;  %v7104_v26 = vld [vmem:[%s12201_s4 + $0xd0] sm:$0xff] }
  0x4e   : > { %589 = vperm.xlu1 %7766, %v515_v28   ;;  %584 = vperm.xlu0 %7765, %v514_v29  }
  0x52   : > { %378 = vperm.xlu1 %7766, %v296_v30   ;;  %373 = vperm.xlu0 %7765, %v295_v31  }
  0x56   : > { %599 = vperm.xlu1 %7766, %v517_v32   ;;  %594 = vperm.xlu0 %7765, %v516_v33  }
  0x5a   : > { %388 = vperm.xlu1 %7766, %v298_v34   ;;  %383 = vperm.xlu0 %7765, %v297_v35   ;;  %v7107_v34 = vld [vmem:[%s12201_s4 + $0xe8] sm:$0xff] }
  0x5e   : > { %609 = vperm.xlu1 %7766, %v519_v36   ;;  %604 = vperm.xlu0 %7765, %v518_v37  }
  0x62   : > { %398 = vperm.xlu1 %7766, %v300_v38   ;;  %393 = vperm.xlu0 %7765, %v299_v39   ;;  %v7106_v38 = vld [vmem:[%s12201_s4 + $0xe0] sm:$0xff] }
  0x66   : > { %619 = vperm.xlu1 %7766, %v521_v40   ;;  %614 = vperm.xlu0 %7765, %v520_v41  }
  0x6a   : > { %869 = vperm.xlu1 %7766, %v843_v42   ;;  %864 = vperm.xlu0 %7765, %v842_v43   ;;  %v7109_v42 = vld [vmem:[%s12201_s4 + $0xf8] sm:$0xff] }
  0x6e   : > { %879 = vperm.xlu1 %7766, %v845_v44   ;;  %874 = vperm.xlu0 %7765, %v844_v45  }
  0x72   : > { %889 = vperm.xlu1 %7766, %v847_v46   ;;  %884 = vperm.xlu0 %7765, %v846_v47   ;;  %v7108_v46 = vld [vmem:[%s12201_s4 + $0xf0] sm:$0xff] }
  0x76   : > { %899 = vperm.xlu1 %7766, %v849_v48   ;;  %894 = vperm.xlu0 %7765, %v848_v49  }
  0x7a   : > { %909 = vperm.xlu1 %7766, %v851_v50   ;;  %904 = vperm.xlu0 %7765, %v850_v51  }
  0x7e   : > { %919 = vperm.xlu1 %7766, %v853_v52   ;;  %914 = vperm.xlu0 %7765, %v852_v53  }
  0x82   : > { %929 = vperm.xlu1 %7766, %v855_v55   ;;  %924 = vperm.xlu0 %7765, %v854_v56   ;;  %v7111_v56 = vld [vmem:[%s12201_s4 + $0x108] sm:$0xff] }
  0x86   : > { %939 = vperm.xlu1 %7766, %v857_v57   ;;  %934 = vperm.xlu0 %7765, %v856_v58  }
  0x8a   : > { %949 = vperm.xlu1 %7766, %v859_v59   ;;  %944 = vperm.xlu0 %7765, %v858_v60   ;;  %v7110_v60 = vld [vmem:[%s12201_s4 + $0x100] sm:$0xff] }
  0x8e   : > { %959 = vperm.xlu1 %7766, %v861_v62   ;;  %954 = vperm.xlu0 %7765, %v860_v63  }
  0x92   : > { %1518 = vperm.xlu1 %7766, %v7099_v1   ;;  %1513 = vperm.xlu0 %7765, %v7098_v2  }
  0x96   : > { %1528 = vperm.xlu1 %7766, %v7101_v8   ;;  %1523 = vperm.xlu0 %7765, %v7100_v9   ;;  %v7113_v9 = vld [vmem:[%s12201_s4 + $0x118] sm:$0xff] }
  0x99   : > { %v525_v16 = vpop.permute.xlu1 %524  ;;  %v304_v17 = vpop.permute.xlu0 %303 }
  0x9a   : > { %v422_v18 = vmul.f32 %v10005_v10, %v304_v17  ;;  %v423_v19 = vmul.f32 %v10007_v11, %v304_v17  ;;  %v424_v20 = vmul.f32 %v10009_v12, %v304_v17  ;;  %v425_v21 = vmul.f32 %v10011_v13, %v304_v17  ;;  %1538 = vperm.xlu1 %7766, %v7103_v14  }
  0x9b   : > { %1533 = vperm.xlu0 %7765, %v7102_v15  }
  0x9c   : > { %v622_v23 = vadd.f32 %v525_v16, %v422_v18  ;;  %v623_v24 = vadd.f32 %v525_v16, %v423_v19  ;;  %v624_v25 = vadd.f32 %v525_v16, %v424_v20  ;;  %v625_v27 = vadd.f32 %v525_v16, %v425_v21  ;;  %v7112_v18 = vld [vmem:[%s12201_s4 + $0x110] sm:$0xff] }
  0x9d   : > { %v530_v28 = vpop.permute.xlu1 %529  ;;  %v309_v29 = vpop.permute.xlu0 %308 }
  0x9e   : > { %8037 = vtanh.f32 %v622_v23  ;;  %v426_v30 = vmul.f32 %v10005_v10, %v309_v29  ;;  %v427_v31 = vmul.f32 %v10007_v11, %v309_v29  ;;  %v428_v32 = vmul.f32 %v10009_v12, %v309_v29  ;;  %1548 = vperm.xlu1 %7766, %v7105_v22  }
  0x9f   : > { %8039 = vtanh.f32 %v624_v25  ;;  %v429_v33 = vmul.f32 %v10011_v13, %v309_v29  ;;  %1543 = vperm.xlu0 %7765, %v7104_v26  }
  0xa0   : > { %v626_v35 = vadd.f32 %v530_v28, %v426_v30  ;;  %v627_v36 = vadd.f32 %v530_v28, %v427_v31  ;;  %v628_v37 = vadd.f32 %v530_v28, %v428_v32  ;;  %8041 = vtanh.f32 %v623_v24 }
  0xa1   : > { %v629_v39 = vadd.f32 %v530_v28, %v429_v33  ;;  %v319_v40 = vpop.permute.xlu1 %318  ;;  %v314_v41 = vpop.permute.xlu0 %313  ;;  %8043 = vtanh.f32 %v625_v27  ;;  %v7115_v33 = vld [vmem:[%s12201_s4 + $0x128] sm:$0xff] }
  0xa2   : > { %8045 = vtanh.f32 %v626_v35  ;;  %1558 = vperm.xlu1 %7766, %v7107_v34   ;;  %v434_v43 = vmul.f32 %v10005_v10, %v319_v40  ;;  %v435_v44 = vmul.f32 %v10007_v11, %v319_v40  ;;  %v436_v45 = vmul.f32 %v10009_v12, %v319_v40 }
  0xa3   : > { %8047 = vtanh.f32 %v628_v37  ;;  %1553 = vperm.xlu0 %7765, %v7106_v38   ;;  %v437_v47 = vmul.f32 %v10011_v13, %v319_v40  ;;  %v430_v50 = vmul.f32 %v10005_v10, %v314_v41  ;;  %v431_v54 = vmul.f32 %v10007_v11, %v314_v41 }
  0xa4   : > { %8049 = vtanh.f32 %v627_v36  ;;  %v432_v58 = vmul.f32 %v10009_v12, %v314_v41  ;;  %v433_v63 = vmul.f32 %v10011_v13, %v314_v41 }
  0xa5   : > { %v540_v48 = vpop.permute.xlu1 %539  ;;  %v535_v49 = vpop.permute.xlu0 %534  ;;  %8051 = vtanh.f32 %v629_v39 }
  0xa6   : > { %v634_v51 = vadd.f32 %v540_v48, %v434_v43  ;;  %v635_v52 = vadd.f32 %v540_v48, %v435_v44  ;;  %v636_v53 = vadd.f32 %v540_v48, %v436_v45  ;;  %1568 = vperm.xlu1 %7766, %v7109_v42   ;;  %v637_v55 = vadd.f32 %v540_v48, %v437_v47  ;;  %v7114_v42 = vld [vmem:[%s12201_s4 + $0x120] sm:$0xff]  ;;  %v7117_v47 = vld [vmem:[%s12201_s4 + $0x138] sm:$0xff] }
  0xa7   : > { %1563 = vperm.xlu0 %7765, %v7108_v46   ;;  %v630_v59 = vadd.f32 %v535_v49, %v430_v50  ;;  %v631_v1 = vadd.f32 %v535_v49, %v431_v54  ;;  %v632_v6 = vadd.f32 %v535_v49, %v432_v58  ;;  %v633_v8 = vadd.f32 %v535_v49, %v433_v63 }
  0xa8   : > { %v10054_v57 = vpop.eup %8037  ;;  %8053 = vtanh.f32 %v634_v51 }
  0xa9   : > { %v10060_v62 = vpop.eup %8039  ;;  %8055 = vtanh.f32 %v635_v52  ;;  %v329_v2 = vpop.permute.xlu1 %328 }
  0xaa   : > { %v324_v4 = vpop.permute.xlu0 %323  ;;  %v8042_v5 = vpop.eup %8041  ;;  %8057 = vtanh.f32 %v636_v53  ;;  %1578 = vperm.xlu1 %7766, %v7111_v56   ;;  %v442_v15 = vmul.f32 %v10005_v10, %v329_v2  ;;  %v443_v16 = vmul.f32 %v10007_v11, %v329_v2  ;;  %v444_v17 = vmul.f32 %v10009_v12, %v329_v2 }
  0xab   : > { %v8044_v7 = vpop.eup %8043  ;;  %8059 = vtanh.f32 %v637_v55  ;;  %1573 = vperm.xlu0 %7765, %v7110_v60   ;;  %v445_v20 = vmul.f32 %v10011_v13, %v329_v2  ;;  %v438_v21 = vmul.f32 %v10005_v10, %v324_v4  ;;  %v439_v22 = vmul.f32 %v10007_v11, %v324_v4 }
  0xac   : > { %v8046_v14 = vpop.eup %8045  ;;  %8061 = vtanh.f32 %v630_v59  ;;  %v440_v30 = vmul.f32 %v10009_v12, %v324_v4  ;;  %v441_v34 = vmul.f32 %v10011_v13, %v324_v4 }
  0xad   : > { %v8048_v19 = vpop.eup %8047  ;;  %8063 = vtanh.f32 %v631_v1  ;;  %v550_v23 = vpop.permute.xlu1 %549  ;;  %v802_v32 = vpack.c.bf16 %v8046_v14, %v10054_v57  ;;  %v7116_v57 = vld [vmem:[%s12201_s4 + $0x130] sm:$0xff] }
  0xae   : > { %v545_v24 = vpop.permute.xlu0 %544  ;;  %v8050_v25 = vpop.eup %8049  ;;  %8065 = vtanh.f32 %v632_v6  ;;  %v642_v26 = vadd.f32 %v550_v23, %v442_v15  ;;  %v643_v27 = vadd.f32 %v550_v23, %v443_v16  ;;  %v644_v28 = vadd.f32 %v550_v23, %v444_v17  ;;  %1588 = vperm.xlu1 %7766, %v7113_v9  }
  0xaf   : > { %v8052_v29 = vpop.eup %8051  ;;  %8067 = vtanh.f32 %v633_v8  ;;  %v645_v31 = vadd.f32 %v550_v23, %v445_v20  ;;  %1583 = vperm.xlu0 %7765, %v7112_v18   ;;  %v638_v35 = vadd.f32 %v545_v24, %v438_v21  ;;  %v803_v36 = vpack.c.bf16 %v8050_v25, %v8042_v5  ;;  %v7179_v5 = vld [vmem:[%s12201_s4 + $0x148] sm:$0xff]  ;;  %v7178_v20 = vld [vmem:[%s12201_s4 + $0x140] sm:$0xff] }
  0xb0   : > { %8069 = vtanh.f32 %v642_v26  ;;  %v639_v37 = vadd.f32 %v545_v24, %v439_v22  ;;  %v805_v38 = vpack.c.bf16 %v8052_v29, %v8044_v7  ;;  %v804_v39 = vpack.c.bf16 %v8048_v19, %v10060_v62  ;;  %v7181_v26 = vld [vmem:[%s12201_s4 + $0x158] sm:$0xff] }
  0xb1   : > { %8071 = vtanh.f32 %v643_v27  ;;  %v339_v40 = vpop.permute.xlu1 %338  ;;  %v640_v44 = vadd.f32 %v545_v24, %v440_v30  ;;  %1083 = vmatprep.subr.bf16.mxu0 %v803_v36  ;;  %v641_v46 = vadd.f32 %v545_v24, %v441_v34  ;;  %v7180_v36 = vld [vmem:[%s12201_s4 + $0x150] sm:$0xff] }
  0xb2   : > { %v334_v41 = vpop.permute.xlu0 %333  ;;  %v8054_v43 = vpop.eup %8053  ;;  %8073 = vtanh.f32 %v644_v28  ;;  %1598 = vperm.xlu1 %7766, %v7115_v33   ;;  %1216 = vmatprep.subr.bf16.mxu1 %v805_v38  ;;  %v450_v49 = vmul.f32 %v10005_v10, %v339_v40  ;;  %v451_v50 = vmul.f32 %v10007_v11, %v339_v40  ;;  %v452_v51 = vmul.f32 %v10009_v12, %v339_v40 }
  0xb3   : > { %v8056_v45 = vpop.eup %8055  ;;  %8075 = vtanh.f32 %v645_v31  ;;  %1084 = vmatpush1.bf16.msra.mxu0 %v802_v32  ;;  %1217 = vmatpush1.bf16.msra.mxu1 %v804_v39  ;;  %v453_v53 = vmul.f32 %v10011_v13, %v339_v40  ;;  %v446_v54 = vmul.f32 %v10005_v10, %v334_v41  ;;  %v447_v1 = vmul.f32 %v10007_v11, %v334_v41 }
  0xb4   : > { %v8058_v48 = vpop.eup %8057  ;;  %8077 = vtanh.f32 %v638_v35  ;;  %1593 = vperm.xlu0 %7765, %v7114_v42   ;;  %v448_v2 = vmul.f32 %v10009_v12, %v334_v41  ;;  %v449_v7 = vmul.f32 %v10011_v13, %v334_v41 }
  0xb5   : > { %v8060_v52 = vpop.eup %8059  ;;  %8079 = vtanh.f32 %v639_v37  ;;  %v560_v55 = vpop.permute.xlu1 %559 }
  0xb6   : > { %v555_v56 = vpop.permute.xlu0 %554  ;;  %v8062_v58 = vpop.eup %8061  ;;  %8081 = vtanh.f32 %v640_v44  ;;  %v650_v59 = vadd.f32 %v560_v55, %v450_v49  ;;  %v651_v60 = vadd.f32 %v560_v55, %v451_v50  ;;  %v652_v62 = vadd.f32 %v560_v55, %v452_v51  ;;  %1608 = vperm.xlu1 %7766, %v7117_v47  }
  0xb7   : > { %v8064_v63 = vpop.eup %8063  ;;  %8083 = vtanh.f32 %v641_v46  ;;  %v653_v4 = vadd.f32 %v560_v55, %v453_v53  ;;  %v646_v8 = vadd.f32 %v555_v56, %v446_v54  ;;  %v647_v15 = vadd.f32 %v555_v56, %v447_v1 }
  0xb8   : > { %v8066_v6 = vpop.eup %8065  ;;  %8085 = vtanh.f32 %v650_v59  ;;  %v807_v9 = vpack.c.bf16 %v8056_v45, %v8064_v63  ;;  %1603 = vperm.xlu0 %7765, %v7116_v57   ;;  %v806_v16 = vpack.c.bf16 %v8054_v43, %v8062_v58  ;;  %v648_v22 = vadd.f32 %v555_v56, %v448_v2  ;;  %v7183_v45 = vld [vmem:[%s12201_s4 + $0x168] sm:$0xff]  ;;  %v7185_v63 = vld [vmem:[%s12201_s4 + $0x178] sm:$0xff] }
  0xb9   : > { %v8068_v14 = vpop.eup %8067  ;;  %8087 = vtanh.f32 %v651_v60  ;;  %v808_v17 = vpack.c.bf16 %v8058_v48, %v8066_v6  ;;  %v349_v18 = vpop.permute.xlu1 %348  ;;  %v649_v25 = vadd.f32 %v555_v56, %v449_v7  ;;  %v7182_v56 = vld [vmem:[%s12201_s4 + $0x160] sm:$0xff] }
  0xba   : > { %v344_v19 = vpop.permute.xlu0 %343  ;;  %v8070_v21 = vpop.eup %8069  ;;  %8089 = vtanh.f32 %v652_v62  ;;  %1085 = vmatprep.subr.bf16.mxu0 %v807_v9  ;;  %v809_v23 = vpack.c.bf16 %v8060_v52, %v8068_v14  ;;  %2166 = vperm.xlu1 %7766, %v7179_v5   ;;  %v458_v28 = vmul.f32 %v10005_v10, %v349_v18  ;;  %v459_v29 = vmul.f32 %v10007_v11, %v349_v18 }
  0xbb   : > { %v8072_v24 = vpop.eup %8071  ;;  %8091 = vtanh.f32 %v653_v4  ;;  %1086 = vmatpush1.bf16.msra.mxu0 %v806_v16  ;;  %v460_v30 = vmul.f32 %v10009_v12, %v349_v18  ;;  %v461_v32 = vmul.f32 %v10011_v13, %v349_v18  ;;  %v454_v33 = vmul.f32 %v10005_v10, %v344_v19 }
  0xbc   : > { %v8074_v27 = vpop.eup %8073  ;;  %8093 = vtanh.f32 %v646_v8  ;;  %1218 = vmatprep.subr.bf16.mxu1 %v809_v23  ;;  %2161 = vperm.xlu0 %7765, %v7178_v20   ;;  %v455_v42 = vmul.f32 %v10007_v11, %v344_v19  ;;  %v456_v43 = vmul.f32 %v10009_v12, %v344_v19  ;;  %v457_v47 = vmul.f32 %v10011_v13, %v344_v19 }
  0xbd   : > { %v8076_v31 = vpop.eup %8075  ;;  %8095 = vtanh.f32 %v647_v15  ;;  %1219 = vmatpush1.bf16.msra.mxu1 %v808_v17  ;;  %v570_v34 = vpop.permute.xlu1 %569  ;;  %v7184_v15 = vld [vmem:[%s12201_s4 + $0x170] sm:$0xff] }
  0xbe   : > { %v565_v35 = vpop.permute.xlu0 %564  ;;  %v8078_v37 = vpop.eup %8077  ;;  %8097 = vtanh.f32 %v648_v22  ;;  %v658_v38 = vadd.f32 %v570_v34, %v458_v28  ;;  %v659_v39 = vadd.f32 %v570_v34, %v459_v29  ;;  %v660_v40 = vadd.f32 %v570_v34, %v460_v30  ;;  %2176 = vperm.xlu1 %7766, %v7181_v26  }
  0xbf   : > { %v8080_v41 = vpop.eup %8079  ;;  %8099 = vtanh.f32 %v649_v25  ;;  %v661_v44 = vadd.f32 %v570_v34, %v461_v32  ;;  %v654_v48 = vadd.f32 %v565_v35, %v454_v33  ;;  %v655_v51 = vadd.f32 %v565_v35, %v455_v42 }
  0xc0   : > { %v8082_v46 = vpop.eup %8081  ;;  %8101 = vtanh.f32 %v658_v38  ;;  %v811_v49 = vpack.c.bf16 %v8072_v24, %v8080_v41  ;;  %2171 = vperm.xlu0 %7765, %v7180_v36   ;;  %v810_v52 = vpack.c.bf16 %v8070_v21, %v8078_v37  ;;  %v656_v58 = vadd.f32 %v565_v35, %v456_v43  ;;  %v7187_v24 = vld [vmem:[%s12201_s4 + $0x188] sm:$0xff]  ;;  %v7189_v41 = vld [vmem:[%s12201_s4 + $0x198] sm:$0xff] }
  0xc1   : > { %v8084_v50 = vpop.eup %8083  ;;  %8103 = vtanh.f32 %v659_v39  ;;  %v812_v53 = vpack.c.bf16 %v8074_v27, %v8082_v46  ;;  %v359_v54 = vpop.permute.xlu1 %358  ;;  %v657_v62 = vadd.f32 %v565_v35, %v457_v47  ;;  %v7186_v35 = vld [vmem:[%s12201_s4 + $0x180] sm:$0xff] }
  0xc2   : > { %v354_v55 = vpop.permute.xlu0 %353  ;;  %v8086_v57 = vpop.eup %8085  ;;  %8105 = vtanh.f32 %v660_v40  ;;  %1087 = vmatprep.subr.bf16.mxu0 %v811_v49  ;;  %v813_v59 = vpack.c.bf16 %v8076_v31, %v8084_v50  ;;  %2186 = vperm.xlu1 %7766, %v7183_v45   ;;  %v466_v2 = vmul.f32 %v10005_v10, %v359_v54  ;;  %v467_v4 = vmul.f32 %v10007_v11, %v359_v54 }
  0xc3   : > { %v8088_v60 = vpop.eup %8087  ;;  %8107 = vtanh.f32 %v661_v44  ;;  %1088 = vmatpush1.bf16.msra.mxu0 %v810_v52  ;;  %v468_v5 = vmul.f32 %v10009_v12, %v359_v54  ;;  %v469_v7 = vmul.f32 %v10011_v13, %v359_v54  ;;  %v462_v8 = vmul.f32 %v10005_v10, %v354_v55 }
  0xc4   : > { %v8090_v1 = vpop.eup %8089  ;;  %8109 = vtanh.f32 %v654_v48  ;;  %1220 = vmatprep.subr.bf16.mxu1 %v813_v59  ;;  %2181 = vperm.xlu0 %7765, %v7182_v56   ;;  %v463_v21 = vmul.f32 %v10007_v11, %v354_v55  ;;  %v464_v22 = vmul.f32 %v10009_v12, %v354_v55  ;;  %v465_v26 = vmul.f32 %v10011_v13, %v354_v55 }
  0xc5   : > { %v8092_v6 = vpop.eup %8091  ;;  %8111 = vtanh.f32 %v655_v51  ;;  %1221 = vmatpush1.bf16.msra.mxu1 %v812_v53  ;;  %v580_v9 = vpop.permute.xlu1 %579  ;;  %v7188_v51 = vld [vmem:[%s12201_s4 + $0x190] sm:$0xff] }
  0xc6   : > { %v575_v14 = vpop.permute.xlu0 %574  ;;  %v8094_v16 = vpop.eup %8093  ;;  %8113 = vtanh.f32 %v656_v58  ;;  %v666_v17 = vadd.f32 %v580_v9, %v466_v2  ;;  %v667_v18 = vadd.f32 %v580_v9, %v467_v4  ;;  %v668_v19 = vadd.f32 %v580_v9, %v468_v5  ;;  %2196 = vperm.xlu1 %7766, %v7185_v63  }
  0xc7   : > { %v8096_v20 = vpop.eup %8095  ;;  %8115 = vtanh.f32 %v657_v62  ;;  %v669_v23 = vadd.f32 %v580_v9, %v469_v7  ;;  %v662_v27 = vadd.f32 %v575_v14, %v462_v8  ;;  %v663_v30 = vadd.f32 %v575_v14, %v463_v21 }
  0xc8   : > { %v8098_v25 = vpop.eup %8097  ;;  %8117 = vtanh.f32 %v666_v17  ;;  %v815_v28 = vpack.c.bf16 %v8088_v60, %v8096_v20  ;;  %2191 = vperm.xlu0 %7765, %v7184_v15   ;;  %v814_v31 = vpack.c.bf16 %v8086_v57, %v8094_v16  ;;  %v664_v37 = vadd.f32 %v575_v14, %v464_v22  ;;  %v7191_v60 = vld [vmem:[%s12201_s4 + $0x1a8] sm:$0xff]  ;;  %v7193_v20 = vld [vmem:[%s12201_s4 + $0x1b8] sm:$0xff] }
  0xc9   : > { %v8100_v29 = vpop.eup %8099  ;;  %8119 = vtanh.f32 %v667_v18  ;;  %v816_v32 = vpack.c.bf16 %v8090_v1, %v8098_v25  ;;  %v369_v33 = vpop.permute.xlu1 %368  ;;  %v665_v40 = vadd.f32 %v575_v14, %v465_v26  ;;  %v7190_v14 = vld [vmem:[%s12201_s4 + $0x1a0] sm:$0xff] }
  0xca   : > { %v364_v34 = vpop.permute.xlu0 %363  ;;  %v8102_v36 = vpop.eup %8101  ;;  %8121 = vtanh.f32 %v668_v19  ;;  %1089 = vmatprep.subr.bf16.mxu0 %v815_v28  ;;  %v817_v38 = vpack.c.bf16 %v8092_v6, %v8100_v29  ;;  %2206 = vperm.xlu1 %7766, %v7187_v24   ;;  %v474_v43 = vmul.f32 %v10005_v10, %v369_v33  ;;  %v475_v44 = vmul.f32 %v10007_v11, %v369_v33 }
  0xcb   : > { %v8104_v39 = vpop.eup %8103  ;;  %8123 = vtanh.f32 %v669_v23  ;;  %1090 = vmatpush1.bf16.msra.mxu0 %v814_v31  ;;  %v476_v45 = vmul.f32 %v10009_v12, %v369_v33  ;;  %v477_v47 = vmul.f32 %v10011_v13, %v369_v33  ;;  %v470_v48 = vmul.f32 %v10005_v10, %v364_v34 }
  0xcc   : > { %v8106_v42 = vpop.eup %8105  ;;  %8125 = vtanh.f32 %v662_v27  ;;  %1222 = vmatprep.subr.bf16.mxu1 %v817_v38  ;;  %2201 = vperm.xlu0 %7765, %v7186_v35   ;;  %v471_v57 = vmul.f32 %v10007_v11, %v364_v34  ;;  %v472_v58 = vmul.f32 %v10009_v12, %v364_v34  ;;  %v473_v63 = vmul.f32 %v10011_v13, %v364_v34 }
  0xcd   : > { %v8108_v46 = vpop.eup %8107  ;;  %8127 = vtanh.f32 %v663_v30  ;;  %1223 = vmatpush1.bf16.msra.mxu1 %v816_v32  ;;  %v590_v49 = vpop.permute.xlu1 %589  ;;  %v7192_v30 = vld [vmem:[%s12201_s4 + $0x1b0] sm:$0xff] }
  0xce   : > { %v585_v50 = vpop.permute.xlu0 %584  ;;  %v8110_v52 = vpop.eup %8109  ;;  %8129 = vtanh.f32 %v664_v37  ;;  %v674_v53 = vadd.f32 %v590_v49, %v474_v43  ;;  %v675_v54 = vadd.f32 %v590_v49, %v475_v44  ;;  %v676_v55 = vadd.f32 %v590_v49, %v476_v45  ;;  %2216 = vperm.xlu1 %7766, %v7189_v41  }
  0xcf   : > { %v8112_v56 = vpop.eup %8111  ;;  %8131 = vtanh.f32 %v665_v40  ;;  %v677_v59 = vadd.f32 %v590_v49, %v477_v47  ;;  %v670_v1 = vadd.f32 %v585_v50, %v470_v48  ;;  %v671_v5 = vadd.f32 %v585_v50, %v471_v57 }
  0xd0   : > { %v8114_v62 = vpop.eup %8113  ;;  %8133 = vtanh.f32 %v674_v53  ;;  %v819_v2 = vpack.c.bf16 %v8104_v39, %v8112_v56  ;;  %2211 = vperm.xlu0 %7765, %v7188_v51   ;;  %v818_v6 = vpack.c.bf16 %v8102_v36, %v8110_v52  ;;  %v672_v16 = vadd.f32 %v585_v50, %v472_v58  ;;  %v7195_v39 = vld [vmem:[%s12201_s4 + $0x1c8] sm:$0xff]  ;;  %v7197_v56 = vld [vmem:[%s12201_s4 + $0x1d8] sm:$0xff] }
  0xd1   : > { %v8116_v4 = vpop.eup %8115  ;;  %8135 = vtanh.f32 %v675_v54  ;;  %v820_v7 = vpack.c.bf16 %v8106_v42, %v8114_v62  ;;  %v379_v8 = vpop.permute.xlu1 %378  ;;  %v673_v19 = vadd.f32 %v585_v50, %v473_v63  ;;  %v7194_v50 = vld [vmem:[%s12201_s4 + $0x1c0] sm:$0xff] }
  0xd2   : > { %v374_v9 = vpop.permute.xlu0 %373  ;;  %v8118_v15 = vpop.eup %8117  ;;  %8137 = vtanh.f32 %v676_v55  ;;  %1091 = vmatprep.subr.bf16.mxu0 %v819_v2  ;;  %v821_v17 = vpack.c.bf16 %v8108_v46, %v8116_v4  ;;  %2226 = vperm.xlu1 %7766, %v7191_v60   ;;  %v482_v22 = vmul.f32 %v10005_v10, %v379_v8  ;;  %v483_v23 = vmul.f32 %v10007_v11, %v379_v8 }
  0xd3   : > { %v8120_v18 = vpop.eup %8119  ;;  %8139 = vtanh.f32 %v677_v59  ;;  %1092 = vmatpush1.bf16.msra.mxu0 %v818_v6  ;;  %v484_v24 = vmul.f32 %v10009_v12, %v379_v8  ;;  %v485_v26 = vmul.f32 %v10011_v13, %v379_v8  ;;  %v478_v27 = vmul.f32 %v10005_v10, %v374_v9 }
  0xd4   : > { %v8122_v21 = vpop.eup %8121  ;;  %8141 = vtanh.f32 %v670_v1  ;;  %1224 = vmatprep.subr.bf16.mxu1 %v821_v17  ;;  %2221 = vperm.xlu0 %7765, %v7190_v14   ;;  %v479_v36 = vmul.f32 %v10007_v11, %v374_v9  ;;  %v480_v37 = vmul.f32 %v10009_v12, %v374_v9  ;;  %v481_v41 = vmul.f32 %v10011_v13, %v374_v9 }
  0xd5   : > { %v8124_v25 = vpop.eup %8123  ;;  %8143 = vtanh.f32 %v671_v5  ;;  %1225 = vmatpush1.bf16.msra.mxu1 %v820_v7  ;;  %v600_v28 = vpop.permute.xlu1 %599  ;;  %v7196_v5 = vld [vmem:[%s12201_s4 + $0x1d0] sm:$0xff] }
  0xd6   : > { %v595_v29 = vpop.permute.xlu0 %594  ;;  %v8126_v31 = vpop.eup %8125  ;;  %8145 = vtanh.f32 %v672_v16  ;;  %v682_v32 = vadd.f32 %v600_v28, %v482_v22  ;;  %v683_v33 = vadd.f32 %v600_v28, %v483_v23  ;;  %v684_v34 = vadd.f32 %v600_v28, %v484_v24  ;;  %2236 = vperm.xlu1 %7766, %v7193_v20  }
  0xd7   : > { %v8128_v35 = vpop.eup %8127  ;;  %8147 = vtanh.f32 %v673_v19  ;;  %v685_v38 = vadd.f32 %v600_v28, %v485_v26  ;;  %v678_v42 = vadd.f32 %v595_v29, %v478_v27  ;;  %v679_v45 = vadd.f32 %v595_v29, %v479_v36 }
  0xd8   : > { %v8130_v40 = vpop.eup %8129  ;;  %8149 = vtanh.f32 %v682_v32  ;;  %v823_v43 = vpack.c.bf16 %v8120_v18, %v8128_v35  ;;  %2231 = vperm.xlu0 %7765, %v7192_v30   ;;  %v822_v46 = vpack.c.bf16 %v8118_v15, %v8126_v31  ;;  %v680_v52 = vadd.f32 %v595_v29, %v480_v37  ;;  %v7259_v18 = vld [vmem:[%s12201_s4 + $0x1e8] sm:$0xff]  ;;  %v7261_v35 = vld [vmem:[%s12201_s4 + $0x1f8] sm:$0xff] }
  0xd9   : > { %v8132_v44 = vpop.eup %8131  ;;  %8151 = vtanh.f32 %v683_v33  ;;  %v824_v47 = vpack.c.bf16 %v8122_v21, %v8130_v40  ;;  %v389_v48 = vpop.permute.xlu1 %388  ;;  %v681_v55 = vadd.f32 %v595_v29, %v481_v41  ;;  %v7258_v29 = vld [vmem:[%s12201_s4 + $0x1e0] sm:$0xff] }
  0xda   : > { %v384_v49 = vpop.permute.xlu0 %383  ;;  %v8134_v51 = vpop.eup %8133  ;;  %8153 = vtanh.f32 %v684_v34  ;;  %1093 = vmatprep.subr.bf16.mxu0 %v823_v43  ;;  %v825_v53 = vpack.c.bf16 %v8124_v25, %v8132_v44  ;;  %2246 = vperm.xlu1 %7766, %v7195_v39   ;;  %v490_v58 = vmul.f32 %v10005_v10, %v389_v48  ;;  %v491_v59 = vmul.f32 %v10007_v11, %v389_v48 }
  0xdb   : > { %v8136_v54 = vpop.eup %8135  ;;  %8155 = vtanh.f32 %v685_v38  ;;  %1094 = vmatpush1.bf16.msra.mxu0 %v822_v46  ;;  %v492_v60 = vmul.f32 %v10009_v12, %v389_v48  ;;  %v493_v63 = vmul.f32 %v10011_v13, %v389_v48  ;;  %v486_v1 = vmul.f32 %v10005_v10, %v384_v49 }
  0xdc   : > { %v8138_v57 = vpop.eup %8137  ;;  %8157 = vtanh.f32 %v678_v42  ;;  %1226 = vmatprep.subr.bf16.mxu1 %v825_v53  ;;  %2241 = vperm.xlu0 %7765, %v7194_v50   ;;  %v487_v15 = vmul.f32 %v10007_v11, %v384_v49  ;;  %v488_v16 = vmul.f32 %v10009_v12, %v384_v49  ;;  %v489_v20 = vmul.f32 %v10011_v13, %v384_v49 }
  0xdd   : > { %v8140_v62 = vpop.eup %8139  ;;  %8159 = vtanh.f32 %v679_v45  ;;  %1227 = vmatpush1.bf16.msra.mxu1 %v824_v47  ;;  %v610_v2 = vpop.permute.xlu1 %609  ;;  %v7260_v45 = vld [vmem:[%s12201_s4 + $0x1f0] sm:$0xff] }
  0xde   : > { %v605_v4 = vpop.permute.xlu0 %604  ;;  %v8142_v6 = vpop.eup %8141  ;;  %8161 = vtanh.f32 %v680_v52  ;;  %v690_v7 = vadd.f32 %v610_v2, %v490_v58  ;;  %v691_v8 = vadd.f32 %v610_v2, %v491_v59  ;;  %v692_v9 = vadd.f32 %v610_v2, %v492_v60  ;;  %2256 = vperm.xlu1 %7766, %v7197_v56  }
  0xdf   : > { %v8144_v14 = vpop.eup %8143  ;;  %8163 = vtanh.f32 %v681_v55  ;;  %v693_v17 = vadd.f32 %v610_v2, %v493_v63  ;;  %v686_v21 = vadd.f32 %v605_v4, %v486_v1  ;;  %v687_v24 = vadd.f32 %v605_v4, %v487_v15  ;;  %v7262_v63 = vld [vmem:[%s12201_s4 + $0x200] sm:$0xff]  ;;  %v7264_v15 = vld [vmem:[%s12201_s4 + $0x210] sm:$0xff] }
  0xe0   : > { %v8146_v19 = vpop.eup %8145  ;;  %8165 = vtanh.f32 %v690_v7  ;;  %v827_v22 = vpack.c.bf16 %v8136_v54, %v8144_v14  ;;  %2251 = vperm.xlu0 %7765, %v7196_v5   ;;  %v826_v25 = vpack.c.bf16 %v8134_v51, %v8142_v6  ;;  %v688_v31 = vadd.f32 %v605_v4, %v488_v16  ;;  %v7265_v6 = vld [vmem:[%s12201_s4 + $0x218] sm:$0xff] }
  0xe1   : > { %v8148_v23 = vpop.eup %8147  ;;  %8167 = vtanh.f32 %v691_v8  ;;  %v828_v26 = vpack.c.bf16 %v8138_v57, %v8146_v19  ;;  %v399_v27 = vpop.permute.xlu1 %398  ;;  %v689_v34 = vadd.f32 %v605_v4, %v489_v20  ;;  %v7267_v19 = vld [vmem:[%s12201_s4 + $0x228] sm:$0xff] }
  0xe2   : > { %v394_v28 = vpop.permute.xlu0 %393  ;;  %v8150_v30 = vpop.eup %8149  ;;  %8169 = vtanh.f32 %v692_v9  ;;  %1095 = vmatprep.subr.bf16.mxu0 %v827_v22  ;;  %v829_v32 = vpack.c.bf16 %v8140_v62, %v8148_v23  ;;  %2814 = vperm.xlu1 %7766, %v7259_v18   ;;  %v498_v37 = vmul.f32 %v10005_v10, %v399_v27  ;;  %v499_v38 = vmul.f32 %v10007_v11, %v399_v27 }
  0xe3   : > { %v8152_v33 = vpop.eup %8151  ;;  %8171 = vtanh.f32 %v693_v17  ;;  %1096 = vmatpush1.bf16.msra.mxu0 %v826_v25  ;;  %v500_v39 = vmul.f32 %v10009_v12, %v399_v27  ;;  %v501_v41 = vmul.f32 %v10011_v13, %v399_v27  ;;  %v494_v42 = vmul.f32 %v10005_v10, %v394_v28  ;;  %v7263_v10 = vld [vmem:[%s12201_s4 + $0x208] sm:$0xff] }
  0xe4   : > { %v8154_v36 = vpop.eup %8153  ;;  %8173 = vtanh.f32 %v686_v21  ;;  %1228 = vmatprep.subr.bf16.mxu1 %v829_v32  ;;  %2809 = vperm.xlu0 %7765, %v7258_v29   ;;  %v495_v51 = vmul.f32 %v10007_v11, %v394_v28  ;;  %v496_v52 = vmul.f32 %v10009_v12, %v394_v28  ;;  %v497_v55 = vmul.f32 %v10011_v13, %v394_v28 }
  0xe5   : > { %v8156_v40 = vpop.eup %8155  ;;  %8175 = vtanh.f32 %v687_v24  ;;  %1229 = vmatpush1.bf16.msra.mxu1 %v828_v26  ;;  %v620_v43 = vpop.permute.xlu1 %619  ;;  %v7266_v26 = vld [vmem:[%s12201_s4 + $0x220] sm:$0xff] }
  0xe6   : > { %v615_v44 = vpop.permute.xlu0 %614  ;;  %v8158_v46 = vpop.eup %8157  ;;  %8177 = vtanh.f32 %v688_v31  ;;  %v698_v47 = vadd.f32 %v620_v43, %v498_v37  ;;  %v699_v48 = vadd.f32 %v620_v43, %v499_v38  ;;  %v700_v49 = vadd.f32 %v620_v43, %v500_v39  ;;  %2824 = vperm.xlu1 %7766, %v7261_v35   ;;  %v7268_v35 = vld [vmem:[%s12201_s4 + $0x230] sm:$0xff]  ;;  %v7271_v39 = vld [vmem:[%s12201_s4 + $0x248] sm:$0xff] }
  0xe7   : > { %v8160_v50 = vpop.eup %8159  ;;  %8179 = vtanh.f32 %v689_v34  ;;  %v701_v53 = vadd.f32 %v620_v43, %v501_v41  ;;  %v694_v56 = vadd.f32 %v615_v44, %v494_v42  ;;  %v695_v59 = vadd.f32 %v615_v44, %v495_v51 }
  0xe8   : > { %v8162_v54 = vpop.eup %8161  ;;  %8181 = vtanh.f32 %v698_v47  ;;  %v831_v57 = vpack.c.bf16 %v8152_v33, %v8160_v50  ;;  %2819 = vperm.xlu0 %7765, %v7260_v45   ;;  %v830_v60 = vpack.c.bf16 %v8150_v30, %v8158_v46  ;;  %v696_v13 = vadd.f32 %v615_v44, %v496_v52  ;;  %v7269_v30 = vld [vmem:[%s12201_s4 + $0x238] sm:$0xff]  ;;  %v7270_v46 = vld [vmem:[%s12201_s4 + $0x240] sm:$0xff] }
  0xe9   : > { %v8164_v58 = vpop.eup %8163  ;;  %8183 = vtanh.f32 %v699_v48  ;;  %v832_v62 = vpack.c.bf16 %v8154_v36, %v8162_v54  ;;  %v10222_v11 = vpop.permute.xlu1 %869  ;;  %v697_v5 = vadd.f32 %v615_v44, %v497_v55  ;;  %v7767_v48 = vld [vmem:[%s12200_s3] ss:$8 sps:$4 sm:$0xff]   ;;  %v7770_v50 = vld [vmem:[%s12200_s3 + $0x14] ss:$8 sps:$4 sm:$0xff]  }
  0xea   : > { %v10224_v12 = vpop.permute.xlu0 %864  ;;  %v8166_v1 = vpop.eup %8165  ;;  %8185 = vtanh.f32 %v700_v49  ;;  %1097 = vmatprep.subr.bf16.mxu0 %v831_v57  ;;  %v833_v2 = vpack.c.bf16 %v8156_v40, %v8164_v58  ;;  %2834 = vperm.xlu1 %7766, %v7263_v10   ;;  %v7273_v49 = vld [vmem:[%s12201_s4 + $0x258] sm:$0xff]  ;;  %v7275_v10 = vld [vmem:[%s12201_s4 + $0x268] sm:$0xff] }
  0xeb   : > { %v8168_v4 = vpop.eup %8167  ;;  %8187 = vtanh.f32 %v701_v53  ;;  %1098 = vmatpush1.bf16.msra.mxu0 %v830_v60  ;;  %v7272_v53 = vld [vmem:[%s12201_s4 + $0x250] sm:$0xff]  ;;  %v7277_v58 = vld [vmem:[%s12201_s4 + $0x278] sm:$0xff] }
  0xec   : > { %v8170_v7 = vpop.eup %8169  ;;  %8189 = vtanh.f32 %v694_v56  ;;  %1230 = vmatprep.subr.bf16.mxu1 %v833_v2  ;;  %2829 = vperm.xlu0 %7765, %v7262_v63   ;;  %v7274_v56 = vld [vmem:[%s12201_s4 + $0x260] sm:$0xff]  ;;  %v7772_v57 = vld [vmem:[%s12200_s3 + $0x10] ss:$8 sps:$4 sm:$0xff]  }
  0xed   : > { %v8172_v8 = vpop.eup %8171  ;;  %8191 = vtanh.f32 %v695_v59  ;;  %1231 = vmatpush1.bf16.msra.mxu1 %v832_v62  ;;  %v10232_v9 = vpop.permute.xlu1 %879  ;;  %v7773_v59 = vld [vmem:[%s12200_s3 + $0x24] ss:$8 sps:$4 sm:$0xff]   ;;  %v7276_v63 = vld [vmem:[%s12201_s4 + $0x270] sm:$0xff] }
  0xee   : > { %v10234_v14 = vpop.permute.xlu0 %874  ;;  %v8174_v16 = vpop.eup %8173  ;;  %8193 = vtanh.f32 %v696_v13  ;;  %2844 = vperm.xlu1 %7766, %v7265_v6   ;;  %v7341_v6 = vld [vmem:[%s12201_s4 + $0x298] sm:$0xff] }
  0xef   : > { %v8176_v17 = vpop.eup %8175  ;;  %8195 = vtanh.f32 %v697_v5  ;;  %v834_v18 = vpack.c.bf16 %v8166_v1, %v8174_v16  ;;  %v7339_v1 = vld [vmem:[%s12201_s4 + $0x288] sm:$0xff]  ;;  %v7340_v16 = vld [vmem:[%s12201_s4 + $0x290] sm:$0xff] }
  0xf0   : > { %v8178_v20 = vpop.eup %8177  ;;  %v835_v21 = vpack.c.bf16 %v8168_v4, %v8176_v17  ;;  %2839 = vperm.xlu0 %7765, %v7264_v15   ;;  %v7338_v4 = vld [vmem:[%s12201_s4 + $0x280] sm:$0xff]  ;;  %v7343_v17 = vld [vmem:[%s12201_s4 + $0x2a8] sm:$0xff] }
  0xf1   : > { %v8180_v22 = vpop.eup %8179  ;;  %v836_v23 = vpack.c.bf16 %v8170_v7, %v8178_v20  ;;  %v10242_v24 = vpop.permute.xlu1 %889  ;;  %v7775_v5 = vld [vmem:[%s12200_s3 + $0x20] ss:$8 sps:$4 sm:$0xff]   ;;  %v7776_v7 = vld [vmem:[%s12200_s3 + $0x34] ss:$8 sps:$4 sm:$0xff]  }
  0xf2   : > { %v10244_v25 = vpop.permute.xlu0 %884  ;;  %v8182_v27 = vpop.eup %8181  ;;  %1099 = vmatprep.subr.bf16.mxu0 %v835_v21  ;;  %v837_v28 = vpack.c.bf16 %v8172_v8, %v8180_v22  ;;  %2854 = vperm.xlu1 %7766, %v7267_v19   ;;  %v7342_v20 = vld [vmem:[%s12201_s4 + $0x2a0] sm:$0xff]  ;;  %v7778_v21 = vld [vmem:[%s12200_s3 + $0x30] ss:$8 sps:$4 sm:$0xff]  }
  0xf3   : > { %v8184_v29 = vpop.eup %8183  ;;  %1100 = vmatpush1.bf16.msra.mxu0 %v834_v18  ;;  %v7345_v22 = vld [vmem:[%s12201_s4 + $0x2b8] sm:$0xff] }
  0xf4   : > { %v8186_v31 = vpop.eup %8185  ;;  %1232 = vmatprep.subr.bf16.mxu1 %v837_v28  ;;  %2849 = vperm.xlu0 %7765, %v7266_v26   ;;  %v7344_v28 = vld [vmem:[%s12201_s4 + $0x2b0] sm:$0xff] }
  0xf5   : > { %v8188_v32 = vpop.eup %8187  ;;  %1233 = vmatpush1.bf16.msra.mxu1 %v836_v23  ;;  %v10252_v33 = vpop.permute.xlu1 %899  ;;  %v7779_v23 = vld [vmem:[%s12200_s3 + $0x44] ss:$8 sps:$4 sm:$0xff]  }
  0xf6   : > { %v10254_v34 = vpop.permute.xlu0 %894  ;;  %v8190_v36 = vpop.eup %8189  ;;  %2864 = vperm.xlu1 %7766, %v7269_v30  }
  0xf7   : > { %v8192_v37 = vpop.eup %8191  ;;  %v838_v38 = vpack.c.bf16 %v8182_v27, %v8190_v36  ;;  %v7349_v36 = vld [vmem:[%s12201_s4 + $0x2d8] sm:$0xff] }
  0xf8   : > { %v8194_v40 = vpop.eup %8193  ;;  %v839_v41 = vpack.c.bf16 %v8184_v29, %v8192_v37  ;;  %2859 = vperm.xlu0 %7765, %v7268_v35   ;;  %v7347_v29 = vld [vmem:[%s12201_s4 + $0x2c8] sm:$0xff]  ;;  %v7782_v37 = vld [vmem:[%s12200_s3 + $0x54] ss:$8 sps:$4 sm:$0xff]  }
  0xf9   : > { %v8196_v42 = vpop.eup %8195  ;;  %v840_v43 = vpack.c.bf16 %v8186_v31, %v8194_v40  ;;  %v10262_v44 = vpop.permute.xlu1 %909  ;;  %v7346_v31 = vld [vmem:[%s12201_s4 + $0x2c0] sm:$0xff] }
  0xfa   : > { %v10264_v45 = vpop.permute.xlu0 %904  ;;  %1101 = vmatprep.subr.bf16.mxu0 %v839_v41  ;;  %v841_v47 = vpack.c.bf16 %v8188_v32, %v8196_v42  ;;  %2874 = vperm.xlu1 %7766, %v7271_v39   ;;  %v7781_v35 = vld [vmem:[%s12200_s3 + $0x40] ss:$8 sps:$4 sm:$0xff]   ;;  %v7348_v39 = vld [vmem:[%s12201_s4 + $0x2d0] sm:$0xff] }
  0xfb   : > { %1102 = vmatpush1.bf16.msra.mxu0 %v838_v38  ;;  %v7351_v41 = vld [vmem:[%s12201_s4 + $0x2e8] sm:$0xff] }
  0xfc   : > { %1234 = vmatprep.subr.bf16.mxu1 %v841_v47  ;;  %2869 = vperm.xlu0 %7765, %v7270_v46   ;;  %v7784_v47 = vld [vmem:[%s12200_s3 + $0x50] ss:$8 sps:$4 sm:$0xff]  }
  0xfd   : > { %1235 = vmatpush1.bf16.msra.mxu1 %v840_v43  ;;  %v10278_v51 = vpop.permute.xlu1 %919  ;;  %v7350_v43 = vld [vmem:[%s12201_s4 + $0x2e0] sm:$0xff] }
  0xfe   : > { %v10280_v52 = vpop.permute.xlu0 %914  ;;  %1116 = vmatmul.mubr.bf16.vlgmr.msra.gmra.mrb[0].mxu0 %v7767_v48  ;;  %2884 = vperm.xlu1 %7766, %v7273_v49   ;;  %v7785_v49 = vld [vmem:[%s12200_s3 + $0x64] ss:$8 sps:$4 sm:$0xff]  }
  0xff   : > { %7059 = vmatprep.mubr.msk.bf16.mxu0 %vm1052_vm0, %v7770_v50 }
 0x100   : > { %1249 = vmatmul.mubr.bf16.vlgmr.msra.gmra.mrb[0].mxu1 %v7767_v48  ;;  %2879 = vperm.xlu0 %7765, %v7272_v53   ;;  %v7353_v48 = vld [vmem:[%s12201_s4 + $0x2f8] sm:$0xff]  ;;  %v7352_v53 = vld [vmem:[%s12201_s4 + $0x2f0] sm:$0xff] }
 0x101   : > { %7069 = vmatprep.mubr.msk.bf16.mxu1 %vm1052_vm0, %v7770_v50  ;;  %v10290_v54 = vpop.permute.xlu1 %929 }
 0x102   : > { %v10292_v55 = vpop.permute.xlu0 %924  ;;  %2894 = vperm.xlu1 %7766, %v7275_v10  }
 0x104   : > { %2889 = vperm.xlu0 %7765, %v7274_v56   ;;  %v7355_v56 = vld [vmem:[%s12201_s4 + $0x308] sm:$0xff] }
 0x105   : > { %v10306_v60 = vpop.permute.xlu1 %939 }
 0x106   : > { %v10308_v62 = vpop.permute.xlu0 %934  ;;  %1126 = vmatmul.mubr.bf16.gmra.mrb[4].mxu0 %v7772_v57  ;;  %2904 = vperm.xlu1 %7766, %v7277_v58   ;;  %v7354_v58 = vld [vmem:[%s12201_s4 + $0x300] sm:$0xff] }
 0x107   : > { %7060 = vmatprep.mubr.msk.bf16.mxu0 %vm1052_vm0, %v7773_v59 }
 0x108   : > { %1259 = vmatmul.mubr.bf16.gmra.mrb[4].mxu1 %v7772_v57  ;;  %2899 = vperm.xlu0 %7765, %v7276_v63   ;;  %v7787_v63 = vld [vmem:[%s12200_s3 + $0x60] ss:$8 sps:$4 sm:$0xff]  }
 0x109   : > { %7070 = vmatprep.mubr.msk.bf16.mxu1 %vm1052_vm0, %v7773_v59  ;;  %v10318_v13 = vpop.permute.xlu1 %949 }
 0x10a   : > { %v10320_v2 = vpop.permute.xlu0 %944  ;;  %3462 = vperm.xlu1 %7766, %v7339_v1   ;;  %v7357_v1 = vld [vmem:[%s12201_s4 + $0x318] sm:$0xff] }
 0x10c   : > { %3457 = vperm.xlu0 %7765, %v7338_v4   ;;  %v7788_v4 = vld [vmem:[%s12200_s3 + $0x74] ss:$8 sps:$4 sm:$0xff]  }
 0x10d   : > { %v10334_v8 = vpop.permute.xlu1 %959 }
 0x10e   : > { %v10336_v15 = vpop.permute.xlu0 %954  ;;  %1136 = vmatmul.mubr.bf16.gmra.mrb[8].mxu0 %v7775_v5  ;;  %3472 = vperm.xlu1 %7766, %v7341_v6   ;;  %v7356_v6 = vld [vmem:[%s12201_s4 + $0x310] sm:$0xff] }
 0x10f   : > { %7061 = vmatprep.mubr.msk.bf16.mxu0 %vm1052_vm0, %v7776_v7 }
 0x110   : > { %1269 = vmatmul.mubr.bf16.gmra.mrb[8].mxu1 %v7775_v5  ;;  %3467 = vperm.xlu0 %7765, %v7340_v16   ;;  %v7419_v16 = vld [vmem:[%s12201_s4 + $0x328] sm:$0xff] }
 0x111   : > { %7071 = vmatprep.mubr.msk.bf16.mxu1 %vm1052_vm0, %v7776_v7  ;;  %v10346_v18 = vpop.permute.xlu1 %1518 }
 0x112   : > { %v10348_v19 = vpop.permute.xlu0 %1513  ;;  %3482 = vperm.xlu1 %7766, %v7343_v17  }
 0x114   : > { %3477 = vperm.xlu0 %7765, %v7342_v20   ;;  %v7418_v20 = vld [vmem:[%s12201_s4 + $0x320] sm:$0xff] }
 0x115   : > { %v10362_v26 = vpop.permute.xlu1 %1528 }
 0x116   : > { %v10364_v27 = vpop.permute.xlu0 %1523  ;;  %1146 = vmatmul.mubr.bf16.gmra.mrb[12].mxu0 %v7778_v21  ;;  %3492 = vperm.xlu1 %7766, %v7345_v22  }
 0x117   : > { %7062 = vmatprep.mubr.msk.bf16.mxu0 %vm1052_vm0, %v7779_v23 }
 0x118   : > { %1279 = vmatmul.mubr.bf16.gmra.mrb[12].mxu1 %v7778_v21  ;;  %3487 = vperm.xlu0 %7765, %v7344_v28   ;;  %v7790_v21 = vld [vmem:[%s12200_s3 + $0x70] ss:$8 sps:$4 sm:$0xff]   ;;  %v7791_v28 = vld [vmem:[%s12200_s3 + $0x84] ss:$8 sps:$4 sm:$0xff]  }
 0x119   : > { %7072 = vmatprep.mubr.msk.bf16.mxu1 %vm1052_vm0, %v7779_v23  ;;  %v10374_v30 = vpop.permute.xlu1 %1538  ;;  %v7421_v23 = vld [vmem:[%s12201_s4 + $0x338] sm:$0xff] }
 0x11a   : > { %v10379_v32 = vpop.permute.xlu0 %1533  ;;  %3502 = vperm.xlu1 %7766, %v7347_v29  }
 0x11c   : > { %3497 = vperm.xlu0 %7765, %v7346_v31   ;;  %v7420_v31 = vld [vmem:[%s12201_s4 + $0x330] sm:$0xff] }
 0x11d   : > { %v10390_v38 = vpop.permute.xlu1 %1548 }
 0x11e   : > { %1156 = vmatmul.mubr.bf16.gmra.mrb[16].mxu0 %v7781_v35  ;;  %v10395_v40 = vpop.permute.xlu0 %1543  ;;  %3512 = vperm.xlu1 %7766, %v7349_v36   ;;  %v7423_v36 = vld [vmem:[%s12201_s4 + $0x348] sm:$0xff] }
 0x11f   : > { %7063 = vmatprep.mubr.msk.bf16.mxu0 %vm1052_vm0, %v7782_v37 }
 0x120   : > { %1289 = vmatmul.mubr.bf16.gmra.mrb[16].mxu1 %v7781_v35  ;;  %3507 = vperm.xlu0 %7765, %v7348_v39   ;;  %v7793_v39 = vld [vmem:[%s12200_s3 + $0x80] ss:$8 sps:$4 sm:$0xff]  }
 0x121   : > { %7073 = vmatprep.mubr.msk.bf16.mxu1 %vm1052_vm0, %v7782_v37  ;;  %v10402_v42 = vpop.permute.xlu1 %1558  ;;  %v7422_v37 = vld [vmem:[%s12201_s4 + $0x340] sm:$0xff] }
 0x122   : > { %v10407_v46 = vpop.permute.xlu0 %1553  ;;  %3522 = vperm.xlu1 %7766, %v7351_v41  }
 0x124   : > { %3517 = vperm.xlu0 %7765, %v7350_v43   ;;  %v7425_v43 = vld [vmem:[%s12201_s4 + $0x358] sm:$0xff] }
 0x125   : > { %v10418_v50 = vpop.permute.xlu1 %1568 }
 0x126   : > { %1166 = vmatmul.mubr.bf16.gmra.mrb[20].mxu0 %v7784_v47  ;;  %v10423_v10 = vpop.permute.xlu0 %1563  ;;  %3532 = vperm.xlu1 %7766, %v7353_v48  }
 0x127   : > { %7064 = vmatprep.mubr.msk.bf16.mxu0 %vm1052_vm0, %v7785_v49 }
 0x128   : > { %1299 = vmatmul.mubr.bf16.gmra.mrb[20].mxu1 %v7784_v47  ;;  %3527 = vperm.xlu0 %7765, %v7352_v53   ;;  %v7794_v47 = vld [vmem:[%s12200_s3 + $0x94] ss:$8 sps:$4 sm:$0xff]   ;;  %v7427_v53 = vld [vmem:[%s12201_s4 + $0x368] sm:$0xff] }
 0x129   : > { %7074 = vmatprep.mubr.msk.bf16.mxu1 %vm1052_vm0, %v7785_v49  ;;  %v10430_v57 = vpop.permute.xlu1 %1578  ;;  %v7424_v49 = vld [vmem:[%s12201_s4 + $0x350] sm:$0xff] }
 0x12a   : > { %v10435_v59 = vpop.permute.xlu0 %1573  ;;  %3542 = vperm.xlu1 %7766, %v7355_v56  }
 0x12c   : > { %3537 = vperm.xlu0 %7765, %v7354_v58   ;;  %v7426_v58 = vld [vmem:[%s12201_s4 + $0x360] sm:$0xff] }
 0x12d   : > { %v10446_v5 = vpop.permute.xlu1 %1588 }
 0x12e   : > { %1176 = vmatmul.mubr.bf16.gmra.mrb[24].mxu0 %v7787_v63  ;;  %v10451_v7 = vpop.permute.xlu0 %1583  ;;  %3552 = vperm.xlu1 %7766, %v7357_v1   ;;  %v7796_v1 = vld [vmem:[%s12200_s3 + $0x90] ss:$8 sps:$4 sm:$0xff]  }
 0x12f   : > { %7065 = vmatprep.mubr.msk.bf16.mxu0 %vm1052_vm0, %v7788_v4 }
 0x130   : > { %1309 = vmatmul.mubr.bf16.gmra.mrb[24].mxu1 %v7787_v63  ;;  %3547 = vperm.xlu0 %7765, %v7356_v6   ;;  %v7428_v6 = vld [vmem:[%s12201_s4 + $0x370] sm:$0xff] }
 0x131   : > { %7075 = vmatprep.mubr.msk.bf16.mxu1 %vm1052_vm0, %v7788_v4  ;;  %v10458_v17 = vpop.permute.xlu1 %1598  ;;  %v7429_v4 = vld [vmem:[%s12201_s4 + $0x378] sm:$0xff] }
 0x132   : > { %4110 = vperm.xlu1 %7766, %v7419_v16  }
 0x133   : > { %v10466_v22 = vpop.permute.xlu0 %1593 }
 0x134   : > { %4105 = vperm.xlu0 %7765, %v7418_v20   ;;  %v7431_v20 = vld [vmem:[%s12201_s4 + $0x388] sm:$0xff] }
 0x135   : > { %v10474_v29 = vpop.permute.xlu1 %1608 }
 0x136   : > { %1186 = vmatmul.mubr.bf16.gmra.mrb[28].mxu0 %v7790_v21  ;;  %4120 = vperm.xlu1 %7766, %v7421_v23   ;;  %v7430_v23 = vld [vmem:[%s12201_s4 + $0x380] sm:$0xff] }
 0x137   : > { %v10479_v35 = vpop.permute.xlu0 %1603  ;;  %7066 = vmatprep.mubr.msk.bf16.mxu0 %vm1052_vm0, %v7791_v28 }
 0x138   : > { %1319 = vmatmul.mubr.bf16.gmra.mrb[28].mxu1 %v7790_v21  ;;  %4115 = vperm.xlu0 %7765, %v7420_v31  }
 0x139   : > { %7076 = vmatprep.mubr.msk.bf16.mxu1 %vm1052_vm0, %v7791_v28  ;;  %v10492_v41 = vpop.permute.xlu1 %2166  ;;  %v7433_v28 = vld [vmem:[%s12201_s4 + $0x398] sm:$0xff] }
 0x13a   : > { %4130 = vperm.xlu1 %7766, %v7423_v36   ;;  %v7432_v36 = vld [vmem:[%s12201_s4 + $0x390] sm:$0xff] }
 0x13b   : > { %v10500_v48 = vpop.permute.xlu0 %2161 }
 0x13c   : > { %4125 = vperm.xlu0 %7765, %v7422_v37  }
 0x13d   : > { %v10509_v56 = vpop.permute.xlu1 %2176 }
 0x13e   : > { %1196 = vmatmul.mubr.bf16.gmra.mrb[32].mxu0 %v7793_v39  ;;  %4140 = vperm.xlu1 %7766, %v7425_v43   ;;  %v7434_v43 = vld [vmem:[%s12201_s4 + $0x3a0] sm:$0xff] }
 0x13f   : > { %7067 = vmatprep.mubr.msk.bf16.mxu0 %vm1052_vm0, %v7794_v47  ;;  %v10515_v63 = vpop.permute.xlu0 %2171 }
 0x140   : > { %1329 = vmatmul.mubr.bf16.gmra.mrb[32].mxu1 %v7793_v39  ;;  %4135 = vperm.xlu0 %7765, %v7424_v49   ;;  %v7435_v39 = vld [vmem:[%s12201_s4 + $0x3a8] sm:$0xff]  ;;  %v7437_v49 = vld [vmem:[%s12201_s4 + $0x3b8] sm:$0xff] }
 0x141   : > { %7077 = vmatprep.mubr.msk.bf16.mxu1 %vm1052_vm0, %v7794_v47  ;;  %v10526_v16 = vpop.permute.xlu1 %2186 }
 0x142   : > { %4150 = vperm.xlu1 %7766, %v7427_v53   ;;  %12265 = vst [vmem:[#allocation7_spill] sm:$0xff] %v10526_v16 }
 0x143   : > { %v10531_v21 = vpop.permute.xlu0 %2181 }
 0x144   : > { %4145 = vperm.xlu0 %7765, %v7426_v58   ;;  %12266 = vst [vmem:[#allocation8_spill] sm:$0xff] %v10531_v21  ;;  %v7436_v58 = vld [vmem:[%s12201_s4 + $0x3b0] sm:$0xff] }
 0x145   : > { %v10539_v31 = vpop.permute.xlu1 %2196 }
 0x146   : > { %1206 = vmatmul.mubr.bf16.gmra.mrb[36].mxu0 %v7796_v1  ;;  %4160 = vperm.xlu1 %7766, %v7429_v4   ;;  %12267 = vst [vmem:[#allocation9_spill] sm:$0xff] %v10539_v31 }
 0x147   : > { %v10544_v37 = vpop.permute.xlu0 %2191 }
 0x148   : > { %1339 = vmatmul.mubr.bf16.gmra.mrb[36].mxu1 %v7796_v1  ;;  %4155 = vperm.xlu0 %7765, %v7428_v6   ;;  %12268 = vst [vmem:[#allocation10_spill] sm:$0xff] %v10544_v37  ;;  %v7499_v1 = vld [vmem:[%s12201_s4 + $0x3c8] sm:$0xff]  ;;  %v7498_v6 = vld [vmem:[%s12201_s4 + $0x3c0] sm:$0xff] }
 0x149   : > { %v10552_v47 = vpop.permute.xlu1 %2206 }
 0x14a   : > { %4170 = vperm.xlu1 %7766, %v7431_v20   ;;  %12269 = vst [vmem:[#allocation11_spill] sm:$0xff] %v10552_v47 }
 0x14b   : > { %v10557_v53 = vpop.permute.xlu0 %2201 }
 0x14c   : > { %4165 = vperm.xlu0 %7765, %v7430_v23   ;;  %12270 = vst [vmem:[#allocation12_spill] sm:$0xff] %v10557_v53  ;;  %v7501_v23 = vld [vmem:[%s12201_s4 + $0x3d8] sm:$0xff] }
 0x14d   : > { %v10565_v4 = vpop.permute.xlu1 %2216 }
 0x14e   : > { %4180 = vperm.xlu1 %7766, %v7433_v28   ;;  %12271 = vst [vmem:[#allocation13_spill] sm:$0xff] %v10565_v4  ;;  %v7500_v28 = vld [vmem:[%s12201_s4 + $0x3d0] sm:$0xff] }
 0x14f   : > { %v10570_v20 = vpop.permute.xlu0 %2211 }
 0x150   : > { %4175 = vperm.xlu0 %7765, %v7432_v36   ;;  %12272 = vst [vmem:[#allocation14_spill] sm:$0xff] %v10570_v20 }
 0x151   : > { %v10578_v36 = vpop.permute.xlu1 %2226 }
 0x152   : > { %4190 = vperm.xlu1 %7766, %v7435_v39   ;;  %12273 = vst [vmem:[#allocation15_spill] sm:$0xff] %v10578_v36  ;;  %v7503_v39 = vld [vmem:[%s12201_s4 + $0x3e8] sm:$0xff] }
 0x154   : > { %4185 = vperm.xlu0 %7765, %v7434_v43   ;;  %v10583_v43 = vpop.permute.xlu0 %2221 }
 0x155   : > { %12274 = vst [vmem:[#allocation16_spill] sm:$0xff] %v10583_v43 }
 0x156   : > { %4200 = vperm.xlu1 %7766, %v7437_v49   ;;  %v7502_v49 = vld [vmem:[%s12201_s4 + $0x3e0] sm:$0xff] }
 0x158   : > { %4195 = vperm.xlu0 %7765, %v7436_v58   ;;  %v7505_v58 = vld [vmem:[%s12201_s4 + $0x3f8] sm:$0xff] }
 0x15a   : > { %4758 = vperm.xlu1 %7766, %v7499_v1   ;;  %v10591_v1 = vpop.permute.xlu1 %2236 }
 0x15b   : > { %12275 = vst [vmem:[#allocation17_spill] sm:$0xff] %v10591_v1 }
 0x15c   : > { %4753 = vperm.xlu0 %7765, %v7498_v6   ;;  %v7504_v6 = vld [vmem:[%s12201_s4 + $0x3f0] sm:$0xff] }
 0x15e   : > { %4768 = vperm.xlu1 %7766, %v7501_v23   ;;  %v10596_v23 = vpop.permute.xlu0 %2231 }
 0x15f   : > { %12276 = vst [vmem:[#allocation18_spill] sm:$0xff] %v10596_v23 }
 0x160   : > { %4763 = vperm.xlu0 %7765, %v7500_v28   ;;  %v7507_v28 = vld [vmem:[%s12201_s4 + $0x408] sm:$0xff] }
 0x162   : > { %4778 = vperm.xlu1 %7766, %v7503_v39   ;;  %v7506_v39 = vld [vmem:[%s12201_s4 + $0x400] sm:$0xff]  ;;  %v10609_v3 = vpop.permute.xlu0 %2241 }
 0x163   : > { %12278 = vst [vmem:[#allocation20_spill] sm:$0xff] %v10609_v3 }
 0x164   : > { %4773 = vperm.xlu0 %7765, %v7502_v49   ;;  %v10604_v49 = vpop.permute.xlu1 %2246 }
 0x165   : > { %12277 = vst [vmem:[#allocation19_spill] sm:$0xff] %v10604_v49 }
 0x166   : > { %4788 = vperm.xlu1 %7766, %v7505_v58   ;;  %v7508_v58 = vld [vmem:[%s12201_s4 + $0x410] sm:$0xff]  ;;  %v10622_v49 = vpop.permute.xlu0 %2251 }
 0x167   : > { %12280 = vst [vmem:[#allocation22_spill] sm:$0xff] %v10622_v49 }
 0x168   : > { %4783 = vperm.xlu0 %7765, %v7504_v6   ;;  %v7511_v6 = vld [vmem:[%s12201_s4 + $0x428] sm:$0xff] }
 0x16a   : > { %4798 = vperm.xlu1 %7766, %v7507_v28   ;;  %v10617_v28 = vpop.permute.xlu1 %2256  ;;  %v10635_v3 = vpop.permute.xlu0 %2809 }
 0x16b   : > { %12279 = vst [vmem:[#allocation21_spill] sm:$0xff] %v10617_v28  ;;  %v7515_v28 = vld [vmem:[%s12201_s4 + $0x448] sm:$0xff]  ;;  %12282 = vst [vmem:[#allocation24_spill] sm:$0xff] %v10635_v3 }
 0x16c   : > { %4793 = vperm.xlu0 %7765, %v7506_v39   ;;  %v7513_v39 = vld [vmem:[%s12201_s4 + $0x438] sm:$0xff] }
 0x16e   : > { %4808 = vperm.xlu1 %7766, %v7509_v61   ;;  %v7512_v61 = vld [vmem:[%s12201_s4 + $0x430] sm:$0xff]  ;;  %v10648_v49 = vpop.permute.xlu0 %2819 }
 0x16f   : > { %12284 = vst [vmem:[#allocation26_spill] sm:$0xff] %v10648_v49 }
 0x170   : > { %4803 = vperm.xlu0 %7765, %v7508_v58   ;;  %v10630_v58 = vpop.permute.xlu1 %2814 }
 0x171   : > { %12281 = vst [vmem:[#allocation23_spill] sm:$0xff] %v10630_v58  ;;  %v7516_v58 = vld [vmem:[%s12201_s4 + $0x450] sm:$0xff] }
 0x172   : > { %4818 = vperm.xlu1 %7766, %v7511_v6   ;;  %v7514_v6 = vld [vmem:[%s12201_s4 + $0x440] sm:$0xff]  ;;  %v10661_v3 = vpop.permute.xlu0 %2829 }
 0x173   : > { %12286 = vst [vmem:[#allocation28_spill] sm:$0xff] %v10661_v3 }
 0x174   : > { %4813 = vperm.xlu0 %7765, %v7510_v0   ;;  %v7517_v0 = vld [vmem:[%s12201_s4 + $0x458] sm:$0xff] }
 0x176   : > { %4828 = vperm.xlu1 %7766, %v7513_v39   ;;  %v10643_v39 = vpop.permute.xlu1 %2824  ;;  %v10674_v49 = vpop.permute.xlu0 %2839 }
 0x177   : > { %12283 = vst [vmem:[#allocation25_spill] sm:$0xff] %v10643_v39  ;;  %v7581_v39 = vld [vmem:[%s12201_s4 + $0x478] sm:$0xff]  ;;  %12288 = vst [vmem:[#allocation30_spill] sm:$0xff] %v10674_v49 }
 0x178   : > { %4823 = vperm.xlu0 %7765, %v7512_v61   ;;  %v7579_v61 = vld [vmem:[%s12201_s4 + $0x468] sm:$0xff] }
 0x17a   : > { %4838 = vperm.xlu1 %7766, %v7515_v28   ;;  %v7578_v28 = vld [vmem:[%s12201_s4 + $0x460] sm:$0xff]  ;;  %v10687_v3 = vpop.permute.xlu0 %2849 }
 0x17b   : > { %12290 = vst [vmem:[#allocation32_spill] sm:$0xff] %v10687_v3 }
 0x17c   : > { %4833 = vperm.xlu0 %7765, %v7514_v6   ;;  %v10656_v6 = vpop.permute.xlu1 %2834 }
 0x17d   : > { %12285 = vst [vmem:[#allocation27_spill] sm:$0xff] %v10656_v6  ;;  %v7582_v6 = vld [vmem:[%s12201_s4 + $0x480] sm:$0xff] }
 0x17e   : > { %4848 = vperm.xlu1 %7766, %v7517_v0   ;;  %v7580_v0 = vld [vmem:[%s12201_s4 + $0x470] sm:$0xff]  ;;  %v10700_v49 = vpop.permute.xlu0 %2859 }
 0x17f   : > { %12292 = vst [vmem:[#allocation34_spill] sm:$0xff] %v10700_v49 }
 0x180   : > { %4843 = vperm.xlu0 %7765, %v7516_v58   ;;  %v7583_v58 = vld [vmem:[%s12201_s4 + $0x488] sm:$0xff] }
 0x182   : > { %5406 = vperm.xlu1 %7766, %v7579_v61   ;;  %v10669_v61 = vpop.permute.xlu1 %2844  ;;  %v10713_v3 = vpop.permute.xlu0 %2869 }
 0x183   : > { %12287 = vst [vmem:[#allocation29_spill] sm:$0xff] %v10669_v61  ;;  %v7587_v61 = vld [vmem:[%s12201_s4 + $0x4a8] sm:$0xff]  ;;  %12294 = vst [vmem:[#allocation36_spill] sm:$0xff] %v10713_v3 }
 0x184   : > { %5401 = vperm.xlu0 %7765, %v7578_v28   ;;  %v7585_v28 = vld [vmem:[%s12201_s4 + $0x498] sm:$0xff] }
 0x186   : > { %5416 = vperm.xlu1 %7766, %v7581_v39   ;;  %v7584_v39 = vld [vmem:[%s12201_s4 + $0x490] sm:$0xff]  ;;  %v10726_v49 = vpop.permute.xlu0 %2879 }
 0x187   : > { %12296 = vst [vmem:[#allocation38_spill] sm:$0xff] %v10726_v49 }
 0x188   : > { %5411 = vperm.xlu0 %7765, %v7580_v0   ;;  %v10682_v0 = vpop.permute.xlu1 %2854 }
 0x189   : > { %12289 = vst [vmem:[#allocation31_spill] sm:$0xff] %v10682_v0  ;;  %v7588_v0 = vld [vmem:[%s12201_s4 + $0x4b0] sm:$0xff] }
 0x18a   : > { %5426 = vperm.xlu1 %7766, %v7583_v58   ;;  %v7586_v58 = vld [vmem:[%s12201_s4 + $0x4a0] sm:$0xff]  ;;  %v10739_v3 = vpop.permute.xlu0 %2889 }
 0x18b   : > { %12298 = vst [vmem:[#allocation40_spill] sm:$0xff] %v10739_v3  ;;  %v7666_v3 = vld [vmem:[%s12201_s4 + $0x540] sm:$0xff] }
 0x18c   : > { %5421 = vperm.xlu0 %7765, %v7582_v6   ;;  %v7589_v6 = vld [vmem:[%s12201_s4 + $0x4b8] sm:$0xff] }
 0x18e   : > { %5436 = vperm.xlu1 %7766, %v7585_v28   ;;  %v10695_v28 = vpop.permute.xlu1 %2864  ;;  %v10752_v49 = vpop.permute.xlu0 %2899 }
 0x18f   : > { %12291 = vst [vmem:[#allocation33_spill] sm:$0xff] %v10695_v28  ;;  %v7593_v28 = vld [vmem:[%s12201_s4 + $0x4d8] sm:$0xff]  ;;  %12300 = vst [vmem:[#allocation42_spill] sm:$0xff] %v10752_v49  ;;  %v7664_v49 = vld [vmem:[%s12201_s4 + $0x530] sm:$0xff] }
 0x190   : > { %5431 = vperm.xlu0 %7765, %v7584_v39   ;;  %v7591_v39 = vld [vmem:[%s12201_s4 + $0x4c8] sm:$0xff] }
 0x192   : > { %5446 = vperm.xlu1 %7766, %v7587_v61   ;;  %v7590_v61 = vld [vmem:[%s12201_s4 + $0x4c0] sm:$0xff] }
 0x194   : > { %5441 = vperm.xlu0 %7765, %v7586_v58   ;;  %v10708_v58 = vpop.permute.xlu1 %2874 }
 0x195   : > { %12293 = vst [vmem:[#allocation35_spill] sm:$0xff] %v10708_v58  ;;  %v7594_v58 = vld [vmem:[%s12201_s4 + $0x4e0] sm:$0xff] }
 0x196   : > { %5456 = vperm.xlu1 %7766, %v7589_v6   ;;  %v7592_v6 = vld [vmem:[%s12201_s4 + $0x4d0] sm:$0xff] }
 0x198   : > { %5451 = vperm.xlu0 %7765, %v7588_v0   ;;  %v7595_v0 = vld [vmem:[%s12201_s4 + $0x4e8] sm:$0xff] }
 0x19a   : > { %5466 = vperm.xlu1 %7766, %v7591_v39   ;;  %v10721_v39 = vpop.permute.xlu1 %2884 }
 0x19b   : > { %12295 = vst [vmem:[#allocation37_spill] sm:$0xff] %v10721_v39  ;;  %v7659_v39 = vld [vmem:[%s12201_s4 + $0x508] sm:$0xff] }
 0x19c   : > { %5461 = vperm.xlu0 %7765, %v7590_v61   ;;  %v7597_v61 = vld [vmem:[%s12201_s4 + $0x4f8] sm:$0xff] }
 0x19e   : > { %5476 = vperm.xlu1 %7766, %v7593_v28   ;;  %v7596_v28 = vld [vmem:[%s12201_s4 + $0x4f0] sm:$0xff] }
 0x1a0   : > { %5471 = vperm.xlu0 %7765, %v7592_v6   ;;  %v10734_v6 = vpop.permute.xlu1 %2894 }
 0x1a1   : > { %12297 = vst [vmem:[#allocation39_spill] sm:$0xff] %v10734_v6  ;;  %v7660_v6 = vld [vmem:[%s12201_s4 + $0x510] sm:$0xff] }
 0x1a2   : > { %5486 = vperm.xlu1 %7766, %v7595_v0   ;;  %v7658_v0 = vld [vmem:[%s12201_s4 + $0x500] sm:$0xff] }
 0x1a4   : > { %5481 = vperm.xlu0 %7765, %v7594_v58   ;;  %v7661_v58 = vld [vmem:[%s12201_s4 + $0x518] sm:$0xff] }
 0x1a6   : > { %5496 = vperm.xlu1 %7766, %v7597_v61   ;;  %v10747_v61 = vpop.permute.xlu1 %2904 }
 0x1a7   : > { %12299 = vst [vmem:[#allocation41_spill] sm:$0xff] %v10747_v61 }
 0x1a8   : > { %5491 = vperm.xlu0 %7765, %v7596_v28   ;;  %v7663_v28 = vld [vmem:[%s12201_s4 + $0x528] sm:$0xff] }
 0x1aa   : > { %6054 = vperm.xlu1 %7766, %v7659_v39   ;;  %v7662_v39 = vld [vmem:[%s12201_s4 + $0x520] sm:$0xff]  ;;  %v10763_v61 = vpop.permute.xlu1 %3462 }
 0x1ab   : > { %12301 = vst [vmem:[#allocation43_spill] sm:$0xff] %v10763_v61 }
 0x1ac   : > { %6049 = vperm.xlu0 %7765, %v7658_v0   ;;  %v7799_v0 = vld [vmem:[%s12200_s3 + $0xa4] ss:$8 sps:$4 sm:$0xff]  }
 0x1ad   : > { %7138 = vmatprep.mubr.msk.bf16.mxu0 %vm1052_vm0, %v7799_v0  ;;  %7148 = vmatprep.mubr.msk.bf16.mxu1 %vm1052_vm0, %v7799_v0 }
 0x1ae   : > { %6064 = vperm.xlu1 %7766, %v7661_v58   ;;  %v7665_v58 = vld [vmem:[%s12201_s4 + $0x538] sm:$0xff]  ;;  %v10778_v61 = vpop.permute.xlu1 %3472 }
 0x1af   : > { %12303 = vst [vmem:[#allocation45_spill] sm:$0xff] %v10778_v61  ;;  %v6616_v61 = vld [vmem:[%s12202_s5 + $0x18] sm:$0xff] }
 0x1b0   : > { %6059 = vperm.xlu0 %7765, %v7660_v6   ;;  %v10770_v6 = vpop.permute.xlu0 %3457 }
 0x1b1   : > { %12302 = vst [vmem:[#allocation44_spill] sm:$0xff] %v10770_v6 }
 0x1b2   : > { %6074 = vperm.xlu1 %7766, %v7663_v28   ;;  %v6613_v28 = vld [vmem:[%s12202_s5] sm:$0xff] }
 0x1b4   : > { %6069 = vperm.xlu0 %7765, %v7662_v39   ;;  %v10783_v0 = vpop.permute.xlu0 %3467  ;;  %v6615_v39 = vld [vmem:[%s12202_s5 + $0x10] sm:$0xff] }
 0x1b5   : > { %12304 = vst [vmem:[#allocation46_spill] sm:$0xff] %v10783_v0 }
 0x1b6   : > { %6084 = vperm.xlu1 %7766, %v7665_v58   ;;  %v6614_v58 = vld [vmem:[%s12202_s5 + $0x8] sm:$0xff] }
 0x1b8   : > { %6079 = vperm.xlu0 %7765, %v7664_v49   ;;  %v10791_v49 = vpop.permute.xlu1 %3482  ;;  %v10796_v6 = vpop.permute.xlu0 %3477 }
 0x1b9   : > { %12305 = vst [vmem:[#allocation47_spill] sm:$0xff] %v10791_v49  ;;  %12306 = vst [vmem:[#allocation48_spill] sm:$0xff] %v10796_v6  ;;  %v7668_v49 = vld [vmem:[%s12201_s4 + $0x550] sm:$0xff] }
 0x1ba   : > { %6635 = vperm.xlu1 %7766, %v6613_v28   ;;  %v7667_v28 = vld [vmem:[%s12201_s4 + $0x548] sm:$0xff] }
 0x1bc   : > { %6089 = vperm.xlu0 %7765, %v7666_v3   ;;  %v6617_v3 = vld [vmem:[%s12202_s5 + $0x20] sm:$0xff]  ;;  %v10809_v0 = vpop.permute.xlu0 %3487 }
 0x1bd   : > { %12308 = vst [vmem:[#allocation50_spill] sm:$0xff] %v10809_v0  ;;  %v7671_v0 = vld [vmem:[%s12201_s4 + $0x568] sm:$0xff] }
 0x1be   : > { %6645 = vperm.xlu1 %7766, %v6615_v39   ;;  %v10804_v39 = vpop.permute.xlu1 %3492 }
 0x1bf   : > { %12307 = vst [vmem:[#allocation49_spill] sm:$0xff] %v10804_v39  ;;  %v6619_v39 = vld [vmem:[%s12202_s5 + $0x30] sm:$0xff] }
 0x1c0   : > { %6640 = vperm.xlu0 %7765, %v6614_v58   ;;  %v6618_v58 = vld [vmem:[%s12202_s5 + $0x28] sm:$0xff]  ;;  %v10822_v6 = vpop.permute.xlu0 %3497 }
 0x1c1   : > { %12310 = vst [vmem:[#allocation52_spill] sm:$0xff] %v10822_v6 }
 0x1c2   : > { %6650 = vperm.xlu1 %7766, %v6616_v61   ;;  %v7669_v61 = vld [vmem:[%s12201_s4 + $0x558] sm:$0xff] }
 0x1c4   : > { %6094 = vperm.xlu0 %7765, %v7667_v28   ;;  %v10817_v28 = vpop.permute.xlu1 %3502  ;;  %v10835_v1 = vpop.permute.xlu0 %3507 }
 0x1c5   : > { %12309 = vst [vmem:[#allocation51_spill] sm:$0xff] %v10817_v28  ;;  %12312 = vst [vmem:[#allocation54_spill] sm:$0xff] %v10835_v1 }
 0x1c6   : > { %6655 = vperm.xlu1 %7766, %v6617_v3   ;;  %v7670_v3 = vld [vmem:[%s12201_s4 + $0x560] sm:$0xff] }
 0x1c8   : > { %6099 = vperm.xlu0 %7765, %v7668_v49   ;;  %v6620_v49 = vld [vmem:[%s12202_s5 + $0x38] sm:$0xff] }
 0x1ca   : > { %6660 = vperm.xlu1 %7766, %v6618_v58   ;;  %v10830_v58 = vpop.permute.xlu1 %3512 }
 0x1cb   : > { %12311 = vst [vmem:[#allocation53_spill] sm:$0xff] %v10830_v58 }
 0x1cc   : > { %6104 = vperm.xlu0 %7765, %v7669_v61  }
 0x1ce   : > { %6665 = vperm.xlu1 %7766, %v6619_v39  }
 0x1d0   : > { %6109 = vperm.xlu0 %7765, %v7670_v3   ;;  %v6621_v3 = vld [vmem:[%s12202_s5 + $0x40] sm:$0xff] }
 0x1d1   : > { %v1117_v28 = vpop.f32.mrb[0].mxu0 }
 0x1d2   : > { %v1118_v61 = vadd.f32 %v1117_v28, %v10224_v12  ;;  %v1119_v6 = vpop.f32.mrb[1].mxu0  ;;  %6670 = vperm.xlu1 %7766, %v6620_v49  }
 0x1d3   : > { %v1250_v23 = vpop.f32.mrb[0].mxu1  ;;  %v1120_v39 = vadd.f32 %v1119_v6, %v10224_v12  ;;  %v1121_v36 = vpop.f32.mrb[2].mxu0  ;;  %v7672_v6 = vld [vmem:[%s12201_s4 + $0x570] sm:$0xff] }
 0x1d4   : > { %8197 = vtanh.f32 %v1118_v61  ;;  %v1251_v58 = vadd.f32 %v1250_v23, %v10224_v12  ;;  %v1252_v43 = vpop.f32.mrb[1].mxu1  ;;  %v1122_v4 = vadd.f32 %v1121_v36, %v10222_v11  ;;  %v1123_v20 = vpop.f32.mrb[3].mxu0  ;;  %6114 = vperm.xlu0 %7765, %v7671_v0   ;;  %v6622_v23 = vld [vmem:[%s12202_s5 + $0x48] sm:$0xff]  ;;  %v7673_v0 = vld [vmem:[%s12201_s4 + $0x578] sm:$0xff] }
 0x1d5   : > { %8199 = vtanh.f32 %v1120_v39  ;;  %v1253_v28 = vadd.f32 %v1252_v43, %v10224_v12  ;;  %v1254_v49 = vpop.f32.mrb[2].mxu1  ;;  %v1124_v61 = vadd.f32 %v1123_v20, %v10222_v11  ;;  %v10854_v12 = vpop.permute.xlu1 %3522 }
 0x1d6   : > { %8201 = vtanh.f32 %v1251_v58  ;;  %v1255_v1 = vadd.f32 %v1254_v49, %v10222_v11  ;;  %v1256_v47 = vpop.f32.mrb[3].mxu1  ;;  %6675 = vperm.xlu1 %7766, %v6621_v3   ;;  %12313 = vst [vmem:[#allocation55_spill] sm:$0xff] %v10854_v12  ;;  %v10859_v20 = vpop.permute.xlu0 %3517 }
 0x1d7   : > { %8203 = vtanh.f32 %v1253_v28  ;;  %v1257_v36 = vadd.f32 %v1256_v47, %v10222_v11  ;;  %12314 = vst [vmem:[#allocation56_spill] sm:$0xff] %v10859_v20  ;;  %v6625_v20 = vld [vmem:[%s12202_s5 + $0x60] sm:$0xff] }
 0x1d8   : > { %8205 = vtanh.f32 %v1122_v4  ;;  %6119 = vperm.xlu0 %7765, %v7672_v6  }
 0x1d9   : > { %8207 = vtanh.f32 %v1255_v1  ;;  %v1127_v43 = vpop.f32.mrb[4].mxu0  ;;  %v6623_v1 = vld [vmem:[%s12202_s5 + $0x50] sm:$0xff] }
 0x1da   : > { %8209 = vtanh.f32 %v1124_v61  ;;  %v1128_v58 = vadd.f32 %v1127_v43, %v10234_v14  ;;  %v1129_v11 = vpop.f32.mrb[5].mxu0  ;;  %6680 = vperm.xlu1 %7766, %v6622_v23   ;;  %v7674_v23 = vld [vmem:[%s12201_s4 + $0x580] sm:$0xff] }
 0x1db   : > { %8211 = vtanh.f32 %v1257_v36  ;;  %v1260_v47 = vpop.f32.mrb[4].mxu1  ;;  %v1130_v4 = vadd.f32 %v1129_v11, %v10234_v14  ;;  %v1131_v39 = vpop.f32.mrb[6].mxu0 }
 0x1dc   : > { %8213 = vtanh.f32 %v1128_v58  ;;  %v1261_v3 = vadd.f32 %v1260_v47, %v10234_v14  ;;  %v1262_v28 = vpop.f32.mrb[5].mxu1  ;;  %v1132_v49 = vadd.f32 %v1131_v39, %v10232_v9  ;;  %v1133_v6 = vpop.f32.mrb[7].mxu0  ;;  %6124 = vperm.xlu0 %7765, %v7673_v0  }
 0x1dd   : > { %8215 = vtanh.f32 %v1130_v4  ;;  %v1263_v61 = vadd.f32 %v1262_v28, %v10234_v14  ;;  %v1264_v36 = vpop.f32.mrb[6].mxu1  ;;  %v1134_v58 = vadd.f32 %v1133_v6, %v10232_v9  ;;  %v6624_v14 = vld [vmem:[%s12202_s5 + $0x58] sm:$0xff]  ;;  %v10878_v28 = vpop.permute.xlu1 %3532 }
 0x1de   : > { %v8198_v43 = vpop.eup %8197  ;;  %8217 = vtanh.f32 %v1261_v3  ;;  %v1265_v11 = vadd.f32 %v1264_v36, %v10232_v9  ;;  %v1266_v47 = vpop.f32.mrb[7].mxu1  ;;  %6685 = vperm.xlu1 %7766, %v6623_v1   ;;  %12315 = vst [vmem:[#allocation57_spill] sm:$0xff] %v10878_v28  ;;  %v7675_v1 = vld [vmem:[%s12201_s4 + $0x588] sm:$0xff] }
 0x1df   : > { %v8200_v12 = vpop.eup %8199  ;;  %8219 = vtanh.f32 %v1263_v61  ;;  %v1267_v0 = vadd.f32 %v1266_v47, %v10232_v9  ;;  %v10883_v61 = vpop.permute.xlu0 %3527 }
 0x1e0   : > { %v8202_v4 = vpop.eup %8201  ;;  %8221 = vtanh.f32 %v1132_v49  ;;  %6129 = vperm.xlu0 %7765, %v7674_v23   ;;  %12316 = vst [vmem:[#allocation58_spill] sm:$0xff] %v10883_v61 }
 0x1e1   : > { %v8204_v39 = vpop.eup %8203  ;;  %8223 = vtanh.f32 %v1265_v11  ;;  %v1137_v3 = vpop.f32.mrb[8].mxu0 }
 0x1e2   : > { %v8206_v6 = vpop.eup %8205  ;;  %8225 = vtanh.f32 %v1134_v58  ;;  %v1138_v9 = vadd.f32 %v1137_v3, %v10244_v25  ;;  %v1139_v36 = vpop.f32.mrb[9].mxu0  ;;  %6690 = vperm.xlu1 %7766, %v6624_v14  }
 0x1e3   : > { %v8208_v47 = vpop.eup %8207  ;;  %8227 = vtanh.f32 %v1267_v0  ;;  %v1270_v49 = vpop.f32.mrb[8].mxu1  ;;  %v1140_v23 = vadd.f32 %v1139_v36, %v10244_v25  ;;  %v1450_v11 = vpack.c.bf16 %v8206_v6, %v8198_v43 }
 0x1e4   : > { %v1141_v28 = vpop.f32.mrb[10].mxu0  ;;  %v8210_v53 = vpop.eup %8209  ;;  %8229 = vtanh.f32 %v1138_v9  ;;  %v1271_v61 = vadd.f32 %v1270_v49, %v10244_v25  ;;  %v1452_v14 = vpack.c.bf16 %v8208_v47, %v8202_v4  ;;  %6134 = vperm.xlu0 %7765, %v7675_v1   ;;  %v7676_v4 = vld [vmem:[%s12201_s4 + $0x590] sm:$0xff] }
 0x1e5   : > { %v1272_v58 = vpop.f32.mrb[9].mxu1  ;;  %v1142_v3 = vadd.f32 %v1141_v28, %v10242_v24  ;;  %v1143_v31 = vpop.f32.mrb[11].mxu0  ;;  %8231 = vtanh.f32 %v1140_v23  ;;  %v1451_v43 = vpack.c.bf16 %v8210_v53, %v8200_v12  ;;  %v6626_v53 = vld [vmem:[%s12202_s5 + $0x68] sm:$0xff] }
 0x1e6   : > { %v8212_v0 = vpop.eup %8211  ;;  %v1273_v36 = vadd.f32 %v1272_v58, %v10244_v25  ;;  %v1274_v37 = vpop.f32.mrb[10].mxu1  ;;  %8233 = vtanh.f32 %v1271_v61  ;;  %v1144_v9 = vadd.f32 %v1143_v31, %v10242_v24  ;;  %6695 = vperm.xlu1 %7766, %v6625_v20  }
 0x1e7   : > { %v10893_v6 = vpop.eup %8213  ;;  %v1275_v16 = vadd.f32 %v1274_v37, %v10242_v24  ;;  %v1276_v49 = vpop.f32.mrb[11].mxu1  ;;  %v1453_v21 = vpack.c.bf16 %v8212_v0, %v8204_v39  ;;  %1731 = vmatprep.subr.bf16.mxu0 %v1451_v43 }
 0x1e8   : > { %v8216_v28 = vpop.eup %8215  ;;  %8235 = vtanh.f32 %v1273_v36  ;;  %v1277_v25 = vadd.f32 %v1276_v49, %v10242_v24  ;;  %1732 = vmatpush1.bf16.msra.mxu0 %v1450_v11  ;;  %v10904_v37 = vpop.permute.xlu1 %3542  ;;  %6139 = vperm.xlu0 %7765, %v7676_v4  }
 0x1e9   : > { %v8218_v12 = vpop.eup %8217  ;;  %8237 = vtanh.f32 %v1142_v3  ;;  %1864 = vmatprep.subr.bf16.mxu1 %v1453_v21  ;;  %v1147_v20 = vpop.f32.mrb[12].mxu0  ;;  %v7677_v21 = vld [vmem:[%s12201_s4 + $0x598] sm:$0xff] }
 0x1ea   : > { %v8220_v31 = vpop.eup %8219  ;;  %8239 = vtanh.f32 %v1275_v16  ;;  %1865 = vmatpush1.bf16.msra.mxu1 %v1452_v14  ;;  %v10906_v1 = vpop.permute.xlu0 %3537  ;;  %v1148_v24 = vadd.f32 %v1147_v20, %v10254_v34  ;;  %6700 = vperm.xlu1 %7766, %v6626_v53   ;;  %v6628_v3 = vld [vmem:[%s12202_s5 + $0x78] sm:$0xff] }
 0x1eb   : > { %v8222_v39 = vpop.eup %8221  ;;  %8241 = vtanh.f32 %v1144_v9  ;;  %v1149_v61 = vpop.f32.mrb[13].mxu0 }
 0x1ec   : > { %v8224_v47 = vpop.eup %8223  ;;  %8243 = vtanh.f32 %v1277_v25  ;;  %v1280_v23 = vpop.f32.mrb[12].mxu1  ;;  %v1150_v16 = vadd.f32 %v1149_v61, %v10254_v34  ;;  %v1454_v58 = vpack.c.bf16 %v8222_v39, %v10893_v6  ;;  %6144 = vperm.xlu0 %7765, %v7677_v21  }
 0x1ed   : > { %v1151_v11 = vpop.f32.mrb[14].mxu0  ;;  %v8226_v14 = vpop.eup %8225  ;;  %8245 = vtanh.f32 %v1148_v24  ;;  %v1281_v0 = vadd.f32 %v1280_v23, %v10254_v34  ;;  %v1456_v49 = vpack.c.bf16 %v8224_v47, %v8218_v12  ;;  %v6627_v12 = vld [vmem:[%s12202_s5 + $0x70] sm:$0xff] }
 0x1ee   : > { %v1282_v36 = vpop.f32.mrb[13].mxu1  ;;  %v1152_v43 = vadd.f32 %v1151_v11, %v10252_v33  ;;  %v1153_v9 = vpop.f32.mrb[15].mxu0  ;;  %8247 = vtanh.f32 %v1150_v16  ;;  %v1455_v20 = vpack.c.bf16 %v8226_v14, %v8216_v28  ;;  %6710 = vperm.xlu1 %7766, %v6628_v3   ;;  %v6630_v28 = vld [vmem:[%s12202_s5 + $0x88] sm:$0xff] }
 0x1ef   : > { %v8228_v4 = vpop.eup %8227  ;;  %v1283_v25 = vadd.f32 %v1282_v36, %v10254_v34  ;;  %v1284_v53 = vpop.f32.mrb[14].mxu1  ;;  %8249 = vtanh.f32 %v1281_v0  ;;  %v1154_v24 = vadd.f32 %v1153_v9, %v10252_v33  ;;  %v6629_v36 = vld [vmem:[%s12202_s5 + $0x80] sm:$0xff] }
 0x1f0   : > { %v10920_v6 = vpop.eup %8229  ;;  %v1285_v39 = vadd.f32 %v1284_v53, %v10252_v33  ;;  %v1286_v61 = vpop.f32.mrb[15].mxu1  ;;  %v1457_v23 = vpack.c.bf16 %v8228_v4, %v8220_v31  ;;  %1733 = vmatprep.subr.bf16.mxu0 %v1455_v20  ;;  %6705 = vperm.xlu0 %7765, %v6627_v12  }
 0x1f1   : > { %v8232_v47 = vpop.eup %8231  ;;  %8251 = vtanh.f32 %v1283_v25  ;;  %v1287_v34 = vadd.f32 %v1286_v61, %v10252_v33  ;;  %v10931_v16 = vpop.permute.xlu1 %3552  ;;  %1734 = vmatpush1.bf16.msra.mxu0 %v1454_v58  ;;  %v6632_v25 = vld [vmem:[%s12202_s5 + $0x98] sm:$0xff] }
 0x1f2   : > { %v8234_v21 = vpop.eup %8233  ;;  %12317 = vst [vmem:[#allocation59_spill] sm:$0xff] %v10931_v16  ;;  %8253 = vtanh.f32 %v1152_v43  ;;  %1866 = vmatprep.subr.bf16.mxu1 %v1457_v23  ;;  %v10933_v11 = vpop.permute.xlu0 %3547  ;;  %6720 = vperm.xlu1 %7766, %v6630_v28  }
 0x1f3   : > { %v8236_v31 = vpop.eup %8235  ;;  %8255 = vtanh.f32 %v1285_v39  ;;  %1867 = vmatpush1.bf16.msra.mxu1 %v1456_v49  ;;  %v1157_v3 = vpop.f32.mrb[16].mxu0 }
 0x1f4   : > { %v8238_v14 = vpop.eup %8237  ;;  %8257 = vtanh.f32 %v1154_v24  ;;  %v1158_v33 = vadd.f32 %v1157_v3, %v10264_v45  ;;  %v1159_v0 = vpop.f32.mrb[17].mxu0  ;;  %6715 = vperm.xlu0 %7765, %v6629_v36  }
 0x1f5   : > { %v8240_v43 = vpop.eup %8239  ;;  %8259 = vtanh.f32 %v1287_v34  ;;  %v1290_v58 = vpop.f32.mrb[16].mxu1  ;;  %v1160_v9 = vadd.f32 %v1159_v0, %v10264_v45  ;;  %v1458_v49 = vpack.c.bf16 %v8238_v14, %v10920_v6 }
 0x1f6   : > { %v1161_v4 = vpop.f32.mrb[18].mxu0  ;;  %v8242_v53 = vpop.eup %8241  ;;  %8261 = vtanh.f32 %v1158_v33  ;;  %v1291_v20 = vadd.f32 %v1290_v58, %v10264_v45  ;;  %v1460_v23 = vpack.c.bf16 %v8240_v43, %v8234_v21  ;;  %v6631_v21 = vld [vmem:[%s12202_s5 + $0x90] sm:$0xff] }
 0x1f7   : > { %v1292_v39 = vpop.f32.mrb[17].mxu1  ;;  %v1162_v24 = vadd.f32 %v1161_v4, %v10262_v44  ;;  %v1163_v61 = vpop.f32.mrb[19].mxu0  ;;  %8263 = vtanh.f32 %v1160_v9  ;;  %v1459_v3 = vpack.c.bf16 %v8242_v53, %v8232_v47 }
 0x1f8   : > { %v8244_v12 = vpop.eup %8243  ;;  %v1293_v34 = vadd.f32 %v1292_v39, %v10264_v45  ;;  %v1294_v28 = vpop.f32.mrb[18].mxu1  ;;  %8265 = vtanh.f32 %v1291_v20  ;;  %v1164_v0 = vadd.f32 %v1163_v61, %v10262_v44  ;;  %v6913_v20 = vld [vmem:[#allocation2] sm:$0x1] }
 0x1f9   : > { %v8246_v6 = vpop.eup %8245  ;;  %v10947_v14 = vpop.permute.xlu1 %4110  ;;  %v1295_v33 = vadd.f32 %v1294_v28, %v10262_v44  ;;  %v1461_v16 = vpack.c.bf16 %v8244_v12, %v8236_v31  ;;  %6730 = vperm.xlu1 %7766, %v6632_v25   ;;  %1735 = vmatprep.subr.bf16.mxu0 %v1459_v3 }
 0x1fa   : > { %v1296_v58 = vpop.f32.mrb[19].mxu1  ;;  %v8248_v43 = vpop.eup %8247  ;;  %8267 = vtanh.f32 %v1293_v34  ;;  %1736 = vmatpush1.bf16.msra.mxu0 %v1458_v49 }
 0x1fb   : > { %v10954_v45 = vpop.permute.xlu0 %4105  ;;  %v1297_v47 = vadd.f32 %v1296_v58, %v10262_v44  ;;  %v8250_v36 = vpop.eup %8249  ;;  %8269 = vtanh.f32 %v1162_v24  ;;  %1868 = vmatprep.subr.bf16.mxu1 %v1461_v16  ;;  %6725 = vperm.xlu0 %7765, %v6631_v21  }
 0x1fc   : > { %v8252_v9 = vpop.eup %8251  ;;  %8271 = vtanh.f32 %v1295_v33  ;;  %1869 = vmatpush1.bf16.msra.mxu1 %v1460_v23  ;;  %v1167_v31 = vpop.f32.mrb[20].mxu0 }
 0x1fd   : > { %v8254_v4 = vpop.eup %8253  ;;  %8273 = vtanh.f32 %v1164_v0  ;;  %v1168_v25 = vadd.f32 %v1167_v31, %v10280_v52  ;;  %v1169_v53 = vpop.f32.mrb[21].mxu0 }
 0x1fe   : > { %v8256_v39 = vpop.eup %8255  ;;  %8275 = vtanh.f32 %v1297_v47  ;;  %v1300_v61 = vpop.f32.mrb[20].mxu1  ;;  %v1170_v44 = vadd.f32 %v1169_v53, %v10280_v52  ;;  %v1462_v24 = vpack.c.bf16 %v8254_v4, %v8246_v6 }
 0x1ff   : > { %v1171_v12 = vpop.f32.mrb[22].mxu0  ;;  %v8258_v16 = vpop.eup %8257  ;;  %8277 = vtanh.f32 %v1168_v25  ;;  %v1301_v49 = vadd.f32 %v1300_v61, %v10280_v52  ;;  %v1464_v3 = vpack.c.bf16 %v8256_v39, %v8250_v36 }
 0x200   : > { %v1302_v23 = vpop.f32.mrb[21].mxu1  ;;  %v1172_v34 = vadd.f32 %v1171_v12, %v10278_v51  ;;  %v1173_v28 = vpop.f32.mrb[23].mxu0  ;;  %8279 = vtanh.f32 %v1170_v44  ;;  %v1463_v47 = vpack.c.bf16 %v8258_v16, %v8248_v43 }
 0x201   : > { %v8260_v33 = vpop.eup %8259  ;;  %v10961_v0 = vpop.permute.xlu0 %4115  ;;  %v1303_v58 = vadd.f32 %v1302_v23, %v10280_v52  ;;  %6916 = vperm.xlu0 %7765, %v6913_v20   ;;  %8281 = vtanh.f32 %v1301_v49  ;;  %v1174_v4 = vadd.f32 %v1173_v28, %v10278_v51 }
 0x202   : > { %v1304_v21 = vpop.f32.mrb[22].mxu1  ;;  %v8262_v31 = vpop.eup %8261  ;;  %v1465_v53 = vpack.c.bf16 %v8260_v33, %v8252_v9  ;;  %1737 = vmatprep.subr.bf16.mxu0 %v1463_v47 }
 0x203   : > { %v1305_v6 = vadd.f32 %v1304_v21, %v10278_v51  ;;  %v1306_v25 = vpop.f32.mrb[23].mxu1  ;;  %v8264_v61 = vpop.eup %8263  ;;  %8283 = vtanh.f32 %v1303_v58  ;;  %1738 = vmatpush1.bf16.msra.mxu0 %v1462_v24 }
 0x204   : > { %v1307_v36 = vadd.f32 %v1306_v25, %v10278_v51  ;;  %v8266_v39 = vpop.eup %8265  ;;  %8285 = vtanh.f32 %v1172_v34  ;;  %1870 = vmatprep.subr.bf16.mxu1 %v1465_v53  ;;  %v1177_v43 = vpop.f32.mrb[24].mxu0 }
 0x205   : > { %v8268_v52 = vpop.eup %8267  ;;  %8287 = vtanh.f32 %v1305_v6  ;;  %1871 = vmatpush1.bf16.msra.mxu1 %v1464_v3  ;;  %v1178_v44 = vadd.f32 %v1177_v43, %v10292_v55  ;;  %v1179_v12 = vpop.f32.mrb[25].mxu0 }
 0x206   : > { %v8270_v20 = vpop.eup %8269  ;;  %8289 = vtanh.f32 %v1174_v4  ;;  %v1310_v9 = vpop.f32.mrb[24].mxu1  ;;  %v1180_v49 = vadd.f32 %v1179_v12, %v10292_v55 }
 0x207   : > { %v8272_v16 = vpop.eup %8271  ;;  %8291 = vtanh.f32 %v1307_v36  ;;  %v1181_v51 = vpop.f32.mrb[26].mxu0  ;;  %v1466_v23 = vpack.c.bf16 %v8270_v20, %v8262_v31  ;;  %v1311_v24 = vadd.f32 %v1310_v9, %v10292_v55 }
 0x208   : > { %v8274_v28 = vpop.eup %8273  ;;  %8293 = vtanh.f32 %v1178_v44  ;;  %v1312_v34 = vpop.f32.mrb[25].mxu1  ;;  %v1182_v3 = vadd.f32 %v1181_v51, %v10290_v54  ;;  %v1468_v58 = vpack.c.bf16 %v8272_v16, %v8266_v39 }
 0x209   : > { %v1183_v33 = vpop.f32.mrb[27].mxu0  ;;  %v8276_v21 = vpop.eup %8275  ;;  %8295 = vtanh.f32 %v1180_v49  ;;  %v1313_v47 = vadd.f32 %v1312_v34, %v10292_v55  ;;  %v1467_v4 = vpack.c.bf16 %v8274_v28, %v8264_v61 }
 0x20a   : > { %v1314_v6 = vpop.f32.mrb[26].mxu1  ;;  %v8278_v25 = vpop.eup %8277  ;;  %8297 = vtanh.f32 %v1311_v24  ;;  %v1184_v31 = vadd.f32 %v1183_v33, %v10290_v54  ;;  %v1469_v43 = vpack.c.bf16 %v8276_v21, %v8268_v52 }
 0x20b   : > { %v1315_v53 = vadd.f32 %v1314_v6, %v10290_v54  ;;  %v1316_v36 = vpop.f32.mrb[27].mxu1  ;;  %v8280_v20 = vpop.eup %8279  ;;  %8299 = vtanh.f32 %v1313_v47  ;;  %1739 = vmatprep.subr.bf16.mxu0 %v1467_v4 }
 0x20c   : > { %v1317_v44 = vadd.f32 %v1316_v36, %v10290_v54  ;;  %v8282_v39 = vpop.eup %8281  ;;  %8301 = vtanh.f32 %v1182_v3  ;;  %1872 = vmatprep.subr.bf16.mxu1 %v1469_v43  ;;  %1740 = vmatpush1.bf16.msra.mxu0 %v1466_v23  ;;  %v1187_v61 = vpop.f32.mrb[28].mxu0 }
 0x20d   : > { %v8284_v55 = vpop.eup %8283  ;;  %8303 = vtanh.f32 %v1315_v53  ;;  %1873 = vmatpush1.bf16.msra.mxu1 %v1468_v58  ;;  %v1188_v16 = vadd.f32 %v1187_v61, %v10308_v62  ;;  %v1189_v9 = vpop.f32.mrb[29].mxu0 }
 0x20e   : > { %v8286_v12 = vpop.eup %8285  ;;  %8305 = vtanh.f32 %v1184_v31  ;;  %v1320_v52 = vpop.f32.mrb[28].mxu1  ;;  %v1190_v51 = vadd.f32 %v1189_v9, %v10308_v62 }
 0x20f   : > { %v8288_v49 = vpop.eup %8287  ;;  %8307 = vtanh.f32 %v1317_v44  ;;  %v1191_v54 = vpop.f32.mrb[30].mxu0  ;;  %v1470_v28 = vpack.c.bf16 %v8286_v12, %v8278_v25  ;;  %v1321_v23 = vadd.f32 %v1320_v52, %v10308_v62 }
 0x210   : > { %v8290_v24 = vpop.eup %8289  ;;  %8309 = vtanh.f32 %v1188_v16  ;;  %v1322_v34 = vpop.f32.mrb[29].mxu1  ;;  %v1192_v3 = vadd.f32 %v1191_v54, %v10306_v60  ;;  %v1472_v58 = vpack.c.bf16 %v8288_v49, %v8282_v39 }
 0x211   : > { %v1193_v33 = vpop.f32.mrb[31].mxu0  ;;  %v8292_v21 = vpop.eup %8291  ;;  %8311 = vtanh.f32 %v1190_v51  ;;  %v1323_v47 = vadd.f32 %v1322_v34, %v10308_v62  ;;  %v1471_v4 = vpack.c.bf16 %v8290_v24, %v8280_v20 }
 0x212   : > { %v1324_v6 = vpop.f32.mrb[30].mxu1  ;;  %v8294_v53 = vpop.eup %8293  ;;  %8313 = vtanh.f32 %v1321_v23  ;;  %v1194_v25 = vadd.f32 %v1193_v33, %v10306_v60  ;;  %v1473_v43 = vpack.c.bf16 %v8292_v21, %v8284_v55 }
 0x213   : > { %v1325_v31 = vadd.f32 %v1324_v6, %v10306_v60  ;;  %v1326_v36 = vpop.f32.mrb[31].mxu1  ;;  %v8296_v44 = vpop.eup %8295  ;;  %8315 = vtanh.f32 %v1323_v47  ;;  %1741 = vmatprep.subr.bf16.mxu0 %v1471_v4 }
 0x214   : > { %v1327_v61 = vadd.f32 %v1326_v36, %v10306_v60  ;;  %v8298_v39 = vpop.eup %8297  ;;  %8317 = vtanh.f32 %v1192_v3  ;;  %1874 = vmatprep.subr.bf16.mxu1 %v1473_v43  ;;  %1742 = vmatpush1.bf16.msra.mxu0 %v1470_v28  ;;  %v1197_v20 = vpop.f32.mrb[32].mxu0 }
 0x215   : > { %v8300_v62 = vpop.eup %8299  ;;  %8319 = vtanh.f32 %v1325_v31  ;;  %1875 = vmatpush1.bf16.msra.mxu1 %v1472_v58  ;;  %v1198_v16 = vadd.f32 %v1197_v20, %v10320_v2  ;;  %v1199_v9 = vpop.f32.mrb[33].mxu0 }
 0x216   : > { %v8302_v12 = vpop.eup %8301  ;;  %8321 = vtanh.f32 %v1194_v25  ;;  %v1330_v55 = vpop.f32.mrb[32].mxu1  ;;  %v1200_v52 = vadd.f32 %v1199_v9, %v10320_v2 }
 0x217   : > { %v8304_v49 = vpop.eup %8303  ;;  %8323 = vtanh.f32 %v1327_v61  ;;  %v1201_v60 = vpop.f32.mrb[34].mxu0  ;;  %v1474_v51 = vpack.c.bf16 %v8302_v12, %v8294_v53  ;;  %v1331_v28 = vadd.f32 %v1330_v55, %v10320_v2 }
 0x218   : > { %v8306_v54 = vpop.eup %8305  ;;  %8325 = vtanh.f32 %v1198_v16  ;;  %v1332_v24 = vpop.f32.mrb[33].mxu1  ;;  %v1202_v23 = vadd.f32 %v1201_v60, %v10318_v13  ;;  %v1476_v3 = vpack.c.bf16 %v8304_v49, %v8298_v39 }
 0x219   : > { %v1203_v34 = vpop.f32.mrb[35].mxu0  ;;  %v8308_v33 = vpop.eup %8307  ;;  %8327 = vtanh.f32 %v1200_v52  ;;  %v1333_v58 = vadd.f32 %v1332_v24, %v10320_v2  ;;  %v1475_v47 = vpack.c.bf16 %v8306_v54, %v8296_v44 }
 0x21a   : > { %v1334_v21 = vpop.f32.mrb[34].mxu1  ;;  %v8310_v6 = vpop.eup %8309  ;;  %8329 = vtanh.f32 %v1331_v28  ;;  %v1204_v53 = vadd.f32 %v1203_v34, %v10318_v13  ;;  %v1477_v25 = vpack.c.bf16 %v8308_v33, %v8300_v62 }
 0x21b   : > { %v1335_v4 = vadd.f32 %v1334_v21, %v10318_v13  ;;  %v1336_v31 = vpop.f32.mrb[35].mxu1  ;;  %v8312_v36 = vpop.eup %8311  ;;  %8331 = vtanh.f32 %v1333_v58  ;;  %1743 = vmatprep.subr.bf16.mxu0 %v1475_v47 }
 0x21c   : > { %v1337_v43 = vadd.f32 %v1336_v31, %v10318_v13  ;;  %v8314_v61 = vpop.eup %8313  ;;  %8333 = vtanh.f32 %v1202_v23  ;;  %1876 = vmatprep.subr.bf16.mxu1 %v1477_v25  ;;  %1744 = vmatpush1.bf16.msra.mxu0 %v1474_v51  ;;  %v1207_v44 = vpop.f32.mrb[36].mxu0 }
 0x21d   : > { %v8316_v2 = vpop.eup %8315  ;;  %8335 = vtanh.f32 %v1335_v4  ;;  %1877 = vmatpush1.bf16.msra.mxu1 %v1476_v3  ;;  %v1208_v20 = vadd.f32 %v1207_v44, %v10336_v15  ;;  %v1209_v12 = vpop.f32.mrb[37].mxu0 }
 0x21e   : > { %v8318_v39 = vpop.eup %8317  ;;  %8337 = vtanh.f32 %v1204_v53  ;;  %v1340_v62 = vpop.f32.mrb[36].mxu1  ;;  %v1210_v9 = vadd.f32 %v1209_v12, %v10336_v15 }
 0x21f   : > { %v8320_v16 = vpop.eup %8319  ;;  %8339 = vtanh.f32 %v1337_v43  ;;  %v1211_v13 = vpop.f32.mrb[38].mxu0  ;;  %v1478_v49 = vpack.c.bf16 %v8318_v39, %v8310_v6  ;;  %v1341_v52 = vadd.f32 %v1340_v62, %v10336_v15 }
 0x220   : > { %v8322_v55 = vpop.eup %8321  ;;  %8341 = vtanh.f32 %v1208_v20  ;;  %v1342_v60 = vpop.f32.mrb[37].mxu1  ;;  %v1212_v51 = vadd.f32 %v1211_v13, %v10334_v8  ;;  %v1480_v28 = vpack.c.bf16 %v8320_v16, %v8314_v61 }
 0x221   : > { %v1213_v54 = vpop.f32.mrb[39].mxu0  ;;  %v8324_v24 = vpop.eup %8323  ;;  %8343 = vtanh.f32 %v1210_v9  ;;  %v1343_v23 = vadd.f32 %v1342_v60, %v10336_v15  ;;  %v1479_v3 = vpack.c.bf16 %v8322_v55, %v8312_v36 }
 0x222   : > { %v1344_v34 = vpop.f32.mrb[38].mxu1  ;;  %v8326_v33 = vpop.eup %8325  ;;  %8345 = vtanh.f32 %v1341_v52  ;;  %v1214_v21 = vadd.f32 %v1213_v54, %v10334_v8  ;;  %v1481_v6 = vpack.c.bf16 %v8324_v24, %v8316_v2  ;;  %v7800_v24 = vld [vmem:[%s12200_s3 + $0xb4] ss:$8 sps:$4 sm:$0xff]  }
 0x223   : > { %v1345_v58 = vadd.f32 %v1344_v34, %v10334_v8  ;;  %v1346_v47 = vpop.f32.mrb[39].mxu1  ;;  %v8328_v4 = vpop.eup %8327  ;;  %8347 = vtanh.f32 %v1343_v23  ;;  %1745 = vmatprep.subr.bf16.mxu0 %v1479_v3  ;;  %v7802_v23 = vld [vmem:[%s12200_s3 + $0xb0] ss:$8 sps:$4 sm:$0xff]   ;;  %v7803_v34 = vld [vmem:[%s12200_s3 + $0xc4] ss:$8 sps:$4 sm:$0xff]  }
 0x224   : > { %v1347_v53 = vadd.f32 %v1346_v47, %v10334_v8  ;;  %v8330_v31 = vpop.eup %8329  ;;  %8349 = vtanh.f32 %v1212_v51  ;;  %1878 = vmatprep.subr.bf16.mxu1 %v1481_v6  ;;  %1746 = vmatpush1.bf16.msra.mxu0 %v1478_v49  ;;  %v7805_v3 = vld [vmem:[%s12200_s3 + $0xc0] ss:$8 sps:$4 sm:$0xff]   ;;  %v7812_v6 = vld [vmem:[%s12200_s3 + $0xf4] ss:$8 sps:$4 sm:$0xff]  }
 0x225   : > { %v8332_v15 = vpop.eup %8331  ;;  %8351 = vtanh.f32 %v1345_v58  ;;  %1879 = vmatpush1.bf16.msra.mxu1 %v1480_v28  ;;  %v7797_v28 = vld [vmem:[%s12200_s3 + $0xa0] ss:$8 sps:$4 sm:$0xff]   ;;  %v7808_v58 = vld [vmem:[%s12200_s3 + $0xd0] ss:$8 sps:$4 sm:$0xff]  }
 0x226   : > { %v8334_v25 = vpop.eup %8333  ;;  %8353 = vtanh.f32 %v1214_v21  ;;  %v7809_v21 = vld [vmem:[%s12200_s3 + $0xe4] ss:$8 sps:$4 sm:$0xff]   ;;  %v7811_v47 = vld [vmem:[%s12200_s3 + $0xe0] ss:$8 sps:$4 sm:$0xff]  }
 0x227   : > { %v8336_v36 = vpop.eup %8335  ;;  %8355 = vtanh.f32 %v1347_v53  ;;  %v1482_v43 = vpack.c.bf16 %v8334_v25, %v8326_v33  ;;  %v7806_v33 = vld [vmem:[%s12200_s3 + $0xd4] ss:$8 sps:$4 sm:$0xff]   ;;  %v7815_v53 = vld [vmem:[%s12200_s3 + $0x104] ss:$8 sps:$4 sm:$0xff]   ;;  %v7820_v25 = vld [vmem:[%s12200_s3 + $0x110] ss:$8 sps:$4 sm:$0xff]  }
 0x228   : > { %v8338_v61 = vpop.eup %8337  ;;  %v1484_v44 = vpack.c.bf16 %v8336_v36, %v8330_v31  ;;  %v7817_v31 = vld [vmem:[%s12200_s3 + $0x100] ss:$8 sps:$4 sm:$0xff]   ;;  %v7821_v36 = vld [vmem:[%s12200_s3 + $0x124] ss:$8 sps:$4 sm:$0xff]  }
 0x229   : > { %v8340_v2 = vpop.eup %8339  ;;  %v1483_v39 = vpack.c.bf16 %v8338_v61, %v8328_v4  ;;  %v7814_v4 = vld [vmem:[%s12200_s3 + $0xf0] ss:$8 sps:$4 sm:$0xff]   ;;  %v7824_v61 = vld [vmem:[%s12200_s3 + $0x134] ss:$8 sps:$4 sm:$0xff]  }
 0x22a   : > { %v8342_v20 = vpop.eup %8341  ;;  %v1485_v12 = vpack.c.bf16 %v8340_v2, %v8332_v15  ;;  %v7818_v15 = vld [vmem:[%s12200_s3 + $0x114] ss:$8 sps:$4 sm:$0xff]   ;;  %v7829_v2 = vld [vmem:[%s12200_s3 + $0x144] ss:$8 sps:$4 sm:$0xff]  }
 0x22b   : > { %v8344_v8 = vpop.eup %8343  ;;  %1747 = vmatprep.subr.bf16.mxu0 %v1483_v39 }
 0x22c   : > { %v8346_v16 = vpop.eup %8345  ;;  %1880 = vmatprep.subr.bf16.mxu1 %v1485_v12  ;;  %1748 = vmatpush1.bf16.msra.mxu0 %v1482_v43  ;;  %v7823_v43 = vld [vmem:[%s12200_s3 + $0x120] ss:$8 sps:$4 sm:$0xff]  }
 0x22d   : > { %v8348_v62 = vpop.eup %8347  ;;  %1881 = vmatpush1.bf16.msra.mxu1 %v1484_v44  ;;  %v7826_v44 = vld [vmem:[%s12200_s3 + $0x130] ss:$8 sps:$4 sm:$0xff]  }
 0x22e   : > { %v8350_v9 = vpop.eup %8349 }
 0x22f   : > { %v8352_v13 = vpop.eup %8351  ;;  %v1486_v49 = vpack.c.bf16 %v8350_v9, %v8342_v20 }
 0x230   : > { %v8354_v55 = vpop.eup %8353  ;;  %v1488_v52 = vpack.c.bf16 %v8352_v13, %v8346_v16 }
 0x231   : > { %v8356_v60 = vpop.eup %8355  ;;  %v1487_v51 = vpack.c.bf16 %v8354_v55, %v8344_v8 }
 0x232   : > { %v1489_v54 = vpack.c.bf16 %v8356_v60, %v8348_v62 }
 0x233   : > { %1749 = vmatprep.subr.bf16.mxu0 %v1487_v51 }
 0x234   : > { %1882 = vmatprep.subr.bf16.mxu1 %v1489_v54  ;;  %1750 = vmatpush1.bf16.msra.mxu0 %v1486_v49 }
 0x235   : > { %1883 = vmatpush1.bf16.msra.mxu1 %v1488_v52 }
 0x237   : > { %1764 = vmatmul.mubr.bf16.vlgmr.msra.gmra.mrb[40].mxu0 %v7797_v28 }
 0x238   : > { %1897 = vmatmul.mubr.bf16.vlgmr.msra.gmra.mrb[40].mxu1 %v7797_v28  ;;  %7139 = vmatprep.mubr.msk.bf16.mxu0 %vm1052_vm0, %v7800_v24 }
 0x239   : > { %7149 = vmatprep.mubr.msk.bf16.mxu1 %vm1052_vm0, %v7800_v24 }
 0x23f   : > { %1774 = vmatmul.mubr.bf16.gmra.mrb[44].mxu0 %v7802_v23 }
 0x240   : > { %1907 = vmatmul.mubr.bf16.gmra.mrb[44].mxu1 %v7802_v23  ;;  %7140 = vmatprep.mubr.msk.bf16.mxu0 %vm1052_vm0, %v7803_v34 }
 0x241   : > { %7150 = vmatprep.mubr.msk.bf16.mxu1 %vm1052_vm0, %v7803_v34 }
 0x247   : > { %1784 = vmatmul.mubr.bf16.gmra.mrb[48].mxu0 %v7805_v3 }
 0x248   : > { %1917 = vmatmul.mubr.bf16.gmra.mrb[48].mxu1 %v7805_v3  ;;  %7141 = vmatprep.mubr.msk.bf16.mxu0 %vm1052_vm0, %v7806_v33 }
 0x249   : > { %7151 = vmatprep.mubr.msk.bf16.mxu1 %vm1052_vm0, %v7806_v33 }
 0x24f   : > { %1794 = vmatmul.mubr.bf16.gmra.mrb[52].mxu0 %v7808_v58 }
 0x250   : > { %1927 = vmatmul.mubr.bf16.gmra.mrb[52].mxu1 %v7808_v58  ;;  %7142 = vmatprep.mubr.msk.bf16.mxu0 %vm1052_vm0, %v7809_v21 }
 0x251   : > { %7152 = vmatprep.mubr.msk.bf16.mxu1 %vm1052_vm0, %v7809_v21 }
 0x257   : > { %1804 = vmatmul.mubr.bf16.gmra.mrb[56].mxu0 %v7811_v47 }
 0x258   : > { %1937 = vmatmul.mubr.bf16.gmra.mrb[56].mxu1 %v7811_v47  ;;  %7143 = vmatprep.mubr.msk.bf16.mxu0 %vm1052_vm0, %v7812_v6 }
 0x259   : > { %7153 = vmatprep.mubr.msk.bf16.mxu1 %vm1052_vm0, %v7812_v6 }
 0x25f   : > { %1814 = vmatmul.mubr.bf16.gmra.mrb[60].mxu0 %v7814_v4 }
 0x260   : > { %1947 = vmatmul.mubr.bf16.gmra.mrb[60].mxu1 %v7814_v4  ;;  %7144 = vmatprep.mubr.msk.bf16.mxu0 %vm1052_vm0, %v7815_v53 }
 0x261   : > { %7154 = vmatprep.mubr.msk.bf16.mxu1 %vm1052_vm0, %v7815_v53 }
 0x267   : > { %1824 = vmatmul.mubr.bf16.gmra.mrb[64].mxu0 %v7817_v31 }
 0x268   : > { %1957 = vmatmul.mubr.bf16.gmra.mrb[64].mxu1 %v7817_v31  ;;  %7145 = vmatprep.mubr.msk.bf16.mxu0 %vm1052_vm0, %v7818_v15 }
 0x269   : > { %7155 = vmatprep.mubr.msk.bf16.mxu1 %vm1052_vm0, %v7818_v15 }
 0x26f   : > { %1834 = vmatmul.mubr.bf16.gmra.mrb[68].mxu0 %v7820_v25 }
 0x270   : > { %1967 = vmatmul.mubr.bf16.gmra.mrb[68].mxu1 %v7820_v25  ;;  %7146 = vmatprep.mubr.msk.bf16.mxu0 %vm1052_vm0, %v7821_v36 }
 0x271   : > { %7156 = vmatprep.mubr.msk.bf16.mxu1 %vm1052_vm0, %v7821_v36 }
 0x277   : > { %1844 = vmatmul.mubr.bf16.gmra.mrb[72].mxu0 %v7823_v43 }
 0x278   : > { %1977 = vmatmul.mubr.bf16.gmra.mrb[72].mxu1 %v7823_v43  ;;  %7147 = vmatprep.mubr.msk.bf16.mxu0 %vm1052_vm0, %v7824_v61 }
 0x279   : > { %7157 = vmatprep.mubr.msk.bf16.mxu1 %vm1052_vm0, %v7824_v61 }
 0x27f   : > { %1854 = vmatmul.mubr.bf16.gmra.mrb[76].mxu0 %v7826_v44 }
 0x280   : > { %1987 = vmatmul.mubr.bf16.gmra.mrb[76].mxu1 %v7826_v44  ;;  %7218 = vmatprep.mubr.msk.bf16.mxu0 %vm1052_vm0, %v7829_v2 }
 0x281   : > { %7228 = vmatprep.mubr.msk.bf16.mxu1 %vm1052_vm0, %v7829_v2 }
 0x30a   : > { %v1765_v39 = vpop.f32.mrb[40].mxu0 }
 0x30b   : > { %v1766_v20 = vadd.f32 %v1765_v39, %v10348_v19  ;;  %v1898_v12 = vpop.f32.mrb[40].mxu1  ;;  %v1767_v8 = vpop.f32.mrb[41].mxu0 }
 0x30c   : > { %v1899_v16 = vadd.f32 %v1898_v12, %v10348_v19  ;;  %v1768_v62 = vadd.f32 %v1767_v8, %v10348_v19  ;;  %v1900_v9 = vpop.f32.mrb[41].mxu1  ;;  %v1769_v13 = vpop.f32.mrb[42].mxu0 }
 0x30d   : > { %8357 = vtanh.f32 %v1766_v20  ;;  %v1901_v49 = vadd.f32 %v1900_v9, %v10348_v19  ;;  %v1770_v55 = vadd.f32 %v1769_v13, %v10346_v18  ;;  %v1902_v52 = vpop.f32.mrb[42].mxu1  ;;  %v1771_v60 = vpop.f32.mrb[43].mxu0 }
 0x30e   : > { %8359 = vtanh.f32 %v1899_v16  ;;  %v1903_v51 = vadd.f32 %v1902_v52, %v10346_v18  ;;  %v1904_v54 = vpop.f32.mrb[43].mxu1  ;;  %v1772_v28 = vadd.f32 %v1771_v60, %v10346_v18 }
 0x30f   : > { %8361 = vtanh.f32 %v1768_v62  ;;  %v1905_v24 = vadd.f32 %v1904_v54, %v10346_v18 }
 0x310   : > { %8363 = vtanh.f32 %v1901_v49 }
 0x311   : > { %8365 = vtanh.f32 %v1770_v55 }
 0x312   : > { %8367 = vtanh.f32 %v1903_v51  ;;  %v1775_v23 = vpop.f32.mrb[44].mxu0 }
 0x313   : > { %8369 = vtanh.f32 %v1772_v28  ;;  %v1776_v19 = vadd.f32 %v1775_v23, %v10364_v27  ;;  %v1908_v34 = vpop.f32.mrb[44].mxu1  ;;  %v1777_v3 = vpop.f32.mrb[45].mxu0 }
 0x314   : > { %8371 = vtanh.f32 %v1905_v24  ;;  %v1909_v33 = vadd.f32 %v1908_v34, %v10364_v27  ;;  %v1778_v58 = vadd.f32 %v1777_v3, %v10364_v27  ;;  %v1910_v21 = vpop.f32.mrb[45].mxu1  ;;  %v1779_v47 = vpop.f32.mrb[46].mxu0 }
 0x315   : > { %8373 = vtanh.f32 %v1776_v19  ;;  %v1911_v6 = vadd.f32 %v1910_v21, %v10364_v27  ;;  %v1780_v18 = vadd.f32 %v1779_v47, %v10362_v26  ;;  %v1912_v4 = vpop.f32.mrb[46].mxu1  ;;  %v1781_v53 = vpop.f32.mrb[47].mxu0 }
 0x316   : > { %8375 = vtanh.f32 %v1909_v33  ;;  %v1913_v31 = vadd.f32 %v1912_v4, %v10362_v26  ;;  %v1914_v15 = vpop.f32.mrb[47].mxu1  ;;  %v1782_v36 = vadd.f32 %v1781_v53, %v10362_v26 }
 0x317   : > { %v8358_v25 = vpop.eup %8357  ;;  %8377 = vtanh.f32 %v1778_v58  ;;  %v1915_v61 = vadd.f32 %v1914_v15, %v10362_v26 }
 0x318   : > { %v8360_v43 = vpop.eup %8359  ;;  %8379 = vtanh.f32 %v1911_v6 }
 0x319   : > { %v8362_v44 = vpop.eup %8361  ;;  %8381 = vtanh.f32 %v1780_v18 }
 0x31a   : > { %v8364_v2 = vpop.eup %8363  ;;  %8383 = vtanh.f32 %v1913_v31  ;;  %v1785_v27 = vpop.f32.mrb[48].mxu0 }
 0x31b   : > { %v8366_v39 = vpop.eup %8365  ;;  %8385 = vtanh.f32 %v1782_v36  ;;  %v1786_v20 = vadd.f32 %v1785_v27, %v10379_v32  ;;  %v1918_v12 = vpop.f32.mrb[48].mxu1 }
 0x31c   : > { %v1787_v8 = vpop.f32.mrb[49].mxu0  ;;  %v8368_v16 = vpop.eup %8367  ;;  %8387 = vtanh.f32 %v1915_v61  ;;  %v1919_v62 = vadd.f32 %v1918_v12, %v10379_v32  ;;  %v2098_v26 = vpack.c.bf16 %v8366_v39, %v8358_v25 }
 0x31d   : > { %v1788_v9 = vadd.f32 %v1787_v8, %v10379_v32  ;;  %v1920_v13 = vpop.f32.mrb[49].mxu1  ;;  %v1789_v49 = vpop.f32.mrb[50].mxu0  ;;  %8389 = vtanh.f32 %v1786_v20  ;;  %v2100_v28 = vpack.c.bf16 %v8368_v16, %v8360_v43 }
 0x31e   : > { %v8370_v55 = vpop.eup %8369  ;;  %v1921_v52 = vadd.f32 %v1920_v13, %v10379_v32  ;;  %v1790_v60 = vadd.f32 %v1789_v49, %v10374_v30  ;;  %v1922_v51 = vpop.f32.mrb[50].mxu1  ;;  %8391 = vtanh.f32 %v1919_v62 }
 0x31f   : > { %v1791_v54 = vpop.f32.mrb[51].mxu0  ;;  %v8372_v24 = vpop.eup %8371  ;;  %v1923_v23 = vadd.f32 %v1922_v51, %v10374_v30  ;;  %v2099_v34 = vpack.c.bf16 %v8370_v55, %v8362_v44  ;;  %8393 = vtanh.f32 %v1788_v9 }
 0x320   : > { %v1924_v19 = vpop.f32.mrb[51].mxu1  ;;  %v8374_v3 = vpop.eup %8373  ;;  %v1792_v33 = vadd.f32 %v1791_v54, %v10374_v30  ;;  %v2101_v58 = vpack.c.bf16 %v8372_v24, %v8364_v2  ;;  %8395 = vtanh.f32 %v1921_v52 }
 0x321   : > { %v8376_v21 = vpop.eup %8375  ;;  %v1925_v32 = vadd.f32 %v1924_v19, %v10374_v30  ;;  %2379 = vmatprep.subr.bf16.mxu0 %v2099_v34  ;;  %8397 = vtanh.f32 %v1790_v60 }
 0x322   : > { %v8378_v47 = vpop.eup %8377  ;;  %2512 = vmatprep.subr.bf16.mxu1 %v2101_v58  ;;  %2380 = vmatpush1.bf16.msra.mxu0 %v2098_v26  ;;  %8399 = vtanh.f32 %v1923_v23  ;;  %v1795_v18 = vpop.f32.mrb[52].mxu0 }
 0x323   : > { %v8380_v6 = vpop.eup %8379  ;;  %2513 = vmatpush1.bf16.msra.mxu1 %v2100_v28  ;;  %8401 = vtanh.f32 %v1792_v33  ;;  %v1796_v53 = vadd.f32 %v1795_v18, %v10395_v40  ;;  %v1928_v31 = vpop.f32.mrb[52].mxu1 }
 0x324   : > { %v8382_v4 = vpop.eup %8381  ;;  %v1797_v15 = vpop.f32.mrb[53].mxu0  ;;  %8403 = vtanh.f32 %v1925_v32  ;;  %v1929_v36 = vadd.f32 %v1928_v31, %v10395_v40 }
 0x325   : > { %v8384_v25 = vpop.eup %8383  ;;  %v1798_v30 = vadd.f32 %v1797_v15, %v10395_v40  ;;  %v1930_v43 = vpop.f32.mrb[53].mxu1  ;;  %v2102_v44 = vpack.c.bf16 %v8382_v4, %v8374_v3  ;;  %8405 = vtanh.f32 %v1796_v53 }
 0x326   : > { %v1799_v61 = vpop.f32.mrb[54].mxu0  ;;  %v8386_v2 = vpop.eup %8385  ;;  %v1931_v27 = vadd.f32 %v1930_v43, %v10395_v40  ;;  %v2104_v8 = vpack.c.bf16 %v8384_v25, %v8376_v21  ;;  %8407 = vtanh.f32 %v1929_v36 }
 0x327   : > { %v1800_v39 = vadd.f32 %v1799_v61, %v10390_v38  ;;  %v1932_v20 = vpop.f32.mrb[54].mxu1  ;;  %v1801_v12 = vpop.f32.mrb[55].mxu0  ;;  %v2103_v13 = vpack.c.bf16 %v8386_v2, %v8378_v47  ;;  %8409 = vtanh.f32 %v1798_v30 }
 0x328   : > { %v8388_v16 = vpop.eup %8387  ;;  %v1933_v62 = vadd.f32 %v1932_v20, %v10390_v38  ;;  %v1934_v9 = vpop.f32.mrb[55].mxu1  ;;  %v1802_v26 = vadd.f32 %v1801_v12, %v10390_v38  ;;  %8411 = vtanh.f32 %v1931_v27 }
 0x329   : > { %v8390_v49 = vpop.eup %8389  ;;  %v2105_v55 = vpack.c.bf16 %v8388_v16, %v8380_v6  ;;  %v1935_v40 = vadd.f32 %v1934_v9, %v10390_v38  ;;  %2381 = vmatprep.subr.bf16.mxu0 %v2103_v13  ;;  %8413 = vtanh.f32 %v1800_v39 }
 0x32a   : > { %v8392_v52 = vpop.eup %8391  ;;  %2382 = vmatpush1.bf16.msra.mxu0 %v2102_v44  ;;  %8415 = vtanh.f32 %v1933_v62  ;;  %v1805_v54 = vpop.f32.mrb[56].mxu0 }
 0x32b   : > { %v8394_v60 = vpop.eup %8393  ;;  %2514 = vmatprep.subr.bf16.mxu1 %v2105_v55  ;;  %8417 = vtanh.f32 %v1802_v26  ;;  %v1806_v24 = vadd.f32 %v1805_v54, %v10407_v46  ;;  %v1938_v23 = vpop.f32.mrb[56].mxu1 }
 0x32c   : > { %v8396_v51 = vpop.eup %8395  ;;  %2515 = vmatpush1.bf16.msra.mxu1 %v2104_v8  ;;  %v1807_v19 = vpop.f32.mrb[57].mxu0  ;;  %8419 = vtanh.f32 %v1935_v40  ;;  %v1939_v3 = vadd.f32 %v1938_v23, %v10407_v46 }
 0x32d   : > { %v8398_v28 = vpop.eup %8397  ;;  %v1808_v38 = vadd.f32 %v1807_v19, %v10407_v46  ;;  %v1940_v33 = vpop.f32.mrb[57].mxu1  ;;  %8421 = vtanh.f32 %v1806_v24 }
 0x32e   : > { %v8400_v34 = vpop.eup %8399  ;;  %v1809_v58 = vpop.f32.mrb[58].mxu0  ;;  %v2106_v21 = vpack.c.bf16 %v8398_v28, %v8390_v49  ;;  %v1941_v47 = vadd.f32 %v1940_v33, %v10407_v46  ;;  %8423 = vtanh.f32 %v1939_v3 }
 0x32f   : > { %v8402_v32 = vpop.eup %8401  ;;  %v1810_v6 = vadd.f32 %v1809_v58, %v10402_v42  ;;  %v1942_v18 = vpop.f32.mrb[58].mxu1  ;;  %v2108_v53 = vpack.c.bf16 %v8400_v34, %v8392_v52  ;;  %8425 = vtanh.f32 %v1808_v38 }
 0x330   : > { %v1811_v4 = vpop.f32.mrb[59].mxu0  ;;  %v8404_v31 = vpop.eup %8403  ;;  %v1943_v15 = vadd.f32 %v1942_v18, %v10402_v42  ;;  %v2107_v36 = vpack.c.bf16 %v8402_v32, %v8394_v60  ;;  %8427 = vtanh.f32 %v1941_v47 }
 0x331   : > { %v1944_v25 = vpop.f32.mrb[59].mxu1  ;;  %v8406_v30 = vpop.eup %8405  ;;  %v1812_v43 = vadd.f32 %v1811_v4, %v10402_v42  ;;  %v2109_v61 = vpack.c.bf16 %v8404_v31, %v8396_v51  ;;  %8429 = vtanh.f32 %v1810_v6 }
 0x332   : > { %v8408_v44 = vpop.eup %8407  ;;  %v1945_v46 = vadd.f32 %v1944_v25, %v10402_v42  ;;  %2383 = vmatprep.subr.bf16.mxu0 %v2107_v36  ;;  %8431 = vtanh.f32 %v1943_v15  ;;  %v1815_v39 = vpop.f32.mrb[60].mxu0 }
 0x333   : > { %v8410_v2 = vpop.eup %8409  ;;  %2516 = vmatprep.subr.bf16.mxu1 %v2109_v61  ;;  %2384 = vmatpush1.bf16.msra.mxu0 %v2106_v21  ;;  %8433 = vtanh.f32 %v1812_v43  ;;  %v1816_v12 = vadd.f32 %v1815_v39, %v10423_v10  ;;  %v1948_v8 = vpop.f32.mrb[60].mxu1 }
 0x334   : > { %v8412_v27 = vpop.eup %8411  ;;  %2517 = vmatpush1.bf16.msra.mxu1 %v2108_v53  ;;  %v1817_v16 = vpop.f32.mrb[61].mxu0  ;;  %8435 = vtanh.f32 %v1945_v46  ;;  %v1949_v9 = vadd.f32 %v1948_v8, %v10423_v10 }
 0x335   : > { %v8414_v20 = vpop.eup %8413  ;;  %v1818_v42 = vadd.f32 %v1817_v16, %v10423_v10  ;;  %v1950_v13 = vpop.f32.mrb[61].mxu1  ;;  %8437 = vtanh.f32 %v1816_v12 }
 0x336   : > { %v8416_v62 = vpop.eup %8415  ;;  %v1819_v49 = vpop.f32.mrb[62].mxu0  ;;  %v2110_v26 = vpack.c.bf16 %v8414_v20, %v8406_v30  ;;  %v1951_v52 = vadd.f32 %v1950_v13, %v10423_v10  ;;  %8439 = vtanh.f32 %v1949_v9 }
 0x337   : > { %v8418_v55 = vpop.eup %8417  ;;  %v1820_v40 = vadd.f32 %v1819_v49, %v10418_v50  ;;  %v1952_v60 = vpop.f32.mrb[62].mxu1  ;;  %v2112_v54 = vpack.c.bf16 %v8416_v62, %v8408_v44  ;;  %8441 = vtanh.f32 %v1818_v42 }
 0x338   : > { %v1821_v51 = vpop.f32.mrb[63].mxu0  ;;  %v8420_v28 = vpop.eup %8419  ;;  %v1953_v24 = vadd.f32 %v1952_v60, %v10418_v50  ;;  %v2111_v19 = vpack.c.bf16 %v8418_v55, %v8410_v2  ;;  %8443 = vtanh.f32 %v1951_v52 }
 0x339   : > { %v1954_v23 = vpop.f32.mrb[63].mxu1  ;;  %v8422_v34 = vpop.eup %8421  ;;  %v1822_v3 = vadd.f32 %v1821_v51, %v10418_v50  ;;  %v2113_v38 = vpack.c.bf16 %v8420_v28, %v8412_v27  ;;  %8445 = vtanh.f32 %v1820_v40 }
 0x33a   : > { %v8424_v33 = vpop.eup %8423  ;;  %v1955_v10 = vadd.f32 %v1954_v23, %v10418_v50  ;;  %2385 = vmatprep.subr.bf16.mxu0 %v2111_v19  ;;  %8447 = vtanh.f32 %v1953_v24  ;;  %v1825_v32 = vpop.f32.mrb[64].mxu0 }
 0x33b   : > { %v8426_v58 = vpop.eup %8425  ;;  %2518 = vmatprep.subr.bf16.mxu1 %v2113_v38  ;;  %2386 = vmatpush1.bf16.msra.mxu0 %v2110_v26  ;;  %8449 = vtanh.f32 %v1822_v3  ;;  %v1826_v6 = vadd.f32 %v1825_v32, %v10435_v59  ;;  %v1958_v18 = vpop.f32.mrb[64].mxu1 }
 0x33c   : > { %v8428_v21 = vpop.eup %8427  ;;  %2519 = vmatpush1.bf16.msra.mxu1 %v2112_v54  ;;  %v1827_v4 = vpop.f32.mrb[65].mxu0  ;;  %8451 = vtanh.f32 %v1955_v10  ;;  %v1959_v31 = vadd.f32 %v1958_v18, %v10435_v59 }
 0x33d   : > { %v8430_v47 = vpop.eup %8429  ;;  %v1828_v50 = vadd.f32 %v1827_v4, %v10435_v59  ;;  %v1960_v15 = vpop.f32.mrb[65].mxu1  ;;  %8453 = vtanh.f32 %v1826_v6 }
 0x33e   : > { %v8432_v53 = vpop.eup %8431  ;;  %v1829_v25 = vpop.f32.mrb[66].mxu0  ;;  %v2114_v36 = vpack.c.bf16 %v8430_v47, %v8422_v34  ;;  %v1961_v43 = vadd.f32 %v1960_v15, %v10435_v59  ;;  %8455 = vtanh.f32 %v1959_v31 }
 0x33f   : > { %v8434_v30 = vpop.eup %8433  ;;  %v1830_v61 = vadd.f32 %v1829_v25, %v10430_v57  ;;  %v1962_v44 = vpop.f32.mrb[66].mxu1  ;;  %v2116_v2 = vpack.c.bf16 %v8432_v53, %v8424_v33  ;;  %8457 = vtanh.f32 %v1828_v50 }
 0x340   : > { %v1831_v46 = vpop.f32.mrb[67].mxu0  ;;  %v8436_v27 = vpop.eup %8435  ;;  %v1963_v39 = vadd.f32 %v1962_v44, %v10430_v57  ;;  %v2115_v12 = vpack.c.bf16 %v8434_v30, %v8426_v58  ;;  %8459 = vtanh.f32 %v1961_v43 }
 0x341   : > { %v1964_v20 = vpop.f32.mrb[67].mxu1  ;;  %v8438_v8 = vpop.eup %8437  ;;  %v1832_v16 = vadd.f32 %v1831_v46, %v10430_v57  ;;  %v2117_v62 = vpack.c.bf16 %v8436_v27, %v8428_v21  ;;  %8461 = vtanh.f32 %v1830_v61 }
 0x342   : > { %v8440_v9 = vpop.eup %8439  ;;  %v1965_v59 = vadd.f32 %v1964_v20, %v10430_v57  ;;  %2387 = vmatprep.subr.bf16.mxu0 %v2115_v12  ;;  %8463 = vtanh.f32 %v1963_v39  ;;  %v1835_v49 = vpop.f32.mrb[68].mxu0 }
 0x343   : > { %v8442_v42 = vpop.eup %8441  ;;  %2520 = vmatprep.subr.bf16.mxu1 %v2117_v62  ;;  %2388 = vmatpush1.bf16.msra.mxu0 %v2114_v36  ;;  %8465 = vtanh.f32 %v1832_v16  ;;  %v1836_v55 = vadd.f32 %v1835_v49, %v10451_v7  ;;  %v1968_v52 = vpop.f32.mrb[68].mxu1 }
 0x344   : > { %v8444_v13 = vpop.eup %8443  ;;  %2521 = vmatpush1.bf16.msra.mxu1 %v2116_v2  ;;  %v1837_v40 = vpop.f32.mrb[69].mxu0  ;;  %8467 = vtanh.f32 %v1965_v59  ;;  %v1969_v51 = vadd.f32 %v1968_v52, %v10451_v7 }
 0x345   : > { %v8446_v26 = vpop.eup %8445  ;;  %v1838_v57 = vadd.f32 %v1837_v40, %v10451_v7  ;;  %v1970_v54 = vpop.f32.mrb[69].mxu1  ;;  %8469 = vtanh.f32 %v1836_v55 }
 0x346   : > { %v8448_v60 = vpop.eup %8447  ;;  %v1839_v28 = vpop.f32.mrb[70].mxu0  ;;  %v2118_v24 = vpack.c.bf16 %v8446_v26, %v8438_v8  ;;  %v1971_v19 = vadd.f32 %v1970_v54, %v10451_v7  ;;  %8471 = vtanh.f32 %v1969_v51 }
 0x347   : > { %v8450_v23 = vpop.eup %8449  ;;  %v1840_v34 = vadd.f32 %v1839_v28, %v10446_v5  ;;  %v1972_v3 = vpop.f32.mrb[70].mxu1  ;;  %v2120_v33 = vpack.c.bf16 %v8448_v60, %v8440_v9  ;;  %8473 = vtanh.f32 %v1838_v57 }
 0x348   : > { %v1841_v38 = vpop.f32.mrb[71].mxu0  ;;  %v8452_v10 = vpop.eup %8451  ;;  %v1973_v58 = vadd.f32 %v1972_v3, %v10446_v5  ;;  %v2119_v32 = vpack.c.bf16 %v8450_v23, %v8442_v42  ;;  %8475 = vtanh.f32 %v1971_v19 }
 0x349   : > { %v1974_v21 = vpop.f32.mrb[71].mxu1  ;;  %v8454_v47 = vpop.eup %8453  ;;  %v1842_v6 = vadd.f32 %v1841_v38, %v10446_v5  ;;  %v2121_v18 = vpack.c.bf16 %v8452_v10, %v8444_v13  ;;  %8477 = vtanh.f32 %v1840_v34 }
 0x34a   : > { %v8456_v4 = vpop.eup %8455  ;;  %v1975_v7 = vadd.f32 %v1974_v21, %v10446_v5  ;;  %2389 = vmatprep.subr.bf16.mxu0 %v2119_v32  ;;  %8479 = vtanh.f32 %v1973_v58  ;;  %v1845_v50 = vpop.f32.mrb[72].mxu0 }
 0x34b   : > { %v8458_v53 = vpop.eup %8457  ;;  %2522 = vmatprep.subr.bf16.mxu1 %v2121_v18  ;;  %2390 = vmatpush1.bf16.msra.mxu0 %v2118_v24  ;;  %8481 = vtanh.f32 %v1842_v6  ;;  %v1846_v25 = vadd.f32 %v1845_v50, %v10466_v22  ;;  %v1978_v36 = vpop.f32.mrb[72].mxu1 }
 0x34c   : > { %v8460_v31 = vpop.eup %8459  ;;  %2523 = vmatpush1.bf16.msra.mxu1 %v2120_v33  ;;  %v1847_v30 = vpop.f32.mrb[73].mxu0  ;;  %8483 = vtanh.f32 %v1975_v7  ;;  %v1979_v61 = vadd.f32 %v1978_v36, %v10466_v22 }
 0x34d   : > { %v8462_v15 = vpop.eup %8461  ;;  %v1848_v5 = vadd.f32 %v1847_v30, %v10466_v22  ;;  %v1980_v44 = vpop.f32.mrb[73].mxu1  ;;  %8485 = vtanh.f32 %v1846_v25 }
 0x34e   : > { %v8464_v43 = vpop.eup %8463  ;;  %v1849_v46 = vpop.f32.mrb[74].mxu0  ;;  %v2122_v2 = vpack.c.bf16 %v8462_v15, %v8454_v47  ;;  %v1981_v39 = vadd.f32 %v1980_v44, %v10466_v22  ;;  %8487 = vtanh.f32 %v1979_v61 }
 0x34f   : > { %v8466_v27 = vpop.eup %8465  ;;  %v1850_v20 = vadd.f32 %v1849_v46, %v10458_v17  ;;  %v1982_v12 = vpop.f32.mrb[74].mxu1  ;;  %v2124_v16 = vpack.c.bf16 %v8464_v43, %v8456_v4  ;;  %8489 = vtanh.f32 %v1848_v5 }
 0x350   : > { %v1851_v8 = vpop.f32.mrb[75].mxu0  ;;  %v8468_v62 = vpop.eup %8467  ;;  %v1983_v9 = vadd.f32 %v1982_v12, %v10458_v17  ;;  %v2123_v42 = vpack.c.bf16 %v8466_v27, %v8458_v53  ;;  %8491 = vtanh.f32 %v1981_v39 }
 0x351   : > { %v1984_v59 = vpop.f32.mrb[75].mxu1  ;;  %v8470_v13 = vpop.eup %8469  ;;  %v1852_v49 = vadd.f32 %v1851_v8, %v10458_v17  ;;  %v2125_v26 = vpack.c.bf16 %v8468_v62, %v8460_v31  ;;  %8493 = vtanh.f32 %v1850_v20 }
 0x352   : > { %v8472_v55 = vpop.eup %8471  ;;  %v1985_v22 = vadd.f32 %v1984_v59, %v10458_v17  ;;  %2391 = vmatprep.subr.bf16.mxu0 %v2123_v42  ;;  %8495 = vtanh.f32 %v1983_v9  ;;  %v1855_v60 = vpop.f32.mrb[76].mxu0 }
 0x353   : > { %v8474_v52 = vpop.eup %8473  ;;  %2524 = vmatprep.subr.bf16.mxu1 %v2125_v26  ;;  %2392 = vmatpush1.bf16.msra.mxu0 %v2122_v2  ;;  %8497 = vtanh.f32 %v1852_v49  ;;  %v1856_v57 = vadd.f32 %v1855_v60, %v10479_v35  ;;  %v1988_v54 = vpop.f32.mrb[76].mxu1  ;;  %v7827_v49 = vld [vmem:[%s12200_s3 + $0x140] ss:$8 sps:$4 sm:$0xff]   ;;  %v7830_v26 = vld [vmem:[%s12200_s3 + $0x154] ss:$8 sps:$4 sm:$0xff]  }
 0x354   : > { %v8476_v40 = vpop.eup %8475  ;;  %2525 = vmatpush1.bf16.msra.mxu1 %v2124_v16  ;;  %v1857_v28 = vpop.f32.mrb[77].mxu0  ;;  %8499 = vtanh.f32 %v1985_v22  ;;  %v1989_v23 = vadd.f32 %v1988_v54, %v10479_v35  ;;  %v7833_v22 = vld [vmem:[%s12200_s3 + $0x164] ss:$8 sps:$4 sm:$0xff]   ;;  %v7838_v60 = vld [vmem:[%s12200_s3 + $0x170] ss:$8 sps:$4 sm:$0xff]  }
 0x355   : > { %v8478_v51 = vpop.eup %8477  ;;  %v1858_v17 = vadd.f32 %v1857_v28, %v10479_v35  ;;  %v1990_v19 = vpop.f32.mrb[77].mxu1  ;;  %8501 = vtanh.f32 %v1856_v57  ;;  %v7841_v57 = vld [vmem:[%s12200_s3 + $0x180] ss:$8 sps:$4 sm:$0xff]   ;;  %v7842_v54 = vld [vmem:[%s12200_s3 + $0x194] ss:$8 sps:$4 sm:$0xff]  }
 0x356   : > { %v8480_v24 = vpop.eup %8479  ;;  %v1859_v34 = vpop.f32.mrb[78].mxu0  ;;  %v2126_v3 = vpack.c.bf16 %v8478_v51, %v8470_v13  ;;  %v1991_v33 = vadd.f32 %v1990_v19, %v10479_v35  ;;  %8503 = vtanh.f32 %v1989_v23  ;;  %v7839_v51 = vld [vmem:[%s12200_s3 + $0x184] ss:$8 sps:$4 sm:$0xff]   ;;  %v7844_v28 = vld [vmem:[%s12200_s3 + $0x190] ss:$8 sps:$4 sm:$0xff]  }
 0x357   : > { %v8482_v38 = vpop.eup %8481  ;;  %v1860_v10 = vadd.f32 %v1859_v34, %v10474_v29  ;;  %v1992_v58 = vpop.f32.mrb[78].mxu1  ;;  %v2128_v32 = vpack.c.bf16 %v8480_v24, %v8472_v55  ;;  %8505 = vtanh.f32 %v1858_v17  ;;  %v7832_v55 = vld [vmem:[%s12200_s3 + $0x150] ss:$8 sps:$4 sm:$0xff]   ;;  %v7845_v24 = vld [vmem:[%s12200_s3 + $0x1a4] ss:$8 sps:$4 sm:$0xff]  }
 0x358   : > { %v1861_v21 = vpop.f32.mrb[79].mxu0  ;;  %v8484_v47 = vpop.eup %8483  ;;  %v1993_v6 = vadd.f32 %v1992_v58, %v10474_v29  ;;  %v2127_v4 = vpack.c.bf16 %v8482_v38, %v8474_v52  ;;  %8507 = vtanh.f32 %v1991_v33  ;;  %v7835_v52 = vld [vmem:[%s12200_s3 + $0x160] ss:$8 sps:$4 sm:$0xff]   ;;  %v7848_v17 = vld [vmem:[%s12200_s3 + $0x1b4] ss:$8 sps:$4 sm:$0xff]  }
 0x359   : > { %v1994_v18 = vpop.f32.mrb[79].mxu1  ;;  %v8486_v7 = vpop.eup %8485  ;;  %v1862_v53 = vadd.f32 %v1861_v21, %v10474_v29  ;;  %v2129_v31 = vpack.c.bf16 %v8484_v47, %v8476_v40  ;;  %8509 = vtanh.f32 %v1860_v10  ;;  %v7836_v40 = vld [vmem:[%s12200_s3 + $0x174] ss:$8 sps:$4 sm:$0xff]   ;;  %v7847_v23 = vld [vmem:[%s12200_s3 + $0x1a0] ss:$8 sps:$4 sm:$0xff]  }
 0x35a   : > { %v8488_v50 = vpop.eup %8487  ;;  %v1995_v35 = vadd.f32 %v1994_v18, %v10474_v29  ;;  %2393 = vmatprep.subr.bf16.mxu0 %v2127_v4  ;;  %8511 = vtanh.f32 %v1993_v6  ;;  %v7850_v19 = vld [vmem:[%s12200_s3 + $0x1b0] ss:$8 sps:$4 sm:$0xff]   ;;  %v7851_v34 = vld [vmem:[%s12200_s3 + $0x1c4] ss:$8 sps:$4 sm:$0xff]   ;;  %v7854_v38 = vld [vmem:[%s12200_s3 + $0x1d4] ss:$8 sps:$4 sm:$0xff]  }
 0x35b   : > { %v8490_v15 = vpop.eup %8489  ;;  %2526 = vmatprep.subr.bf16.mxu1 %v2129_v31  ;;  %2394 = vmatpush1.bf16.msra.mxu0 %v2126_v3  ;;  %8513 = vtanh.f32 %v1862_v53  ;;  %v7853_v3 = vld [vmem:[%s12200_s3 + $0x1c0] ss:$8 sps:$4 sm:$0xff]   ;;  %v7856_v33 = vld [vmem:[%s12200_s3 + $0x1d0] ss:$8 sps:$4 sm:$0xff]   ;;  %v7859_v10 = vld [vmem:[%s12200_s3 + $0x1e4] ss:$8 sps:$4 sm:$0xff]  }
 0x35c   : > { %v8492_v25 = vpop.eup %8491  ;;  %2527 = vmatpush1.bf16.msra.mxu1 %v2128_v32  ;;  %8515 = vtanh.f32 %v1995_v35 }
 0x35d   : > { %v8494_v36 = vpop.eup %8493 }
 0x35e   : > { %v8496_v30 = vpop.eup %8495  ;;  %v2130_v43 = vpack.c.bf16 %v8494_v36, %v8486_v7 }
 0x35f   : > { %v8498_v61 = vpop.eup %8497  ;;  %v2132_v5 = vpack.c.bf16 %v8496_v30, %v8488_v50 }
 0x360   : > { %v8500_v44 = vpop.eup %8499  ;;  %v2131_v46 = vpack.c.bf16 %v8498_v61, %v8490_v15 }
 0x361   : > { %v8502_v2 = vpop.eup %8501  ;;  %v2133_v27 = vpack.c.bf16 %v8500_v44, %v8492_v25 }
 0x362   : > { %v8504_v29 = vpop.eup %8503  ;;  %2395 = vmatprep.subr.bf16.mxu0 %v2131_v46 }
 0x363   : > { %v8506_v39 = vpop.eup %8505  ;;  %2528 = vmatprep.subr.bf16.mxu1 %v2133_v27  ;;  %2396 = vmatpush1.bf16.msra.mxu0 %v2130_v43 }
 0x364   : > { %v8508_v20 = vpop.eup %8507  ;;  %2529 = vmatpush1.bf16.msra.mxu1 %v2132_v5 }
 0x365   : > { %v8510_v12 = vpop.eup %8509 }
 0x366   : > { %v8512_v8 = vpop.eup %8511  ;;  %v2134_v16 = vpack.c.bf16 %v8510_v12, %v8502_v2 }
 0x367   : > { %v8514_v62 = vpop.eup %8513  ;;  %v2136_v9 = vpack.c.bf16 %v8512_v8, %v8504_v29 }
 0x368   : > { %v8516_v59 = vpop.eup %8515  ;;  %v2135_v42 = vpack.c.bf16 %v8514_v62, %v8506_v39 }
 0x369   : > { %v2137_v13 = vpack.c.bf16 %v8516_v59, %v8508_v20 }
 0x36a   : > { %2397 = vmatprep.subr.bf16.mxu0 %v2135_v42 }
 0x36b   : > { %2530 = vmatprep.subr.bf16.mxu1 %v2137_v13  ;;  %2398 = vmatpush1.bf16.msra.mxu0 %v2134_v16 }
 0x36c   : > { %2531 = vmatpush1.bf16.msra.mxu1 %v2136_v9 }
 0x36e   : > { %2412 = vmatmul.mubr.bf16.vlgmr.msra.gmra.mrb[80].mxu0 %v7827_v49 }
 0x36f   : > { %2545 = vmatmul.mubr.bf16.vlgmr.msra.gmra.mrb[80].mxu1 %v7827_v49  ;;  %7219 = vmatprep.mubr.msk.bf16.mxu0 %vm1052_vm0, %v7830_v26 }
 0x370   : > { %7229 = vmatprep.mubr.msk.bf16.mxu1 %vm1052_vm0, %v7830_v26  ;;  %v12318_v26 = vld [vmem:[#allocation8_spill] sm:$0xff] }
 0x376   : > { %2422 = vmatmul.mubr.bf16.gmra.mrb[84].mxu0 %v7832_v55 }
 0x377   : > { %2555 = vmatmul.mubr.bf16.gmra.mrb[84].mxu1 %v7832_v55  ;;  %7220 = vmatprep.mubr.msk.bf16.mxu0 %vm1052_vm0, %v7833_v22 }
 0x378   : > { %7230 = vmatprep.mubr.msk.bf16.mxu1 %vm1052_vm0, %v7833_v22 }
 0x37e   : > { %2432 = vmatmul.mubr.bf16.gmra.mrb[88].mxu0 %v7835_v52 }
 0x37f   : > { %2565 = vmatmul.mubr.bf16.gmra.mrb[88].mxu1 %v7835_v52  ;;  %7221 = vmatprep.mubr.msk.bf16.mxu0 %vm1052_vm0, %v7836_v40 }
 0x380   : > { %7231 = vmatprep.mubr.msk.bf16.mxu1 %vm1052_vm0, %v7836_v40 }
 0x386   : > { %2442 = vmatmul.mubr.bf16.gmra.mrb[92].mxu0 %v7838_v60 }
 0x387   : > { %2575 = vmatmul.mubr.bf16.gmra.mrb[92].mxu1 %v7838_v60  ;;  %7222 = vmatprep.mubr.msk.bf16.mxu0 %vm1052_vm0, %v7839_v51 }
 0x388   : > { %7232 = vmatprep.mubr.msk.bf16.mxu1 %vm1052_vm0, %v7839_v51 }
 0x38e   : > { %2452 = vmatmul.mubr.bf16.gmra.mrb[96].mxu0 %v7841_v57 }
 0x38f   : > { %2585 = vmatmul.mubr.bf16.gmra.mrb[96].mxu1 %v7841_v57  ;;  %7223 = vmatprep.mubr.msk.bf16.mxu0 %vm1052_vm0, %v7842_v54 }
 0x390   : > { %7233 = vmatprep.mubr.msk.bf16.mxu1 %vm1052_vm0, %v7842_v54 }
 0x396   : > { %2462 = vmatmul.mubr.bf16.gmra.mrb[100].mxu0 %v7844_v28 }
 0x397   : > { %2595 = vmatmul.mubr.bf16.gmra.mrb[100].mxu1 %v7844_v28  ;;  %7224 = vmatprep.mubr.msk.bf16.mxu0 %vm1052_vm0, %v7845_v24 }
 0x398   : > { %7234 = vmatprep.mubr.msk.bf16.mxu1 %vm1052_vm0, %v7845_v24 }
 0x39e   : > { %2472 = vmatmul.mubr.bf16.gmra.mrb[104].mxu0 %v7847_v23 }
 0x39f   : > { %2605 = vmatmul.mubr.bf16.gmra.mrb[104].mxu1 %v7847_v23  ;;  %7225 = vmatprep.mubr.msk.bf16.mxu0 %vm1052_vm0, %v7848_v17  ;;  %v12319_v23 = vld [vmem:[#allocation7_spill] sm:$0xff] }
 0x3a0   : > { %7235 = vmatprep.mubr.msk.bf16.mxu1 %vm1052_vm0, %v7848_v17 }
 0x3a6   : > { %2482 = vmatmul.mubr.bf16.gmra.mrb[108].mxu0 %v7850_v19 }
 0x3a7   : > { %2615 = vmatmul.mubr.bf16.gmra.mrb[108].mxu1 %v7850_v19  ;;  %7226 = vmatprep.mubr.msk.bf16.mxu0 %vm1052_vm0, %v7851_v34 }
 0x3a8   : > { %7236 = vmatprep.mubr.msk.bf16.mxu1 %vm1052_vm0, %v7851_v34 }
 0x3ae   : > { %2492 = vmatmul.mubr.bf16.gmra.mrb[112].mxu0 %v7853_v3 }
 0x3af   : > { %2625 = vmatmul.mubr.bf16.gmra.mrb[112].mxu1 %v7853_v3  ;;  %7227 = vmatprep.mubr.msk.bf16.mxu0 %vm1052_vm0, %v7854_v38 }
 0x3b0   : > { %7237 = vmatprep.mubr.msk.bf16.mxu1 %vm1052_vm0, %v7854_v38 }
 0x3b6   : > { %2502 = vmatmul.mubr.bf16.gmra.mrb[116].mxu0 %v7856_v33 }
 0x3b7   : > { %2635 = vmatmul.mubr.bf16.gmra.mrb[116].mxu1 %v7856_v33  ;;  %7298 = vmatprep.mubr.msk.bf16.mxu0 %vm1052_vm0, %v7859_v10 }
 0x3b8   : > { %7308 = vmatprep.mubr.msk.bf16.mxu1 %vm1052_vm0, %v7859_v10 }
 0x441   : > { %v2413_v58 = vpop.f32.mrb[80].mxu0 }
 0x442   : > { %v2414_v21 = vadd.f32 %v2413_v58, %v10500_v48  ;;  %v2546_v32 = vpop.f32.mrb[80].mxu1  ;;  %v2415_v47 = vpop.f32.mrb[81].mxu0 }
 0x443   : > { %v2547_v6 = vadd.f32 %v2546_v32, %v10500_v48  ;;  %v2416_v18 = vadd.f32 %v2415_v47, %v10500_v48  ;;  %v2548_v4 = vpop.f32.mrb[81].mxu1  ;;  %v2417_v7 = vpop.f32.mrb[82].mxu0 }
 0x444   : > { %8517 = vtanh.f32 %v2414_v21  ;;  %v2549_v53 = vadd.f32 %v2548_v4, %v10500_v48  ;;  %v2418_v31 = vadd.f32 %v2417_v7, %v10492_v41  ;;  %v2550_v50 = vpop.f32.mrb[82].mxu1  ;;  %v2419_v35 = vpop.f32.mrb[83].mxu0 }
 0x445   : > { %8519 = vtanh.f32 %v2547_v6  ;;  %v2551_v15 = vadd.f32 %v2550_v50, %v10492_v41  ;;  %v2552_v25 = vpop.f32.mrb[83].mxu1  ;;  %v2420_v36 = vadd.f32 %v2419_v35, %v10492_v41  ;;  %v12320_v50 = vld [vmem:[#allocation10_spill] sm:$0xff] }
 0x446   : > { %8521 = vtanh.f32 %v2416_v18  ;;  %v2553_v30 = vadd.f32 %v2552_v25, %v10492_v41 }
 0x447   : > { %8523 = vtanh.f32 %v2549_v53 }
 0x448   : > { %8525 = vtanh.f32 %v2418_v31 }
 0x449   : > { %8527 = vtanh.f32 %v2551_v15  ;;  %v2423_v43 = vpop.f32.mrb[84].mxu0 }
 0x44a   : > { %8529 = vtanh.f32 %v2420_v36  ;;  %v2424_v48 = vadd.f32 %v2423_v43, %v10515_v63  ;;  %v2556_v61 = vpop.f32.mrb[84].mxu1  ;;  %v2425_v5 = vpop.f32.mrb[85].mxu0 }
 0x44b   : > { %8531 = vtanh.f32 %v2553_v30  ;;  %v2557_v44 = vadd.f32 %v2556_v61, %v10515_v63  ;;  %v2426_v46 = vadd.f32 %v2425_v5, %v10515_v63  ;;  %v2558_v2 = vpop.f32.mrb[85].mxu1  ;;  %v2427_v27 = vpop.f32.mrb[86].mxu0 }
 0x44c   : > { %8533 = vtanh.f32 %v2424_v48  ;;  %v2559_v29 = vadd.f32 %v2558_v2, %v10515_v63  ;;  %v2428_v41 = vadd.f32 %v2427_v27, %v10509_v56  ;;  %v2560_v39 = vpop.f32.mrb[86].mxu1  ;;  %v2429_v20 = vpop.f32.mrb[87].mxu0  ;;  %v12321_v2 = vld [vmem:[#allocation9_spill] sm:$0xff] }
 0x44d   : > { %8535 = vtanh.f32 %v2557_v44  ;;  %v2561_v12 = vadd.f32 %v2560_v39, %v10509_v56  ;;  %v2562_v8 = vpop.f32.mrb[87].mxu1  ;;  %v2430_v62 = vadd.f32 %v2429_v20, %v10509_v56 }
 0x44e   : > { %v8518_v16 = vpop.eup %8517  ;;  %8537 = vtanh.f32 %v2426_v46  ;;  %v2563_v59 = vadd.f32 %v2562_v8, %v10509_v56 }
 0x44f   : > { %v8520_v9 = vpop.eup %8519  ;;  %8539 = vtanh.f32 %v2559_v29 }
 0x450   : > { %v8522_v42 = vpop.eup %8521  ;;  %8541 = vtanh.f32 %v2428_v41 }
 0x451   : > { %v8524_v13 = vpop.eup %8523  ;;  %8543 = vtanh.f32 %v2561_v12  ;;  %v2433_v63 = vpop.f32.mrb[88].mxu0 }
 0x452   : > { %v8526_v49 = vpop.eup %8525  ;;  %8545 = vtanh.f32 %v2430_v62  ;;  %v2434_v55 = vadd.f32 %v2433_v63, %v12318_v26  ;;  %v2566_v22 = vpop.f32.mrb[88].mxu1 }
 0x453   : > { %v2435_v52 = vpop.f32.mrb[89].mxu0  ;;  %v8528_v40 = vpop.eup %8527  ;;  %8547 = vtanh.f32 %v2563_v59  ;;  %v2567_v60 = vadd.f32 %v2566_v22, %v12318_v26  ;;  %v2746_v56 = vpack.c.bf16 %v8526_v49, %v8518_v16  ;;  %v12322_v22 = vld [vmem:[#allocation12_spill] sm:$0xff] }
 0x454   : > { %v2436_v51 = vadd.f32 %v2435_v52, %v12318_v26  ;;  %v2568_v57 = vpop.f32.mrb[89].mxu1  ;;  %v2437_v54 = vpop.f32.mrb[90].mxu0  ;;  %8549 = vtanh.f32 %v2434_v55  ;;  %v2748_v3 = vpack.c.bf16 %v8528_v40, %v8520_v9 }
 0x455   : > { %v8530_v28 = vpop.eup %8529  ;;  %v2569_v24 = vadd.f32 %v2568_v57, %v12318_v26  ;;  %v2438_v17 = vadd.f32 %v2437_v54, %v12319_v23  ;;  %v2570_v19 = vpop.f32.mrb[90].mxu1  ;;  %8551 = vtanh.f32 %v2567_v60 }
 0x456   : > { %v2439_v34 = vpop.f32.mrb[91].mxu0  ;;  %v8532_v38 = vpop.eup %8531  ;;  %v2571_v33 = vadd.f32 %v2570_v19, %v12319_v23  ;;  %v2747_v58 = vpack.c.bf16 %v8530_v28, %v8522_v42  ;;  %8553 = vtanh.f32 %v2436_v51  ;;  %v12323_v19 = vld [vmem:[#allocation11_spill] sm:$0xff] }
 0x457   : > { %v2572_v10 = vpop.f32.mrb[91].mxu1  ;;  %v8534_v21 = vpop.eup %8533  ;;  %v2440_v32 = vadd.f32 %v2439_v34, %v12319_v23  ;;  %v2749_v47 = vpack.c.bf16 %v8532_v38, %v8524_v13  ;;  %8555 = vtanh.f32 %v2569_v24 }
 0x458   : > { %v8536_v6 = vpop.eup %8535  ;;  %v2573_v18 = vadd.f32 %v2572_v10, %v12319_v23  ;;  %3027 = vmatprep.subr.bf16.mxu0 %v2747_v58  ;;  %8557 = vtanh.f32 %v2438_v17 }
 0x459   : > { %v8538_v4 = vpop.eup %8537  ;;  %3160 = vmatprep.subr.bf16.mxu1 %v2749_v47  ;;  %3028 = vmatpush1.bf16.msra.mxu0 %v2746_v56  ;;  %8559 = vtanh.f32 %v2571_v33  ;;  %v2443_v53 = vpop.f32.mrb[92].mxu0 }
 0x45a   : > { %v8540_v7 = vpop.eup %8539  ;;  %3161 = vmatpush1.bf16.msra.mxu1 %v2748_v3  ;;  %8561 = vtanh.f32 %v2440_v32  ;;  %v2444_v35 = vadd.f32 %v2443_v53, %v12320_v50  ;;  %v2576_v15 = vpop.f32.mrb[92].mxu1 }
 0x45b   : > { %v8542_v31 = vpop.eup %8541  ;;  %v2445_v25 = vpop.f32.mrb[93].mxu0  ;;  %8563 = vtanh.f32 %v2573_v18  ;;  %v2577_v30 = vadd.f32 %v2576_v15, %v12320_v50  ;;  %v12324_v15 = vld [vmem:[#allocation14_spill] sm:$0xff] }
 0x45c   : > { %v8544_v36 = vpop.eup %8543  ;;  %v2446_v43 = vadd.f32 %v2445_v25, %v12320_v50  ;;  %v2578_v48 = vpop.f32.mrb[93].mxu1  ;;  %v2750_v5 = vpack.c.bf16 %v8542_v31, %v8534_v21  ;;  %8565 = vtanh.f32 %v2444_v35 }
 0x45d   : > { %v2447_v61 = vpop.f32.mrb[94].mxu0  ;;  %v8546_v44 = vpop.eup %8545  ;;  %v2579_v46 = vadd.f32 %v2578_v48, %v12320_v50  ;;  %v2752_v39 = vpack.c.bf16 %v8544_v36, %v8536_v6  ;;  %8567 = vtanh.f32 %v2577_v30 }
 0x45e   : > { %v2448_v27 = vadd.f32 %v2447_v61, %v12321_v2  ;;  %v2580_v29 = vpop.f32.mrb[94].mxu1  ;;  %v2449_v41 = vpop.f32.mrb[95].mxu0  ;;  %v2751_v16 = vpack.c.bf16 %v8546_v44, %v8538_v4  ;;  %8569 = vtanh.f32 %v2446_v43 }
 0x45f   : > { %v8548_v20 = vpop.eup %8547  ;;  %v2581_v12 = vadd.f32 %v2580_v29, %v12321_v2  ;;  %v2582_v8 = vpop.f32.mrb[95].mxu1  ;;  %v2450_v9 = vadd.f32 %v2449_v41, %v12321_v2  ;;  %8571 = vtanh.f32 %v2579_v46  ;;  %v12325_v29 = vld [vmem:[#allocation13_spill] sm:$0xff] }
 0x460   : > { %v8550_v62 = vpop.eup %8549  ;;  %v2753_v59 = vpack.c.bf16 %v8548_v20, %v8540_v7  ;;  %v2583_v13 = vadd.f32 %v2582_v8, %v12321_v2  ;;  %3029 = vmatprep.subr.bf16.mxu0 %v2751_v16  ;;  %8573 = vtanh.f32 %v2448_v27 }
 0x461   : > { %v8552_v42 = vpop.eup %8551  ;;  %3030 = vmatpush1.bf16.msra.mxu0 %v2750_v5  ;;  %8575 = vtanh.f32 %v2581_v12  ;;  %v2453_v26 = vpop.f32.mrb[96].mxu0 }
 0x462   : > { %v8554_v63 = vpop.eup %8553  ;;  %3162 = vmatprep.subr.bf16.mxu1 %v2753_v59  ;;  %8577 = vtanh.f32 %v2450_v9  ;;  %v2454_v52 = vadd.f32 %v2453_v26, %v12322_v22  ;;  %v2586_v40 = vpop.f32.mrb[96].mxu1 }
 0x463   : > { %v8556_v49 = vpop.eup %8555  ;;  %3163 = vmatpush1.bf16.msra.mxu1 %v2752_v39  ;;  %v2455_v60 = vpop.f32.mrb[97].mxu0  ;;  %8579 = vtanh.f32 %v2583_v13  ;;  %v2587_v57 = vadd.f32 %v2586_v40, %v12322_v22  ;;  %v12326_v40 = vld [vmem:[#allocation16_spill] sm:$0xff] }
 0x464   : > { %v8558_v55 = vpop.eup %8557  ;;  %v2456_v54 = vadd.f32 %v2455_v60, %v12322_v22  ;;  %v2588_v56 = vpop.f32.mrb[97].mxu1  ;;  %8581 = vtanh.f32 %v2454_v52 }
 0x465   : > { %v8560_v51 = vpop.eup %8559  ;;  %v2457_v28 = vpop.f32.mrb[98].mxu0  ;;  %v2754_v24 = vpack.c.bf16 %v8558_v55, %v8550_v62  ;;  %v2589_v17 = vadd.f32 %v2588_v56, %v12322_v22  ;;  %8583 = vtanh.f32 %v2587_v57 }
 0x466   : > { %v8562_v23 = vpop.eup %8561  ;;  %v2458_v34 = vadd.f32 %v2457_v28, %v12323_v19  ;;  %v2590_v3 = vpop.f32.mrb[98].mxu1  ;;  %v2756_v33 = vpack.c.bf16 %v8560_v51, %v8552_v42  ;;  %8585 = vtanh.f32 %v2456_v54 }
 0x467   : > { %v2459_v38 = vpop.f32.mrb[99].mxu0  ;;  %v8564_v10 = vpop.eup %8563  ;;  %v2591_v58 = vadd.f32 %v2590_v3, %v12323_v19  ;;  %v2755_v32 = vpack.c.bf16 %v8562_v23, %v8554_v63  ;;  %8587 = vtanh.f32 %v2589_v17  ;;  %v12327_v3 = vld [vmem:[#allocation15_spill] sm:$0xff] }
 0x468   : > { %v2592_v21 = vpop.f32.mrb[99].mxu1  ;;  %v8566_v47 = vpop.eup %8565  ;;  %v2460_v6 = vadd.f32 %v2459_v38, %v12323_v19  ;;  %v2757_v18 = vpack.c.bf16 %v8564_v10, %v8556_v49  ;;  %8589 = vtanh.f32 %v2458_v34 }
 0x469   : > { %v8568_v4 = vpop.eup %8567  ;;  %v2593_v7 = vadd.f32 %v2592_v21, %v12323_v19  ;;  %3031 = vmatprep.subr.bf16.mxu0 %v2755_v32  ;;  %8591 = vtanh.f32 %v2591_v58  ;;  %v2463_v50 = vpop.f32.mrb[100].mxu0 }
 0x46a   : > { %v8570_v53 = vpop.eup %8569  ;;  %3164 = vmatprep.subr.bf16.mxu1 %v2757_v18  ;;  %3032 = vmatpush1.bf16.msra.mxu0 %v2754_v24  ;;  %8593 = vtanh.f32 %v2460_v6  ;;  %v2464_v25 = vadd.f32 %v2463_v50, %v12324_v15  ;;  %v2596_v36 = vpop.f32.mrb[100].mxu1 }
 0x46b   : > { %v8572_v31 = vpop.eup %8571  ;;  %3165 = vmatpush1.bf16.msra.mxu1 %v2756_v33  ;;  %v2465_v30 = vpop.f32.mrb[101].mxu0  ;;  %8595 = vtanh.f32 %v2593_v7  ;;  %v2597_v48 = vadd.f32 %v2596_v36, %v12324_v15  ;;  %v12328_v36 = vld [vmem:[#allocation18_spill] sm:$0xff] }
 0x46c   : > { %v8574_v35 = vpop.eup %8573  ;;  %v2466_v61 = vadd.f32 %v2465_v30, %v12324_v15  ;;  %v2598_v5 = vpop.f32.mrb[101].mxu1  ;;  %8597 = vtanh.f32 %v2464_v25 }
 0x46d   : > { %v8576_v43 = vpop.eup %8575  ;;  %v2467_v44 = vpop.f32.mrb[102].mxu0  ;;  %v2758_v46 = vpack.c.bf16 %v8574_v35, %v8566_v47  ;;  %v2599_v27 = vadd.f32 %v2598_v5, %v12324_v15  ;;  %8599 = vtanh.f32 %v2597_v48 }
 0x46e   : > { %v8578_v2 = vpop.eup %8577  ;;  %v2468_v41 = vadd.f32 %v2467_v44, %v12325_v29  ;;  %v2600_v39 = vpop.f32.mrb[102].mxu1  ;;  %v2760_v12 = vpack.c.bf16 %v8576_v43, %v8568_v4  ;;  %8601 = vtanh.f32 %v2466_v61 }
 0x46f   : > { %v2469_v20 = vpop.f32.mrb[103].mxu0  ;;  %v8580_v8 = vpop.eup %8579  ;;  %v2601_v16 = vadd.f32 %v2600_v39, %v12325_v29  ;;  %v2759_v9 = vpack.c.bf16 %v8578_v2, %v8570_v53  ;;  %8603 = vtanh.f32 %v2599_v27  ;;  %v12329_v39 = vld [vmem:[#allocation17_spill] sm:$0xff] }
 0x470   : > { %v2602_v62 = vpop.f32.mrb[103].mxu1  ;;  %v8582_v59 = vpop.eup %8581  ;;  %v2470_v42 = vadd.f32 %v2469_v20, %v12325_v29  ;;  %v2761_v13 = vpack.c.bf16 %v8580_v8, %v8572_v31  ;;  %8605 = vtanh.f32 %v2468_v41 }
 0x471   : > { %v8584_v63 = vpop.eup %8583  ;;  %v2603_v49 = vadd.f32 %v2602_v62, %v12325_v29  ;;  %3033 = vmatprep.subr.bf16.mxu0 %v2759_v9  ;;  %8607 = vtanh.f32 %v2601_v16  ;;  %v2473_v22 = vpop.f32.mrb[104].mxu0 }
 0x472   : > { %v8586_v26 = vpop.eup %8585  ;;  %3166 = vmatprep.subr.bf16.mxu1 %v2761_v13  ;;  %3034 = vmatpush1.bf16.msra.mxu0 %v2758_v46  ;;  %8609 = vtanh.f32 %v2470_v42  ;;  %v2474_v60 = vadd.f32 %v2473_v22, %v12326_v40  ;;  %v2606_v51 = vpop.f32.mrb[104].mxu1 }
 0x473   : > { %v8588_v55 = vpop.eup %8587  ;;  %3167 = vmatpush1.bf16.msra.mxu1 %v2760_v12  ;;  %v2475_v57 = vpop.f32.mrb[105].mxu0  ;;  %8611 = vtanh.f32 %v2603_v49  ;;  %v2607_v56 = vadd.f32 %v2606_v51, %v12326_v40  ;;  %v12330_v51 = vld [vmem:[#allocation20_spill] sm:$0xff] }
 0x474   : > { %v8590_v52 = vpop.eup %8589  ;;  %v2476_v28 = vadd.f32 %v2475_v57, %v12326_v40  ;;  %v2608_v24 = vpop.f32.mrb[105].mxu1  ;;  %8613 = vtanh.f32 %v2474_v60 }
 0x475   : > { %v8592_v54 = vpop.eup %8591  ;;  %v2477_v23 = vpop.f32.mrb[106].mxu0  ;;  %v2762_v17 = vpack.c.bf16 %v8590_v52, %v8582_v59  ;;  %v2609_v34 = vadd.f32 %v2608_v24, %v12326_v40  ;;  %8615 = vtanh.f32 %v2607_v56 }
 0x476   : > { %v8594_v19 = vpop.eup %8593  ;;  %v2478_v38 = vadd.f32 %v2477_v23, %v12327_v3  ;;  %v2610_v33 = vpop.f32.mrb[106].mxu1  ;;  %v2764_v58 = vpack.c.bf16 %v8592_v54, %v8584_v63  ;;  %8617 = vtanh.f32 %v2476_v28 }
 0x477   : > { %v2479_v10 = vpop.f32.mrb[107].mxu0  ;;  %v8596_v21 = vpop.eup %8595  ;;  %v2611_v32 = vadd.f32 %v2610_v33, %v12327_v3  ;;  %v2763_v6 = vpack.c.bf16 %v8594_v19, %v8586_v26  ;;  %8619 = vtanh.f32 %v2609_v34  ;;  %v12331_v33 = vld [vmem:[#allocation19_spill] sm:$0xff] }
 0x478   : > { %v2612_v47 = vpop.f32.mrb[107].mxu1  ;;  %v8598_v18 = vpop.eup %8597  ;;  %v2480_v4 = vadd.f32 %v2479_v10, %v12327_v3  ;;  %v2765_v7 = vpack.c.bf16 %v8596_v21, %v8588_v55  ;;  %8621 = vtanh.f32 %v2478_v38 }
 0x479   : > { %v8600_v53 = vpop.eup %8599  ;;  %v2613_v31 = vadd.f32 %v2612_v47, %v12327_v3  ;;  %3035 = vmatprep.subr.bf16.mxu0 %v2763_v6  ;;  %8623 = vtanh.f32 %v2611_v32  ;;  %v2483_v15 = vpop.f32.mrb[108].mxu0 }
 0x47a   : > { %v8602_v50 = vpop.eup %8601  ;;  %3168 = vmatprep.subr.bf16.mxu1 %v2765_v7  ;;  %3036 = vmatpush1.bf16.msra.mxu0 %v2762_v17  ;;  %8625 = vtanh.f32 %v2480_v4  ;;  %v2484_v30 = vadd.f32 %v2483_v15, %v12328_v36  ;;  %v2616_v43 = vpop.f32.mrb[108].mxu1 }
 0x47b   : > { %v8604_v35 = vpop.eup %8603  ;;  %3169 = vmatpush1.bf16.msra.mxu1 %v2764_v58  ;;  %v2485_v48 = vpop.f32.mrb[109].mxu0  ;;  %8627 = vtanh.f32 %v2613_v31  ;;  %v2617_v5 = vadd.f32 %v2616_v43, %v12328_v36  ;;  %v12332_v43 = vld [vmem:[#allocation22_spill] sm:$0xff] }
 0x47c   : > { %v8606_v25 = vpop.eup %8605  ;;  %v2486_v44 = vadd.f32 %v2485_v48, %v12328_v36  ;;  %v2618_v46 = vpop.f32.mrb[109].mxu1  ;;  %8629 = vtanh.f32 %v2484_v30 }
 0x47d   : > { %v8608_v61 = vpop.eup %8607  ;;  %v2487_v2 = vpop.f32.mrb[110].mxu0  ;;  %v2766_v27 = vpack.c.bf16 %v8606_v25, %v8598_v18  ;;  %v2619_v41 = vadd.f32 %v2618_v46, %v12328_v36  ;;  %8631 = vtanh.f32 %v2617_v5 }
 0x47e   : > { %v8610_v29 = vpop.eup %8609  ;;  %v2488_v20 = vadd.f32 %v2487_v2, %v12329_v39  ;;  %v2620_v12 = vpop.f32.mrb[110].mxu1  ;;  %v2768_v16 = vpack.c.bf16 %v8608_v61, %v8600_v53  ;;  %8633 = vtanh.f32 %v2486_v44 }
 0x47f   : > { %v2489_v8 = vpop.f32.mrb[111].mxu0  ;;  %v8612_v62 = vpop.eup %8611  ;;  %v2621_v9 = vadd.f32 %v2620_v12, %v12329_v39  ;;  %v2767_v42 = vpack.c.bf16 %v8610_v29, %v8602_v50  ;;  %8635 = vtanh.f32 %v2619_v41  ;;  %v12333_v12 = vld [vmem:[#allocation21_spill] sm:$0xff] }
 0x480   : > { %v2622_v59 = vpop.f32.mrb[111].mxu1  ;;  %v8614_v13 = vpop.eup %8613  ;;  %v2490_v63 = vadd.f32 %v2489_v8, %v12329_v39  ;;  %v2769_v49 = vpack.c.bf16 %v8612_v62, %v8604_v35  ;;  %8637 = vtanh.f32 %v2488_v20 }
 0x481   : > { %v8616_v26 = vpop.eup %8615  ;;  %v2623_v55 = vadd.f32 %v2622_v59, %v12329_v39  ;;  %3037 = vmatprep.subr.bf16.mxu0 %v2767_v42  ;;  %8639 = vtanh.f32 %v2621_v9  ;;  %v2493_v40 = vpop.f32.mrb[112].mxu0 }
 0x482   : > { %v8618_v22 = vpop.eup %8617  ;;  %3170 = vmatprep.subr.bf16.mxu1 %v2769_v49  ;;  %3038 = vmatpush1.bf16.msra.mxu0 %v2766_v27  ;;  %8641 = vtanh.f32 %v2490_v63  ;;  %v2494_v57 = vadd.f32 %v2493_v40, %v12330_v51  ;;  %v2626_v54 = vpop.f32.mrb[112].mxu1 }
 0x483   : > { %v8620_v52 = vpop.eup %8619  ;;  %3171 = vmatpush1.bf16.msra.mxu1 %v2768_v16  ;;  %v2495_v56 = vpop.f32.mrb[113].mxu0  ;;  %8643 = vtanh.f32 %v2623_v55  ;;  %v2627_v24 = vadd.f32 %v2626_v54, %v12330_v51 }
 0x484   : > { %v8622_v60 = vpop.eup %8621  ;;  %v2496_v23 = vadd.f32 %v2495_v56, %v12330_v51  ;;  %v2628_v17 = vpop.f32.mrb[113].mxu1  ;;  %8645 = vtanh.f32 %v2494_v57 }
 0x485   : > { %v8624_v28 = vpop.eup %8623  ;;  %v2497_v19 = vpop.f32.mrb[114].mxu0  ;;  %v2770_v34 = vpack.c.bf16 %v8622_v60, %v8614_v13  ;;  %v2629_v38 = vadd.f32 %v2628_v17, %v12330_v51  ;;  %8647 = vtanh.f32 %v2627_v24 }
 0x486   : > { %v8626_v3 = vpop.eup %8625  ;;  %v2498_v10 = vadd.f32 %v2497_v19, %v12331_v33  ;;  %v2630_v58 = vpop.f32.mrb[114].mxu1  ;;  %v2772_v32 = vpack.c.bf16 %v8624_v28, %v8616_v26  ;;  %8649 = vtanh.f32 %v2496_v23 }
 0x487   : > { %v2499_v21 = vpop.f32.mrb[115].mxu0  ;;  %v8628_v47 = vpop.eup %8627  ;;  %v2631_v6 = vadd.f32 %v2630_v58, %v12331_v33  ;;  %v2771_v4 = vpack.c.bf16 %v8626_v3, %v8618_v22  ;;  %8651 = vtanh.f32 %v2629_v38 }
 0x488   : > { %v2632_v18 = vpop.f32.mrb[115].mxu1  ;;  %v8630_v7 = vpop.eup %8629  ;;  %v2500_v53 = vadd.f32 %v2499_v21, %v12331_v33  ;;  %v2773_v31 = vpack.c.bf16 %v8628_v47, %v8620_v52  ;;  %8653 = vtanh.f32 %v2498_v10 }
 0x489   : > { %v8632_v50 = vpop.eup %8631  ;;  %v2633_v35 = vadd.f32 %v2632_v18, %v12331_v33  ;;  %3039 = vmatprep.subr.bf16.mxu0 %v2771_v4  ;;  %8655 = vtanh.f32 %v2631_v6  ;;  %v2503_v36 = vpop.f32.mrb[116].mxu0  ;;  %v7857_v4 = vld [vmem:[%s12200_s3 + $0x1e0] ss:$8 sps:$4 sm:$0xff]  }
 0x48a   : > { %v8634_v15 = vpop.eup %8633  ;;  %3172 = vmatprep.subr.bf16.mxu1 %v2773_v31  ;;  %3040 = vmatpush1.bf16.msra.mxu0 %v2770_v34  ;;  %8657 = vtanh.f32 %v2500_v53  ;;  %v2504_v48 = vadd.f32 %v2503_v36, %v12332_v43  ;;  %v2636_v61 = vpop.f32.mrb[116].mxu1  ;;  %v7862_v53 = vld [vmem:[%s12200_s3 + $0x1f0] ss:$8 sps:$4 sm:$0xff]   ;;  %v7863_v31 = vld [vmem:[%s12200_s3 + $0x204] ss:$8 sps:$4 sm:$0xff]  }
 0x48b   : > { %v8636_v25 = vpop.eup %8635  ;;  %3173 = vmatpush1.bf16.msra.mxu1 %v2772_v32  ;;  %v2505_v5 = vpop.f32.mrb[117].mxu0  ;;  %8659 = vtanh.f32 %v2633_v35  ;;  %v2637_v46 = vadd.f32 %v2636_v61, %v12332_v43  ;;  %v7866_v35 = vld [vmem:[%s12200_s3 + $0x214] ss:$8 sps:$4 sm:$0xff]   ;;  %v7871_v36 = vld [vmem:[%s12200_s3 + $0x220] ss:$8 sps:$4 sm:$0xff]  }
 0x48c   : > { %v8638_v30 = vpop.eup %8637  ;;  %v2506_v2 = vadd.f32 %v2505_v5, %v12332_v43  ;;  %v2638_v27 = vpop.f32.mrb[117].mxu1  ;;  %8661 = vtanh.f32 %v2504_v48  ;;  %v7875_v48 = vld [vmem:[%s12200_s3 + $0x244] ss:$8 sps:$4 sm:$0xff]   ;;  %v7877_v61 = vld [vmem:[%s12200_s3 + $0x240] ss:$8 sps:$4 sm:$0xff]  }
 0x48d   : > { %v8640_v44 = vpop.eup %8639  ;;  %v2507_v29 = vpop.f32.mrb[118].mxu0  ;;  %v2774_v41 = vpack.c.bf16 %v8638_v30, %v8630_v7  ;;  %v2639_v20 = vadd.f32 %v2638_v27, %v12332_v43  ;;  %8663 = vtanh.f32 %v2637_v46  ;;  %v7860_v7 = vld [vmem:[%s12200_s3 + $0x1f4] ss:$8 sps:$4 sm:$0xff]   ;;  %v7874_v43 = vld [vmem:[%s12200_s3 + $0x230] ss:$8 sps:$4 sm:$0xff]  }
 0x48e   : > { %v8642_v39 = vpop.eup %8641  ;;  %v2508_v8 = vadd.f32 %v2507_v29, %v12333_v12  ;;  %v2640_v16 = vpop.f32.mrb[118].mxu1  ;;  %v2776_v9 = vpack.c.bf16 %v8640_v44, %v8632_v50  ;;  %8665 = vtanh.f32 %v2506_v2  ;;  %v7865_v50 = vld [vmem:[%s12200_s3 + $0x200] ss:$8 sps:$4 sm:$0xff]   ;;  %v7872_v30 = vld [vmem:[%s12200_s3 + $0x234] ss:$8 sps:$4 sm:$0xff]  }
 0x48f   : > { %v2509_v62 = vpop.f32.mrb[119].mxu0  ;;  %v8644_v59 = vpop.eup %8643  ;;  %v2641_v42 = vadd.f32 %v2640_v16, %v12333_v12  ;;  %v2775_v63 = vpack.c.bf16 %v8642_v39, %v8634_v15  ;;  %8667 = vtanh.f32 %v2639_v20  ;;  %v7868_v15 = vld [vmem:[%s12200_s3 + $0x210] ss:$8 sps:$4 sm:$0xff]   ;;  %v7878_v5 = vld [vmem:[%s12200_s3 + $0x254] ss:$8 sps:$4 sm:$0xff]  }
 0x490   : > { %v2642_v13 = vpop.f32.mrb[119].mxu1  ;;  %v8646_v49 = vpop.eup %8645  ;;  %v2510_v26 = vadd.f32 %v2509_v62, %v12333_v12  ;;  %v2777_v55 = vpack.c.bf16 %v8644_v59, %v8636_v25  ;;  %8669 = vtanh.f32 %v2508_v8  ;;  %v7869_v25 = vld [vmem:[%s12200_s3 + $0x224] ss:$8 sps:$4 sm:$0xff]   ;;  %v7880_v44 = vld [vmem:[%s12200_s3 + $0x250] ss:$8 sps:$4 sm:$0xff]  }
 0x491   : > { %v8648_v22 = vpop.eup %8647  ;;  %v2643_v52 = vadd.f32 %v2642_v13, %v12333_v12  ;;  %3041 = vmatprep.subr.bf16.mxu0 %v2775_v63  ;;  %8671 = vtanh.f32 %v2641_v42  ;;  %v7881_v46 = vld [vmem:[%s12200_s3 + $0x264] ss:$8 sps:$4 sm:$0xff]   ;;  %v7883_v2 = vld [vmem:[%s12200_s3 + $0x260] ss:$8 sps:$4 sm:$0xff]   ;;  %v7884_v27 = vld [vmem:[%s12200_s3 + $0x274] ss:$8 sps:$4 sm:$0xff]  }
 0x492   : > { %v8650_v40 = vpop.eup %8649  ;;  %3174 = vmatprep.subr.bf16.mxu1 %v2777_v55  ;;  %3042 = vmatpush1.bf16.msra.mxu0 %v2774_v41  ;;  %8673 = vtanh.f32 %v2510_v26  ;;  %v7886_v29 = vld [vmem:[%s12200_s3 + $0x270] ss:$8 sps:$4 sm:$0xff]   ;;  %v7889_v41 = vld [vmem:[%s12200_s3 + $0x284] ss:$8 sps:$4 sm:$0xff]  }
 0x493   : > { %v8652_v60 = vpop.eup %8651  ;;  %3175 = vmatpush1.bf16.msra.mxu1 %v2776_v9  ;;  %8675 = vtanh.f32 %v2643_v52  ;;  %v12334_v20 = vld [vmem:[#allocation24_spill] sm:$0xff]  ;;  %v12335_v63 = vld [vmem:[#allocation23_spill] sm:$0xff] }
 0x494   : > { %v8654_v51 = vpop.eup %8653 }
 0x495   : > { %v8656_v57 = vpop.eup %8655  ;;  %v2778_v54 = vpack.c.bf16 %v8654_v51, %v8646_v49 }
 0x496   : > { %v8658_v56 = vpop.eup %8657  ;;  %v2780_v28 = vpack.c.bf16 %v8656_v57, %v8648_v22  ;;  %v12336_v57 = vld [vmem:[#allocation26_spill] sm:$0xff] }
 0x497   : > { %v8660_v24 = vpop.eup %8659  ;;  %v2779_v23 = vpack.c.bf16 %v8658_v56, %v8650_v40 }
 0x498   : > { %v8662_v17 = vpop.eup %8661  ;;  %v2781_v19 = vpack.c.bf16 %v8660_v24, %v8652_v60 }
 0x499   : > { %v8664_v34 = vpop.eup %8663  ;;  %3043 = vmatprep.subr.bf16.mxu0 %v2779_v23 }
 0x49a   : > { %v8666_v3 = vpop.eup %8665  ;;  %3176 = vmatprep.subr.bf16.mxu1 %v2781_v19  ;;  %3044 = vmatpush1.bf16.msra.mxu0 %v2778_v54 }
 0x49b   : > { %v8668_v38 = vpop.eup %8667  ;;  %3177 = vmatpush1.bf16.msra.mxu1 %v2780_v28 }
 0x49c   : > { %v8670_v33 = vpop.eup %8669 }
 0x49d   : > { %v8672_v10 = vpop.eup %8671  ;;  %v2782_v58 = vpack.c.bf16 %v8670_v33, %v8662_v17 }
 0x49e   : > { %v8674_v21 = vpop.eup %8673  ;;  %v2784_v32 = vpack.c.bf16 %v8672_v10, %v8664_v34 }
 0x49f   : > { %v8676_v47 = vpop.eup %8675  ;;  %v2783_v6 = vpack.c.bf16 %v8674_v21, %v8666_v3  ;;  %v12337_v3 = vld [vmem:[#allocation25_spill] sm:$0xff] }
 0x4a0   : > { %v2785_v18 = vpack.c.bf16 %v8676_v47, %v8668_v38 }
 0x4a1   : > { %3045 = vmatprep.subr.bf16.mxu0 %v2783_v6 }
 0x4a2   : > { %3178 = vmatprep.subr.bf16.mxu1 %v2785_v18  ;;  %3046 = vmatpush1.bf16.msra.mxu0 %v2782_v58 }
 0x4a3   : > { %3179 = vmatpush1.bf16.msra.mxu1 %v2784_v32 }
 0x4a5   : > { %3060 = vmatmul.mubr.bf16.vlgmr.msra.gmra.mrb[120].mxu0 %v7857_v4 }
 0x4a6   : > { %3193 = vmatmul.mubr.bf16.vlgmr.msra.gmra.mrb[120].mxu1 %v7857_v4  ;;  %7299 = vmatprep.mubr.msk.bf16.mxu0 %vm1052_vm0, %v7860_v7 }
 0x4a7   : > { %7309 = vmatprep.mubr.msk.bf16.mxu1 %vm1052_vm0, %v7860_v7 }
 0x4ad   : > { %3070 = vmatmul.mubr.bf16.gmra.mrb[124].mxu0 %v7862_v53 }
 0x4ae   : > { %3203 = vmatmul.mubr.bf16.gmra.mrb[124].mxu1 %v7862_v53  ;;  %7300 = vmatprep.mubr.msk.bf16.mxu0 %vm1052_vm0, %v7863_v31 }
 0x4af   : > { %7310 = vmatprep.mubr.msk.bf16.mxu1 %vm1052_vm0, %v7863_v31 }
 0x4b5   : > { %3080 = vmatmul.mubr.bf16.gmra.mrb[128].mxu0 %v7865_v50 }
 0x4b6   : > { %3213 = vmatmul.mubr.bf16.gmra.mrb[128].mxu1 %v7865_v50  ;;  %7301 = vmatprep.mubr.msk.bf16.mxu0 %vm1052_vm0, %v7866_v35  ;;  %v12338_v50 = vld [vmem:[#allocation28_spill] sm:$0xff] }
 0x4b7   : > { %7311 = vmatprep.mubr.msk.bf16.mxu1 %vm1052_vm0, %v7866_v35 }
 0x4bd   : > { %3090 = vmatmul.mubr.bf16.gmra.mrb[132].mxu0 %v7868_v15 }
 0x4be   : > { %3223 = vmatmul.mubr.bf16.gmra.mrb[132].mxu1 %v7868_v15  ;;  %7302 = vmatprep.mubr.msk.bf16.mxu0 %vm1052_vm0, %v7869_v25 }
 0x4bf   : > { %7312 = vmatprep.mubr.msk.bf16.mxu1 %vm1052_vm0, %v7869_v25 }
 0x4c5   : > { %3100 = vmatmul.mubr.bf16.gmra.mrb[136].mxu0 %v7871_v36 }
 0x4c6   : > { %3233 = vmatmul.mubr.bf16.gmra.mrb[136].mxu1 %v7871_v36  ;;  %7303 = vmatprep.mubr.msk.bf16.mxu0 %vm1052_vm0, %v7872_v30 }
 0x4c7   : > { %7313 = vmatprep.mubr.msk.bf16.mxu1 %vm1052_vm0, %v7872_v30 }
 0x4cd   : > { %3110 = vmatmul.mubr.bf16.gmra.mrb[140].mxu0 %v7874_v43 }
 0x4ce   : > { %3243 = vmatmul.mubr.bf16.gmra.mrb[140].mxu1 %v7874_v43  ;;  %7304 = vmatprep.mubr.msk.bf16.mxu0 %vm1052_vm0, %v7875_v48 }
 0x4cf   : > { %7314 = vmatprep.mubr.msk.bf16.mxu1 %vm1052_vm0, %v7875_v48 }
 0x4d5   : > { %3120 = vmatmul.mubr.bf16.gmra.mrb[144].mxu0 %v7877_v61 }
 0x4d6   : > { %3253 = vmatmul.mubr.bf16.gmra.mrb[144].mxu1 %v7877_v61  ;;  %7305 = vmatprep.mubr.msk.bf16.mxu0 %vm1052_vm0, %v7878_v5 }
 0x4d7   : > { %7315 = vmatprep.mubr.msk.bf16.mxu1 %vm1052_vm0, %v7878_v5 }
 0x4dd   : > { %3130 = vmatmul.mubr.bf16.gmra.mrb[148].mxu0 %v7880_v44 }
 0x4de   : > { %3263 = vmatmul.mubr.bf16.gmra.mrb[148].mxu1 %v7880_v44  ;;  %7306 = vmatprep.mubr.msk.bf16.mxu0 %vm1052_vm0, %v7881_v46 }
 0x4df   : > { %7316 = vmatprep.mubr.msk.bf16.mxu1 %vm1052_vm0, %v7881_v46 }
 0x4e5   : > { %3140 = vmatmul.mubr.bf16.gmra.mrb[152].mxu0 %v7883_v2 }
 0x4e6   : > { %3273 = vmatmul.mubr.bf16.gmra.mrb[152].mxu1 %v7883_v2  ;;  %7307 = vmatprep.mubr.msk.bf16.mxu0 %vm1052_vm0, %v7884_v27  ;;  %v12339_v2 = vld [vmem:[#allocation27_spill] sm:$0xff] }
 0x4e7   : > { %7317 = vmatprep.mubr.msk.bf16.mxu1 %vm1052_vm0, %v7884_v27 }
 0x4ed   : > { %3150 = vmatmul.mubr.bf16.gmra.mrb[156].mxu0 %v7886_v29 }
 0x4ee   : > { %3283 = vmatmul.mubr.bf16.gmra.mrb[156].mxu1 %v7886_v29  ;;  %7378 = vmatprep.mubr.msk.bf16.mxu0 %vm1052_vm0, %v7889_v41 }
 0x4ef   : > { %7388 = vmatprep.mubr.msk.bf16.mxu1 %vm1052_vm0, %v7889_v41 }
 0x578   : > { %v3061_v39 = vpop.f32.mrb[120].mxu0 }
 0x579   : > { %v3062_v12 = vadd.f32 %v3061_v39, %v12334_v20  ;;  %v3194_v8 = vpop.f32.mrb[120].mxu1  ;;  %v3063_v16 = vpop.f32.mrb[121].mxu0 }
 0x57a   : > { %v3195_v62 = vadd.f32 %v3194_v8, %v12334_v20  ;;  %v3064_v9 = vadd.f32 %v3063_v16, %v12334_v20  ;;  %v3196_v59 = vpop.f32.mrb[121].mxu1  ;;  %v3065_v42 = vpop.f32.mrb[122].mxu0 }
 0x57b   : > { %8677 = vtanh.f32 %v3062_v12  ;;  %v3197_v13 = vadd.f32 %v3196_v59, %v12334_v20  ;;  %v3066_v49 = vadd.f32 %v3065_v42, %v12335_v63  ;;  %v3198_v26 = vpop.f32.mrb[122].mxu1  ;;  %v3067_v55 = vpop.f32.mrb[123].mxu0 }
 0x57c   : > { %8679 = vtanh.f32 %v3195_v62  ;;  %v3199_v22 = vadd.f32 %v3198_v26, %v12335_v63  ;;  %v3200_v52 = vpop.f32.mrb[123].mxu1  ;;  %v3068_v40 = vadd.f32 %v3067_v55, %v12335_v63 }
 0x57d   : > { %8681 = vtanh.f32 %v3064_v9  ;;  %v3201_v60 = vadd.f32 %v3200_v52, %v12335_v63 }
 0x57e   : > { %8683 = vtanh.f32 %v3197_v13 }
 0x57f   : > { %8685 = vtanh.f32 %v3066_v49 }
 0x580   : > { %8687 = vtanh.f32 %v3199_v22  ;;  %v3071_v51 = vpop.f32.mrb[124].mxu0  ;;  %v12340_v22 = vld [vmem:[#allocation30_spill] sm:$0xff] }
 0x581   : > { %8689 = vtanh.f32 %v3068_v40  ;;  %v3072_v54 = vadd.f32 %v3071_v51, %v12336_v57  ;;  %v3204_v56 = vpop.f32.mrb[124].mxu1  ;;  %v3073_v28 = vpop.f32.mrb[125].mxu0 }
 0x582   : > { %8691 = vtanh.f32 %v3201_v60  ;;  %v3205_v24 = vadd.f32 %v3204_v56, %v12336_v57  ;;  %v3074_v23 = vadd.f32 %v3073_v28, %v12336_v57  ;;  %v3206_v17 = vpop.f32.mrb[125].mxu1  ;;  %v3075_v19 = vpop.f32.mrb[126].mxu0 }
 0x583   : > { %8693 = vtanh.f32 %v3072_v54  ;;  %v3207_v34 = vadd.f32 %v3206_v17, %v12336_v57  ;;  %v3076_v38 = vadd.f32 %v3075_v19, %v12337_v3  ;;  %v3208_v33 = vpop.f32.mrb[126].mxu1  ;;  %v3077_v10 = vpop.f32.mrb[127].mxu0  ;;  %v12341_v19 = vld [vmem:[#allocation29_spill] sm:$0xff] }
 0x584   : > { %8695 = vtanh.f32 %v3205_v24  ;;  %v3209_v58 = vadd.f32 %v3208_v33, %v12337_v3  ;;  %v3210_v21 = vpop.f32.mrb[127].mxu1  ;;  %v3078_v47 = vadd.f32 %v3077_v10, %v12337_v3 }
 0x585   : > { %v8678_v32 = vpop.eup %8677  ;;  %8697 = vtanh.f32 %v3074_v23  ;;  %v3211_v18 = vadd.f32 %v3210_v21, %v12337_v3 }
 0x586   : > { %v8680_v6 = vpop.eup %8679  ;;  %8699 = vtanh.f32 %v3207_v34 }
 0x587   : > { %v8682_v4 = vpop.eup %8681  ;;  %8701 = vtanh.f32 %v3076_v38 }
 0x588   : > { %v8684_v7 = vpop.eup %8683  ;;  %8703 = vtanh.f32 %v3209_v58  ;;  %v3081_v53 = vpop.f32.mrb[128].mxu0 }
 0x589   : > { %v8686_v31 = vpop.eup %8685  ;;  %8705 = vtanh.f32 %v3078_v47  ;;  %v3082_v35 = vadd.f32 %v3081_v53, %v12338_v50  ;;  %v3214_v15 = vpop.f32.mrb[128].mxu1 }
 0x58a   : > { %v3083_v25 = vpop.f32.mrb[129].mxu0  ;;  %v8688_v36 = vpop.eup %8687  ;;  %8707 = vtanh.f32 %v3211_v18  ;;  %v3215_v30 = vadd.f32 %v3214_v15, %v12338_v50  ;;  %v3394_v5 = vpack.c.bf16 %v8686_v31, %v8678_v32  ;;  %v12342_v15 = vld [vmem:[#allocation32_spill] sm:$0xff] }
 0x58b   : > { %v3084_v43 = vadd.f32 %v3083_v25, %v12338_v50  ;;  %v3216_v48 = vpop.f32.mrb[129].mxu1  ;;  %v3085_v61 = vpop.f32.mrb[130].mxu0  ;;  %8709 = vtanh.f32 %v3082_v35  ;;  %v3396_v39 = vpack.c.bf16 %v8688_v36, %v8680_v6 }
 0x58c   : > { %v8690_v44 = vpop.eup %8689  ;;  %v3217_v46 = vadd.f32 %v3216_v48, %v12338_v50  ;;  %v3086_v27 = vadd.f32 %v3085_v61, %v12339_v2  ;;  %v3218_v29 = vpop.f32.mrb[130].mxu1  ;;  %8711 = vtanh.f32 %v3215_v30 }
 0x58d   : > { %v3087_v41 = vpop.f32.mrb[131].mxu0  ;;  %v8692_v20 = vpop.eup %8691  ;;  %v3219_v12 = vadd.f32 %v3218_v29, %v12339_v2  ;;  %v3395_v16 = vpack.c.bf16 %v8690_v44, %v8682_v4  ;;  %8713 = vtanh.f32 %v3084_v43  ;;  %v12343_v29 = vld [vmem:[#allocation31_spill] sm:$0xff] }
 0x58e   : > { %v3220_v8 = vpop.f32.mrb[131].mxu1  ;;  %v8694_v62 = vpop.eup %8693  ;;  %v3088_v9 = vadd.f32 %v3087_v41, %v12339_v2  ;;  %v3397_v59 = vpack.c.bf16 %v8692_v20, %v8684_v7  ;;  %8715 = vtanh.f32 %v3217_v46 }
 0x58f   : > { %v8696_v42 = vpop.eup %8695  ;;  %v3221_v13 = vadd.f32 %v3220_v8, %v12339_v2  ;;  %3675 = vmatprep.subr.bf16.mxu0 %v3395_v16  ;;  %8717 = vtanh.f32 %v3086_v27 }
 0x590   : > { %v8698_v63 = vpop.eup %8697  ;;  %3808 = vmatprep.subr.bf16.mxu1 %v3397_v59  ;;  %3676 = vmatpush1.bf16.msra.mxu0 %v3394_v5  ;;  %8719 = vtanh.f32 %v3219_v12  ;;  %v3091_v26 = vpop.f32.mrb[132].mxu0 }
 0x591   : > { %v8700_v49 = vpop.eup %8699  ;;  %3809 = vmatpush1.bf16.msra.mxu1 %v3396_v39  ;;  %8721 = vtanh.f32 %v3088_v9  ;;  %v3092_v52 = vadd.f32 %v3091_v26, %v12340_v22  ;;  %v3224_v40 = vpop.f32.mrb[132].mxu1 }
 0x592   : > { %v8702_v55 = vpop.eup %8701  ;;  %v3093_v60 = vpop.f32.mrb[133].mxu0  ;;  %8723 = vtanh.f32 %v3221_v13  ;;  %v3225_v57 = vadd.f32 %v3224_v40, %v12340_v22  ;;  %v12344_v40 = vld [vmem:[#allocation34_spill] sm:$0xff] }
 0x593   : > { %v8704_v51 = vpop.eup %8703  ;;  %v3094_v54 = vadd.f32 %v3093_v60, %v12340_v22  ;;  %v3226_v56 = vpop.f32.mrb[133].mxu1  ;;  %v3398_v24 = vpack.c.bf16 %v8702_v55, %v8694_v62  ;;  %8725 = vtanh.f32 %v3092_v52 }
 0x594   : > { %v3095_v28 = vpop.f32.mrb[134].mxu0  ;;  %v8706_v23 = vpop.eup %8705  ;;  %v3227_v17 = vadd.f32 %v3226_v56, %v12340_v22  ;;  %v3400_v33 = vpack.c.bf16 %v8704_v51, %v8696_v42  ;;  %8727 = vtanh.f32 %v3225_v57 }
 0x595   : > { %v3096_v34 = vadd.f32 %v3095_v28, %v12341_v19  ;;  %v3228_v3 = vpop.f32.mrb[134].mxu1  ;;  %v3097_v38 = vpop.f32.mrb[135].mxu0  ;;  %v3399_v32 = vpack.c.bf16 %v8706_v23, %v8698_v63  ;;  %8729 = vtanh.f32 %v3094_v54 }
 0x596   : > { %v8708_v10 = vpop.eup %8707  ;;  %v3229_v58 = vadd.f32 %v3228_v3, %v12341_v19  ;;  %v3230_v21 = vpop.f32.mrb[135].mxu1  ;;  %v3098_v6 = vadd.f32 %v3097_v38, %v12341_v19  ;;  %8731 = vtanh.f32 %v3227_v17  ;;  %v12345_v3 = vld [vmem:[#allocation33_spill] sm:$0xff] }
 0x597   : > { %v8710_v47 = vpop.eup %8709  ;;  %v3401_v18 = vpack.c.bf16 %v8708_v10, %v8700_v49  ;;  %v3231_v7 = vadd.f32 %v3230_v21, %v12341_v19  ;;  %3677 = vmatprep.subr.bf16.mxu0 %v3399_v32  ;;  %8733 = vtanh.f32 %v3096_v34 }
 0x598   : > { %v8712_v4 = vpop.eup %8711  ;;  %3678 = vmatpush1.bf16.msra.mxu0 %v3398_v24  ;;  %8735 = vtanh.f32 %v3229_v58  ;;  %v3101_v50 = vpop.f32.mrb[136].mxu0 }
 0x599   : > { %v8714_v53 = vpop.eup %8713  ;;  %3810 = vmatprep.subr.bf16.mxu1 %v3401_v18  ;;  %8737 = vtanh.f32 %v3098_v6  ;;  %v3102_v25 = vadd.f32 %v3101_v50, %v12342_v15  ;;  %v3234_v36 = vpop.f32.mrb[136].mxu1 }
 0x59a   : > { %v8716_v31 = vpop.eup %8715  ;;  %3811 = vmatpush1.bf16.msra.mxu1 %v3400_v33  ;;  %v3103_v30 = vpop.f32.mrb[137].mxu0  ;;  %8739 = vtanh.f32 %v3231_v7  ;;  %v3235_v48 = vadd.f32 %v3234_v36, %v12342_v15  ;;  %v12346_v36 = vld [vmem:[#allocation36_spill] sm:$0xff] }
 0x59b   : > { %v8718_v35 = vpop.eup %8717  ;;  %v3104_v61 = vadd.f32 %v3103_v30, %v12342_v15  ;;  %v3236_v5 = vpop.f32.mrb[137].mxu1  ;;  %8741 = vtanh.f32 %v3102_v25 }
 0x59c   : > { %v8720_v43 = vpop.eup %8719  ;;  %v3105_v44 = vpop.f32.mrb[138].mxu0  ;;  %v3402_v46 = vpack.c.bf16 %v8718_v35, %v8710_v47  ;;  %v3237_v27 = vadd.f32 %v3236_v5, %v12342_v15  ;;  %8743 = vtanh.f32 %v3235_v48 }
 0x59d   : > { %v8722_v2 = vpop.eup %8721  ;;  %v3106_v41 = vadd.f32 %v3105_v44, %v12343_v29  ;;  %v3238_v39 = vpop.f32.mrb[138].mxu1  ;;  %v3404_v12 = vpack.c.bf16 %v8720_v43, %v8712_v4  ;;  %8745 = vtanh.f32 %v3104_v61 }
 0x59e   : > { %v3107_v20 = vpop.f32.mrb[139].mxu0  ;;  %v8724_v8 = vpop.eup %8723  ;;  %v3239_v16 = vadd.f32 %v3238_v39, %v12343_v29  ;;  %v3403_v9 = vpack.c.bf16 %v8722_v2, %v8714_v53  ;;  %8747 = vtanh.f32 %v3237_v27  ;;  %v12347_v39 = vld [vmem:[#allocation35_spill] sm:$0xff] }
 0x59f   : > { %v3240_v62 = vpop.f32.mrb[139].mxu1  ;;  %v8726_v59 = vpop.eup %8725  ;;  %v3108_v42 = vadd.f32 %v3107_v20, %v12343_v29  ;;  %v3405_v13 = vpack.c.bf16 %v8724_v8, %v8716_v31  ;;  %8749 = vtanh.f32 %v3106_v41 }
 0x5a0   : > { %v8728_v63 = vpop.eup %8727  ;;  %v3241_v49 = vadd.f32 %v3240_v62, %v12343_v29  ;;  %3679 = vmatprep.subr.bf16.mxu0 %v3403_v9  ;;  %8751 = vtanh.f32 %v3239_v16  ;;  %v3111_v22 = vpop.f32.mrb[140].mxu0 }
 0x5a1   : > { %v8730_v26 = vpop.eup %8729  ;;  %3812 = vmatprep.subr.bf16.mxu1 %v3405_v13  ;;  %3680 = vmatpush1.bf16.msra.mxu0 %v3402_v46  ;;  %8753 = vtanh.f32 %v3108_v42  ;;  %v3112_v60 = vadd.f32 %v3111_v22, %v12344_v40  ;;  %v3244_v51 = vpop.f32.mrb[140].mxu1 }
 0x5a2   : > { %v8732_v55 = vpop.eup %8731  ;;  %3813 = vmatpush1.bf16.msra.mxu1 %v3404_v12  ;;  %v3113_v57 = vpop.f32.mrb[141].mxu0  ;;  %8755 = vtanh.f32 %v3241_v49  ;;  %v3245_v56 = vadd.f32 %v3244_v51, %v12344_v40  ;;  %v12348_v51 = vld [vmem:[#allocation38_spill] sm:$0xff] }
 0x5a3   : > { %v8734_v52 = vpop.eup %8733  ;;  %v3114_v28 = vadd.f32 %v3113_v57, %v12344_v40  ;;  %v3246_v24 = vpop.f32.mrb[141].mxu1  ;;  %8757 = vtanh.f32 %v3112_v60 }
 0x5a4   : > { %v8736_v54 = vpop.eup %8735  ;;  %v3115_v23 = vpop.f32.mrb[142].mxu0  ;;  %v3406_v17 = vpack.c.bf16 %v8734_v52, %v8726_v59  ;;  %v3247_v34 = vadd.f32 %v3246_v24, %v12344_v40  ;;  %8759 = vtanh.f32 %v3245_v56 }
 0x5a5   : > { %v8738_v19 = vpop.eup %8737  ;;  %v3116_v38 = vadd.f32 %v3115_v23, %v12345_v3  ;;  %v3248_v33 = vpop.f32.mrb[142].mxu1  ;;  %v3408_v58 = vpack.c.bf16 %v8736_v54, %v8728_v63  ;;  %8761 = vtanh.f32 %v3114_v28 }
 0x5a6   : > { %v3117_v10 = vpop.f32.mrb[143].mxu0  ;;  %v8740_v21 = vpop.eup %8739  ;;  %v3249_v32 = vadd.f32 %v3248_v33, %v12345_v3  ;;  %v3407_v6 = vpack.c.bf16 %v8738_v19, %v8730_v26  ;;  %8763 = vtanh.f32 %v3247_v34  ;;  %v12349_v33 = vld [vmem:[#allocation37_spill] sm:$0xff] }
 0x5a7   : > { %v3250_v47 = vpop.f32.mrb[143].mxu1  ;;  %v8742_v18 = vpop.eup %8741  ;;  %v3118_v4 = vadd.f32 %v3117_v10, %v12345_v3  ;;  %v3409_v7 = vpack.c.bf16 %v8740_v21, %v8732_v55  ;;  %8765 = vtanh.f32 %v3116_v38 }
 0x5a8   : > { %v8744_v53 = vpop.eup %8743  ;;  %v3251_v31 = vadd.f32 %v3250_v47, %v12345_v3  ;;  %3681 = vmatprep.subr.bf16.mxu0 %v3407_v6  ;;  %8767 = vtanh.f32 %v3249_v32  ;;  %v3121_v15 = vpop.f32.mrb[144].mxu0 }
 0x5a9   : > { %v8746_v50 = vpop.eup %8745  ;;  %3814 = vmatprep.subr.bf16.mxu1 %v3409_v7  ;;  %3682 = vmatpush1.bf16.msra.mxu0 %v3406_v17  ;;  %8769 = vtanh.f32 %v3118_v4  ;;  %v3122_v30 = vadd.f32 %v3121_v15, %v12346_v36  ;;  %v3254_v43 = vpop.f32.mrb[144].mxu1 }
 0x5aa   : > { %v8748_v35 = vpop.eup %8747  ;;  %3815 = vmatpush1.bf16.msra.mxu1 %v3408_v58  ;;  %v3123_v48 = vpop.f32.mrb[145].mxu0  ;;  %8771 = vtanh.f32 %v3251_v31  ;;  %v3255_v5 = vadd.f32 %v3254_v43, %v12346_v36  ;;  %v12350_v43 = vld [vmem:[#allocation40_spill] sm:$0xff] }
 0x5ab   : > { %v8750_v25 = vpop.eup %8749  ;;  %v3124_v44 = vadd.f32 %v3123_v48, %v12346_v36  ;;  %v3256_v46 = vpop.f32.mrb[145].mxu1  ;;  %8773 = vtanh.f32 %v3122_v30 }
 0x5ac   : > { %v8752_v61 = vpop.eup %8751  ;;  %v3125_v2 = vpop.f32.mrb[146].mxu0  ;;  %v3410_v27 = vpack.c.bf16 %v8750_v25, %v8742_v18  ;;  %v3257_v41 = vadd.f32 %v3256_v46, %v12346_v36  ;;  %8775 = vtanh.f32 %v3255_v5 }
 0x5ad   : > { %v8754_v29 = vpop.eup %8753  ;;  %v3126_v20 = vadd.f32 %v3125_v2, %v12347_v39  ;;  %v3258_v12 = vpop.f32.mrb[146].mxu1  ;;  %v3412_v16 = vpack.c.bf16 %v8752_v61, %v8744_v53  ;;  %8777 = vtanh.f32 %v3124_v44 }
 0x5ae   : > { %v3127_v8 = vpop.f32.mrb[147].mxu0  ;;  %v8756_v62 = vpop.eup %8755  ;;  %v3259_v9 = vadd.f32 %v3258_v12, %v12347_v39  ;;  %v3411_v42 = vpack.c.bf16 %v8754_v29, %v8746_v50  ;;  %8779 = vtanh.f32 %v3257_v41  ;;  %v12351_v12 = vld [vmem:[#allocation39_spill] sm:$0xff] }
 0x5af   : > { %v3260_v59 = vpop.f32.mrb[147].mxu1  ;;  %v8758_v13 = vpop.eup %8757  ;;  %v3128_v63 = vadd.f32 %v3127_v8, %v12347_v39  ;;  %v3413_v49 = vpack.c.bf16 %v8756_v62, %v8748_v35  ;;  %8781 = vtanh.f32 %v3126_v20 }
 0x5b0   : > { %v8760_v26 = vpop.eup %8759  ;;  %v3261_v55 = vadd.f32 %v3260_v59, %v12347_v39  ;;  %3683 = vmatprep.subr.bf16.mxu0 %v3411_v42  ;;  %8783 = vtanh.f32 %v3259_v9  ;;  %v3131_v40 = vpop.f32.mrb[148].mxu0 }
 0x5b1   : > { %v8762_v22 = vpop.eup %8761  ;;  %3816 = vmatprep.subr.bf16.mxu1 %v3413_v49  ;;  %3684 = vmatpush1.bf16.msra.mxu0 %v3410_v27  ;;  %8785 = vtanh.f32 %v3128_v63  ;;  %v3132_v57 = vadd.f32 %v3131_v40, %v12348_v51  ;;  %v3264_v54 = vpop.f32.mrb[148].mxu1 }
 0x5b2   : > { %v8764_v52 = vpop.eup %8763  ;;  %3817 = vmatpush1.bf16.msra.mxu1 %v3412_v16  ;;  %v3133_v56 = vpop.f32.mrb[149].mxu0  ;;  %8787 = vtanh.f32 %v3261_v55  ;;  %v3265_v24 = vadd.f32 %v3264_v54, %v12348_v51  ;;  %v12352_v54 = vld [vmem:[#allocation42_spill] sm:$0xff] }
 0x5b3   : > { %v8766_v60 = vpop.eup %8765  ;;  %v3134_v23 = vadd.f32 %v3133_v56, %v12348_v51  ;;  %v3266_v17 = vpop.f32.mrb[149].mxu1  ;;  %8789 = vtanh.f32 %v3132_v57 }
 0x5b4   : > { %v8768_v28 = vpop.eup %8767  ;;  %v3135_v19 = vpop.f32.mrb[150].mxu0  ;;  %v3414_v34 = vpack.c.bf16 %v8766_v60, %v8758_v13  ;;  %v3267_v38 = vadd.f32 %v3266_v17, %v12348_v51  ;;  %8791 = vtanh.f32 %v3265_v24 }
 0x5b5   : > { %v8770_v3 = vpop.eup %8769  ;;  %v3136_v10 = vadd.f32 %v3135_v19, %v12349_v33  ;;  %v3268_v58 = vpop.f32.mrb[150].mxu1  ;;  %v3416_v32 = vpack.c.bf16 %v8768_v28, %v8760_v26  ;;  %8793 = vtanh.f32 %v3134_v23 }
 0x5b6   : > { %v3137_v21 = vpop.f32.mrb[151].mxu0  ;;  %v8772_v47 = vpop.eup %8771  ;;  %v3269_v6 = vadd.f32 %v3268_v58, %v12349_v33  ;;  %v3415_v4 = vpack.c.bf16 %v8770_v3, %v8762_v22  ;;  %8795 = vtanh.f32 %v3267_v38  ;;  %v12353_v58 = vld [vmem:[#allocation41_spill] sm:$0xff] }
 0x5b7   : > { %v3270_v18 = vpop.f32.mrb[151].mxu1  ;;  %v8774_v7 = vpop.eup %8773  ;;  %v3138_v53 = vadd.f32 %v3137_v21, %v12349_v33  ;;  %v3417_v31 = vpack.c.bf16 %v8772_v47, %v8764_v52  ;;  %8797 = vtanh.f32 %v3136_v10 }
 0x5b8   : > { %v8776_v50 = vpop.eup %8775  ;;  %v3271_v35 = vadd.f32 %v3270_v18, %v12349_v33  ;;  %3685 = vmatprep.subr.bf16.mxu0 %v3415_v4  ;;  %8799 = vtanh.f32 %v3269_v6  ;;  %v3141_v36 = vpop.f32.mrb[152].mxu0 }
 0x5b9   : > { %v8778_v15 = vpop.eup %8777  ;;  %3818 = vmatprep.subr.bf16.mxu1 %v3417_v31  ;;  %3686 = vmatpush1.bf16.msra.mxu0 %v3414_v34  ;;  %8801 = vtanh.f32 %v3138_v53  ;;  %v3142_v48 = vadd.f32 %v3141_v36, %v12350_v43  ;;  %v3274_v61 = vpop.f32.mrb[152].mxu1 }
 0x5ba   : > { %v8780_v25 = vpop.eup %8779  ;;  %3819 = vmatpush1.bf16.msra.mxu1 %v3416_v32  ;;  %v3143_v5 = vpop.f32.mrb[153].mxu0  ;;  %8803 = vtanh.f32 %v3271_v35  ;;  %v3275_v46 = vadd.f32 %v3274_v61, %v12350_v43 }
 0x5bb   : > { %v8782_v30 = vpop.eup %8781  ;;  %v3144_v2 = vadd.f32 %v3143_v5, %v12350_v43  ;;  %v3276_v27 = vpop.f32.mrb[153].mxu1  ;;  %8805 = vtanh.f32 %v3142_v48 }
 0x5bc   : > { %v8784_v44 = vpop.eup %8783  ;;  %v3145_v29 = vpop.f32.mrb[154].mxu0  ;;  %v3418_v41 = vpack.c.bf16 %v8782_v30, %v8774_v7  ;;  %v3277_v20 = vadd.f32 %v3276_v27, %v12350_v43  ;;  %8807 = vtanh.f32 %v3275_v46 }
 0x5bd   : > { %v8786_v39 = vpop.eup %8785  ;;  %v3146_v8 = vadd.f32 %v3145_v29, %v12351_v12  ;;  %v3278_v16 = vpop.f32.mrb[154].mxu1  ;;  %v3420_v9 = vpack.c.bf16 %v8784_v44, %v8776_v50  ;;  %8809 = vtanh.f32 %v3144_v2 }
 0x5be   : > { %v3147_v62 = vpop.f32.mrb[155].mxu0  ;;  %v8788_v59 = vpop.eup %8787  ;;  %v3279_v42 = vadd.f32 %v3278_v16, %v12351_v12  ;;  %v3419_v63 = vpack.c.bf16 %v8786_v39, %v8778_v15  ;;  %8811 = vtanh.f32 %v3277_v20 }
 0x5bf   : > { %v3280_v13 = vpop.f32.mrb[155].mxu1  ;;  %v8790_v49 = vpop.eup %8789  ;;  %v3148_v26 = vadd.f32 %v3147_v62, %v12351_v12  ;;  %v3421_v55 = vpack.c.bf16 %v8788_v59, %v8780_v25  ;;  %8813 = vtanh.f32 %v3146_v8 }
 0x5c0   : > { %v8792_v22 = vpop.eup %8791  ;;  %v3281_v52 = vadd.f32 %v3280_v13, %v12351_v12  ;;  %3687 = vmatprep.subr.bf16.mxu0 %v3419_v63  ;;  %8815 = vtanh.f32 %v3279_v42  ;;  %v3151_v51 = vpop.f32.mrb[156].mxu0  ;;  %v7887_v63 = vld [vmem:[%s12200_s3 + $0x280] ss:$8 sps:$4 sm:$0xff]  }
 0x5c1   : > { %v8794_v40 = vpop.eup %8793  ;;  %3820 = vmatprep.subr.bf16.mxu1 %v3421_v55  ;;  %3688 = vmatpush1.bf16.msra.mxu0 %v3418_v41  ;;  %8817 = vtanh.f32 %v3148_v26  ;;  %v3152_v56 = vadd.f32 %v3151_v51, %v12352_v54  ;;  %v3284_v28 = vpop.f32.mrb[156].mxu1  ;;  %v7892_v26 = vld [vmem:[%s12200_s3 + $0x290] ss:$8 sps:$4 sm:$0xff]   ;;  %v7893_v55 = vld [vmem:[%s12200_s3 + $0x2a4] ss:$8 sps:$4 sm:$0xff]  }
 0x5c2   : > { %v8796_v60 = vpop.eup %8795  ;;  %3821 = vmatpush1.bf16.msra.mxu1 %v3420_v9  ;;  %v3153_v24 = vpop.f32.mrb[157].mxu0  ;;  %8819 = vtanh.f32 %v3281_v52  ;;  %v3285_v17 = vadd.f32 %v3284_v28, %v12352_v54  ;;  %v7896_v52 = vld [vmem:[%s12200_s3 + $0x2b4] ss:$8 sps:$4 sm:$0xff]   ;;  %v7901_v51 = vld [vmem:[%s12200_s3 + $0x2c0] ss:$8 sps:$4 sm:$0xff]  }
 0x5c3   : > { %v8798_v57 = vpop.eup %8797  ;;  %v3154_v19 = vadd.f32 %v3153_v24, %v12352_v54  ;;  %v3286_v34 = vpop.f32.mrb[157].mxu1  ;;  %8821 = vtanh.f32 %v3152_v56  ;;  %v7905_v56 = vld [vmem:[%s12200_s3 + $0x2e4] ss:$8 sps:$4 sm:$0xff]   ;;  %v7907_v28 = vld [vmem:[%s12200_s3 + $0x2e0] ss:$8 sps:$4 sm:$0xff]  }
 0x5c4   : > { %v8800_v23 = vpop.eup %8799  ;;  %v3155_v3 = vpop.f32.mrb[158].mxu0  ;;  %v3422_v38 = vpack.c.bf16 %v8798_v57, %v8790_v49  ;;  %v3287_v10 = vadd.f32 %v3286_v34, %v12352_v54  ;;  %8823 = vtanh.f32 %v3285_v17  ;;  %v7890_v49 = vld [vmem:[%s12200_s3 + $0x294] ss:$8 sps:$4 sm:$0xff]   ;;  %v7904_v54 = vld [vmem:[%s12200_s3 + $0x2d0] ss:$8 sps:$4 sm:$0xff]  }
 0x5c5   : > { %v8802_v33 = vpop.eup %8801  ;;  %v3156_v21 = vadd.f32 %v3155_v3, %v12353_v58  ;;  %v3288_v32 = vpop.f32.mrb[158].mxu1  ;;  %v3424_v6 = vpack.c.bf16 %v8800_v23, %v8792_v22  ;;  %8825 = vtanh.f32 %v3154_v19  ;;  %v7895_v22 = vld [vmem:[%s12200_s3 + $0x2a0] ss:$8 sps:$4 sm:$0xff]   ;;  %v7902_v57 = vld [vmem:[%s12200_s3 + $0x2d4] ss:$8 sps:$4 sm:$0xff]  }
 0x5c6   : > { %v3157_v47 = vpop.f32.mrb[159].mxu0  ;;  %v8804_v18 = vpop.eup %8803  ;;  %v3289_v4 = vadd.f32 %v3288_v32, %v12353_v58  ;;  %v3423_v53 = vpack.c.bf16 %v8802_v33, %v8794_v40  ;;  %8827 = vtanh.f32 %v3287_v10  ;;  %v7898_v40 = vld [vmem:[%s12200_s3 + $0x2b0] ss:$8 sps:$4 sm:$0xff]   ;;  %v7908_v24 = vld [vmem:[%s12200_s3 + $0x2f4] ss:$8 sps:$4 sm:$0xff]  }
 0x5c7   : > { %v3290_v7 = vpop.f32.mrb[159].mxu1  ;;  %v8806_v31 = vpop.eup %8805  ;;  %v3158_v50 = vadd.f32 %v3157_v47, %v12353_v58  ;;  %v3425_v35 = vpack.c.bf16 %v8804_v18, %v8796_v60  ;;  %8829 = vtanh.f32 %v3156_v21  ;;  %v7899_v60 = vld [vmem:[%s12200_s3 + $0x2c4] ss:$8 sps:$4 sm:$0xff]   ;;  %v7910_v23 = vld [vmem:[%s12200_s3 + $0x2f0] ss:$8 sps:$4 sm:$0xff]  }
 0x5c8   : > { %v8808_v15 = vpop.eup %8807  ;;  %v3291_v25 = vadd.f32 %v3290_v7, %v12353_v58  ;;  %3689 = vmatprep.subr.bf16.mxu0 %v3423_v53  ;;  %8831 = vtanh.f32 %v3289_v4  ;;  %v7911_v17 = vld [vmem:[%s12200_s3 + $0x304] ss:$8 sps:$4 sm:$0xff]   ;;  %v7913_v19 = vld [vmem:[%s12200_s3 + $0x300] ss:$8 sps:$4 sm:$0xff]   ;;  %v7914_v34 = vld [vmem:[%s12200_s3 + $0x314] ss:$8 sps:$4 sm:$0xff]  }
 0x5c9   : > { %v8810_v36 = vpop.eup %8809  ;;  %3822 = vmatprep.subr.bf16.mxu1 %v3425_v35  ;;  %3690 = vmatpush1.bf16.msra.mxu0 %v3422_v38  ;;  %8833 = vtanh.f32 %v3158_v50  ;;  %v7916_v3 = vld [vmem:[%s12200_s3 + $0x310] ss:$8 sps:$4 sm:$0xff]   ;;  %v7919_v38 = vld [vmem:[%s12200_s3 + $0x324] ss:$8 sps:$4 sm:$0xff]  }
 0x5ca   : > { %v8812_v30 = vpop.eup %8811  ;;  %3823 = vmatpush1.bf16.msra.mxu1 %v3424_v6  ;;  %8835 = vtanh.f32 %v3291_v25  ;;  %v12354_v10 = vld [vmem:[#allocation44_spill] sm:$0xff]  ;;  %v12355_v53 = vld [vmem:[#allocation43_spill] sm:$0xff] }
 0x5cb   : > { %v8814_v43 = vpop.eup %8813 }
 0x5cc   : > { %v8816_v48 = vpop.eup %8815  ;;  %v3426_v61 = vpack.c.bf16 %v8814_v43, %v8806_v31 }
 0x5cd   : > { %v8818_v5 = vpop.eup %8817  ;;  %v3428_v44 = vpack.c.bf16 %v8816_v48, %v8808_v15  ;;  %v12356_v48 = vld [vmem:[#allocation46_spill] sm:$0xff] }
 0x5ce   : > { %v8820_v46 = vpop.eup %8819  ;;  %v3427_v2 = vpack.c.bf16 %v8818_v5, %v8810_v36 }
 0x5cf   : > { %v8822_v27 = vpop.eup %8821  ;;  %v3429_v29 = vpack.c.bf16 %v8820_v46, %v8812_v30 }
 0x5d0   : > { %v8824_v41 = vpop.eup %8823  ;;  %3691 = vmatprep.subr.bf16.mxu0 %v3427_v2 }
 0x5d1   : > { %v8826_v39 = vpop.eup %8825  ;;  %3824 = vmatprep.subr.bf16.mxu1 %v3429_v29  ;;  %3692 = vmatpush1.bf16.msra.mxu0 %v3426_v61 }
 0x5d2   : > { %v8828_v20 = vpop.eup %8827  ;;  %3825 = vmatpush1.bf16.msra.mxu1 %v3428_v44 }
 0x5d3   : > { %v8830_v12 = vpop.eup %8829 }
 0x5d4   : > { %v8832_v8 = vpop.eup %8831  ;;  %v3430_v16 = vpack.c.bf16 %v8830_v12, %v8822_v27 }
 0x5d5   : > { %v8834_v62 = vpop.eup %8833  ;;  %v3432_v9 = vpack.c.bf16 %v8832_v8, %v8824_v41 }
 0x5d6   : > { %v8836_v59 = vpop.eup %8835  ;;  %v3431_v42 = vpack.c.bf16 %v8834_v62, %v8826_v39  ;;  %v12357_v39 = vld [vmem:[#allocation45_spill] sm:$0xff] }
 0x5d7   : > { %v3433_v13 = vpack.c.bf16 %v8836_v59, %v8828_v20 }
 0x5d8   : > { %3693 = vmatprep.subr.bf16.mxu0 %v3431_v42 }
 0x5d9   : > { %3826 = vmatprep.subr.bf16.mxu1 %v3433_v13  ;;  %3694 = vmatpush1.bf16.msra.mxu0 %v3430_v16 }
 0x5da   : > { %3827 = vmatpush1.bf16.msra.mxu1 %v3432_v9 }
 0x5dc   : > { %3708 = vmatmul.mubr.bf16.vlgmr.msra.gmra.mrb[160].mxu0 %v7887_v63 }
 0x5dd   : > { %3841 = vmatmul.mubr.bf16.vlgmr.msra.gmra.mrb[160].mxu1 %v7887_v63  ;;  %7379 = vmatprep.mubr.msk.bf16.mxu0 %vm1052_vm0, %v7890_v49 }
 0x5de   : > { %7389 = vmatprep.mubr.msk.bf16.mxu1 %vm1052_vm0, %v7890_v49 }
 0x5e4   : > { %3718 = vmatmul.mubr.bf16.gmra.mrb[164].mxu0 %v7892_v26 }
 0x5e5   : > { %3851 = vmatmul.mubr.bf16.gmra.mrb[164].mxu1 %v7892_v26  ;;  %7380 = vmatprep.mubr.msk.bf16.mxu0 %vm1052_vm0, %v7893_v55 }
 0x5e6   : > { %7390 = vmatprep.mubr.msk.bf16.mxu1 %vm1052_vm0, %v7893_v55 }
 0x5ec   : > { %3728 = vmatmul.mubr.bf16.gmra.mrb[168].mxu0 %v7895_v22 }
 0x5ed   : > { %3861 = vmatmul.mubr.bf16.gmra.mrb[168].mxu1 %v7895_v22  ;;  %7381 = vmatprep.mubr.msk.bf16.mxu0 %vm1052_vm0, %v7896_v52  ;;  %v12358_v22 = vld [vmem:[#allocation48_spill] sm:$0xff] }
 0x5ee   : > { %7391 = vmatprep.mubr.msk.bf16.mxu1 %vm1052_vm0, %v7896_v52 }
 0x5f4   : > { %3738 = vmatmul.mubr.bf16.gmra.mrb[172].mxu0 %v7898_v40 }
 0x5f5   : > { %3871 = vmatmul.mubr.bf16.gmra.mrb[172].mxu1 %v7898_v40  ;;  %7382 = vmatprep.mubr.msk.bf16.mxu0 %vm1052_vm0, %v7899_v60 }
 0x5f6   : > { %7392 = vmatprep.mubr.msk.bf16.mxu1 %vm1052_vm0, %v7899_v60 }
 0x5fc   : > { %3748 = vmatmul.mubr.bf16.gmra.mrb[176].mxu0 %v7901_v51 }
 0x5fd   : > { %3881 = vmatmul.mubr.bf16.gmra.mrb[176].mxu1 %v7901_v51  ;;  %7383 = vmatprep.mubr.msk.bf16.mxu0 %vm1052_vm0, %v7902_v57 }
 0x5fe   : > { %7393 = vmatprep.mubr.msk.bf16.mxu1 %vm1052_vm0, %v7902_v57 }
 0x604   : > { %3758 = vmatmul.mubr.bf16.gmra.mrb[180].mxu0 %v7904_v54 }
 0x605   : > { %3891 = vmatmul.mubr.bf16.gmra.mrb[180].mxu1 %v7904_v54  ;;  %7384 = vmatprep.mubr.msk.bf16.mxu0 %vm1052_vm0, %v7905_v56 }
 0x606   : > { %7394 = vmatprep.mubr.msk.bf16.mxu1 %vm1052_vm0, %v7905_v56 }
 0x60c   : > { %3768 = vmatmul.mubr.bf16.gmra.mrb[184].mxu0 %v7907_v28 }
 0x60d   : > { %3901 = vmatmul.mubr.bf16.gmra.mrb[184].mxu1 %v7907_v28  ;;  %7385 = vmatprep.mubr.msk.bf16.mxu0 %vm1052_vm0, %v7908_v24 }
 0x60e   : > { %7395 = vmatprep.mubr.msk.bf16.mxu1 %vm1052_vm0, %v7908_v24 }
 0x614   : > { %3778 = vmatmul.mubr.bf16.gmra.mrb[188].mxu0 %v7910_v23 }
 0x615   : > { %3911 = vmatmul.mubr.bf16.gmra.mrb[188].mxu1 %v7910_v23  ;;  %7386 = vmatprep.mubr.msk.bf16.mxu0 %vm1052_vm0, %v7911_v17 }
 0x616   : > { %7396 = vmatprep.mubr.msk.bf16.mxu1 %vm1052_vm0, %v7911_v17 }
 0x61c   : > { %3788 = vmatmul.mubr.bf16.gmra.mrb[192].mxu0 %v7913_v19 }
 0x61d   : > { %3921 = vmatmul.mubr.bf16.gmra.mrb[192].mxu1 %v7913_v19  ;;  %7387 = vmatprep.mubr.msk.bf16.mxu0 %vm1052_vm0, %v7914_v34  ;;  %v12359_v19 = vld [vmem:[#allocation47_spill] sm:$0xff] }
 0x61e   : > { %7397 = vmatprep.mubr.msk.bf16.mxu1 %vm1052_vm0, %v7914_v34 }
 0x624   : > { %3798 = vmatmul.mubr.bf16.gmra.mrb[196].mxu0 %v7916_v3 }
 0x625   : > { %3931 = vmatmul.mubr.bf16.gmra.mrb[196].mxu1 %v7916_v3  ;;  %7458 = vmatprep.mubr.msk.bf16.mxu0 %vm1052_vm0, %v7919_v38 }
 0x626   : > { %7468 = vmatprep.mubr.msk.bf16.mxu1 %vm1052_vm0, %v7919_v38 }
 0x6af   : > { %v3709_v33 = vpop.f32.mrb[160].mxu0 }
 0x6b0   : > { %v3710_v58 = vadd.f32 %v3709_v33, %v12354_v10  ;;  %v3842_v21 = vpop.f32.mrb[160].mxu1  ;;  %v3711_v32 = vpop.f32.mrb[161].mxu0 }
 0x6b1   : > { %v3843_v47 = vadd.f32 %v3842_v21, %v12354_v10  ;;  %v3712_v6 = vadd.f32 %v3711_v32, %v12354_v10  ;;  %v3844_v18 = vpop.f32.mrb[161].mxu1  ;;  %v3713_v4 = vpop.f32.mrb[162].mxu0 }
 0x6b2   : > { %8837 = vtanh.f32 %v3710_v58  ;;  %v3845_v7 = vadd.f32 %v3844_v18, %v12354_v10  ;;  %v3714_v31 = vadd.f32 %v3713_v4, %v12355_v53  ;;  %v3846_v50 = vpop.f32.mrb[162].mxu1  ;;  %v3715_v35 = vpop.f32.mrb[163].mxu0 }
 0x6b3   : > { %8839 = vtanh.f32 %v3843_v47  ;;  %v3847_v15 = vadd.f32 %v3846_v50, %v12355_v53  ;;  %v3848_v25 = vpop.f32.mrb[163].mxu1  ;;  %v3716_v36 = vadd.f32 %v3715_v35, %v12355_v53 }
 0x6b4   : > { %8841 = vtanh.f32 %v3712_v6  ;;  %v3849_v30 = vadd.f32 %v3848_v25, %v12355_v53 }
 0x6b5   : > { %8843 = vtanh.f32 %v3845_v7 }
 0x6b6   : > { %8845 = vtanh.f32 %v3714_v31 }
 0x6b7   : > { %8847 = vtanh.f32 %v3847_v15  ;;  %v3719_v43 = vpop.f32.mrb[164].mxu0  ;;  %v12360_v15 = vld [vmem:[#allocation50_spill] sm:$0xff] }
 0x6b8   : > { %8849 = vtanh.f32 %v3716_v36  ;;  %v3720_v61 = vadd.f32 %v3719_v43, %v12356_v48  ;;  %v3852_v5 = vpop.f32.mrb[164].mxu1  ;;  %v3721_v44 = vpop.f32.mrb[165].mxu0 }
 0x6b9   : > { %8851 = vtanh.f32 %v3849_v30  ;;  %v3853_v46 = vadd.f32 %v3852_v5, %v12356_v48  ;;  %v3722_v2 = vadd.f32 %v3721_v44, %v12356_v48  ;;  %v3854_v27 = vpop.f32.mrb[165].mxu1  ;;  %v3723_v29 = vpop.f32.mrb[166].mxu0 }
 0x6ba   : > { %8853 = vtanh.f32 %v3720_v61  ;;  %v3855_v41 = vadd.f32 %v3854_v27, %v12356_v48  ;;  %v3724_v20 = vadd.f32 %v3723_v29, %v12357_v39  ;;  %v3856_v12 = vpop.f32.mrb[166].mxu1  ;;  %v3725_v8 = vpop.f32.mrb[167].mxu0  ;;  %v12361_v29 = vld [vmem:[#allocation49_spill] sm:$0xff] }
 0x6bb   : > { %8855 = vtanh.f32 %v3853_v46  ;;  %v3857_v16 = vadd.f32 %v3856_v12, %v12357_v39  ;;  %v3858_v62 = vpop.f32.mrb[167].mxu1  ;;  %v3726_v59 = vadd.f32 %v3725_v8, %v12357_v39 }
 0x6bc   : > { %v8838_v9 = vpop.eup %8837  ;;  %8857 = vtanh.f32 %v3722_v2  ;;  %v3859_v13 = vadd.f32 %v3858_v62, %v12357_v39 }
 0x6bd   : > { %v8840_v42 = vpop.eup %8839  ;;  %8859 = vtanh.f32 %v3855_v41 }
 0x6be   : > { %v8842_v63 = vpop.eup %8841  ;;  %8861 = vtanh.f32 %v3724_v20 }
 0x6bf   : > { %v8844_v49 = vpop.eup %8843  ;;  %8863 = vtanh.f32 %v3857_v16  ;;  %v3729_v26 = vpop.f32.mrb[168].mxu0 }
 0x6c0   : > { %v8846_v55 = vpop.eup %8845  ;;  %8865 = vtanh.f32 %v3726_v59  ;;  %v3730_v52 = vadd.f32 %v3729_v26, %v12358_v22  ;;  %v3862_v40 = vpop.f32.mrb[168].mxu1 }
 0x6c1   : > { %v3731_v60 = vpop.f32.mrb[169].mxu0  ;;  %v8848_v51 = vpop.eup %8847  ;;  %8867 = vtanh.f32 %v3859_v13  ;;  %v3863_v57 = vadd.f32 %v3862_v40, %v12358_v22  ;;  %v4042_v24 = vpack.c.bf16 %v8846_v55, %v8838_v9  ;;  %v12362_v40 = vld [vmem:[#allocation52_spill] sm:$0xff] }
 0x6c2   : > { %v3732_v54 = vadd.f32 %v3731_v60, %v12358_v22  ;;  %v3864_v56 = vpop.f32.mrb[169].mxu1  ;;  %v3733_v28 = vpop.f32.mrb[170].mxu0  ;;  %8869 = vtanh.f32 %v3730_v52  ;;  %v4044_v33 = vpack.c.bf16 %v8848_v51, %v8840_v42 }
 0x6c3   : > { %v8850_v23 = vpop.eup %8849  ;;  %v3865_v17 = vadd.f32 %v3864_v56, %v12358_v22  ;;  %v3734_v34 = vadd.f32 %v3733_v28, %v12359_v19  ;;  %v3866_v3 = vpop.f32.mrb[170].mxu1  ;;  %8871 = vtanh.f32 %v3863_v57 }
 0x6c4   : > { %v3735_v38 = vpop.f32.mrb[171].mxu0  ;;  %v8852_v10 = vpop.eup %8851  ;;  %v3867_v58 = vadd.f32 %v3866_v3, %v12359_v19  ;;  %v4043_v32 = vpack.c.bf16 %v8850_v23, %v8842_v63  ;;  %8873 = vtanh.f32 %v3732_v54  ;;  %v12363_v3 = vld [vmem:[#allocation51_spill] sm:$0xff] }
 0x6c5   : > { %v3868_v21 = vpop.f32.mrb[171].mxu1  ;;  %v8854_v47 = vpop.eup %8853  ;;  %v3736_v6 = vadd.f32 %v3735_v38, %v12359_v19  ;;  %v4045_v18 = vpack.c.bf16 %v8852_v10, %v8844_v49  ;;  %8875 = vtanh.f32 %v3865_v17 }
 0x6c6   : > { %v8856_v4 = vpop.eup %8855  ;;  %v3869_v7 = vadd.f32 %v3868_v21, %v12359_v19  ;;  %4323 = vmatprep.subr.bf16.mxu0 %v4043_v32  ;;  %8877 = vtanh.f32 %v3734_v34 }
 0x6c7   : > { %v8858_v53 = vpop.eup %8857  ;;  %4456 = vmatprep.subr.bf16.mxu1 %v4045_v18  ;;  %4324 = vmatpush1.bf16.msra.mxu0 %v4042_v24  ;;  %8879 = vtanh.f32 %v3867_v58  ;;  %v3739_v50 = vpop.f32.mrb[172].mxu0 }
 0x6c8   : > { %v8860_v31 = vpop.eup %8859  ;;  %4457 = vmatpush1.bf16.msra.mxu1 %v4044_v33  ;;  %8881 = vtanh.f32 %v3736_v6  ;;  %v3740_v25 = vadd.f32 %v3739_v50, %v12360_v15  ;;  %v3872_v36 = vpop.f32.mrb[172].mxu1 }
 0x6c9   : > { %v8862_v35 = vpop.eup %8861  ;;  %v3741_v30 = vpop.f32.mrb[173].mxu0  ;;  %8883 = vtanh.f32 %v3869_v7  ;;  %v3873_v48 = vadd.f32 %v3872_v36, %v12360_v15  ;;  %v12364_v36 = vld [vmem:[#allocation54_spill] sm:$0xff] }
 0x6ca   : > { %v8864_v43 = vpop.eup %8863  ;;  %v3742_v61 = vadd.f32 %v3741_v30, %v12360_v15  ;;  %v3874_v5 = vpop.f32.mrb[173].mxu1  ;;  %v4046_v46 = vpack.c.bf16 %v8862_v35, %v8854_v47  ;;  %8885 = vtanh.f32 %v3740_v25 }
 0x6cb   : > { %v3743_v44 = vpop.f32.mrb[174].mxu0  ;;  %v8866_v2 = vpop.eup %8865  ;;  %v3875_v27 = vadd.f32 %v3874_v5, %v12360_v15  ;;  %v4048_v12 = vpack.c.bf16 %v8864_v43, %v8856_v4  ;;  %8887 = vtanh.f32 %v3873_v48 }
 0x6cc   : > { %v3744_v41 = vadd.f32 %v3743_v44, %v12361_v29  ;;  %v3876_v39 = vpop.f32.mrb[174].mxu1  ;;  %v3745_v20 = vpop.f32.mrb[175].mxu0  ;;  %v4047_v9 = vpack.c.bf16 %v8866_v2, %v8858_v53  ;;  %8889 = vtanh.f32 %v3742_v61 }
 0x6cd   : > { %v8868_v8 = vpop.eup %8867  ;;  %v3877_v16 = vadd.f32 %v3876_v39, %v12361_v29  ;;  %v3878_v62 = vpop.f32.mrb[175].mxu1  ;;  %v3746_v42 = vadd.f32 %v3745_v20, %v12361_v29  ;;  %8891 = vtanh.f32 %v3875_v27  ;;  %v12365_v39 = vld [vmem:[#allocation53_spill] sm:$0xff] }
 0x6ce   : > { %v8870_v59 = vpop.eup %8869  ;;  %v4049_v13 = vpack.c.bf16 %v8868_v8, %v8860_v31  ;;  %v3879_v49 = vadd.f32 %v3878_v62, %v12361_v29  ;;  %4325 = vmatprep.subr.bf16.mxu0 %v4047_v9  ;;  %8893 = vtanh.f32 %v3744_v41 }
 0x6cf   : > { %v8872_v63 = vpop.eup %8871  ;;  %4326 = vmatpush1.bf16.msra.mxu0 %v4046_v46  ;;  %8895 = vtanh.f32 %v3877_v16  ;;  %v3749_v22 = vpop.f32.mrb[176].mxu0 }
 0x6d0   : > { %v8874_v26 = vpop.eup %8873  ;;  %4458 = vmatprep.subr.bf16.mxu1 %v4049_v13  ;;  %8897 = vtanh.f32 %v3746_v42  ;;  %v3750_v60 = vadd.f32 %v3749_v22, %v12362_v40  ;;  %v3882_v51 = vpop.f32.mrb[176].mxu1 }
 0x6d1   : > { %v8876_v55 = vpop.eup %8875  ;;  %4459 = vmatpush1.bf16.msra.mxu1 %v4048_v12  ;;  %v3751_v57 = vpop.f32.mrb[177].mxu0  ;;  %8899 = vtanh.f32 %v3879_v49  ;;  %v3883_v56 = vadd.f32 %v3882_v51, %v12362_v40  ;;  %v12366_v51 = vld [vmem:[#allocation56_spill] sm:$0xff] }
 0x6d2   : > { %v8878_v52 = vpop.eup %8877  ;;  %v3752_v28 = vadd.f32 %v3751_v57, %v12362_v40  ;;  %v3884_v24 = vpop.f32.mrb[177].mxu1  ;;  %8901 = vtanh.f32 %v3750_v60 }
 0x6d3   : > { %v8880_v54 = vpop.eup %8879  ;;  %v3753_v23 = vpop.f32.mrb[178].mxu0  ;;  %v4050_v17 = vpack.c.bf16 %v8878_v52, %v8870_v59  ;;  %v3885_v34 = vadd.f32 %v3884_v24, %v12362_v40  ;;  %8903 = vtanh.f32 %v3883_v56 }
 0x6d4   : > { %v8882_v19 = vpop.eup %8881  ;;  %v3754_v38 = vadd.f32 %v3753_v23, %v12363_v3  ;;  %v3886_v33 = vpop.f32.mrb[178].mxu1  ;;  %v4052_v58 = vpack.c.bf16 %v8880_v54, %v8872_v63  ;;  %8905 = vtanh.f32 %v3752_v28 }
 0x6d5   : > { %v3755_v10 = vpop.f32.mrb[179].mxu0  ;;  %v8884_v21 = vpop.eup %8883  ;;  %v3887_v32 = vadd.f32 %v3886_v33, %v12363_v3  ;;  %v4051_v6 = vpack.c.bf16 %v8882_v19, %v8874_v26  ;;  %8907 = vtanh.f32 %v3885_v34  ;;  %v12367_v33 = vld [vmem:[#allocation55_spill] sm:$0xff] }
 0x6d6   : > { %v3888_v47 = vpop.f32.mrb[179].mxu1  ;;  %v8886_v18 = vpop.eup %8885  ;;  %v3756_v4 = vadd.f32 %v3755_v10, %v12363_v3  ;;  %v4053_v7 = vpack.c.bf16 %v8884_v21, %v8876_v55  ;;  %8909 = vtanh.f32 %v3754_v38 }
 0x6d7   : > { %v8888_v53 = vpop.eup %8887  ;;  %v3889_v31 = vadd.f32 %v3888_v47, %v12363_v3  ;;  %4327 = vmatprep.subr.bf16.mxu0 %v4051_v6  ;;  %8911 = vtanh.f32 %v3887_v32  ;;  %v3759_v15 = vpop.f32.mrb[180].mxu0 }
 0x6d8   : > { %v8890_v50 = vpop.eup %8889  ;;  %4460 = vmatprep.subr.bf16.mxu1 %v4053_v7  ;;  %4328 = vmatpush1.bf16.msra.mxu0 %v4050_v17  ;;  %8913 = vtanh.f32 %v3756_v4  ;;  %v3760_v30 = vadd.f32 %v3759_v15, %v12364_v36  ;;  %v3892_v43 = vpop.f32.mrb[180].mxu1 }
 0x6d9   : > { %v8892_v35 = vpop.eup %8891  ;;  %4461 = vmatpush1.bf16.msra.mxu1 %v4052_v58  ;;  %v3761_v48 = vpop.f32.mrb[181].mxu0  ;;  %8915 = vtanh.f32 %v3889_v31  ;;  %v3893_v5 = vadd.f32 %v3892_v43, %v12364_v36  ;;  %v12368_v43 = vld [vmem:[#allocation58_spill] sm:$0xff] }
 0x6da   : > { %v8894_v25 = vpop.eup %8893  ;;  %v3762_v44 = vadd.f32 %v3761_v48, %v12364_v36  ;;  %v3894_v46 = vpop.f32.mrb[181].mxu1  ;;  %8917 = vtanh.f32 %v3760_v30 }
 0x6db   : > { %v8896_v61 = vpop.eup %8895  ;;  %v3763_v2 = vpop.f32.mrb[182].mxu0  ;;  %v4054_v27 = vpack.c.bf16 %v8894_v25, %v8886_v18  ;;  %v3895_v41 = vadd.f32 %v3894_v46, %v12364_v36  ;;  %8919 = vtanh.f32 %v3893_v5 }
 0x6dc   : > { %v8898_v29 = vpop.eup %8897  ;;  %v3764_v20 = vadd.f32 %v3763_v2, %v12365_v39  ;;  %v3896_v12 = vpop.f32.mrb[182].mxu1  ;;  %v4056_v16 = vpack.c.bf16 %v8896_v61, %v8888_v53  ;;  %8921 = vtanh.f32 %v3762_v44 }
 0x6dd   : > { %v3765_v8 = vpop.f32.mrb[183].mxu0  ;;  %v8900_v62 = vpop.eup %8899  ;;  %v3897_v9 = vadd.f32 %v3896_v12, %v12365_v39  ;;  %v4055_v42 = vpack.c.bf16 %v8898_v29, %v8890_v50  ;;  %8923 = vtanh.f32 %v3895_v41  ;;  %v12369_v12 = vld [vmem:[#allocation57_spill] sm:$0xff] }
 0x6de   : > { %v3898_v59 = vpop.f32.mrb[183].mxu1  ;;  %v8902_v13 = vpop.eup %8901  ;;  %v3766_v63 = vadd.f32 %v3765_v8, %v12365_v39  ;;  %v4057_v49 = vpack.c.bf16 %v8900_v62, %v8892_v35  ;;  %8925 = vtanh.f32 %v3764_v20 }
 0x6df   : > { %v8904_v26 = vpop.eup %8903  ;;  %v3899_v55 = vadd.f32 %v3898_v59, %v12365_v39  ;;  %4329 = vmatprep.subr.bf16.mxu0 %v4055_v42  ;;  %8927 = vtanh.f32 %v3897_v9  ;;  %v3769_v40 = vpop.f32.mrb[184].mxu0 }
 0x6e0   : > { %v8906_v22 = vpop.eup %8905  ;;  %4462 = vmatprep.subr.bf16.mxu1 %v4057_v49  ;;  %4330 = vmatpush1.bf16.msra.mxu0 %v4054_v27  ;;  %8929 = vtanh.f32 %v3766_v63  ;;  %v3770_v57 = vadd.f32 %v3769_v40, %v12366_v51  ;;  %v3902_v54 = vpop.f32.mrb[184].mxu1 }
 0x6e1   : > { %v8908_v52 = vpop.eup %8907  ;;  %4463 = vmatpush1.bf16.msra.mxu1 %v4056_v16  ;;  %v3771_v56 = vpop.f32.mrb[185].mxu0  ;;  %8931 = vtanh.f32 %v3899_v55  ;;  %v3903_v24 = vadd.f32 %v3902_v54, %v12366_v51 }
 0x6e2   : > { %v8910_v60 = vpop.eup %8909  ;;  %v3772_v23 = vadd.f32 %v3771_v56, %v12366_v51  ;;  %v3904_v17 = vpop.f32.mrb[185].mxu1  ;;  %8933 = vtanh.f32 %v3770_v57 }
 0x6e3   : > { %v8912_v28 = vpop.eup %8911  ;;  %v3773_v19 = vpop.f32.mrb[186].mxu0  ;;  %v4058_v34 = vpack.c.bf16 %v8910_v60, %v8902_v13  ;;  %v3905_v38 = vadd.f32 %v3904_v17, %v12366_v51  ;;  %8935 = vtanh.f32 %v3903_v24 }
 0x6e4   : > { %v8914_v3 = vpop.eup %8913  ;;  %v3774_v10 = vadd.f32 %v3773_v19, %v12367_v33  ;;  %v3906_v58 = vpop.f32.mrb[186].mxu1  ;;  %v4060_v32 = vpack.c.bf16 %v8912_v28, %v8904_v26  ;;  %8937 = vtanh.f32 %v3772_v23 }
 0x6e5   : > { %v3775_v21 = vpop.f32.mrb[187].mxu0  ;;  %v8916_v47 = vpop.eup %8915  ;;  %v3907_v6 = vadd.f32 %v3906_v58, %v12367_v33  ;;  %v4059_v4 = vpack.c.bf16 %v8914_v3, %v8906_v22  ;;  %8939 = vtanh.f32 %v3905_v38 }
 0x6e6   : > { %v3908_v18 = vpop.f32.mrb[187].mxu1  ;;  %v8918_v7 = vpop.eup %8917  ;;  %v3776_v53 = vadd.f32 %v3775_v21, %v12367_v33  ;;  %v4061_v31 = vpack.c.bf16 %v8916_v47, %v8908_v52  ;;  %8941 = vtanh.f32 %v3774_v10 }
 0x6e7   : > { %v8920_v50 = vpop.eup %8919  ;;  %v3909_v35 = vadd.f32 %v3908_v18, %v12367_v33  ;;  %4331 = vmatprep.subr.bf16.mxu0 %v4059_v4  ;;  %8943 = vtanh.f32 %v3907_v6  ;;  %v3779_v36 = vpop.f32.mrb[188].mxu0 }
 0x6e8   : > { %v8922_v15 = vpop.eup %8921  ;;  %4464 = vmatprep.subr.bf16.mxu1 %v4061_v31  ;;  %4332 = vmatpush1.bf16.msra.mxu0 %v4058_v34  ;;  %8945 = vtanh.f32 %v3776_v53  ;;  %v3780_v48 = vadd.f32 %v3779_v36, %v12368_v43  ;;  %v3912_v61 = vpop.f32.mrb[188].mxu1 }
 0x6e9   : > { %v8924_v25 = vpop.eup %8923  ;;  %4465 = vmatpush1.bf16.msra.mxu1 %v4060_v32  ;;  %v3781_v5 = vpop.f32.mrb[189].mxu0  ;;  %8947 = vtanh.f32 %v3909_v35  ;;  %v3913_v46 = vadd.f32 %v3912_v61, %v12368_v43 }
 0x6ea   : > { %v8926_v30 = vpop.eup %8925  ;;  %v3782_v2 = vadd.f32 %v3781_v5, %v12368_v43  ;;  %v3914_v27 = vpop.f32.mrb[189].mxu1  ;;  %8949 = vtanh.f32 %v3780_v48 }
 0x6eb   : > { %v8928_v44 = vpop.eup %8927  ;;  %v3783_v29 = vpop.f32.mrb[190].mxu0  ;;  %v4062_v41 = vpack.c.bf16 %v8926_v30, %v8918_v7  ;;  %v3915_v20 = vadd.f32 %v3914_v27, %v12368_v43  ;;  %8951 = vtanh.f32 %v3913_v46 }
 0x6ec   : > { %v8930_v39 = vpop.eup %8929  ;;  %v3784_v8 = vadd.f32 %v3783_v29, %v12369_v12  ;;  %v3916_v16 = vpop.f32.mrb[190].mxu1  ;;  %v4064_v9 = vpack.c.bf16 %v8928_v44, %v8920_v50  ;;  %8953 = vtanh.f32 %v3782_v2 }
 0x6ed   : > { %v3785_v62 = vpop.f32.mrb[191].mxu0  ;;  %v8932_v59 = vpop.eup %8931  ;;  %v3917_v42 = vadd.f32 %v3916_v16, %v12369_v12  ;;  %v4063_v63 = vpack.c.bf16 %v8930_v39, %v8922_v15  ;;  %8955 = vtanh.f32 %v3915_v20 }
 0x6ee   : > { %v3918_v13 = vpop.f32.mrb[191].mxu1  ;;  %v8934_v49 = vpop.eup %8933  ;;  %v3786_v26 = vadd.f32 %v3785_v62, %v12369_v12  ;;  %v4065_v55 = vpack.c.bf16 %v8932_v59, %v8924_v25  ;;  %8957 = vtanh.f32 %v3784_v8 }
 0x6ef   : > { %v8936_v22 = vpop.eup %8935  ;;  %v3919_v52 = vadd.f32 %v3918_v13, %v12369_v12  ;;  %4333 = vmatprep.subr.bf16.mxu0 %v4063_v63  ;;  %8959 = vtanh.f32 %v3917_v42  ;;  %v3789_v51 = vpop.f32.mrb[192].mxu0 }
 0x6f0   : > { %v8938_v40 = vpop.eup %8937  ;;  %4466 = vmatprep.subr.bf16.mxu1 %v4065_v55  ;;  %4334 = vmatpush1.bf16.msra.mxu0 %v4062_v41  ;;  %8961 = vtanh.f32 %v3786_v26  ;;  %v3790_v54 = vadd.f32 %v3789_v51, %v10906_v1  ;;  %v3922_v56 = vpop.f32.mrb[192].mxu1  ;;  %v12370_v41 = vld [vmem:[#allocation59_spill] sm:$0xff] }
 0x6f1   : > { %v8940_v60 = vpop.eup %8939  ;;  %4467 = vmatpush1.bf16.msra.mxu1 %v4064_v9  ;;  %v3791_v28 = vpop.f32.mrb[193].mxu0  ;;  %8963 = vtanh.f32 %v3919_v52  ;;  %v3923_v23 = vadd.f32 %v3922_v56, %v10906_v1 }
 0x6f2   : > { %v8942_v57 = vpop.eup %8941  ;;  %v3792_v17 = vadd.f32 %v3791_v28, %v10906_v1  ;;  %v3924_v19 = vpop.f32.mrb[193].mxu1  ;;  %8965 = vtanh.f32 %v3790_v54 }
 0x6f3   : > { %v8944_v24 = vpop.eup %8943  ;;  %v3793_v34 = vpop.f32.mrb[194].mxu0  ;;  %v4066_v3 = vpack.c.bf16 %v8942_v57, %v8934_v49  ;;  %v3925_v33 = vadd.f32 %v3924_v19, %v10906_v1  ;;  %8967 = vtanh.f32 %v3923_v23 }
 0x6f4   : > { %v8946_v38 = vpop.eup %8945  ;;  %v3794_v10 = vadd.f32 %v3793_v34, %v10904_v37  ;;  %v3926_v58 = vpop.f32.mrb[194].mxu1  ;;  %v4068_v32 = vpack.c.bf16 %v8944_v24, %v8936_v22  ;;  %8969 = vtanh.f32 %v3792_v17 }
 0x6f5   : > { %v3795_v21 = vpop.f32.mrb[195].mxu0  ;;  %v8948_v47 = vpop.eup %8947  ;;  %v3927_v6 = vadd.f32 %v3926_v58, %v10904_v37  ;;  %v4067_v4 = vpack.c.bf16 %v8946_v38, %v8938_v40  ;;  %8971 = vtanh.f32 %v3925_v33 }
 0x6f6   : > { %v3928_v18 = vpop.f32.mrb[195].mxu1  ;;  %v8950_v7 = vpop.eup %8949  ;;  %v3796_v53 = vadd.f32 %v3795_v21, %v10904_v37  ;;  %v4069_v31 = vpack.c.bf16 %v8948_v47, %v8940_v60  ;;  %8973 = vtanh.f32 %v3794_v10  ;;  %v7920_v47 = vld [vmem:[%s12200_s3 + $0x334] ss:$8 sps:$4 sm:$0xff]  }
 0x6f7   : > { %v8952_v50 = vpop.eup %8951  ;;  %v3929_v1 = vadd.f32 %v3928_v18, %v10904_v37  ;;  %4335 = vmatprep.subr.bf16.mxu0 %v4067_v4  ;;  %8975 = vtanh.f32 %v3927_v6  ;;  %v3799_v25 = vpop.f32.mrb[196].mxu0  ;;  %v7922_v6 = vld [vmem:[%s12200_s3 + $0x330] ss:$8 sps:$4 sm:$0xff]   ;;  %v7923_v18 = vld [vmem:[%s12200_s3 + $0x344] ss:$8 sps:$4 sm:$0xff]  }
 0x6f8   : > { %v8954_v35 = vpop.eup %8953  ;;  %4468 = vmatprep.subr.bf16.mxu1 %v4069_v31  ;;  %4336 = vmatpush1.bf16.msra.mxu0 %v4066_v3  ;;  %8977 = vtanh.f32 %v3796_v53  ;;  %v3800_v30 = vadd.f32 %v3799_v25, %v10933_v11  ;;  %v3932_v43 = vpop.f32.mrb[196].mxu1  ;;  %v7925_v4 = vld [vmem:[%s12200_s3 + $0x340] ss:$8 sps:$4 sm:$0xff]   ;;  %v7928_v53 = vld [vmem:[%s12200_s3 + $0x350] ss:$8 sps:$4 sm:$0xff]  }
 0x6f9   : > { %v8956_v15 = vpop.eup %8955  ;;  %4469 = vmatpush1.bf16.msra.mxu1 %v4068_v32  ;;  %v3801_v48 = vpop.f32.mrb[197].mxu0  ;;  %8979 = vtanh.f32 %v3929_v1  ;;  %v3933_v5 = vadd.f32 %v3932_v43, %v10933_v11  ;;  %v7917_v32 = vld [vmem:[%s12200_s3 + $0x320] ss:$8 sps:$4 sm:$0xff]   ;;  %v7929_v31 = vld [vmem:[%s12200_s3 + $0x364] ss:$8 sps:$4 sm:$0xff]  }
 0x6fa   : > { %v8958_v36 = vpop.eup %8957  ;;  %v3802_v37 = vadd.f32 %v3801_v48, %v10933_v11  ;;  %v3934_v44 = vpop.f32.mrb[197].mxu1  ;;  %8981 = vtanh.f32 %v3800_v30  ;;  %v7932_v1 = vld [vmem:[%s12200_s3 + $0x374] ss:$8 sps:$4 sm:$0xff]   ;;  %v7937_v25 = vld [vmem:[%s12200_s3 + $0x380] ss:$8 sps:$4 sm:$0xff]  }
 0x6fb   : > { %v8960_v61 = vpop.eup %8959  ;;  %v3803_v46 = vpop.f32.mrb[198].mxu0  ;;  %v4070_v2 = vpack.c.bf16 %v8958_v36, %v8950_v7  ;;  %v3935_v29 = vadd.f32 %v3934_v44, %v10933_v11  ;;  %8983 = vtanh.f32 %v3933_v5  ;;  %v7926_v7 = vld [vmem:[%s12200_s3 + $0x354] ss:$8 sps:$4 sm:$0xff]   ;;  %v7940_v30 = vld [vmem:[%s12200_s3 + $0x390] ss:$8 sps:$4 sm:$0xff]  }
 0x6fc   : > { %v8962_v27 = vpop.eup %8961  ;;  %v3804_v39 = vadd.f32 %v3803_v46, %v12370_v41  ;;  %v3936_v20 = vpop.f32.mrb[198].mxu1  ;;  %v4072_v8 = vpack.c.bf16 %v8960_v61, %v8952_v50  ;;  %8985 = vtanh.f32 %v3802_v37  ;;  %v7931_v50 = vld [vmem:[%s12200_s3 + $0x360] ss:$8 sps:$4 sm:$0xff]   ;;  %v7938_v36 = vld [vmem:[%s12200_s3 + $0x394] ss:$8 sps:$4 sm:$0xff]  }
 0x6fd   : > { %v3805_v12 = vpop.f32.mrb[199].mxu0  ;;  %v8964_v16 = vpop.eup %8963  ;;  %v3937_v62 = vadd.f32 %v3936_v20, %v12370_v41  ;;  %v4071_v59 = vpack.c.bf16 %v8962_v27, %v8954_v35  ;;  %8987 = vtanh.f32 %v3935_v29  ;;  %v7934_v35 = vld [vmem:[%s12200_s3 + $0x370] ss:$8 sps:$4 sm:$0xff]   ;;  %v7941_v43 = vld [vmem:[%s12200_s3 + $0x3a4] ss:$8 sps:$4 sm:$0xff]  }
 0x6fe   : > { %v3938_v9 = vpop.f32.mrb[199].mxu1  ;;  %v8966_v42 = vpop.eup %8965  ;;  %v3806_v13 = vadd.f32 %v3805_v12, %v12370_v41  ;;  %v4073_v63 = vpack.c.bf16 %v8964_v16, %v8956_v15  ;;  %8989 = vtanh.f32 %v3804_v39  ;;  %v7935_v15 = vld [vmem:[%s12200_s3 + $0x384] ss:$8 sps:$4 sm:$0xff]   ;;  %v7943_v48 = vld [vmem:[%s12200_s3 + $0x3a0] ss:$8 sps:$4 sm:$0xff]  }
 0x6ff   : > { %v8968_v49 = vpop.eup %8967  ;;  %v3939_v11 = vadd.f32 %v3938_v9, %v12370_v41  ;;  %4337 = vmatprep.subr.bf16.mxu0 %v4071_v59  ;;  %8991 = vtanh.f32 %v3937_v62  ;;  %v7944_v61 = vld [vmem:[%s12200_s3 + $0x3b4] ss:$8 sps:$4 sm:$0xff]   ;;  %v7946_v5 = vld [vmem:[%s12200_s3 + $0x3b0] ss:$8 sps:$4 sm:$0xff]   ;;  %v7949_v37 = vld [vmem:[%s12200_s3 + $0x3c4] ss:$8 sps:$4 sm:$0xff]  }
 0x700   : > { %v8970_v26 = vpop.eup %8969  ;;  %4470 = vmatprep.subr.bf16.mxu1 %v4073_v63  ;;  %4338 = vmatpush1.bf16.msra.mxu0 %v4070_v2  ;;  %8993 = vtanh.f32 %v3806_v13  ;;  %v4121_v63 = vpop.permute.xlu1 %4120 }
 0x701   : > { %v8972_v55 = vpop.eup %8971  ;;  %4471 = vmatpush1.bf16.msra.mxu1 %v4072_v8  ;;  %8995 = vtanh.f32 %v3939_v11 }
 0x702   : > { %v8974_v22 = vpop.eup %8973 }
 0x703   : > { %v8976_v52 = vpop.eup %8975  ;;  %v4074_v40 = vpack.c.bf16 %v8974_v22, %v8966_v42 }
 0x704   : > { %v8978_v60 = vpop.eup %8977  ;;  %v4076_v51 = vpack.c.bf16 %v8976_v52, %v8968_v49 }
 0x705   : > { %v8980_v57 = vpop.eup %8979  ;;  %v4075_v54 = vpack.c.bf16 %v8978_v60, %v8970_v26 }
 0x706   : > { %v8982_v56 = vpop.eup %8981  ;;  %v4077_v28 = vpack.c.bf16 %v8980_v57, %v8972_v55 }
 0x707   : > { %v8984_v24 = vpop.eup %8983  ;;  %4339 = vmatprep.subr.bf16.mxu0 %v4075_v54 }
 0x708   : > { %v8986_v23 = vpop.eup %8985  ;;  %4472 = vmatprep.subr.bf16.mxu1 %v4077_v28  ;;  %4340 = vmatpush1.bf16.msra.mxu0 %v4074_v40 }
 0x709   : > { %v8988_v17 = vpop.eup %8987  ;;  %4473 = vmatpush1.bf16.msra.mxu1 %v4076_v51 }
 0x70a   : > { %v8990_v19 = vpop.eup %8989 }
 0x70b   : > { %v8992_v34 = vpop.eup %8991  ;;  %v4078_v3 = vpack.c.bf16 %v8990_v19, %v8982_v56 }
 0x70c   : > { %v8994_v38 = vpop.eup %8993  ;;  %v4080_v33 = vpack.c.bf16 %v8992_v34, %v8984_v24  ;;  %v4131_v34 = vpop.permute.xlu1 %4130 }
 0x70d   : > { %v8996_v10 = vpop.eup %8995  ;;  %v4079_v58 = vpack.c.bf16 %v8994_v38, %v8986_v23  ;;  %v4126_v38 = vpop.permute.xlu0 %4125 }
 0x70e   : > { %v4081_v21 = vpack.c.bf16 %v8996_v10, %v8988_v17 }
 0x70f   : > { %4341 = vmatprep.subr.bf16.mxu0 %v4079_v58 }
 0x710   : > { %4474 = vmatprep.subr.bf16.mxu1 %v4081_v21  ;;  %4342 = vmatpush1.bf16.msra.mxu0 %v4078_v3 }
 0x711   : > { %4475 = vmatpush1.bf16.msra.mxu1 %v4080_v33 }
 0x713   : > { %4356 = vmatmul.mubr.bf16.vlgmr.msra.gmra.mrb[200].mxu0 %v7917_v32 }
 0x714   : > { %4489 = vmatmul.mubr.bf16.vlgmr.msra.gmra.mrb[200].mxu1 %v7917_v32  ;;  %7459 = vmatprep.mubr.msk.bf16.mxu0 %vm1052_vm0, %v7920_v47 }
 0x715   : > { %7469 = vmatprep.mubr.msk.bf16.mxu1 %vm1052_vm0, %v7920_v47 }
 0x71b   : > { %4366 = vmatmul.mubr.bf16.gmra.mrb[204].mxu0 %v7922_v6 }
 0x71c   : > { %4499 = vmatmul.mubr.bf16.gmra.mrb[204].mxu1 %v7922_v6  ;;  %7460 = vmatprep.mubr.msk.bf16.mxu0 %vm1052_vm0, %v7923_v18 }
 0x71d   : > { %7470 = vmatprep.mubr.msk.bf16.mxu1 %vm1052_vm0, %v7923_v18 }
 0x723   : > { %4376 = vmatmul.mubr.bf16.gmra.mrb[208].mxu0 %v7925_v4 }
 0x724   : > { %4509 = vmatmul.mubr.bf16.gmra.mrb[208].mxu1 %v7925_v4  ;;  %7461 = vmatprep.mubr.msk.bf16.mxu0 %vm1052_vm0, %v7926_v7 }
 0x725   : > { %7471 = vmatprep.mubr.msk.bf16.mxu1 %vm1052_vm0, %v7926_v7 }
 0x72b   : > { %4386 = vmatmul.mubr.bf16.gmra.mrb[212].mxu0 %v7928_v53 }
 0x72c   : > { %4519 = vmatmul.mubr.bf16.gmra.mrb[212].mxu1 %v7928_v53  ;;  %7462 = vmatprep.mubr.msk.bf16.mxu0 %vm1052_vm0, %v7929_v31 }
 0x72d   : > { %7472 = vmatprep.mubr.msk.bf16.mxu1 %vm1052_vm0, %v7929_v31 }
 0x733   : > { %4396 = vmatmul.mubr.bf16.gmra.mrb[216].mxu0 %v7931_v50 }
 0x734   : > { %4529 = vmatmul.mubr.bf16.gmra.mrb[216].mxu1 %v7931_v50  ;;  %7463 = vmatprep.mubr.msk.bf16.mxu0 %vm1052_vm0, %v7932_v1 }
 0x735   : > { %7473 = vmatprep.mubr.msk.bf16.mxu1 %vm1052_vm0, %v7932_v1 }
 0x73b   : > { %4406 = vmatmul.mubr.bf16.gmra.mrb[220].mxu0 %v7934_v35 }
 0x73c   : > { %4539 = vmatmul.mubr.bf16.gmra.mrb[220].mxu1 %v7934_v35  ;;  %7464 = vmatprep.mubr.msk.bf16.mxu0 %vm1052_vm0, %v7935_v15 }
 0x73d   : > { %7474 = vmatprep.mubr.msk.bf16.mxu1 %vm1052_vm0, %v7935_v15 }
 0x743   : > { %4416 = vmatmul.mubr.bf16.gmra.mrb[224].mxu0 %v7937_v25 }
 0x744   : > { %4549 = vmatmul.mubr.bf16.gmra.mrb[224].mxu1 %v7937_v25  ;;  %7465 = vmatprep.mubr.msk.bf16.mxu0 %vm1052_vm0, %v7938_v36 }
 0x745   : > { %7475 = vmatprep.mubr.msk.bf16.mxu1 %vm1052_vm0, %v7938_v36 }
 0x74b   : > { %4426 = vmatmul.mubr.bf16.gmra.mrb[228].mxu0 %v7940_v30 }
 0x74c   : > { %4559 = vmatmul.mubr.bf16.gmra.mrb[228].mxu1 %v7940_v30  ;;  %7466 = vmatprep.mubr.msk.bf16.mxu0 %vm1052_vm0, %v7941_v43 }
 0x74d   : > { %7476 = vmatprep.mubr.msk.bf16.mxu1 %vm1052_vm0, %v7941_v43 }
 0x753   : > { %4436 = vmatmul.mubr.bf16.gmra.mrb[232].mxu0 %v7943_v48 }
 0x754   : > { %4569 = vmatmul.mubr.bf16.gmra.mrb[232].mxu1 %v7943_v48  ;;  %7467 = vmatprep.mubr.msk.bf16.mxu0 %vm1052_vm0, %v7944_v61 }
 0x755   : > { %7477 = vmatprep.mubr.msk.bf16.mxu1 %vm1052_vm0, %v7944_v61 }
 0x75b   : > { %4446 = vmatmul.mubr.bf16.gmra.mrb[236].mxu0 %v7946_v5 }
 0x75c   : > { %4579 = vmatmul.mubr.bf16.gmra.mrb[236].mxu1 %v7946_v5  ;;  %7538 = vmatprep.mubr.msk.bf16.mxu0 %vm1052_vm0, %v7949_v37 }
 0x75d   : > { %7548 = vmatprep.mubr.msk.bf16.mxu1 %vm1052_vm0, %v7949_v37 }
 0x7e6   : > { %v4357_v44 = vpop.f32.mrb[200].mxu0 }
 0x7e7   : > { %v4358_v46 = vadd.f32 %v4357_v44, %v10954_v45  ;;  %v4490_v2 = vpop.f32.mrb[200].mxu1  ;;  %v4359_v27 = vpop.f32.mrb[201].mxu0 }
 0x7e8   : > { %v4491_v29 = vadd.f32 %v4490_v2, %v10954_v45  ;;  %v4360_v41 = vadd.f32 %v4359_v27, %v10954_v45  ;;  %v4492_v39 = vpop.f32.mrb[201].mxu1  ;;  %v4361_v20 = vpop.f32.mrb[202].mxu0 }
 0x7e9   : > { %8997 = vtanh.f32 %v4358_v46  ;;  %v4493_v12 = vadd.f32 %v4492_v39, %v10954_v45  ;;  %v4362_v8 = vadd.f32 %v4361_v20, %v10947_v14  ;;  %v4494_v16 = vpop.f32.mrb[202].mxu1  ;;  %v4363_v62 = vpop.f32.mrb[203].mxu0 }
 0x7ea   : > { %8999 = vtanh.f32 %v4491_v29  ;;  %v4495_v9 = vadd.f32 %v4494_v16, %v10947_v14  ;;  %v4496_v59 = vpop.f32.mrb[203].mxu1  ;;  %v4364_v42 = vadd.f32 %v4363_v62, %v10947_v14  ;;  %v4141_v2 = vpop.permute.xlu1 %4140 }
 0x7eb   : > { %9001 = vtanh.f32 %v4360_v41  ;;  %v4497_v13 = vadd.f32 %v4496_v59, %v10947_v14  ;;  %v4136_v29 = vpop.permute.xlu0 %4135 }
 0x7ec   : > { %9003 = vtanh.f32 %v4493_v12 }
 0x7ed   : > { %9005 = vtanh.f32 %v4362_v8 }
 0x7ee   : > { %9007 = vtanh.f32 %v4495_v9  ;;  %v4367_v49 = vpop.f32.mrb[204].mxu0 }
 0x7ef   : > { %9009 = vtanh.f32 %v4364_v42  ;;  %v4368_v45 = vadd.f32 %v4367_v49, %v10961_v0  ;;  %v4500_v11 = vpop.f32.mrb[204].mxu1  ;;  %v4369_v26 = vpop.f32.mrb[205].mxu0 }
 0x7f0   : > { %9011 = vtanh.f32 %v4497_v13  ;;  %v4501_v55 = vadd.f32 %v4500_v11, %v10961_v0  ;;  %v4370_v22 = vadd.f32 %v4369_v26, %v10961_v0  ;;  %v4502_v52 = vpop.f32.mrb[205].mxu1  ;;  %v4371_v40 = vpop.f32.mrb[206].mxu0 }
 0x7f1   : > { %9013 = vtanh.f32 %v4368_v45  ;;  %v4503_v60 = vadd.f32 %v4502_v52, %v10961_v0  ;;  %v4372_v14 = vadd.f32 %v4371_v40, %v4121_v63  ;;  %v4504_v51 = vpop.f32.mrb[206].mxu1  ;;  %v4373_v57 = vpop.f32.mrb[207].mxu0 }
 0x7f2   : > { %9015 = vtanh.f32 %v4501_v55  ;;  %v4505_v54 = vadd.f32 %v4504_v51, %v4121_v63  ;;  %v4506_v56 = vpop.f32.mrb[207].mxu1  ;;  %v4374_v24 = vadd.f32 %v4373_v57, %v4121_v63 }
 0x7f3   : > { %v8998_v28 = vpop.eup %8997  ;;  %9017 = vtanh.f32 %v4370_v22  ;;  %v4507_v17 = vadd.f32 %v4506_v56, %v4121_v63 }
 0x7f4   : > { %v9000_v23 = vpop.eup %8999  ;;  %9019 = vtanh.f32 %v4503_v60 }
 0x7f5   : > { %v9002_v19 = vpop.eup %9001  ;;  %9021 = vtanh.f32 %v4372_v14 }
 0x7f6   : > { %v9004_v3 = vpop.eup %9003  ;;  %9023 = vtanh.f32 %v4505_v54  ;;  %v4377_v33 = vpop.f32.mrb[208].mxu0 }
 0x7f7   : > { %v9006_v0 = vpop.eup %9005  ;;  %9025 = vtanh.f32 %v4374_v24  ;;  %v4378_v10 = vadd.f32 %v4377_v33, %v4126_v38  ;;  %v4510_v58 = vpop.f32.mrb[208].mxu1 }
 0x7f8   : > { %v4379_v21 = vpop.f32.mrb[209].mxu0  ;;  %v9008_v32 = vpop.eup %9007  ;;  %9027 = vtanh.f32 %v4507_v17  ;;  %v4511_v47 = vadd.f32 %v4510_v58, %v4126_v38  ;;  %v4690_v7 = vpack.c.bf16 %v9006_v0, %v8998_v28 }
 0x7f9   : > { %v4380_v6 = vadd.f32 %v4379_v21, %v4126_v38  ;;  %v4512_v18 = vpop.f32.mrb[209].mxu1  ;;  %v4381_v4 = vpop.f32.mrb[210].mxu0  ;;  %9029 = vtanh.f32 %v4378_v10  ;;  %v4692_v15 = vpack.c.bf16 %v9008_v32, %v9000_v23 }
 0x7fa   : > { %v9010_v53 = vpop.eup %9009  ;;  %v4513_v31 = vadd.f32 %v4512_v18, %v4126_v38  ;;  %v4382_v50 = vadd.f32 %v4381_v4, %v4131_v34  ;;  %v4514_v1 = vpop.f32.mrb[210].mxu1  ;;  %9031 = vtanh.f32 %v4511_v47 }
 0x7fb   : > { %v4383_v35 = vpop.f32.mrb[211].mxu0  ;;  %v9012_v25 = vpop.eup %9011  ;;  %v4515_v36 = vadd.f32 %v4514_v1, %v4131_v34  ;;  %v4691_v43 = vpack.c.bf16 %v9010_v53, %v9002_v19  ;;  %9033 = vtanh.f32 %v4380_v6 }
 0x7fc   : > { %v4516_v30 = vpop.f32.mrb[211].mxu1  ;;  %v9014_v48 = vpop.eup %9013  ;;  %v4384_v61 = vadd.f32 %v4383_v35, %v4131_v34  ;;  %v4693_v5 = vpack.c.bf16 %v9012_v25, %v9004_v3  ;;  %9035 = vtanh.f32 %v4513_v31 }
 0x7fd   : > { %v9016_v37 = vpop.eup %9015  ;;  %v4517_v44 = vadd.f32 %v4516_v30, %v4131_v34  ;;  %4971 = vmatprep.subr.bf16.mxu0 %v4691_v43  ;;  %9037 = vtanh.f32 %v4382_v50  ;;  %v4151_v24 = vpop.permute.xlu1 %4150 }
 0x7fe   : > { %v9018_v46 = vpop.eup %9017  ;;  %5104 = vmatprep.subr.bf16.mxu1 %v4693_v5  ;;  %4972 = vmatpush1.bf16.msra.mxu0 %v4690_v7  ;;  %9039 = vtanh.f32 %v4515_v36  ;;  %v4387_v41 = vpop.f32.mrb[212].mxu0 }
 0x7ff   : > { %v9020_v27 = vpop.eup %9019  ;;  %5105 = vmatpush1.bf16.msra.mxu1 %v4692_v15  ;;  %9041 = vtanh.f32 %v4384_v61  ;;  %v4388_v20 = vadd.f32 %v4387_v41, %v4136_v29  ;;  %v4520_v12 = vpop.f32.mrb[212].mxu1 }
 0x800   : > { %v9022_v39 = vpop.eup %9021  ;;  %v4389_v8 = vpop.f32.mrb[213].mxu0  ;;  %9043 = vtanh.f32 %v4517_v44  ;;  %v4521_v62 = vadd.f32 %v4520_v12, %v4136_v29 }
 0x801   : > { %v9024_v16 = vpop.eup %9023  ;;  %v4390_v9 = vadd.f32 %v4389_v8, %v4136_v29  ;;  %v4522_v59 = vpop.f32.mrb[213].mxu1  ;;  %v4694_v13 = vpack.c.bf16 %v9022_v39, %v9014_v48  ;;  %9045 = vtanh.f32 %v4388_v20 }
 0x802   : > { %v4391_v42 = vpop.f32.mrb[214].mxu0  ;;  %v9026_v63 = vpop.eup %9025  ;;  %v4523_v49 = vadd.f32 %v4522_v59, %v4136_v29  ;;  %v4696_v55 = vpack.c.bf16 %v9024_v16, %v9016_v37  ;;  %9047 = vtanh.f32 %v4521_v62 }
 0x803   : > { %v4392_v45 = vadd.f32 %v4391_v42, %v4141_v2  ;;  %v4524_v11 = vpop.f32.mrb[214].mxu1  ;;  %v4393_v26 = vpop.f32.mrb[215].mxu0  ;;  %v4695_v60 = vpack.c.bf16 %v9026_v63, %v9018_v46  ;;  %9049 = vtanh.f32 %v4390_v9 }
 0x804   : > { %v9028_v22 = vpop.eup %9027  ;;  %v4525_v52 = vadd.f32 %v4524_v11, %v4141_v2  ;;  %v4526_v40 = vpop.f32.mrb[215].mxu1  ;;  %v4394_v51 = vadd.f32 %v4393_v26, %v4141_v2  ;;  %9051 = vtanh.f32 %v4523_v49 }
 0x805   : > { %v9030_v14 = vpop.eup %9029  ;;  %v4697_v57 = vpack.c.bf16 %v9028_v22, %v9020_v27  ;;  %v4527_v56 = vadd.f32 %v4526_v40, %v4141_v2  ;;  %4973 = vmatprep.subr.bf16.mxu0 %v4695_v60  ;;  %9053 = vtanh.f32 %v4392_v45  ;;  %v4146_v17 = vpop.permute.xlu0 %4145 }
 0x806   : > { %v9032_v54 = vpop.eup %9031  ;;  %4974 = vmatpush1.bf16.msra.mxu0 %v4694_v13  ;;  %9055 = vtanh.f32 %v4525_v52  ;;  %v4397_v19 = vpop.f32.mrb[216].mxu0 }
 0x807   : > { %v9034_v28 = vpop.eup %9033  ;;  %5106 = vmatprep.subr.bf16.mxu1 %v4697_v57  ;;  %9057 = vtanh.f32 %v4394_v51  ;;  %v4398_v3 = vadd.f32 %v4397_v19, %v4146_v17  ;;  %v4530_v38 = vpop.f32.mrb[216].mxu1 }
 0x808   : > { %v9036_v23 = vpop.eup %9035  ;;  %5107 = vmatpush1.bf16.msra.mxu1 %v4696_v55  ;;  %v4399_v33 = vpop.f32.mrb[217].mxu0  ;;  %9059 = vtanh.f32 %v4527_v56  ;;  %v4531_v10 = vadd.f32 %v4530_v38, %v4146_v17 }
 0x809   : > { %v9038_v34 = vpop.eup %9037  ;;  %v4400_v58 = vadd.f32 %v4399_v33, %v4146_v17  ;;  %v4532_v21 = vpop.f32.mrb[217].mxu1  ;;  %9061 = vtanh.f32 %v4398_v3 }
 0x80a   : > { %v9040_v0 = vpop.eup %9039  ;;  %v4401_v32 = vpop.f32.mrb[218].mxu0  ;;  %v4698_v47 = vpack.c.bf16 %v9038_v34, %v9030_v14  ;;  %v4533_v18 = vadd.f32 %v4532_v21, %v4146_v17  ;;  %9063 = vtanh.f32 %v4531_v10 }
 0x80b   : > { %v9042_v6 = vpop.eup %9041  ;;  %v4402_v4 = vadd.f32 %v4401_v32, %v4151_v24  ;;  %v4534_v7 = vpop.f32.mrb[218].mxu1  ;;  %v4700_v31 = vpack.c.bf16 %v9040_v0, %v9032_v54  ;;  %9065 = vtanh.f32 %v4400_v58 }
 0x80c   : > { %v4403_v53 = vpop.f32.mrb[219].mxu0  ;;  %v9044_v50 = vpop.eup %9043  ;;  %v4535_v1 = vadd.f32 %v4534_v7, %v4151_v24  ;;  %v4699_v15 = vpack.c.bf16 %v9042_v6, %v9034_v28  ;;  %9067 = vtanh.f32 %v4533_v18 }
 0x80d   : > { %v4536_v35 = vpop.f32.mrb[219].mxu1  ;;  %v9046_v25 = vpop.eup %9045  ;;  %v4404_v36 = vadd.f32 %v4403_v53, %v4151_v24  ;;  %v4701_v30 = vpack.c.bf16 %v9044_v50, %v9036_v23  ;;  %9069 = vtanh.f32 %v4402_v4 }
 0x80e   : > { %v9048_v43 = vpop.eup %9047  ;;  %v4537_v48 = vadd.f32 %v4536_v35, %v4151_v24  ;;  %4975 = vmatprep.subr.bf16.mxu0 %v4699_v15  ;;  %v4161_v5 = vpop.permute.xlu1 %4160  ;;  %9071 = vtanh.f32 %v4535_v1 }
 0x80f   : > { %v9050_v61 = vpop.eup %9049  ;;  %5108 = vmatprep.subr.bf16.mxu1 %v4701_v30  ;;  %4976 = vmatpush1.bf16.msra.mxu0 %v4698_v47  ;;  %v4156_v44 = vpop.permute.xlu0 %4155  ;;  %9073 = vtanh.f32 %v4404_v36 }
 0x810   : > { %v9052_v37 = vpop.eup %9051  ;;  %5109 = vmatpush1.bf16.msra.mxu1 %v4700_v31  ;;  %v4407_v46 = vpop.f32.mrb[220].mxu0  ;;  %9075 = vtanh.f32 %v4537_v48 }
 0x811   : > { %v9054_v2 = vpop.eup %9053  ;;  %v4408_v27 = vadd.f32 %v4407_v46, %v4156_v44  ;;  %v4540_v29 = vpop.f32.mrb[220].mxu1 }
 0x812   : > { %v4409_v41 = vpop.f32.mrb[221].mxu0  ;;  %v9056_v39 = vpop.eup %9055  ;;  %v4541_v20 = vadd.f32 %v4540_v29, %v4156_v44  ;;  %v4702_v62 = vpack.c.bf16 %v9054_v2, %v9046_v25 }
 0x813   : > { %v4410_v12 = vadd.f32 %v4409_v41, %v4156_v44  ;;  %v4542_v8 = vpop.f32.mrb[221].mxu1  ;;  %v4411_v16 = vpop.f32.mrb[222].mxu0  ;;  %9077 = vtanh.f32 %v4408_v27  ;;  %v4704_v49 = vpack.c.bf16 %v9056_v39, %v9048_v43 }
 0x814   : > { %v9058_v9 = vpop.eup %9057  ;;  %v4543_v59 = vadd.f32 %v4542_v8, %v4156_v44  ;;  %v4412_v42 = vadd.f32 %v4411_v16, %v4161_v5  ;;  %v4544_v13 = vpop.f32.mrb[222].mxu1  ;;  %9079 = vtanh.f32 %v4541_v20 }
 0x815   : > { %v4413_v63 = vpop.f32.mrb[223].mxu0  ;;  %v9060_v45 = vpop.eup %9059  ;;  %v4545_v11 = vadd.f32 %v4544_v13, %v4161_v5  ;;  %v4703_v55 = vpack.c.bf16 %v9058_v9, %v9050_v61  ;;  %9081 = vtanh.f32 %v4410_v12 }
 0x816   : > { %v4546_v26 = vpop.f32.mrb[223].mxu1  ;;  %v9062_v22 = vpop.eup %9061  ;;  %v4414_v52 = vadd.f32 %v4413_v63, %v4161_v5  ;;  %v4705_v40 = vpack.c.bf16 %v9060_v45, %v9052_v37  ;;  %9083 = vtanh.f32 %v4543_v59 }
 0x817   : > { %v9064_v60 = vpop.eup %9063  ;;  %v4547_v14 = vadd.f32 %v4546_v26, %v4161_v5  ;;  %4977 = vmatprep.subr.bf16.mxu0 %v4703_v55  ;;  %v4171_v57 = vpop.permute.xlu1 %4170  ;;  %9085 = vtanh.f32 %v4412_v42 }
 0x818   : > { %v9066_v51 = vpop.eup %9065  ;;  %5110 = vmatprep.subr.bf16.mxu1 %v4705_v40  ;;  %4978 = vmatpush1.bf16.msra.mxu0 %v4702_v62  ;;  %v4166_v56 = vpop.permute.xlu0 %4165  ;;  %9087 = vtanh.f32 %v4545_v11 }
 0x819   : > { %v9068_v54 = vpop.eup %9067  ;;  %5111 = vmatpush1.bf16.msra.mxu1 %v4704_v49  ;;  %v4417_v28 = vpop.f32.mrb[224].mxu0  ;;  %9089 = vtanh.f32 %v4414_v52 }
 0x81a   : > { %v9070_v24 = vpop.eup %9069  ;;  %v4418_v23 = vadd.f32 %v4417_v28, %v4166_v56  ;;  %v4550_v17 = vpop.f32.mrb[224].mxu1  ;;  %9091 = vtanh.f32 %v4547_v14 }
 0x81b   : > { %v4419_v19 = vpop.f32.mrb[225].mxu0  ;;  %v9072_v34 = vpop.eup %9071  ;;  %v4551_v3 = vadd.f32 %v4550_v17, %v4166_v56  ;;  %v4706_v10 = vpack.c.bf16 %v9070_v24, %v9062_v22 }
 0x81c   : > { %v4420_v38 = vadd.f32 %v4419_v19, %v4166_v56  ;;  %v4552_v33 = vpop.f32.mrb[225].mxu1  ;;  %v4421_v0 = vpop.f32.mrb[226].mxu0  ;;  %9093 = vtanh.f32 %v4418_v23  ;;  %v4708_v18 = vpack.c.bf16 %v9072_v34, %v9064_v60 }
 0x81d   : > { %v9074_v58 = vpop.eup %9073  ;;  %v4553_v21 = vadd.f32 %v4552_v33, %v4166_v56  ;;  %v4422_v32 = vadd.f32 %v4421_v0, %v4171_v57  ;;  %v4554_v47 = vpop.f32.mrb[226].mxu1  ;;  %9095 = vtanh.f32 %v4551_v3 }
 0x81e   : > { %v4423_v6 = vpop.f32.mrb[227].mxu0  ;;  %v9076_v4 = vpop.eup %9075  ;;  %v4555_v7 = vadd.f32 %v4554_v47, %v4171_v57  ;;  %v4707_v31 = vpack.c.bf16 %v9074_v58, %v9066_v51  ;;  %9097 = vtanh.f32 %v4420_v38 }
 0x81f   : > { %v4556_v53 = vpop.f32.mrb[227].mxu1  ;;  %v9078_v50 = vpop.eup %9077  ;;  %v4424_v1 = vadd.f32 %v4423_v6, %v4171_v57  ;;  %v4709_v35 = vpack.c.bf16 %v9076_v4, %v9068_v54  ;;  %9099 = vtanh.f32 %v4553_v21 }
 0x820   : > { %v9080_v15 = vpop.eup %9079  ;;  %v4557_v25 = vadd.f32 %v4556_v53, %v4171_v57  ;;  %4979 = vmatprep.subr.bf16.mxu0 %v4707_v31  ;;  %v4181_v30 = vpop.permute.xlu1 %4180  ;;  %9101 = vtanh.f32 %v4422_v32 }
 0x821   : > { %v9082_v36 = vpop.eup %9081  ;;  %5112 = vmatprep.subr.bf16.mxu1 %v4709_v35  ;;  %4980 = vmatpush1.bf16.msra.mxu0 %v4706_v10  ;;  %v4176_v48 = vpop.permute.xlu0 %4175  ;;  %9103 = vtanh.f32 %v4555_v7 }
 0x822   : > { %v9084_v43 = vpop.eup %9083  ;;  %5113 = vmatpush1.bf16.msra.mxu1 %v4708_v18  ;;  %v4427_v61 = vpop.f32.mrb[228].mxu0  ;;  %9105 = vtanh.f32 %v4424_v1 }
 0x823   : > { %v9086_v5 = vpop.eup %9085  ;;  %v4428_v37 = vadd.f32 %v4427_v61, %v4176_v48  ;;  %v4560_v44 = vpop.f32.mrb[228].mxu1  ;;  %9107 = vtanh.f32 %v4557_v25 }
 0x824   : > { %v4429_v46 = vpop.f32.mrb[229].mxu0  ;;  %v9088_v2 = vpop.eup %9087  ;;  %v4561_v27 = vadd.f32 %v4560_v44, %v4176_v48  ;;  %v4710_v20 = vpack.c.bf16 %v9086_v5, %v9078_v50 }
 0x825   : > { %v4430_v29 = vadd.f32 %v4429_v46, %v4176_v48  ;;  %v4562_v41 = vpop.f32.mrb[229].mxu1  ;;  %v4431_v39 = vpop.f32.mrb[230].mxu0  ;;  %9109 = vtanh.f32 %v4428_v37  ;;  %v4712_v59 = vpack.c.bf16 %v9088_v2, %v9080_v15 }
 0x826   : > { %v9090_v12 = vpop.eup %9089  ;;  %v4563_v8 = vadd.f32 %v4562_v41, %v4176_v48  ;;  %v4432_v16 = vadd.f32 %v4431_v39, %v4181_v30  ;;  %v4564_v62 = vpop.f32.mrb[230].mxu1  ;;  %9111 = vtanh.f32 %v4561_v27 }
 0x827   : > { %v4433_v9 = vpop.f32.mrb[231].mxu0  ;;  %v9092_v42 = vpop.eup %9091  ;;  %v4565_v13 = vadd.f32 %v4564_v62, %v4181_v30  ;;  %v4711_v49 = vpack.c.bf16 %v9090_v12, %v9082_v36  ;;  %9113 = vtanh.f32 %v4430_v29 }
 0x828   : > { %v4566_v63 = vpop.f32.mrb[231].mxu1  ;;  %v9094_v45 = vpop.eup %9093  ;;  %v4434_v11 = vadd.f32 %v4433_v9, %v4181_v30  ;;  %v4713_v26 = vpack.c.bf16 %v9092_v42, %v9084_v43  ;;  %9115 = vtanh.f32 %v4563_v8 }
 0x829   : > { %v9096_v55 = vpop.eup %9095  ;;  %v4567_v22 = vadd.f32 %v4566_v63, %v4181_v30  ;;  %4981 = vmatprep.subr.bf16.mxu0 %v4711_v49  ;;  %v4191_v40 = vpop.permute.xlu1 %4190  ;;  %9117 = vtanh.f32 %v4432_v16 }
 0x82a   : > { %v9098_v52 = vpop.eup %9097  ;;  %5114 = vmatprep.subr.bf16.mxu1 %v4713_v26  ;;  %4982 = vmatpush1.bf16.msra.mxu0 %v4710_v20  ;;  %v4186_v14 = vpop.permute.xlu0 %4185  ;;  %9119 = vtanh.f32 %v4565_v13 }
 0x82b   : > { %v9100_v60 = vpop.eup %9099  ;;  %5115 = vmatpush1.bf16.msra.mxu1 %v4712_v59  ;;  %v4437_v51 = vpop.f32.mrb[232].mxu0  ;;  %9121 = vtanh.f32 %v4434_v11 }
 0x82c   : > { %v9102_v57 = vpop.eup %9101  ;;  %v4438_v54 = vadd.f32 %v4437_v51, %v4186_v14  ;;  %v4570_v56 = vpop.f32.mrb[232].mxu1  ;;  %9123 = vtanh.f32 %v4567_v22 }
 0x82d   : > { %v4439_v28 = vpop.f32.mrb[233].mxu0  ;;  %v9104_v24 = vpop.eup %9103  ;;  %v4571_v23 = vadd.f32 %v4570_v56, %v4186_v14  ;;  %v4714_v3 = vpack.c.bf16 %v9102_v57, %v9094_v45 }
 0x82e   : > { %v4440_v17 = vadd.f32 %v4439_v28, %v4186_v14  ;;  %v4572_v19 = vpop.f32.mrb[233].mxu1  ;;  %v4441_v34 = vpop.f32.mrb[234].mxu0  ;;  %9125 = vtanh.f32 %v4438_v54  ;;  %v4716_v21 = vpack.c.bf16 %v9104_v24, %v9096_v55 }
 0x82f   : > { %v9106_v38 = vpop.eup %9105  ;;  %v4573_v33 = vadd.f32 %v4572_v19, %v4186_v14  ;;  %v4442_v0 = vadd.f32 %v4441_v34, %v4191_v40  ;;  %v4574_v10 = vpop.f32.mrb[234].mxu1  ;;  %9127 = vtanh.f32 %v4571_v23 }
 0x830   : > { %v4443_v58 = vpop.f32.mrb[235].mxu0  ;;  %v9108_v32 = vpop.eup %9107  ;;  %v4575_v47 = vadd.f32 %v4574_v10, %v4191_v40  ;;  %v4715_v18 = vpack.c.bf16 %v9106_v38, %v9098_v52  ;;  %9129 = vtanh.f32 %v4440_v17  ;;  %v7947_v10 = vld [vmem:[%s12200_s3 + $0x3c0] ss:$8 sps:$4 sm:$0xff]  }
 0x831   : > { %v4576_v6 = vpop.f32.mrb[235].mxu1  ;;  %v9110_v4 = vpop.eup %9109  ;;  %v4444_v7 = vadd.f32 %v4443_v58, %v4191_v40  ;;  %v4717_v53 = vpack.c.bf16 %v9108_v32, %v9100_v60  ;;  %9131 = vtanh.f32 %v4573_v33  ;;  %v7950_v58 = vld [vmem:[%s12200_s3 + $0x3d4] ss:$8 sps:$4 sm:$0xff]   ;;  %v7953_v32 = vld [vmem:[%s12200_s3 + $0x3e4] ss:$8 sps:$4 sm:$0xff]  }
 0x832   : > { %v9112_v31 = vpop.eup %9111  ;;  %v4577_v50 = vadd.f32 %v4576_v6, %v4191_v40  ;;  %4983 = vmatprep.subr.bf16.mxu0 %v4715_v18  ;;  %v4201_v35 = vpop.permute.xlu1 %4200  ;;  %9133 = vtanh.f32 %v4442_v0  ;;  %v7956_v6 = vld [vmem:[%s12200_s3 + $0x3f4] ss:$8 sps:$4 sm:$0xff]   ;;  %v7958_v18 = vld [vmem:[%s12200_s3 + $0x3f0] ss:$8 sps:$4 sm:$0xff]  }
 0x833   : > { %v9114_v1 = vpop.eup %9113  ;;  %5116 = vmatprep.subr.bf16.mxu1 %v4717_v53  ;;  %4984 = vmatpush1.bf16.msra.mxu0 %v4714_v3  ;;  %v4196_v25 = vpop.permute.xlu0 %4195  ;;  %9135 = vtanh.f32 %v4575_v47  ;;  %v7955_v47 = vld [vmem:[%s12200_s3 + $0x3e0] ss:$8 sps:$4 sm:$0xff]   ;;  %v7964_v53 = vld [vmem:[%s12200_s3 + $0x414] ss:$8 sps:$4 sm:$0xff]  }
 0x834   : > { %v9116_v15 = vpop.eup %9115  ;;  %5117 = vmatpush1.bf16.msra.mxu1 %v4716_v21  ;;  %v4447_v36 = vpop.f32.mrb[236].mxu0  ;;  %9137 = vtanh.f32 %v4444_v7  ;;  %v7952_v21 = vld [vmem:[%s12200_s3 + $0x3d0] ss:$8 sps:$4 sm:$0xff]   ;;  %v7959_v7 = vld [vmem:[%s12200_s3 + $0x400] ss:$8 sps:$4 sm:$0xff]  }
 0x835   : > { %v9118_v30 = vpop.eup %9117  ;;  %v4448_v43 = vadd.f32 %v4447_v36, %v4196_v25  ;;  %v4580_v48 = vpop.f32.mrb[236].mxu1  ;;  %9139 = vtanh.f32 %v4577_v50  ;;  %v7967_v50 = vld [vmem:[%s12200_s3 + $0x424] ss:$8 sps:$4 sm:$0xff]   ;;  %v7971_v36 = vld [vmem:[%s12200_s3 + $0x440] ss:$8 sps:$4 sm:$0xff]  }
 0x836   : > { %v4449_v61 = vpop.f32.mrb[237].mxu0  ;;  %v9120_v5 = vpop.eup %9119  ;;  %v4581_v37 = vadd.f32 %v4580_v48, %v4196_v25  ;;  %v4718_v27 = vpack.c.bf16 %v9118_v30, %v9110_v4  ;;  %v7961_v4 = vld [vmem:[%s12200_s3 + $0x404] ss:$8 sps:$4 sm:$0xff]   ;;  %v7976_v30 = vld [vmem:[%s12200_s3 + $0x454] ss:$8 sps:$4 sm:$0xff]  }
 0x837   : > { %v4450_v44 = vadd.f32 %v4449_v61, %v4196_v25  ;;  %v4582_v46 = vpop.f32.mrb[237].mxu1  ;;  %v4451_v2 = vpop.f32.mrb[238].mxu0  ;;  %9141 = vtanh.f32 %v4448_v43  ;;  %v4720_v8 = vpack.c.bf16 %v9120_v5, %v9112_v31  ;;  %v7962_v31 = vld [vmem:[%s12200_s3 + $0x410] ss:$8 sps:$4 sm:$0xff]   ;;  %v7979_v48 = vld [vmem:[%s12200_s3 + $0x464] ss:$8 sps:$4 sm:$0xff]  }
 0x838   : > { %v9122_v29 = vpop.eup %9121  ;;  %v4583_v41 = vadd.f32 %v4582_v46, %v4196_v25  ;;  %v4452_v39 = vadd.f32 %v4451_v2, %v4201_v35  ;;  %v4584_v20 = vpop.f32.mrb[238].mxu1  ;;  %9143 = vtanh.f32 %v4581_v37  ;;  %v7973_v25 = vld [vmem:[%s12200_s3 + $0x444] ss:$8 sps:$4 sm:$0xff]   ;;  %v7974_v43 = vld [vmem:[%s12200_s3 + $0x450] ss:$8 sps:$4 sm:$0xff]  }
 0x839   : > { %v4453_v12 = vpop.f32.mrb[239].mxu0  ;;  %v9124_v16 = vpop.eup %9123  ;;  %v4585_v62 = vadd.f32 %v4584_v20, %v4201_v35  ;;  %v4719_v59 = vpack.c.bf16 %v9122_v29, %v9114_v1  ;;  %9145 = vtanh.f32 %v4450_v44  ;;  %v7965_v1 = vld [vmem:[%s12200_s3 + $0x420] ss:$8 sps:$4 sm:$0xff]  }
 0x83a   : > { %v4586_v9 = vpop.f32.mrb[239].mxu1  ;;  %v9126_v42 = vpop.eup %9125  ;;  %v4454_v13 = vadd.f32 %v4453_v12, %v4201_v35  ;;  %v4721_v63 = vpack.c.bf16 %v9124_v16, %v9116_v15  ;;  %9147 = vtanh.f32 %v4583_v41  ;;  %v7968_v15 = vld [vmem:[%s12200_s3 + $0x430] ss:$8 sps:$4 sm:$0xff]  }
 0x83b   : > { %v9128_v49 = vpop.eup %9127  ;;  %v4587_v45 = vadd.f32 %v4586_v9, %v4201_v35  ;;  %4985 = vmatprep.subr.bf16.mxu0 %v4719_v59  ;;  %9149 = vtanh.f32 %v4452_v39  ;;  %v7970_v35 = vld [vmem:[%s12200_s3 + $0x434] ss:$8 sps:$4 sm:$0xff]   ;;  %v4759_v61 = vpop.permute.xlu1 %4758 }
 0x83c   : > { %v9130_v11 = vpop.eup %9129  ;;  %5118 = vmatprep.subr.bf16.mxu1 %v4721_v63  ;;  %4986 = vmatpush1.bf16.msra.mxu0 %v4718_v27  ;;  %9151 = vtanh.f32 %v4585_v62  ;;  %v4754_v5 = vpop.permute.xlu0 %4753 }
 0x83d   : > { %v9132_v26 = vpop.eup %9131  ;;  %5119 = vmatpush1.bf16.msra.mxu1 %v4720_v8  ;;  %9153 = vtanh.f32 %v4454_v13 }
 0x83e   : > { %v9134_v55 = vpop.eup %9133  ;;  %9155 = vtanh.f32 %v4587_v45 }
 0x83f   : > { %v9136_v22 = vpop.eup %9135  ;;  %v4722_v52 = vpack.c.bf16 %v9134_v55, %v9126_v42  ;;  %v4769_v13 = vpop.permute.xlu1 %4768 }
 0x840   : > { %v9138_v40 = vpop.eup %9137  ;;  %v4724_v60 = vpack.c.bf16 %v9136_v22, %v9128_v49  ;;  %v4764_v63 = vpop.permute.xlu0 %4763 }
 0x841   : > { %v9140_v14 = vpop.eup %9139  ;;  %v4723_v51 = vpack.c.bf16 %v9138_v40, %v9130_v11 }
 0x842   : > { %v9142_v57 = vpop.eup %9141  ;;  %v4725_v54 = vpack.c.bf16 %v9140_v14, %v9132_v26 }
 0x843   : > { %v9144_v56 = vpop.eup %9143  ;;  %4987 = vmatprep.subr.bf16.mxu0 %v4723_v51 }
 0x844   : > { %v9146_v28 = vpop.eup %9145  ;;  %5120 = vmatprep.subr.bf16.mxu1 %v4725_v54  ;;  %4988 = vmatpush1.bf16.msra.mxu0 %v4722_v52 }
 0x845   : > { %v9148_v24 = vpop.eup %9147  ;;  %5121 = vmatpush1.bf16.msra.mxu1 %v4724_v60 }
 0x846   : > { %v9150_v23 = vpop.eup %9149 }
 0x847   : > { %v9152_v17 = vpop.eup %9151  ;;  %v4726_v19 = vpack.c.bf16 %v9150_v23, %v9142_v57 }
 0x848   : > { %v9154_v34 = vpop.eup %9153  ;;  %v4728_v3 = vpack.c.bf16 %v9152_v17, %v9144_v56 }
 0x849   : > { %v9156_v38 = vpop.eup %9155  ;;  %v4727_v33 = vpack.c.bf16 %v9154_v34, %v9146_v28  ;;  %v4779_v34 = vpop.permute.xlu1 %4778 }
 0x84a   : > { %v4729_v0 = vpack.c.bf16 %v9156_v38, %v9148_v24  ;;  %v4774_v38 = vpop.permute.xlu0 %4773 }
 0x84b   : > { %4989 = vmatprep.subr.bf16.mxu0 %v4727_v33 }
 0x84c   : > { %5122 = vmatprep.subr.bf16.mxu1 %v4729_v0  ;;  %4990 = vmatpush1.bf16.msra.mxu0 %v4726_v19 }
 0x84d   : > { %5123 = vmatpush1.bf16.msra.mxu1 %v4728_v3 }
 0x84f   : > { %5004 = vmatmul.mubr.bf16.vlgmr.msra.gmra.mrb[240].mxu0 %v7947_v10 }
 0x850   : > { %5137 = vmatmul.mubr.bf16.vlgmr.msra.gmra.mrb[240].mxu1 %v7947_v10  ;;  %7539 = vmatprep.mubr.msk.bf16.mxu0 %vm1052_vm0, %v7950_v58 }
 0x851   : > { %7549 = vmatprep.mubr.msk.bf16.mxu1 %vm1052_vm0, %v7950_v58 }
 0x857   : > { %5014 = vmatmul.mubr.bf16.gmra.mrb[244].mxu0 %v7952_v21 }
 0x858   : > { %5147 = vmatmul.mubr.bf16.gmra.mrb[244].mxu1 %v7952_v21  ;;  %7540 = vmatprep.mubr.msk.bf16.mxu0 %vm1052_vm0, %v7953_v32 }
 0x859   : > { %7550 = vmatprep.mubr.msk.bf16.mxu1 %vm1052_vm0, %v7953_v32 }
 0x85f   : > { %5024 = vmatmul.mubr.bf16.gmra.mrb[248].mxu0 %v7955_v47 }
 0x860   : > { %5157 = vmatmul.mubr.bf16.gmra.mrb[248].mxu1 %v7955_v47  ;;  %7541 = vmatprep.mubr.msk.bf16.mxu0 %vm1052_vm0, %v7956_v6 }
 0x861   : > { %7551 = vmatprep.mubr.msk.bf16.mxu1 %vm1052_vm0, %v7956_v6 }
 0x867   : > { %5034 = vmatmul.mubr.bf16.gmra.mrb[252].mxu0 %v7958_v18 }
 0x868   : > { %5167 = vmatmul.mubr.bf16.gmra.mrb[252].mxu1 %v7958_v18  ;;  %7542 = vmatprep.mubr.msk.bf16.mxu0 %vm1052_vm0, %v7961_v4 }
 0x869   : > { %7552 = vmatprep.mubr.msk.bf16.mxu1 %vm1052_vm0, %v7961_v4 }
 0x86f   : > { %5044 = vmatmul.mubr.bf16.gmra.mrb[0].mxu0 %v7959_v7 }
 0x870   : > { %5177 = vmatmul.mubr.bf16.gmra.mrb[0].mxu1 %v7959_v7  ;;  %7543 = vmatprep.mubr.msk.bf16.mxu0 %vm1052_vm0, %v7964_v53 }
 0x871   : > { %7553 = vmatprep.mubr.msk.bf16.mxu1 %vm1052_vm0, %v7964_v53 }
 0x877   : > { %5054 = vmatmul.mubr.bf16.gmra.mrb[4].mxu0 %v7962_v31 }
 0x878   : > { %5187 = vmatmul.mubr.bf16.gmra.mrb[4].mxu1 %v7962_v31  ;;  %7544 = vmatprep.mubr.msk.bf16.mxu0 %vm1052_vm0, %v7967_v50 }
 0x879   : > { %7554 = vmatprep.mubr.msk.bf16.mxu1 %vm1052_vm0, %v7967_v50 }
 0x87f   : > { %5064 = vmatmul.mubr.bf16.gmra.mrb[8].mxu0 %v7965_v1 }
 0x880   : > { %5197 = vmatmul.mubr.bf16.gmra.mrb[8].mxu1 %v7965_v1  ;;  %7545 = vmatprep.mubr.msk.bf16.mxu0 %vm1052_vm0, %v7970_v35 }
 0x881   : > { %7555 = vmatprep.mubr.msk.bf16.mxu1 %vm1052_vm0, %v7970_v35 }
 0x887   : > { %5074 = vmatmul.mubr.bf16.gmra.mrb[12].mxu0 %v7968_v15 }
 0x888   : > { %5207 = vmatmul.mubr.bf16.gmra.mrb[12].mxu1 %v7968_v15  ;;  %7546 = vmatprep.mubr.msk.bf16.mxu0 %vm1052_vm0, %v7973_v25 }
 0x889   : > { %7556 = vmatprep.mubr.msk.bf16.mxu1 %vm1052_vm0, %v7973_v25 }
 0x88f   : > { %5084 = vmatmul.mubr.bf16.gmra.mrb[16].mxu0 %v7971_v36 }
 0x890   : > { %5217 = vmatmul.mubr.bf16.gmra.mrb[16].mxu1 %v7971_v36  ;;  %7547 = vmatprep.mubr.msk.bf16.mxu0 %vm1052_vm0, %v7976_v30 }
 0x891   : > { %7557 = vmatprep.mubr.msk.bf16.mxu1 %vm1052_vm0, %v7976_v30 }
 0x897   : > { %5094 = vmatmul.mubr.bf16.gmra.mrb[20].mxu0 %v7974_v43 }
 0x898   : > { %5227 = vmatmul.mubr.bf16.gmra.mrb[20].mxu1 %v7974_v43  ;;  %7618 = vmatprep.mubr.msk.bf16.mxu0 %vm1052_vm0, %v7979_v48 }
 0x899   : > { %7628 = vmatprep.mubr.msk.bf16.mxu1 %vm1052_vm0, %v7979_v48 }
 0x922   : > { %v5005_v37 = vpop.f32.mrb[240].mxu0 }
 0x923   : > { %v5006_v44 = vadd.f32 %v5005_v37, %v4754_v5  ;;  %v5138_v46 = vpop.f32.mrb[240].mxu1  ;;  %v5007_v2 = vpop.f32.mrb[241].mxu0 }
 0x924   : > { %v5139_v27 = vadd.f32 %v5138_v46, %v4754_v5  ;;  %v5008_v29 = vadd.f32 %v5007_v2, %v4754_v5  ;;  %v5140_v41 = vpop.f32.mrb[241].mxu1  ;;  %v5009_v39 = vpop.f32.mrb[242].mxu0 }
 0x925   : > { %9157 = vtanh.f32 %v5006_v44  ;;  %v5141_v20 = vadd.f32 %v5140_v41, %v4754_v5  ;;  %v5010_v12 = vadd.f32 %v5009_v39, %v4759_v61  ;;  %v5142_v8 = vpop.f32.mrb[242].mxu1  ;;  %v5011_v16 = vpop.f32.mrb[243].mxu0 }
 0x926   : > { %9159 = vtanh.f32 %v5139_v27  ;;  %v5143_v62 = vadd.f32 %v5142_v8, %v4759_v61  ;;  %v5144_v9 = vpop.f32.mrb[243].mxu1  ;;  %v5012_v59 = vadd.f32 %v5011_v16, %v4759_v61  ;;  %v4789_v2 = vpop.permute.xlu1 %4788 }
 0x927   : > { %9161 = vtanh.f32 %v5008_v29  ;;  %v5145_v42 = vadd.f32 %v5144_v9, %v4759_v61  ;;  %v4784_v29 = vpop.permute.xlu0 %4783 }
 0x928   : > { %9163 = vtanh.f32 %v5141_v20 }
 0x929   : > { %9165 = vtanh.f32 %v5010_v12 }
 0x92a   : > { %9167 = vtanh.f32 %v5143_v62  ;;  %v5015_v49 = vpop.f32.mrb[244].mxu0 }
 0x92b   : > { %9169 = vtanh.f32 %v5012_v59  ;;  %v5016_v45 = vadd.f32 %v5015_v49, %v4764_v63  ;;  %v5148_v11 = vpop.f32.mrb[244].mxu1  ;;  %v5017_v26 = vpop.f32.mrb[245].mxu0 }
 0x92c   : > { %9171 = vtanh.f32 %v5145_v42  ;;  %v5149_v55 = vadd.f32 %v5148_v11, %v4764_v63  ;;  %v5018_v22 = vadd.f32 %v5017_v26, %v4764_v63  ;;  %v5150_v52 = vpop.f32.mrb[245].mxu1  ;;  %v5019_v40 = vpop.f32.mrb[246].mxu0 }
 0x92d   : > { %9173 = vtanh.f32 %v5016_v45  ;;  %v5151_v60 = vadd.f32 %v5150_v52, %v4764_v63  ;;  %v5020_v14 = vadd.f32 %v5019_v40, %v4769_v13  ;;  %v5152_v51 = vpop.f32.mrb[246].mxu1  ;;  %v5021_v57 = vpop.f32.mrb[247].mxu0 }
 0x92e   : > { %9175 = vtanh.f32 %v5149_v55  ;;  %v5153_v54 = vadd.f32 %v5152_v51, %v4769_v13  ;;  %v5154_v56 = vpop.f32.mrb[247].mxu1  ;;  %v5022_v24 = vadd.f32 %v5021_v57, %v4769_v13 }
 0x92f   : > { %v9158_v28 = vpop.eup %9157  ;;  %9177 = vtanh.f32 %v5018_v22  ;;  %v5155_v17 = vadd.f32 %v5154_v56, %v4769_v13 }
 0x930   : > { %v9160_v23 = vpop.eup %9159  ;;  %9179 = vtanh.f32 %v5151_v60 }
 0x931   : > { %v9162_v19 = vpop.eup %9161  ;;  %9181 = vtanh.f32 %v5020_v14 }
 0x932   : > { %v9164_v3 = vpop.eup %9163  ;;  %9183 = vtanh.f32 %v5153_v54  ;;  %v5025_v33 = vpop.f32.mrb[248].mxu0 }
 0x933   : > { %v9166_v0 = vpop.eup %9165  ;;  %9185 = vtanh.f32 %v5022_v24  ;;  %v5026_v10 = vadd.f32 %v5025_v33, %v4774_v38  ;;  %v5158_v58 = vpop.f32.mrb[248].mxu1 }
 0x934   : > { %v5027_v21 = vpop.f32.mrb[249].mxu0  ;;  %v9168_v32 = vpop.eup %9167  ;;  %9187 = vtanh.f32 %v5155_v17  ;;  %v5159_v47 = vadd.f32 %v5158_v58, %v4774_v38  ;;  %v5338_v7 = vpack.c.bf16 %v9166_v0, %v9158_v28 }
 0x935   : > { %v5028_v6 = vadd.f32 %v5027_v21, %v4774_v38  ;;  %v5160_v18 = vpop.f32.mrb[249].mxu1  ;;  %v5029_v4 = vpop.f32.mrb[250].mxu0  ;;  %9189 = vtanh.f32 %v5026_v10  ;;  %v5340_v15 = vpack.c.bf16 %v9168_v32, %v9160_v23 }
 0x936   : > { %v9170_v53 = vpop.eup %9169  ;;  %v5161_v31 = vadd.f32 %v5160_v18, %v4774_v38  ;;  %v5030_v50 = vadd.f32 %v5029_v4, %v4779_v34  ;;  %v5162_v1 = vpop.f32.mrb[250].mxu1  ;;  %9191 = vtanh.f32 %v5159_v47 }
 0x937   : > { %v5031_v35 = vpop.f32.mrb[251].mxu0  ;;  %v9172_v25 = vpop.eup %9171  ;;  %v5163_v36 = vadd.f32 %v5162_v1, %v4779_v34  ;;  %v5339_v43 = vpack.c.bf16 %v9170_v53, %v9162_v19  ;;  %9193 = vtanh.f32 %v5028_v6 }
 0x938   : > { %v5164_v30 = vpop.f32.mrb[251].mxu1  ;;  %v9174_v48 = vpop.eup %9173  ;;  %v5032_v61 = vadd.f32 %v5031_v35, %v4779_v34  ;;  %v5341_v5 = vpack.c.bf16 %v9172_v25, %v9164_v3  ;;  %9195 = vtanh.f32 %v5161_v31 }
 0x939   : > { %v9176_v37 = vpop.eup %9175  ;;  %v5165_v44 = vadd.f32 %v5164_v30, %v4779_v34  ;;  %5619 = vmatprep.subr.bf16.mxu0 %v5339_v43  ;;  %9197 = vtanh.f32 %v5030_v50  ;;  %v4799_v24 = vpop.permute.xlu1 %4798 }
 0x93a   : > { %v9178_v46 = vpop.eup %9177  ;;  %5752 = vmatprep.subr.bf16.mxu1 %v5341_v5  ;;  %5620 = vmatpush1.bf16.msra.mxu0 %v5338_v7  ;;  %9199 = vtanh.f32 %v5163_v36  ;;  %v5035_v41 = vpop.f32.mrb[252].mxu0 }
 0x93b   : > { %v9180_v27 = vpop.eup %9179  ;;  %5753 = vmatpush1.bf16.msra.mxu1 %v5340_v15  ;;  %9201 = vtanh.f32 %v5032_v61  ;;  %v5036_v20 = vadd.f32 %v5035_v41, %v4784_v29  ;;  %v5168_v12 = vpop.f32.mrb[252].mxu1 }
 0x93c   : > { %v9182_v39 = vpop.eup %9181  ;;  %v5037_v8 = vpop.f32.mrb[253].mxu0  ;;  %9203 = vtanh.f32 %v5165_v44  ;;  %v5169_v62 = vadd.f32 %v5168_v12, %v4784_v29 }
 0x93d   : > { %v9184_v16 = vpop.eup %9183  ;;  %v5038_v9 = vadd.f32 %v5037_v8, %v4784_v29  ;;  %v5170_v59 = vpop.f32.mrb[253].mxu1  ;;  %v5342_v13 = vpack.c.bf16 %v9182_v39, %v9174_v48  ;;  %9205 = vtanh.f32 %v5036_v20 }
 0x93e   : > { %v5039_v42 = vpop.f32.mrb[254].mxu0  ;;  %v9186_v63 = vpop.eup %9185  ;;  %v5171_v49 = vadd.f32 %v5170_v59, %v4784_v29  ;;  %v5344_v55 = vpack.c.bf16 %v9184_v16, %v9176_v37  ;;  %9207 = vtanh.f32 %v5169_v62 }
 0x93f   : > { %v5040_v45 = vadd.f32 %v5039_v42, %v4789_v2  ;;  %v5172_v11 = vpop.f32.mrb[254].mxu1  ;;  %v5041_v26 = vpop.f32.mrb[255].mxu0  ;;  %v5343_v60 = vpack.c.bf16 %v9186_v63, %v9178_v46  ;;  %9209 = vtanh.f32 %v5038_v9 }
 0x940   : > { %v9188_v22 = vpop.eup %9187  ;;  %v5173_v52 = vadd.f32 %v5172_v11, %v4789_v2  ;;  %v5174_v40 = vpop.f32.mrb[255].mxu1  ;;  %v5042_v51 = vadd.f32 %v5041_v26, %v4789_v2  ;;  %9211 = vtanh.f32 %v5171_v49 }
 0x941   : > { %v9190_v14 = vpop.eup %9189  ;;  %v5345_v57 = vpack.c.bf16 %v9188_v22, %v9180_v27  ;;  %v5175_v56 = vadd.f32 %v5174_v40, %v4789_v2  ;;  %5621 = vmatprep.subr.bf16.mxu0 %v5343_v60  ;;  %9213 = vtanh.f32 %v5040_v45  ;;  %v4794_v17 = vpop.permute.xlu0 %4793 }
 0x942   : > { %v9192_v54 = vpop.eup %9191  ;;  %5622 = vmatpush1.bf16.msra.mxu0 %v5342_v13  ;;  %9215 = vtanh.f32 %v5173_v52  ;;  %v5045_v19 = vpop.f32.mrb[0].mxu0 }
 0x943   : > { %v9194_v28 = vpop.eup %9193  ;;  %5754 = vmatprep.subr.bf16.mxu1 %v5345_v57  ;;  %9217 = vtanh.f32 %v5042_v51  ;;  %v5046_v3 = vadd.f32 %v5045_v19, %v4794_v17  ;;  %v5178_v38 = vpop.f32.mrb[0].mxu1 }
 0x944   : > { %v9196_v23 = vpop.eup %9195  ;;  %5755 = vmatpush1.bf16.msra.mxu1 %v5344_v55  ;;  %v5047_v33 = vpop.f32.mrb[1].mxu0  ;;  %9219 = vtanh.f32 %v5175_v56  ;;  %v5179_v10 = vadd.f32 %v5178_v38, %v4794_v17 }
 0x945   : > { %v9198_v34 = vpop.eup %9197  ;;  %v5048_v58 = vadd.f32 %v5047_v33, %v4794_v17  ;;  %v5180_v21 = vpop.f32.mrb[1].mxu1  ;;  %9221 = vtanh.f32 %v5046_v3 }
 0x946   : > { %v9200_v0 = vpop.eup %9199  ;;  %v5049_v32 = vpop.f32.mrb[2].mxu0  ;;  %v5346_v47 = vpack.c.bf16 %v9198_v34, %v9190_v14  ;;  %v5181_v18 = vadd.f32 %v5180_v21, %v4794_v17  ;;  %9223 = vtanh.f32 %v5179_v10 }
 0x947   : > { %v9202_v6 = vpop.eup %9201  ;;  %v5050_v4 = vadd.f32 %v5049_v32, %v4799_v24  ;;  %v5182_v7 = vpop.f32.mrb[2].mxu1  ;;  %v5348_v31 = vpack.c.bf16 %v9200_v0, %v9192_v54  ;;  %9225 = vtanh.f32 %v5048_v58 }
 0x948   : > { %v5051_v53 = vpop.f32.mrb[3].mxu0  ;;  %v9204_v50 = vpop.eup %9203  ;;  %v5183_v1 = vadd.f32 %v5182_v7, %v4799_v24  ;;  %v5347_v15 = vpack.c.bf16 %v9202_v6, %v9194_v28  ;;  %9227 = vtanh.f32 %v5181_v18 }
 0x949   : > { %v5184_v35 = vpop.f32.mrb[3].mxu1  ;;  %v9206_v25 = vpop.eup %9205  ;;  %v5052_v36 = vadd.f32 %v5051_v53, %v4799_v24  ;;  %v5349_v30 = vpack.c.bf16 %v9204_v50, %v9196_v23  ;;  %9229 = vtanh.f32 %v5050_v4 }
 0x94a   : > { %v9208_v43 = vpop.eup %9207  ;;  %v5185_v48 = vadd.f32 %v5184_v35, %v4799_v24  ;;  %5623 = vmatprep.subr.bf16.mxu0 %v5347_v15  ;;  %v4809_v5 = vpop.permute.xlu1 %4808  ;;  %9231 = vtanh.f32 %v5183_v1 }
 0x94b   : > { %v9210_v61 = vpop.eup %9209  ;;  %5756 = vmatprep.subr.bf16.mxu1 %v5349_v30  ;;  %5624 = vmatpush1.bf16.msra.mxu0 %v5346_v47  ;;  %v4804_v44 = vpop.permute.xlu0 %4803  ;;  %9233 = vtanh.f32 %v5052_v36 }
 0x94c   : > { %v9212_v37 = vpop.eup %9211  ;;  %5757 = vmatpush1.bf16.msra.mxu1 %v5348_v31  ;;  %v5055_v46 = vpop.f32.mrb[4].mxu0  ;;  %9235 = vtanh.f32 %v5185_v48 }
 0x94d   : > { %v9214_v2 = vpop.eup %9213  ;;  %v5056_v27 = vadd.f32 %v5055_v46, %v4804_v44  ;;  %v5188_v29 = vpop.f32.mrb[4].mxu1 }
 0x94e   : > { %v5057_v41 = vpop.f32.mrb[5].mxu0  ;;  %v9216_v39 = vpop.eup %9215  ;;  %v5189_v20 = vadd.f32 %v5188_v29, %v4804_v44  ;;  %v5350_v62 = vpack.c.bf16 %v9214_v2, %v9206_v25 }
 0x94f   : > { %v5058_v12 = vadd.f32 %v5057_v41, %v4804_v44  ;;  %v5190_v8 = vpop.f32.mrb[5].mxu1  ;;  %v5059_v16 = vpop.f32.mrb[6].mxu0  ;;  %9237 = vtanh.f32 %v5056_v27  ;;  %v5352_v49 = vpack.c.bf16 %v9216_v39, %v9208_v43 }
 0x950   : > { %v9218_v9 = vpop.eup %9217  ;;  %v5191_v59 = vadd.f32 %v5190_v8, %v4804_v44  ;;  %v5060_v42 = vadd.f32 %v5059_v16, %v4809_v5  ;;  %v5192_v13 = vpop.f32.mrb[6].mxu1  ;;  %9239 = vtanh.f32 %v5189_v20 }
 0x951   : > { %v5061_v63 = vpop.f32.mrb[7].mxu0  ;;  %v9220_v45 = vpop.eup %9219  ;;  %v5193_v11 = vadd.f32 %v5192_v13, %v4809_v5  ;;  %v5351_v55 = vpack.c.bf16 %v9218_v9, %v9210_v61  ;;  %9241 = vtanh.f32 %v5058_v12 }
 0x952   : > { %v5194_v26 = vpop.f32.mrb[7].mxu1  ;;  %v9222_v22 = vpop.eup %9221  ;;  %v5062_v52 = vadd.f32 %v5061_v63, %v4809_v5  ;;  %v5353_v40 = vpack.c.bf16 %v9220_v45, %v9212_v37  ;;  %9243 = vtanh.f32 %v5191_v59 }
 0x953   : > { %v9224_v60 = vpop.eup %9223  ;;  %v5195_v14 = vadd.f32 %v5194_v26, %v4809_v5  ;;  %5625 = vmatprep.subr.bf16.mxu0 %v5351_v55  ;;  %v4819_v57 = vpop.permute.xlu1 %4818  ;;  %9245 = vtanh.f32 %v5060_v42 }
 0x954   : > { %v9226_v51 = vpop.eup %9225  ;;  %5758 = vmatprep.subr.bf16.mxu1 %v5353_v40  ;;  %5626 = vmatpush1.bf16.msra.mxu0 %v5350_v62  ;;  %v4814_v56 = vpop.permute.xlu0 %4813  ;;  %9247 = vtanh.f32 %v5193_v11 }
 0x955   : > { %v9228_v54 = vpop.eup %9227  ;;  %5759 = vmatpush1.bf16.msra.mxu1 %v5352_v49  ;;  %v5065_v28 = vpop.f32.mrb[8].mxu0  ;;  %9249 = vtanh.f32 %v5062_v52 }
 0x956   : > { %v9230_v24 = vpop.eup %9229  ;;  %v5066_v23 = vadd.f32 %v5065_v28, %v4814_v56  ;;  %v5198_v17 = vpop.f32.mrb[8].mxu1  ;;  %9251 = vtanh.f32 %v5195_v14 }
 0x957   : > { %v5067_v19 = vpop.f32.mrb[9].mxu0  ;;  %v9232_v34 = vpop.eup %9231  ;;  %v5199_v3 = vadd.f32 %v5198_v17, %v4814_v56  ;;  %v5354_v10 = vpack.c.bf16 %v9230_v24, %v9222_v22 }
 0x958   : > { %v5068_v38 = vadd.f32 %v5067_v19, %v4814_v56  ;;  %v5200_v33 = vpop.f32.mrb[9].mxu1  ;;  %v5069_v0 = vpop.f32.mrb[10].mxu0  ;;  %9253 = vtanh.f32 %v5066_v23  ;;  %v5356_v18 = vpack.c.bf16 %v9232_v34, %v9224_v60 }
 0x959   : > { %v9234_v58 = vpop.eup %9233  ;;  %v5201_v21 = vadd.f32 %v5200_v33, %v4814_v56  ;;  %v5070_v32 = vadd.f32 %v5069_v0, %v4819_v57  ;;  %v5202_v47 = vpop.f32.mrb[10].mxu1  ;;  %9255 = vtanh.f32 %v5199_v3 }
 0x95a   : > { %v5071_v6 = vpop.f32.mrb[11].mxu0  ;;  %v9236_v4 = vpop.eup %9235  ;;  %v5203_v7 = vadd.f32 %v5202_v47, %v4819_v57  ;;  %v5355_v31 = vpack.c.bf16 %v9234_v58, %v9226_v51  ;;  %9257 = vtanh.f32 %v5068_v38 }
 0x95b   : > { %v5204_v53 = vpop.f32.mrb[11].mxu1  ;;  %v9238_v50 = vpop.eup %9237  ;;  %v5072_v1 = vadd.f32 %v5071_v6, %v4819_v57  ;;  %v5357_v35 = vpack.c.bf16 %v9236_v4, %v9228_v54  ;;  %9259 = vtanh.f32 %v5201_v21 }
 0x95c   : > { %v9240_v15 = vpop.eup %9239  ;;  %v5205_v25 = vadd.f32 %v5204_v53, %v4819_v57  ;;  %5627 = vmatprep.subr.bf16.mxu0 %v5355_v31  ;;  %v4829_v30 = vpop.permute.xlu1 %4828  ;;  %9261 = vtanh.f32 %v5070_v32 }
 0x95d   : > { %v9242_v36 = vpop.eup %9241  ;;  %5760 = vmatprep.subr.bf16.mxu1 %v5357_v35  ;;  %5628 = vmatpush1.bf16.msra.mxu0 %v5354_v10  ;;  %v4824_v48 = vpop.permute.xlu0 %4823  ;;  %9263 = vtanh.f32 %v5203_v7 }
 0x95e   : > { %v9244_v43 = vpop.eup %9243  ;;  %5761 = vmatpush1.bf16.msra.mxu1 %v5356_v18  ;;  %v5075_v61 = vpop.f32.mrb[12].mxu0  ;;  %9265 = vtanh.f32 %v5072_v1 }
 0x95f   : > { %v9246_v5 = vpop.eup %9245  ;;  %v5076_v37 = vadd.f32 %v5075_v61, %v4824_v48  ;;  %v5208_v44 = vpop.f32.mrb[12].mxu1  ;;  %9267 = vtanh.f32 %v5205_v25 }
 0x960   : > { %v5077_v46 = vpop.f32.mrb[13].mxu0  ;;  %v9248_v2 = vpop.eup %9247  ;;  %v5209_v27 = vadd.f32 %v5208_v44, %v4824_v48  ;;  %v5358_v20 = vpack.c.bf16 %v9246_v5, %v9238_v50 }
 0x961   : > { %v5078_v29 = vadd.f32 %v5077_v46, %v4824_v48  ;;  %v5210_v41 = vpop.f32.mrb[13].mxu1  ;;  %v5079_v39 = vpop.f32.mrb[14].mxu0  ;;  %9269 = vtanh.f32 %v5076_v37  ;;  %v5360_v59 = vpack.c.bf16 %v9248_v2, %v9240_v15 }
 0x962   : > { %v9250_v12 = vpop.eup %9249  ;;  %v5211_v8 = vadd.f32 %v5210_v41, %v4824_v48  ;;  %v5080_v16 = vadd.f32 %v5079_v39, %v4829_v30  ;;  %v5212_v62 = vpop.f32.mrb[14].mxu1  ;;  %9271 = vtanh.f32 %v5209_v27 }
 0x963   : > { %v5081_v9 = vpop.f32.mrb[15].mxu0  ;;  %v9252_v42 = vpop.eup %9251  ;;  %v5213_v13 = vadd.f32 %v5212_v62, %v4829_v30  ;;  %v5359_v49 = vpack.c.bf16 %v9250_v12, %v9242_v36  ;;  %9273 = vtanh.f32 %v5078_v29 }
 0x964   : > { %v5214_v63 = vpop.f32.mrb[15].mxu1  ;;  %v9254_v45 = vpop.eup %9253  ;;  %v5082_v11 = vadd.f32 %v5081_v9, %v4829_v30  ;;  %v5361_v26 = vpack.c.bf16 %v9252_v42, %v9244_v43  ;;  %9275 = vtanh.f32 %v5211_v8 }
 0x965   : > { %v9256_v55 = vpop.eup %9255  ;;  %v5215_v22 = vadd.f32 %v5214_v63, %v4829_v30  ;;  %5629 = vmatprep.subr.bf16.mxu0 %v5359_v49  ;;  %v4839_v40 = vpop.permute.xlu1 %4838  ;;  %9277 = vtanh.f32 %v5080_v16 }
 0x966   : > { %v9258_v52 = vpop.eup %9257  ;;  %5762 = vmatprep.subr.bf16.mxu1 %v5361_v26  ;;  %5630 = vmatpush1.bf16.msra.mxu0 %v5358_v20  ;;  %v4834_v14 = vpop.permute.xlu0 %4833  ;;  %9279 = vtanh.f32 %v5213_v13 }
 0x967   : > { %v9260_v60 = vpop.eup %9259  ;;  %5763 = vmatpush1.bf16.msra.mxu1 %v5360_v59  ;;  %v5085_v51 = vpop.f32.mrb[16].mxu0  ;;  %9281 = vtanh.f32 %v5082_v11 }
 0x968   : > { %v9262_v57 = vpop.eup %9261  ;;  %v5086_v54 = vadd.f32 %v5085_v51, %v4834_v14  ;;  %v5218_v56 = vpop.f32.mrb[16].mxu1  ;;  %9283 = vtanh.f32 %v5215_v22 }
 0x969   : > { %v5087_v28 = vpop.f32.mrb[17].mxu0  ;;  %v9264_v24 = vpop.eup %9263  ;;  %v5219_v23 = vadd.f32 %v5218_v56, %v4834_v14  ;;  %v5362_v3 = vpack.c.bf16 %v9262_v57, %v9254_v45 }
 0x96a   : > { %v5088_v17 = vadd.f32 %v5087_v28, %v4834_v14  ;;  %v5220_v19 = vpop.f32.mrb[17].mxu1  ;;  %v5089_v34 = vpop.f32.mrb[18].mxu0  ;;  %9285 = vtanh.f32 %v5086_v54  ;;  %v5364_v21 = vpack.c.bf16 %v9264_v24, %v9256_v55 }
 0x96b   : > { %v9266_v38 = vpop.eup %9265  ;;  %v5221_v33 = vadd.f32 %v5220_v19, %v4834_v14  ;;  %v5090_v0 = vadd.f32 %v5089_v34, %v4839_v40  ;;  %v5222_v10 = vpop.f32.mrb[18].mxu1  ;;  %9287 = vtanh.f32 %v5219_v23 }
 0x96c   : > { %v5091_v58 = vpop.f32.mrb[19].mxu0  ;;  %v9268_v32 = vpop.eup %9267  ;;  %v5223_v47 = vadd.f32 %v5222_v10, %v4839_v40  ;;  %v5363_v18 = vpack.c.bf16 %v9266_v38, %v9258_v52  ;;  %9289 = vtanh.f32 %v5088_v17  ;;  %v7977_v10 = vld [vmem:[%s12200_s3 + $0x460] ss:$8 sps:$4 sm:$0xff]  }
 0x96d   : > { %v5224_v6 = vpop.f32.mrb[19].mxu1  ;;  %v9270_v4 = vpop.eup %9269  ;;  %v5092_v7 = vadd.f32 %v5091_v58, %v4839_v40  ;;  %v5365_v53 = vpack.c.bf16 %v9268_v32, %v9260_v60  ;;  %9291 = vtanh.f32 %v5221_v33  ;;  %v7982_v58 = vld [vmem:[%s12200_s3 + $0x474] ss:$8 sps:$4 sm:$0xff]   ;;  %v7985_v32 = vld [vmem:[%s12200_s3 + $0x484] ss:$8 sps:$4 sm:$0xff]  }
 0x96e   : > { %v9272_v31 = vpop.eup %9271  ;;  %v5225_v50 = vadd.f32 %v5224_v6, %v4839_v40  ;;  %5631 = vmatprep.subr.bf16.mxu0 %v5363_v18  ;;  %v4849_v35 = vpop.permute.xlu1 %4848  ;;  %9293 = vtanh.f32 %v5090_v0  ;;  %v7988_v6 = vld [vmem:[%s12200_s3 + $0x494] ss:$8 sps:$4 sm:$0xff]   ;;  %v7986_v18 = vld [vmem:[%s12200_s3 + $0x490] ss:$8 sps:$4 sm:$0xff]  }
 0x96f   : > { %v9274_v1 = vpop.eup %9273  ;;  %5764 = vmatprep.subr.bf16.mxu1 %v5365_v53  ;;  %5632 = vmatpush1.bf16.msra.mxu0 %v5362_v3  ;;  %v4844_v25 = vpop.permute.xlu0 %4843  ;;  %9295 = vtanh.f32 %v5223_v47  ;;  %v7983_v47 = vld [vmem:[%s12200_s3 + $0x480] ss:$8 sps:$4 sm:$0xff]   ;;  %v7994_v53 = vld [vmem:[%s12200_s3 + $0x4b4] ss:$8 sps:$4 sm:$0xff]  }
 0x970   : > { %v9276_v15 = vpop.eup %9275  ;;  %5765 = vmatpush1.bf16.msra.mxu1 %v5364_v21  ;;  %v5095_v36 = vpop.f32.mrb[20].mxu0  ;;  %9297 = vtanh.f32 %v5092_v7  ;;  %v7980_v21 = vld [vmem:[%s12200_s3 + $0x470] ss:$8 sps:$4 sm:$0xff]   ;;  %v7989_v7 = vld [vmem:[%s12200_s3 + $0x4a0] ss:$8 sps:$4 sm:$0xff]  }
 0x971   : > { %v9278_v30 = vpop.eup %9277  ;;  %v5096_v43 = vadd.f32 %v5095_v36, %v4844_v25  ;;  %v5228_v48 = vpop.f32.mrb[20].mxu1  ;;  %9299 = vtanh.f32 %v5225_v50  ;;  %v7997_v50 = vld [vmem:[%s12200_s3 + $0x4c4] ss:$8 sps:$4 sm:$0xff]   ;;  %v8001_v36 = vld [vmem:[%s12200_s3 + $0x4e0] ss:$8 sps:$4 sm:$0xff]  }
 0x972   : > { %v5097_v61 = vpop.f32.mrb[21].mxu0  ;;  %v9280_v5 = vpop.eup %9279  ;;  %v5229_v37 = vadd.f32 %v5228_v48, %v4844_v25  ;;  %v5366_v27 = vpack.c.bf16 %v9278_v30, %v9270_v4  ;;  %v7991_v4 = vld [vmem:[%s12200_s3 + $0x4a4] ss:$8 sps:$4 sm:$0xff]   ;;  %v8006_v30 = vld [vmem:[%s12200_s3 + $0x4f4] ss:$8 sps:$4 sm:$0xff]  }
 0x973   : > { %v5098_v44 = vadd.f32 %v5097_v61, %v4844_v25  ;;  %v5230_v46 = vpop.f32.mrb[21].mxu1  ;;  %v5099_v2 = vpop.f32.mrb[22].mxu0  ;;  %9301 = vtanh.f32 %v5096_v43  ;;  %v5368_v8 = vpack.c.bf16 %v9280_v5, %v9272_v31  ;;  %v7992_v31 = vld [vmem:[%s12200_s3 + $0x4b0] ss:$8 sps:$4 sm:$0xff]   ;;  %v8009_v48 = vld [vmem:[%s12200_s3 + $0x504] ss:$8 sps:$4 sm:$0xff]  }
 0x974   : > { %v9282_v29 = vpop.eup %9281  ;;  %v5231_v41 = vadd.f32 %v5230_v46, %v4844_v25  ;;  %v5100_v39 = vadd.f32 %v5099_v2, %v4849_v35  ;;  %v5232_v20 = vpop.f32.mrb[22].mxu1  ;;  %9303 = vtanh.f32 %v5229_v37  ;;  %v8003_v25 = vld [vmem:[%s12200_s3 + $0x4e4] ss:$8 sps:$4 sm:$0xff]   ;;  %v8004_v43 = vld [vmem:[%s12200_s3 + $0x4f0] ss:$8 sps:$4 sm:$0xff]  }
 0x975   : > { %v5101_v12 = vpop.f32.mrb[23].mxu0  ;;  %v9284_v16 = vpop.eup %9283  ;;  %v5233_v62 = vadd.f32 %v5232_v20, %v4849_v35  ;;  %v5367_v59 = vpack.c.bf16 %v9282_v29, %v9274_v1  ;;  %9305 = vtanh.f32 %v5098_v44  ;;  %v7995_v1 = vld [vmem:[%s12200_s3 + $0x4c0] ss:$8 sps:$4 sm:$0xff]  }
 0x976   : > { %v5234_v9 = vpop.f32.mrb[23].mxu1  ;;  %v9286_v42 = vpop.eup %9285  ;;  %v5102_v13 = vadd.f32 %v5101_v12, %v4849_v35  ;;  %v5369_v63 = vpack.c.bf16 %v9284_v16, %v9276_v15  ;;  %9307 = vtanh.f32 %v5231_v41  ;;  %v7998_v15 = vld [vmem:[%s12200_s3 + $0x4d0] ss:$8 sps:$4 sm:$0xff]  }
 0x977   : > { %v9288_v49 = vpop.eup %9287  ;;  %v5235_v45 = vadd.f32 %v5234_v9, %v4849_v35  ;;  %5633 = vmatprep.subr.bf16.mxu0 %v5367_v59  ;;  %9309 = vtanh.f32 %v5100_v39  ;;  %v8000_v35 = vld [vmem:[%s12200_s3 + $0x4d4] ss:$8 sps:$4 sm:$0xff]   ;;  %v5407_v61 = vpop.permute.xlu1 %5406 }
 0x978   : > { %v9290_v11 = vpop.eup %9289  ;;  %5766 = vmatprep.subr.bf16.mxu1 %v5369_v63  ;;  %5634 = vmatpush1.bf16.msra.mxu0 %v5366_v27  ;;  %9311 = vtanh.f32 %v5233_v62  ;;  %v5402_v5 = vpop.permute.xlu0 %5401 }
 0x979   : > { %v9292_v26 = vpop.eup %9291  ;;  %5767 = vmatpush1.bf16.msra.mxu1 %v5368_v8  ;;  %9313 = vtanh.f32 %v5102_v13 }
 0x97a   : > { %v9294_v55 = vpop.eup %9293  ;;  %9315 = vtanh.f32 %v5235_v45 }
 0x97b   : > { %v9296_v22 = vpop.eup %9295  ;;  %v5370_v52 = vpack.c.bf16 %v9294_v55, %v9286_v42  ;;  %v5417_v13 = vpop.permute.xlu1 %5416 }
 0x97c   : > { %v9298_v40 = vpop.eup %9297  ;;  %v5372_v60 = vpack.c.bf16 %v9296_v22, %v9288_v49  ;;  %v5412_v63 = vpop.permute.xlu0 %5411 }
 0x97d   : > { %v9300_v14 = vpop.eup %9299  ;;  %v5371_v51 = vpack.c.bf16 %v9298_v40, %v9290_v11 }
 0x97e   : > { %v9302_v57 = vpop.eup %9301  ;;  %v5373_v54 = vpack.c.bf16 %v9300_v14, %v9292_v26 }
 0x97f   : > { %v9304_v56 = vpop.eup %9303  ;;  %5635 = vmatprep.subr.bf16.mxu0 %v5371_v51 }
 0x980   : > { %v9306_v28 = vpop.eup %9305  ;;  %5768 = vmatprep.subr.bf16.mxu1 %v5373_v54  ;;  %5636 = vmatpush1.bf16.msra.mxu0 %v5370_v52 }
 0x981   : > { %v9308_v24 = vpop.eup %9307  ;;  %5769 = vmatpush1.bf16.msra.mxu1 %v5372_v60 }
 0x982   : > { %v9310_v23 = vpop.eup %9309 }
 0x983   : > { %v9312_v17 = vpop.eup %9311  ;;  %v5374_v19 = vpack.c.bf16 %v9310_v23, %v9302_v57 }
 0x984   : > { %v9314_v34 = vpop.eup %9313  ;;  %v5376_v3 = vpack.c.bf16 %v9312_v17, %v9304_v56 }
 0x985   : > { %v9316_v38 = vpop.eup %9315  ;;  %v5375_v33 = vpack.c.bf16 %v9314_v34, %v9306_v28  ;;  %v5427_v34 = vpop.permute.xlu1 %5426 }
 0x986   : > { %v5377_v0 = vpack.c.bf16 %v9316_v38, %v9308_v24  ;;  %v5422_v38 = vpop.permute.xlu0 %5421 }
 0x987   : > { %5637 = vmatprep.subr.bf16.mxu0 %v5375_v33 }
 0x988   : > { %5770 = vmatprep.subr.bf16.mxu1 %v5377_v0  ;;  %5638 = vmatpush1.bf16.msra.mxu0 %v5374_v19 }
 0x989   : > { %5771 = vmatpush1.bf16.msra.mxu1 %v5376_v3 }
 0x98b   : > { %5652 = vmatmul.mubr.bf16.vlgmr.msra.gmra.mrb[24].mxu0 %v7977_v10 }
 0x98c   : > { %5785 = vmatmul.mubr.bf16.vlgmr.msra.gmra.mrb[24].mxu1 %v7977_v10  ;;  %7619 = vmatprep.mubr.msk.bf16.mxu0 %vm1052_vm0, %v7982_v58 }
 0x98d   : > { %7629 = vmatprep.mubr.msk.bf16.mxu1 %vm1052_vm0, %v7982_v58 }
 0x993   : > { %5662 = vmatmul.mubr.bf16.gmra.mrb[28].mxu0 %v7980_v21 }
 0x994   : > { %5795 = vmatmul.mubr.bf16.gmra.mrb[28].mxu1 %v7980_v21  ;;  %7620 = vmatprep.mubr.msk.bf16.mxu0 %vm1052_vm0, %v7985_v32 }
 0x995   : > { %7630 = vmatprep.mubr.msk.bf16.mxu1 %vm1052_vm0, %v7985_v32 }
 0x99b   : > { %5672 = vmatmul.mubr.bf16.gmra.mrb[32].mxu0 %v7983_v47 }
 0x99c   : > { %5805 = vmatmul.mubr.bf16.gmra.mrb[32].mxu1 %v7983_v47  ;;  %7621 = vmatprep.mubr.msk.bf16.mxu0 %vm1052_vm0, %v7988_v6 }
 0x99d   : > { %7631 = vmatprep.mubr.msk.bf16.mxu1 %vm1052_vm0, %v7988_v6 }
 0x9a3   : > { %5682 = vmatmul.mubr.bf16.gmra.mrb[36].mxu0 %v7986_v18 }
 0x9a4   : > { %5815 = vmatmul.mubr.bf16.gmra.mrb[36].mxu1 %v7986_v18  ;;  %7622 = vmatprep.mubr.msk.bf16.mxu0 %vm1052_vm0, %v7991_v4 }
 0x9a5   : > { %7632 = vmatprep.mubr.msk.bf16.mxu1 %vm1052_vm0, %v7991_v4 }
 0x9ab   : > { %5692 = vmatmul.mubr.bf16.gmra.mrb[40].mxu0 %v7989_v7 }
 0x9ac   : > { %5825 = vmatmul.mubr.bf16.gmra.mrb[40].mxu1 %v7989_v7  ;;  %7623 = vmatprep.mubr.msk.bf16.mxu0 %vm1052_vm0, %v7994_v53 }
 0x9ad   : > { %7633 = vmatprep.mubr.msk.bf16.mxu1 %vm1052_vm0, %v7994_v53 }
 0x9b3   : > { %5702 = vmatmul.mubr.bf16.gmra.mrb[44].mxu0 %v7992_v31 }
 0x9b4   : > { %5835 = vmatmul.mubr.bf16.gmra.mrb[44].mxu1 %v7992_v31  ;;  %7624 = vmatprep.mubr.msk.bf16.mxu0 %vm1052_vm0, %v7997_v50 }
 0x9b5   : > { %7634 = vmatprep.mubr.msk.bf16.mxu1 %vm1052_vm0, %v7997_v50 }
 0x9bb   : > { %5712 = vmatmul.mubr.bf16.gmra.mrb[48].mxu0 %v7995_v1 }
 0x9bc   : > { %5845 = vmatmul.mubr.bf16.gmra.mrb[48].mxu1 %v7995_v1  ;;  %7625 = vmatprep.mubr.msk.bf16.mxu0 %vm1052_vm0, %v8000_v35 }
 0x9bd   : > { %7635 = vmatprep.mubr.msk.bf16.mxu1 %vm1052_vm0, %v8000_v35 }
 0x9c3   : > { %5722 = vmatmul.mubr.bf16.gmra.mrb[52].mxu0 %v7998_v15 }
 0x9c4   : > { %5855 = vmatmul.mubr.bf16.gmra.mrb[52].mxu1 %v7998_v15  ;;  %7626 = vmatprep.mubr.msk.bf16.mxu0 %vm1052_vm0, %v8003_v25 }
 0x9c5   : > { %7636 = vmatprep.mubr.msk.bf16.mxu1 %vm1052_vm0, %v8003_v25 }
 0x9cb   : > { %5732 = vmatmul.mubr.bf16.gmra.mrb[56].mxu0 %v8001_v36 }
 0x9cc   : > { %5865 = vmatmul.mubr.bf16.gmra.mrb[56].mxu1 %v8001_v36  ;;  %7627 = vmatprep.mubr.msk.bf16.mxu0 %vm1052_vm0, %v8006_v30 }
 0x9cd   : > { %7637 = vmatprep.mubr.msk.bf16.mxu1 %vm1052_vm0, %v8006_v30 }
 0x9d3   : > { %5742 = vmatmul.mubr.bf16.gmra.mrb[60].mxu0 %v8004_v43 }
 0x9d4   : > { %5875 = vmatmul.mubr.bf16.gmra.mrb[60].mxu1 %v8004_v43  ;;  %7698 = vmatprep.mubr.msk.bf16.mxu0 %vm1052_vm0, %v8009_v48 }
 0x9d5   : > { %7708 = vmatprep.mubr.msk.bf16.mxu1 %vm1052_vm0, %v8009_v48 }
 0xa5e   : > { %v5653_v37 = vpop.f32.mrb[24].mxu0 }
 0xa5f   : > { %v5654_v44 = vadd.f32 %v5653_v37, %v5402_v5  ;;  %v5786_v46 = vpop.f32.mrb[24].mxu1  ;;  %v5655_v2 = vpop.f32.mrb[25].mxu0 }
 0xa60   : > { %v5787_v27 = vadd.f32 %v5786_v46, %v5402_v5  ;;  %v5656_v29 = vadd.f32 %v5655_v2, %v5402_v5  ;;  %v5788_v41 = vpop.f32.mrb[25].mxu1  ;;  %v5657_v39 = vpop.f32.mrb[26].mxu0 }
 0xa61   : > { %9317 = vtanh.f32 %v5654_v44  ;;  %v5789_v20 = vadd.f32 %v5788_v41, %v5402_v5  ;;  %v5658_v12 = vadd.f32 %v5657_v39, %v5407_v61  ;;  %v5790_v8 = vpop.f32.mrb[26].mxu1  ;;  %v5659_v16 = vpop.f32.mrb[27].mxu0 }
 0xa62   : > { %9319 = vtanh.f32 %v5787_v27  ;;  %v5791_v62 = vadd.f32 %v5790_v8, %v5407_v61  ;;  %v5792_v9 = vpop.f32.mrb[27].mxu1  ;;  %v5660_v59 = vadd.f32 %v5659_v16, %v5407_v61  ;;  %v5437_v2 = vpop.permute.xlu1 %5436 }
 0xa63   : > { %9321 = vtanh.f32 %v5656_v29  ;;  %v5793_v42 = vadd.f32 %v5792_v9, %v5407_v61  ;;  %v5432_v29 = vpop.permute.xlu0 %5431 }
 0xa64   : > { %9323 = vtanh.f32 %v5789_v20 }
 0xa65   : > { %9325 = vtanh.f32 %v5658_v12 }
 0xa66   : > { %9327 = vtanh.f32 %v5791_v62  ;;  %v5663_v49 = vpop.f32.mrb[28].mxu0 }
 0xa67   : > { %9329 = vtanh.f32 %v5660_v59  ;;  %v5664_v45 = vadd.f32 %v5663_v49, %v5412_v63  ;;  %v5796_v11 = vpop.f32.mrb[28].mxu1  ;;  %v5665_v26 = vpop.f32.mrb[29].mxu0 }
 0xa68   : > { %9331 = vtanh.f32 %v5793_v42  ;;  %v5797_v55 = vadd.f32 %v5796_v11, %v5412_v63  ;;  %v5666_v22 = vadd.f32 %v5665_v26, %v5412_v63  ;;  %v5798_v52 = vpop.f32.mrb[29].mxu1  ;;  %v5667_v40 = vpop.f32.mrb[30].mxu0 }
 0xa69   : > { %9333 = vtanh.f32 %v5664_v45  ;;  %v5799_v60 = vadd.f32 %v5798_v52, %v5412_v63  ;;  %v5668_v14 = vadd.f32 %v5667_v40, %v5417_v13  ;;  %v5800_v51 = vpop.f32.mrb[30].mxu1  ;;  %v5669_v57 = vpop.f32.mrb[31].mxu0 }
 0xa6a   : > { %9335 = vtanh.f32 %v5797_v55  ;;  %v5801_v54 = vadd.f32 %v5800_v51, %v5417_v13  ;;  %v5802_v56 = vpop.f32.mrb[31].mxu1  ;;  %v5670_v24 = vadd.f32 %v5669_v57, %v5417_v13 }
 0xa6b   : > { %v9318_v28 = vpop.eup %9317  ;;  %9337 = vtanh.f32 %v5666_v22  ;;  %v5803_v17 = vadd.f32 %v5802_v56, %v5417_v13 }
 0xa6c   : > { %v9320_v23 = vpop.eup %9319  ;;  %9339 = vtanh.f32 %v5799_v60 }
 0xa6d   : > { %v9322_v19 = vpop.eup %9321  ;;  %9341 = vtanh.f32 %v5668_v14 }
 0xa6e   : > { %v9324_v3 = vpop.eup %9323  ;;  %9343 = vtanh.f32 %v5801_v54  ;;  %v5673_v33 = vpop.f32.mrb[32].mxu0 }
 0xa6f   : > { %v9326_v0 = vpop.eup %9325  ;;  %9345 = vtanh.f32 %v5670_v24  ;;  %v5674_v10 = vadd.f32 %v5673_v33, %v5422_v38  ;;  %v5806_v58 = vpop.f32.mrb[32].mxu1 }
 0xa70   : > { %v5675_v21 = vpop.f32.mrb[33].mxu0  ;;  %v9328_v32 = vpop.eup %9327  ;;  %9347 = vtanh.f32 %v5803_v17  ;;  %v5807_v47 = vadd.f32 %v5806_v58, %v5422_v38  ;;  %v5986_v7 = vpack.c.bf16 %v9326_v0, %v9318_v28 }
 0xa71   : > { %v5676_v6 = vadd.f32 %v5675_v21, %v5422_v38  ;;  %v5808_v18 = vpop.f32.mrb[33].mxu1  ;;  %v5677_v4 = vpop.f32.mrb[34].mxu0  ;;  %9349 = vtanh.f32 %v5674_v10  ;;  %v5988_v15 = vpack.c.bf16 %v9328_v32, %v9320_v23 }
 0xa72   : > { %v9330_v53 = vpop.eup %9329  ;;  %v5809_v31 = vadd.f32 %v5808_v18, %v5422_v38  ;;  %v5678_v50 = vadd.f32 %v5677_v4, %v5427_v34  ;;  %v5810_v1 = vpop.f32.mrb[34].mxu1  ;;  %9351 = vtanh.f32 %v5807_v47 }
 0xa73   : > { %v5679_v35 = vpop.f32.mrb[35].mxu0  ;;  %v9332_v25 = vpop.eup %9331  ;;  %v5811_v36 = vadd.f32 %v5810_v1, %v5427_v34  ;;  %v5987_v43 = vpack.c.bf16 %v9330_v53, %v9322_v19  ;;  %9353 = vtanh.f32 %v5676_v6 }
 0xa74   : > { %v5812_v30 = vpop.f32.mrb[35].mxu1  ;;  %v9334_v48 = vpop.eup %9333  ;;  %v5680_v61 = vadd.f32 %v5679_v35, %v5427_v34  ;;  %v5989_v5 = vpack.c.bf16 %v9332_v25, %v9324_v3  ;;  %9355 = vtanh.f32 %v5809_v31 }
 0xa75   : > { %v9336_v37 = vpop.eup %9335  ;;  %v5813_v44 = vadd.f32 %v5812_v30, %v5427_v34  ;;  %6267 = vmatprep.subr.bf16.mxu0 %v5987_v43  ;;  %9357 = vtanh.f32 %v5678_v50  ;;  %v5447_v24 = vpop.permute.xlu1 %5446 }
 0xa76   : > { %v9338_v46 = vpop.eup %9337  ;;  %6400 = vmatprep.subr.bf16.mxu1 %v5989_v5  ;;  %6268 = vmatpush1.bf16.msra.mxu0 %v5986_v7  ;;  %9359 = vtanh.f32 %v5811_v36  ;;  %v5683_v41 = vpop.f32.mrb[36].mxu0 }
 0xa77   : > { %v9340_v27 = vpop.eup %9339  ;;  %6401 = vmatpush1.bf16.msra.mxu1 %v5988_v15  ;;  %9361 = vtanh.f32 %v5680_v61  ;;  %v5684_v20 = vadd.f32 %v5683_v41, %v5432_v29  ;;  %v5816_v12 = vpop.f32.mrb[36].mxu1 }
 0xa78   : > { %v9342_v39 = vpop.eup %9341  ;;  %v5685_v8 = vpop.f32.mrb[37].mxu0  ;;  %9363 = vtanh.f32 %v5813_v44  ;;  %v5817_v62 = vadd.f32 %v5816_v12, %v5432_v29 }
 0xa79   : > { %v9344_v16 = vpop.eup %9343  ;;  %v5686_v9 = vadd.f32 %v5685_v8, %v5432_v29  ;;  %v5818_v59 = vpop.f32.mrb[37].mxu1  ;;  %v5990_v13 = vpack.c.bf16 %v9342_v39, %v9334_v48  ;;  %9365 = vtanh.f32 %v5684_v20 }
 0xa7a   : > { %v5687_v42 = vpop.f32.mrb[38].mxu0  ;;  %v9346_v63 = vpop.eup %9345  ;;  %v5819_v49 = vadd.f32 %v5818_v59, %v5432_v29  ;;  %v5992_v55 = vpack.c.bf16 %v9344_v16, %v9336_v37  ;;  %9367 = vtanh.f32 %v5817_v62 }
 0xa7b   : > { %v5688_v45 = vadd.f32 %v5687_v42, %v5437_v2  ;;  %v5820_v11 = vpop.f32.mrb[38].mxu1  ;;  %v5689_v26 = vpop.f32.mrb[39].mxu0  ;;  %v5991_v60 = vpack.c.bf16 %v9346_v63, %v9338_v46  ;;  %9369 = vtanh.f32 %v5686_v9 }
 0xa7c   : > { %v9348_v22 = vpop.eup %9347  ;;  %v5821_v52 = vadd.f32 %v5820_v11, %v5437_v2  ;;  %v5822_v40 = vpop.f32.mrb[39].mxu1  ;;  %v5690_v51 = vadd.f32 %v5689_v26, %v5437_v2  ;;  %9371 = vtanh.f32 %v5819_v49 }
 0xa7d   : > { %v9350_v14 = vpop.eup %9349  ;;  %v5993_v57 = vpack.c.bf16 %v9348_v22, %v9340_v27  ;;  %v5823_v56 = vadd.f32 %v5822_v40, %v5437_v2  ;;  %6269 = vmatprep.subr.bf16.mxu0 %v5991_v60  ;;  %9373 = vtanh.f32 %v5688_v45  ;;  %v5442_v17 = vpop.permute.xlu0 %5441 }
 0xa7e   : > { %v9352_v54 = vpop.eup %9351  ;;  %6270 = vmatpush1.bf16.msra.mxu0 %v5990_v13  ;;  %9375 = vtanh.f32 %v5821_v52  ;;  %v5693_v19 = vpop.f32.mrb[40].mxu0 }
 0xa7f   : > { %v9354_v28 = vpop.eup %9353  ;;  %6402 = vmatprep.subr.bf16.mxu1 %v5993_v57  ;;  %9377 = vtanh.f32 %v5690_v51  ;;  %v5694_v3 = vadd.f32 %v5693_v19, %v5442_v17  ;;  %v5826_v38 = vpop.f32.mrb[40].mxu1 }
 0xa80   : > { %v9356_v23 = vpop.eup %9355  ;;  %6403 = vmatpush1.bf16.msra.mxu1 %v5992_v55  ;;  %v5695_v33 = vpop.f32.mrb[41].mxu0  ;;  %9379 = vtanh.f32 %v5823_v56  ;;  %v5827_v10 = vadd.f32 %v5826_v38, %v5442_v17 }
 0xa81   : > { %v9358_v34 = vpop.eup %9357  ;;  %v5696_v58 = vadd.f32 %v5695_v33, %v5442_v17  ;;  %v5828_v21 = vpop.f32.mrb[41].mxu1  ;;  %9381 = vtanh.f32 %v5694_v3 }
 0xa82   : > { %v9360_v0 = vpop.eup %9359  ;;  %v5697_v32 = vpop.f32.mrb[42].mxu0  ;;  %v5994_v47 = vpack.c.bf16 %v9358_v34, %v9350_v14  ;;  %v5829_v18 = vadd.f32 %v5828_v21, %v5442_v17  ;;  %9383 = vtanh.f32 %v5827_v10 }
 0xa83   : > { %v9362_v6 = vpop.eup %9361  ;;  %v5698_v4 = vadd.f32 %v5697_v32, %v5447_v24  ;;  %v5830_v7 = vpop.f32.mrb[42].mxu1  ;;  %v5996_v31 = vpack.c.bf16 %v9360_v0, %v9352_v54  ;;  %9385 = vtanh.f32 %v5696_v58 }
 0xa84   : > { %v5699_v53 = vpop.f32.mrb[43].mxu0  ;;  %v9364_v50 = vpop.eup %9363  ;;  %v5831_v1 = vadd.f32 %v5830_v7, %v5447_v24  ;;  %v5995_v15 = vpack.c.bf16 %v9362_v6, %v9354_v28  ;;  %9387 = vtanh.f32 %v5829_v18 }
 0xa85   : > { %v5832_v35 = vpop.f32.mrb[43].mxu1  ;;  %v9366_v25 = vpop.eup %9365  ;;  %v5700_v36 = vadd.f32 %v5699_v53, %v5447_v24  ;;  %v5997_v30 = vpack.c.bf16 %v9364_v50, %v9356_v23  ;;  %9389 = vtanh.f32 %v5698_v4 }
 0xa86   : > { %v9368_v43 = vpop.eup %9367  ;;  %v5833_v48 = vadd.f32 %v5832_v35, %v5447_v24  ;;  %6271 = vmatprep.subr.bf16.mxu0 %v5995_v15  ;;  %v5457_v5 = vpop.permute.xlu1 %5456  ;;  %9391 = vtanh.f32 %v5831_v1 }
 0xa87   : > { %v9370_v61 = vpop.eup %9369  ;;  %6404 = vmatprep.subr.bf16.mxu1 %v5997_v30  ;;  %6272 = vmatpush1.bf16.msra.mxu0 %v5994_v47  ;;  %v5452_v44 = vpop.permute.xlu0 %5451  ;;  %9393 = vtanh.f32 %v5700_v36 }
 0xa88   : > { %v9372_v37 = vpop.eup %9371  ;;  %6405 = vmatpush1.bf16.msra.mxu1 %v5996_v31  ;;  %v5703_v46 = vpop.f32.mrb[44].mxu0  ;;  %9395 = vtanh.f32 %v5833_v48 }
 0xa89   : > { %v9374_v2 = vpop.eup %9373  ;;  %v5704_v27 = vadd.f32 %v5703_v46, %v5452_v44  ;;  %v5836_v29 = vpop.f32.mrb[44].mxu1 }
 0xa8a   : > { %v5705_v41 = vpop.f32.mrb[45].mxu0  ;;  %v9376_v39 = vpop.eup %9375  ;;  %v5837_v20 = vadd.f32 %v5836_v29, %v5452_v44  ;;  %v5998_v62 = vpack.c.bf16 %v9374_v2, %v9366_v25 }
 0xa8b   : > { %v5706_v12 = vadd.f32 %v5705_v41, %v5452_v44  ;;  %v5838_v8 = vpop.f32.mrb[45].mxu1  ;;  %v5707_v16 = vpop.f32.mrb[46].mxu0  ;;  %9397 = vtanh.f32 %v5704_v27  ;;  %v6000_v49 = vpack.c.bf16 %v9376_v39, %v9368_v43 }
 0xa8c   : > { %v9378_v9 = vpop.eup %9377  ;;  %v5839_v59 = vadd.f32 %v5838_v8, %v5452_v44  ;;  %v5708_v42 = vadd.f32 %v5707_v16, %v5457_v5  ;;  %v5840_v13 = vpop.f32.mrb[46].mxu1  ;;  %9399 = vtanh.f32 %v5837_v20 }
 0xa8d   : > { %v5709_v63 = vpop.f32.mrb[47].mxu0  ;;  %v9380_v45 = vpop.eup %9379  ;;  %v5841_v11 = vadd.f32 %v5840_v13, %v5457_v5  ;;  %v5999_v55 = vpack.c.bf16 %v9378_v9, %v9370_v61  ;;  %9401 = vtanh.f32 %v5706_v12 }
 0xa8e   : > { %v5842_v26 = vpop.f32.mrb[47].mxu1  ;;  %v9382_v22 = vpop.eup %9381  ;;  %v5710_v52 = vadd.f32 %v5709_v63, %v5457_v5  ;;  %v6001_v40 = vpack.c.bf16 %v9380_v45, %v9372_v37  ;;  %9403 = vtanh.f32 %v5839_v59 }
 0xa8f   : > { %v9384_v60 = vpop.eup %9383  ;;  %v5843_v14 = vadd.f32 %v5842_v26, %v5457_v5  ;;  %6273 = vmatprep.subr.bf16.mxu0 %v5999_v55  ;;  %v5467_v57 = vpop.permute.xlu1 %5466  ;;  %9405 = vtanh.f32 %v5708_v42 }
 0xa90   : > { %v9386_v51 = vpop.eup %9385  ;;  %6406 = vmatprep.subr.bf16.mxu1 %v6001_v40  ;;  %6274 = vmatpush1.bf16.msra.mxu0 %v5998_v62  ;;  %v5462_v56 = vpop.permute.xlu0 %5461  ;;  %9407 = vtanh.f32 %v5841_v11 }
 0xa91   : > { %v9388_v54 = vpop.eup %9387  ;;  %6407 = vmatpush1.bf16.msra.mxu1 %v6000_v49  ;;  %v5713_v28 = vpop.f32.mrb[48].mxu0  ;;  %9409 = vtanh.f32 %v5710_v52 }
 0xa92   : > { %v9390_v24 = vpop.eup %9389  ;;  %v5714_v23 = vadd.f32 %v5713_v28, %v5462_v56  ;;  %v5846_v17 = vpop.f32.mrb[48].mxu1  ;;  %9411 = vtanh.f32 %v5843_v14 }
 0xa93   : > { %v5715_v19 = vpop.f32.mrb[49].mxu0  ;;  %v9392_v34 = vpop.eup %9391  ;;  %v5847_v3 = vadd.f32 %v5846_v17, %v5462_v56  ;;  %v6002_v10 = vpack.c.bf16 %v9390_v24, %v9382_v22 }
 0xa94   : > { %v5716_v38 = vadd.f32 %v5715_v19, %v5462_v56  ;;  %v5848_v33 = vpop.f32.mrb[49].mxu1  ;;  %v5717_v0 = vpop.f32.mrb[50].mxu0  ;;  %9413 = vtanh.f32 %v5714_v23  ;;  %v6004_v18 = vpack.c.bf16 %v9392_v34, %v9384_v60 }
 0xa95   : > { %v9394_v58 = vpop.eup %9393  ;;  %v5849_v21 = vadd.f32 %v5848_v33, %v5462_v56  ;;  %v5718_v32 = vadd.f32 %v5717_v0, %v5467_v57  ;;  %v5850_v47 = vpop.f32.mrb[50].mxu1  ;;  %9415 = vtanh.f32 %v5847_v3 }
 0xa96   : > { %v5719_v6 = vpop.f32.mrb[51].mxu0  ;;  %v9396_v4 = vpop.eup %9395  ;;  %v5851_v7 = vadd.f32 %v5850_v47, %v5467_v57  ;;  %v6003_v31 = vpack.c.bf16 %v9394_v58, %v9386_v51  ;;  %9417 = vtanh.f32 %v5716_v38 }
 0xa97   : > { %v5852_v53 = vpop.f32.mrb[51].mxu1  ;;  %v9398_v50 = vpop.eup %9397  ;;  %v5720_v1 = vadd.f32 %v5719_v6, %v5467_v57  ;;  %v6005_v35 = vpack.c.bf16 %v9396_v4, %v9388_v54  ;;  %9419 = vtanh.f32 %v5849_v21 }
 0xa98   : > { %v9400_v15 = vpop.eup %9399  ;;  %v5853_v25 = vadd.f32 %v5852_v53, %v5467_v57  ;;  %6275 = vmatprep.subr.bf16.mxu0 %v6003_v31  ;;  %v5477_v30 = vpop.permute.xlu1 %5476  ;;  %9421 = vtanh.f32 %v5718_v32 }
 0xa99   : > { %v9402_v36 = vpop.eup %9401  ;;  %6408 = vmatprep.subr.bf16.mxu1 %v6005_v35  ;;  %6276 = vmatpush1.bf16.msra.mxu0 %v6002_v10  ;;  %v5472_v48 = vpop.permute.xlu0 %5471  ;;  %9423 = vtanh.f32 %v5851_v7 }
 0xa9a   : > { %v9404_v43 = vpop.eup %9403  ;;  %6409 = vmatpush1.bf16.msra.mxu1 %v6004_v18  ;;  %v5723_v61 = vpop.f32.mrb[52].mxu0  ;;  %9425 = vtanh.f32 %v5720_v1 }
 0xa9b   : > { %v9406_v5 = vpop.eup %9405  ;;  %v5724_v37 = vadd.f32 %v5723_v61, %v5472_v48  ;;  %v5856_v44 = vpop.f32.mrb[52].mxu1  ;;  %9427 = vtanh.f32 %v5853_v25 }
 0xa9c   : > { %v5725_v46 = vpop.f32.mrb[53].mxu0  ;;  %v9408_v2 = vpop.eup %9407  ;;  %v5857_v27 = vadd.f32 %v5856_v44, %v5472_v48  ;;  %v6006_v20 = vpack.c.bf16 %v9406_v5, %v9398_v50 }
 0xa9d   : > { %v5726_v29 = vadd.f32 %v5725_v46, %v5472_v48  ;;  %v5858_v41 = vpop.f32.mrb[53].mxu1  ;;  %v5727_v39 = vpop.f32.mrb[54].mxu0  ;;  %9429 = vtanh.f32 %v5724_v37  ;;  %v6008_v59 = vpack.c.bf16 %v9408_v2, %v9400_v15 }
 0xa9e   : > { %v9410_v12 = vpop.eup %9409  ;;  %v5859_v8 = vadd.f32 %v5858_v41, %v5472_v48  ;;  %v5728_v16 = vadd.f32 %v5727_v39, %v5477_v30  ;;  %v5860_v62 = vpop.f32.mrb[54].mxu1  ;;  %9431 = vtanh.f32 %v5857_v27 }
 0xa9f   : > { %v5729_v9 = vpop.f32.mrb[55].mxu0  ;;  %v9412_v42 = vpop.eup %9411  ;;  %v5861_v13 = vadd.f32 %v5860_v62, %v5477_v30  ;;  %v6007_v49 = vpack.c.bf16 %v9410_v12, %v9402_v36  ;;  %9433 = vtanh.f32 %v5726_v29 }
 0xaa0   : > { %v5862_v63 = vpop.f32.mrb[55].mxu1  ;;  %v9414_v45 = vpop.eup %9413  ;;  %v5730_v11 = vadd.f32 %v5729_v9, %v5477_v30  ;;  %v6009_v26 = vpack.c.bf16 %v9412_v42, %v9404_v43  ;;  %9435 = vtanh.f32 %v5859_v8 }
 0xaa1   : > { %v9416_v55 = vpop.eup %9415  ;;  %v5863_v22 = vadd.f32 %v5862_v63, %v5477_v30  ;;  %6277 = vmatprep.subr.bf16.mxu0 %v6007_v49  ;;  %v5487_v40 = vpop.permute.xlu1 %5486  ;;  %9437 = vtanh.f32 %v5728_v16 }
 0xaa2   : > { %v9418_v52 = vpop.eup %9417  ;;  %6410 = vmatprep.subr.bf16.mxu1 %v6009_v26  ;;  %6278 = vmatpush1.bf16.msra.mxu0 %v6006_v20  ;;  %v5482_v14 = vpop.permute.xlu0 %5481  ;;  %9439 = vtanh.f32 %v5861_v13 }
 0xaa3   : > { %v9420_v60 = vpop.eup %9419  ;;  %6411 = vmatpush1.bf16.msra.mxu1 %v6008_v59  ;;  %v5733_v51 = vpop.f32.mrb[56].mxu0  ;;  %9441 = vtanh.f32 %v5730_v11 }
 0xaa4   : > { %v9422_v57 = vpop.eup %9421  ;;  %v5734_v54 = vadd.f32 %v5733_v51, %v5482_v14  ;;  %v5866_v56 = vpop.f32.mrb[56].mxu1  ;;  %9443 = vtanh.f32 %v5863_v22 }
 0xaa5   : > { %v5735_v28 = vpop.f32.mrb[57].mxu0  ;;  %v9424_v24 = vpop.eup %9423  ;;  %v5867_v23 = vadd.f32 %v5866_v56, %v5482_v14  ;;  %v6010_v3 = vpack.c.bf16 %v9422_v57, %v9414_v45 }
 0xaa6   : > { %v5736_v17 = vadd.f32 %v5735_v28, %v5482_v14  ;;  %v5868_v19 = vpop.f32.mrb[57].mxu1  ;;  %v5737_v34 = vpop.f32.mrb[58].mxu0  ;;  %9445 = vtanh.f32 %v5734_v54  ;;  %v6012_v21 = vpack.c.bf16 %v9424_v24, %v9416_v55 }
 0xaa7   : > { %v9426_v38 = vpop.eup %9425  ;;  %v5869_v33 = vadd.f32 %v5868_v19, %v5482_v14  ;;  %v5738_v0 = vadd.f32 %v5737_v34, %v5487_v40  ;;  %v5870_v10 = vpop.f32.mrb[58].mxu1  ;;  %9447 = vtanh.f32 %v5867_v23 }
 0xaa8   : > { %v5739_v58 = vpop.f32.mrb[59].mxu0  ;;  %v9428_v32 = vpop.eup %9427  ;;  %v5871_v47 = vadd.f32 %v5870_v10, %v5487_v40  ;;  %v6011_v18 = vpack.c.bf16 %v9426_v38, %v9418_v52  ;;  %9449 = vtanh.f32 %v5736_v17  ;;  %v8007_v10 = vld [vmem:[%s12200_s3 + $0x500] ss:$8 sps:$4 sm:$0xff]  }
 0xaa9   : > { %v5872_v6 = vpop.f32.mrb[59].mxu1  ;;  %v9430_v4 = vpop.eup %9429  ;;  %v5740_v7 = vadd.f32 %v5739_v58, %v5487_v40  ;;  %v6013_v53 = vpack.c.bf16 %v9428_v32, %v9420_v60  ;;  %9451 = vtanh.f32 %v5869_v33  ;;  %v8012_v58 = vld [vmem:[%s12200_s3 + $0x514] ss:$8 sps:$4 sm:$0xff]   ;;  %v8015_v32 = vld [vmem:[%s12200_s3 + $0x524] ss:$8 sps:$4 sm:$0xff]  }
 0xaaa   : > { %v9432_v31 = vpop.eup %9431  ;;  %v5873_v50 = vadd.f32 %v5872_v6, %v5487_v40  ;;  %6279 = vmatprep.subr.bf16.mxu0 %v6011_v18  ;;  %v5497_v35 = vpop.permute.xlu1 %5496  ;;  %9453 = vtanh.f32 %v5738_v0  ;;  %v8018_v6 = vld [vmem:[%s12200_s3 + $0x534] ss:$8 sps:$4 sm:$0xff]   ;;  %v8016_v18 = vld [vmem:[%s12200_s3 + $0x530] ss:$8 sps:$4 sm:$0xff]  }
 0xaab   : > { %v9434_v1 = vpop.eup %9433  ;;  %6412 = vmatprep.subr.bf16.mxu1 %v6013_v53  ;;  %6280 = vmatpush1.bf16.msra.mxu0 %v6010_v3  ;;  %v5492_v25 = vpop.permute.xlu0 %5491  ;;  %9455 = vtanh.f32 %v5871_v47  ;;  %v8013_v47 = vld [vmem:[%s12200_s3 + $0x520] ss:$8 sps:$4 sm:$0xff]   ;;  %v8024_v53 = vld [vmem:[%s12200_s3 + $0x554] ss:$8 sps:$4 sm:$0xff]  }
 0xaac   : > { %v9436_v15 = vpop.eup %9435  ;;  %6413 = vmatpush1.bf16.msra.mxu1 %v6012_v21  ;;  %v5743_v36 = vpop.f32.mrb[60].mxu0  ;;  %9457 = vtanh.f32 %v5740_v7  ;;  %v8010_v21 = vld [vmem:[%s12200_s3 + $0x510] ss:$8 sps:$4 sm:$0xff]   ;;  %v8019_v7 = vld [vmem:[%s12200_s3 + $0x540] ss:$8 sps:$4 sm:$0xff]  }
 0xaad   : > { %v9438_v30 = vpop.eup %9437  ;;  %v5744_v43 = vadd.f32 %v5743_v36, %v5492_v25  ;;  %v5876_v48 = vpop.f32.mrb[60].mxu1  ;;  %9459 = vtanh.f32 %v5873_v50  ;;  %v8027_v50 = vld [vmem:[%s12200_s3 + $0x564] ss:$8 sps:$4 sm:$0xff]   ;;  %v8031_v36 = vld [vmem:[%s12200_s3 + $0x580] ss:$8 sps:$4 sm:$0xff]  }
 0xaae   : > { %v5745_v61 = vpop.f32.mrb[61].mxu0  ;;  %v9440_v5 = vpop.eup %9439  ;;  %v5877_v37 = vadd.f32 %v5876_v48, %v5492_v25  ;;  %v6014_v27 = vpack.c.bf16 %v9438_v30, %v9430_v4  ;;  %v8021_v4 = vld [vmem:[%s12200_s3 + $0x544] ss:$8 sps:$4 sm:$0xff]   ;;  %v8036_v30 = vld [vmem:[%s12200_s3 + $0x594] ss:$8 sps:$4 sm:$0xff]  }
 0xaaf   : > { %v5746_v44 = vadd.f32 %v5745_v61, %v5492_v25  ;;  %v5878_v46 = vpop.f32.mrb[61].mxu1  ;;  %v5747_v2 = vpop.f32.mrb[62].mxu0  ;;  %9461 = vtanh.f32 %v5744_v43  ;;  %v6016_v8 = vpack.c.bf16 %v9440_v5, %v9432_v31  ;;  %v8022_v31 = vld [vmem:[%s12200_s3 + $0x550] ss:$8 sps:$4 sm:$0xff]  }
 0xab0   : > { %v9442_v29 = vpop.eup %9441  ;;  %v5879_v41 = vadd.f32 %v5878_v46, %v5492_v25  ;;  %v5748_v39 = vadd.f32 %v5747_v2, %v5497_v35  ;;  %v5880_v20 = vpop.f32.mrb[62].mxu1  ;;  %9463 = vtanh.f32 %v5877_v37  ;;  %v8033_v25 = vld [vmem:[%s12200_s3 + $0x584] ss:$8 sps:$4 sm:$0xff]   ;;  %v8034_v43 = vld [vmem:[%s12200_s3 + $0x590] ss:$8 sps:$4 sm:$0xff]  }
 0xab1   : > { %v5749_v12 = vpop.f32.mrb[63].mxu0  ;;  %v9444_v16 = vpop.eup %9443  ;;  %v5881_v62 = vadd.f32 %v5880_v20, %v5497_v35  ;;  %v6015_v59 = vpack.c.bf16 %v9442_v29, %v9434_v1  ;;  %9465 = vtanh.f32 %v5746_v44  ;;  %v8025_v1 = vld [vmem:[%s12200_s3 + $0x560] ss:$8 sps:$4 sm:$0xff]  }
 0xab2   : > { %v5882_v9 = vpop.f32.mrb[63].mxu1  ;;  %v9446_v42 = vpop.eup %9445  ;;  %v5750_v13 = vadd.f32 %v5749_v12, %v5497_v35  ;;  %v6017_v63 = vpack.c.bf16 %v9444_v16, %v9436_v15  ;;  %9467 = vtanh.f32 %v5879_v41  ;;  %v8028_v15 = vld [vmem:[%s12200_s3 + $0x570] ss:$8 sps:$4 sm:$0xff]  }
 0xab3   : > { %v9448_v49 = vpop.eup %9447  ;;  %v5883_v45 = vadd.f32 %v5882_v9, %v5497_v35  ;;  %6281 = vmatprep.subr.bf16.mxu0 %v6015_v59  ;;  %9469 = vtanh.f32 %v5748_v39  ;;  %v8030_v35 = vld [vmem:[%s12200_s3 + $0x574] ss:$8 sps:$4 sm:$0xff]   ;;  %v6055_v48 = vpop.permute.xlu1 %6054 }
 0xab4   : > { %v9450_v11 = vpop.eup %9449  ;;  %6414 = vmatprep.subr.bf16.mxu1 %v6017_v63  ;;  %6282 = vmatpush1.bf16.msra.mxu0 %v6014_v27  ;;  %9471 = vtanh.f32 %v5881_v62  ;;  %v6050_v61 = vpop.permute.xlu0 %6049 }
 0xab5   : > { %v9452_v26 = vpop.eup %9451  ;;  %6415 = vmatpush1.bf16.msra.mxu1 %v6016_v8  ;;  %9473 = vtanh.f32 %v5750_v13 }
 0xab6   : > { %v9454_v55 = vpop.eup %9453  ;;  %9475 = vtanh.f32 %v5883_v45 }
 0xab7   : > { %v9456_v22 = vpop.eup %9455  ;;  %v6018_v52 = vpack.c.bf16 %v9454_v55, %v9446_v42  ;;  %v11966_v5 = vpop.permute.xlu1 %6064 }
 0xab8   : > { %v9458_v40 = vpop.eup %9457  ;;  %v6020_v60 = vpack.c.bf16 %v9456_v22, %v9448_v49  ;;  %v6060_v37 = vpop.permute.xlu0 %6059 }
 0xab9   : > { %v9460_v14 = vpop.eup %9459  ;;  %v6019_v51 = vpack.c.bf16 %v9458_v40, %v9450_v11 }
 0xaba   : > { %v9462_v57 = vpop.eup %9461  ;;  %v6021_v54 = vpack.c.bf16 %v9460_v14, %v9452_v26 }
 0xabb   : > { %v9464_v56 = vpop.eup %9463  ;;  %6283 = vmatprep.subr.bf16.mxu0 %v6019_v51  ;;  %v11968_v44 = vpop.permute.xlu1 %6074 }
 0xabc   : > { %v9466_v28 = vpop.eup %9465  ;;  %6416 = vmatprep.subr.bf16.mxu1 %v6021_v54  ;;  %6284 = vmatpush1.bf16.msra.mxu0 %v6018_v52  ;;  %v11970_v46 = vpop.permute.xlu0 %6069 }
 0xabd   : > { %v9468_v24 = vpop.eup %9467  ;;  %6417 = vmatpush1.bf16.msra.mxu1 %v6020_v60 }
 0xabe   : > { %v9470_v23 = vpop.eup %9469 }
 0xabf   : > { %v9472_v17 = vpop.eup %9471  ;;  %v6022_v19 = vpack.c.bf16 %v9470_v23, %v9462_v57  ;;  %v11972_v2 = vpop.permute.xlu1 %6084 }
 0xac0   : > { %v9474_v34 = vpop.eup %9473  ;;  %v6024_v3 = vpack.c.bf16 %v9472_v17, %v9464_v56  ;;  %v11974_v27 = vpop.permute.xlu0 %6079 }
 0xac1   : > { %v9476_v38 = vpop.eup %9475  ;;  %v6023_v33 = vpack.c.bf16 %v9474_v34, %v9466_v28 }
 0xac2   : > { %v6025_v0 = vpack.c.bf16 %v9476_v38, %v9468_v24 }
 0xac3   : > { %6285 = vmatprep.subr.bf16.mxu0 %v6023_v33  ;;  %v11976_v29 = vpop.permute.xlu1 %6635 }
 0xac4   : > { %6418 = vmatprep.subr.bf16.mxu1 %v6025_v0  ;;  %6286 = vmatpush1.bf16.msra.mxu0 %v6022_v19  ;;  %v11978_v41 = vpop.permute.xlu0 %6089 }
 0xac5   : > { %6419 = vmatpush1.bf16.msra.mxu1 %v6024_v3 }
 0xac7   : > { %6300 = vmatmul.mubr.bf16.vlgmr.msra.gmra.mrb[64].mxu0 %v8007_v10  ;;  %v11980_v39 = vpop.permute.xlu1 %6645 }
 0xac8   : > { %6433 = vmatmul.mubr.bf16.vlgmr.msra.gmra.mrb[64].mxu1 %v8007_v10  ;;  %7699 = vmatprep.mubr.msk.bf16.mxu0 %vm1052_vm0, %v8012_v58  ;;  %v11982_v20 = vpop.permute.xlu0 %6640 }
 0xac9   : > { %7709 = vmatprep.mubr.msk.bf16.mxu1 %vm1052_vm0, %v8012_v58 }
 0xacb   : > { %v11984_v12 = vpop.permute.xlu1 %6650 }
 0xacc   : > { %v11986_v8 = vpop.permute.xlu0 %6094 }
 0xacf   : > { %6310 = vmatmul.mubr.bf16.gmra.mrb[68].mxu0 %v8010_v21  ;;  %v11988_v16 = vpop.permute.xlu1 %6655 }
 0xad0   : > { %6443 = vmatmul.mubr.bf16.gmra.mrb[68].mxu1 %v8010_v21  ;;  %7700 = vmatprep.mubr.msk.bf16.mxu0 %vm1052_vm0, %v8015_v32  ;;  %v11990_v62 = vpop.permute.xlu0 %6099 }
 0xad1   : > { %7710 = vmatprep.mubr.msk.bf16.mxu1 %vm1052_vm0, %v8015_v32 }
 0xad3   : > { %v11992_v9 = vpop.permute.xlu1 %6660 }
 0xad4   : > { %v11994_v59 = vpop.permute.xlu0 %6104 }
 0xad7   : > { %6320 = vmatmul.mubr.bf16.gmra.mrb[72].mxu0 %v8013_v47  ;;  %v11996_v56 = vpop.permute.xlu1 %6665 }
 0xad8   : > { %6453 = vmatmul.mubr.bf16.gmra.mrb[72].mxu1 %v8013_v47  ;;  %7701 = vmatprep.mubr.msk.bf16.mxu0 %vm1052_vm0, %v8018_v6  ;;  %v11998_v28 = vpop.permute.xlu0 %6109 }
 0xad9   : > { %7711 = vmatprep.mubr.msk.bf16.mxu1 %vm1052_vm0, %v8018_v6 }
 0xadf   : > { %6330 = vmatmul.mubr.bf16.gmra.mrb[76].mxu0 %v8016_v18 }
 0xae0   : > { %6463 = vmatmul.mubr.bf16.gmra.mrb[76].mxu1 %v8016_v18  ;;  %7702 = vmatprep.mubr.msk.bf16.mxu0 %vm1052_vm0, %v8021_v4 }
 0xae1   : > { %7712 = vmatprep.mubr.msk.bf16.mxu1 %vm1052_vm0, %v8021_v4 }
 0xae7   : > { %6340 = vmatmul.mubr.bf16.gmra.mrb[80].mxu0 %v8019_v7 }
 0xae8   : > { %6473 = vmatmul.mubr.bf16.gmra.mrb[80].mxu1 %v8019_v7  ;;  %7703 = vmatprep.mubr.msk.bf16.mxu0 %vm1052_vm0, %v8024_v53 }
 0xae9   : > { %7713 = vmatprep.mubr.msk.bf16.mxu1 %vm1052_vm0, %v8024_v53 }
 0xaef   : > { %6350 = vmatmul.mubr.bf16.gmra.mrb[84].mxu0 %v8022_v31 }
 0xaf0   : > { %6483 = vmatmul.mubr.bf16.gmra.mrb[84].mxu1 %v8022_v31  ;;  %7704 = vmatprep.mubr.msk.bf16.mxu0 %vm1052_vm0, %v8027_v50  ;;  %v12004_v31 = vpop.permute.xlu1 %6670 }
 0xaf1   : > { %7714 = vmatprep.mubr.msk.bf16.mxu1 %vm1052_vm0, %v8027_v50 }
 0xaf7   : > { %6360 = vmatmul.mubr.bf16.gmra.mrb[88].mxu0 %v8025_v1 }
 0xaf8   : > { %6493 = vmatmul.mubr.bf16.gmra.mrb[88].mxu1 %v8025_v1  ;;  %7705 = vmatprep.mubr.msk.bf16.mxu0 %vm1052_vm0, %v8030_v35  ;;  %v12006_v1 = vpop.permute.xlu0 %6114 }
 0xaf9   : > { %7715 = vmatprep.mubr.msk.bf16.mxu1 %vm1052_vm0, %v8030_v35 }
 0xaff   : > { %6370 = vmatmul.mubr.bf16.gmra.mrb[92].mxu0 %v8028_v15 }
 0xb00   : > { %6503 = vmatmul.mubr.bf16.gmra.mrb[92].mxu1 %v8028_v15  ;;  %7706 = vmatprep.mubr.msk.bf16.mxu0 %vm1052_vm0, %v8033_v25 }
 0xb01   : > { %7716 = vmatprep.mubr.msk.bf16.mxu1 %vm1052_vm0, %v8033_v25 }
 0xb07   : > { %6380 = vmatmul.mubr.bf16.gmra.mrb[96].mxu0 %v8031_v36 }
 0xb08   : > { %6513 = vmatmul.mubr.bf16.gmra.mrb[96].mxu1 %v8031_v36  ;;  %7707 = vmatprep.mubr.msk.bf16.mxu0 %vm1052_vm0, %v8036_v30 }
 0xb09   : > { %7717 = vmatprep.mubr.msk.bf16.mxu1 %vm1052_vm0, %v8036_v30 }
 0xb0f   : > { %6390 = vmatmul.mubr.bf16.gmra.mrb[100].mxu0 %v8034_v43 }
 0xb10   : > { %6523 = vmatmul.mubr.bf16.gmra.mrb[100].mxu1 %v8034_v43 }
 0xb9a   : > { %v6301_v42 = vpop.f32.mrb[64].mxu0 }
 0xb9b   : > { %v6302_v13 = vadd.f32 %v6301_v42, %v6050_v61  ;;  %v6434_v63 = vpop.f32.mrb[64].mxu1  ;;  %v6303_v49 = vpop.f32.mrb[65].mxu0 }
 0xb9c   : > { %v6435_v45 = vadd.f32 %v6434_v63, %v6050_v61  ;;  %v6304_v11 = vadd.f32 %v6303_v49, %v6050_v61  ;;  %v6436_v26 = vpop.f32.mrb[65].mxu1  ;;  %v6305_v55 = vpop.f32.mrb[66].mxu0 }
 0xb9d   : > { %9477 = vtanh.f32 %v6302_v13  ;;  %v6437_v22 = vadd.f32 %v6436_v26, %v6050_v61  ;;  %v6306_v52 = vadd.f32 %v6305_v55, %v6055_v48  ;;  %v6438_v40 = vpop.f32.mrb[66].mxu1  ;;  %v6307_v60 = vpop.f32.mrb[67].mxu0 }
 0xb9e   : > { %9479 = vtanh.f32 %v6435_v45  ;;  %v6439_v14 = vadd.f32 %v6438_v40, %v6055_v48  ;;  %v6440_v51 = vpop.f32.mrb[67].mxu1  ;;  %v6308_v57 = vadd.f32 %v6307_v60, %v6055_v48 }
 0xb9f   : > { %9481 = vtanh.f32 %v6304_v11  ;;  %v6441_v54 = vadd.f32 %v6440_v51, %v6055_v48 }
 0xba0   : > { %9483 = vtanh.f32 %v6437_v22 }
 0xba1   : > { %9485 = vtanh.f32 %v6306_v52 }
 0xba2   : > { %9487 = vtanh.f32 %v6439_v14  ;;  %v6311_v24 = vpop.f32.mrb[68].mxu0 }
 0xba3   : > { %9489 = vtanh.f32 %v6308_v57  ;;  %v6312_v23 = vadd.f32 %v6311_v24, %v6060_v37  ;;  %v6444_v17 = vpop.f32.mrb[68].mxu1  ;;  %v6313_v19 = vpop.f32.mrb[69].mxu0 }
 0xba4   : > { %9491 = vtanh.f32 %v6441_v54  ;;  %v6445_v34 = vadd.f32 %v6444_v17, %v6060_v37  ;;  %v6314_v3 = vadd.f32 %v6313_v19, %v6060_v37  ;;  %v6446_v38 = vpop.f32.mrb[69].mxu1  ;;  %v6315_v33 = vpop.f32.mrb[70].mxu0 }
 0xba5   : > { %9493 = vtanh.f32 %v6312_v23  ;;  %v6447_v0 = vadd.f32 %v6446_v38, %v6060_v37  ;;  %v6316_v10 = vadd.f32 %v6315_v33, %v11966_v5  ;;  %v6448_v58 = vpop.f32.mrb[70].mxu1  ;;  %v6317_v21 = vpop.f32.mrb[71].mxu0 }
 0xba6   : > { %9495 = vtanh.f32 %v6445_v34  ;;  %v6449_v32 = vadd.f32 %v6448_v58, %v11966_v5  ;;  %v6450_v47 = vpop.f32.mrb[71].mxu1  ;;  %v6318_v18 = vadd.f32 %v6317_v21, %v11966_v5  ;;  %v12025_v33 = vpop.permute.xlu1 %6675 }
 0xba7   : > { %v9478_v6 = vpop.eup %9477  ;;  %9497 = vtanh.f32 %v6314_v3  ;;  %v6451_v7 = vadd.f32 %v6450_v47, %v11966_v5  ;;  %v12028_v21 = vpop.permute.xlu0 %6119 }
 0xba8   : > { %v9480_v4 = vpop.eup %9479  ;;  %9499 = vtanh.f32 %v6447_v0  ;;  %v6733_v35 = vmul.f32 %v9478_v6, %v11976_v29 }
 0xba9   : > { %v9482_v53 = vpop.eup %9481  ;;  %9501 = vtanh.f32 %v6316_v10  ;;  %v6735_v15 = vmul.f32 %v9480_v4, %v11976_v29 }
 0xbaa   : > { %v9484_v50 = vpop.eup %9483  ;;  %9503 = vtanh.f32 %v6449_v32  ;;  %v6321_v25 = vpop.f32.mrb[72].mxu0  ;;  %v6734_v30 = vmul.f32 %v9482_v53, %v11976_v29 }
 0xbab   : > { %v9486_v36 = vpop.eup %9485  ;;  %v6736_v43 = vmul.f32 %v9484_v50, %v11976_v29  ;;  %9505 = vtanh.f32 %v6318_v18  ;;  %v6322_v48 = vadd.f32 %v6321_v25, %v11970_v46  ;;  %v6454_v61 = vpop.f32.mrb[72].mxu1 }
 0xbac   : > { %v6323_v5 = vpop.f32.mrb[73].mxu0  ;;  %v9488_v37 = vpop.eup %9487  ;;  %v6737_v42 = vmul.f32 %v9486_v36, %v11982_v20  ;;  %9507 = vtanh.f32 %v6451_v7  ;;  %v6455_v13 = vadd.f32 %v6454_v61, %v11970_v46 }
 0xbad   : > { %v6324_v63 = vadd.f32 %v6323_v5, %v11970_v46  ;;  %v6456_v49 = vpop.f32.mrb[73].mxu1  ;;  %v6325_v45 = vpop.f32.mrb[74].mxu0  ;;  %v6739_v26 = vmul.f32 %v9488_v37, %v11982_v20  ;;  %9509 = vtanh.f32 %v6322_v48 }
 0xbae   : > { %v9490_v11 = vpop.eup %9489  ;;  %v6457_v29 = vadd.f32 %v6456_v49, %v11970_v46  ;;  %v6326_v55 = vadd.f32 %v6325_v45, %v11968_v44  ;;  %v6458_v22 = vpop.f32.mrb[74].mxu1  ;;  %v6813_v60 = vadd.f32 %v6737_v42, %v6733_v35  ;;  %9511 = vtanh.f32 %v6455_v13 }
 0xbaf   : > { %v6327_v52 = vpop.f32.mrb[75].mxu0  ;;  %v9492_v40 = vpop.eup %9491  ;;  %v6738_v14 = vmul.f32 %v9490_v11, %v11982_v20  ;;  %v6459_v51 = vadd.f32 %v6458_v22, %v11968_v44  ;;  %v6863_v24 = vadd.f32 %v6739_v26, %v6735_v15  ;;  %9513 = vtanh.f32 %v6324_v63 }
 0xbb0   : > { %v6460_v57 = vpop.f32.mrb[75].mxu1  ;;  %v9494_v54 = vpop.eup %9493  ;;  %v6740_v23 = vmul.f32 %v9492_v40, %v11982_v20  ;;  %v6328_v17 = vadd.f32 %v6327_v52, %v11968_v44  ;;  %9515 = vtanh.f32 %v6457_v29 }
 0xbb1   : > { %v9496_v46 = vpop.eup %9495  ;;  %v6838_v19 = vadd.f32 %v6738_v14, %v6734_v30  ;;  %v6741_v34 = vmul.f32 %v9494_v54, %v11980_v39  ;;  %v6461_v3 = vadd.f32 %v6460_v57, %v11968_v44  ;;  %9517 = vtanh.f32 %v6326_v55 }
 0xbb2   : > { %v9498_v38 = vpop.eup %9497  ;;  %v6888_v0 = vadd.f32 %v6740_v23, %v6736_v43  ;;  %v6743_v10 = vmul.f32 %v9496_v46, %v11980_v39  ;;  %9519 = vtanh.f32 %v6459_v51  ;;  %v6331_v47 = vpop.f32.mrb[76].mxu0 }
 0xbb3   : > { %v9500_v58 = vpop.eup %9499  ;;  %v6814_v20 = vadd.f32 %v6813_v60, %v6741_v34  ;;  %v6742_v32 = vmul.f32 %v9498_v38, %v11980_v39  ;;  %9521 = vtanh.f32 %v6328_v17  ;;  %v6332_v44 = vadd.f32 %v6331_v47, %v11974_v27  ;;  %v6464_v7 = vpop.f32.mrb[76].mxu1 }
 0xbb4   : > { %v9502_v6 = vpop.eup %9501  ;;  %v6864_v18 = vadd.f32 %v6863_v24, %v6743_v10  ;;  %v6744_v4 = vmul.f32 %v9500_v58, %v11980_v39  ;;  %v6333_v53 = vpop.f32.mrb[77].mxu0  ;;  %9523 = vtanh.f32 %v6461_v3  ;;  %v6465_v25 = vadd.f32 %v6464_v7, %v11974_v27 }
 0xbb5   : > { %v9504_v50 = vpop.eup %9503  ;;  %v6839_v35 = vadd.f32 %v6838_v19, %v6742_v32  ;;  %v6745_v15 = vmul.f32 %v9502_v6, %v11984_v12  ;;  %v6466_v36 = vpop.f32.mrb[77].mxu1  ;;  %9525 = vtanh.f32 %v6332_v44  ;;  %v6334_v39 = vadd.f32 %v6333_v53, %v11974_v27 }
 0xbb6   : > { %v6335_v30 = vpop.f32.mrb[78].mxu0  ;;  %v9506_v43 = vpop.eup %9505  ;;  %v6889_v48 = vadd.f32 %v6888_v0, %v6744_v4  ;;  %v6747_v61 = vmul.f32 %v9504_v50, %v11984_v12  ;;  %9527 = vtanh.f32 %v6465_v25  ;;  %v6467_v49 = vadd.f32 %v6466_v36, %v11974_v27 }
 0xbb7   : > { %v6468_v5 = vpop.f32.mrb[78].mxu1  ;;  %v6337_v37 = vpop.f32.mrb[79].mxu0  ;;  %v6815_v13 = vadd.f32 %v6814_v20, %v6745_v15  ;;  %v6746_v63 = vmul.f32 %v9506_v43, %v11984_v12  ;;  %9529 = vtanh.f32 %v6334_v39  ;;  %v6336_v55 = vadd.f32 %v6335_v30, %v11972_v2 }
 0xbb8   : > { %v9508_v42 = vpop.eup %9507  ;;  %v6470_v45 = vpop.f32.mrb[79].mxu1  ;;  %v6865_v26 = vadd.f32 %v6864_v18, %v6747_v61  ;;  %9531 = vtanh.f32 %v6467_v49  ;;  %v6469_v60 = vadd.f32 %v6468_v5, %v11972_v2  ;;  %v6338_v54 = vadd.f32 %v6337_v37, %v11972_v2 }
 0xbb9   : > { %v9510_v11 = vpop.eup %9509  ;;  %v6748_v29 = vmul.f32 %v9508_v42, %v11984_v12  ;;  %v6840_v52 = vadd.f32 %v6839_v35, %v6746_v63  ;;  %v12043_v51 = vpop.permute.xlu1 %6680  ;;  %9533 = vtanh.f32 %v6336_v55  ;;  %v6471_v46 = vadd.f32 %v6470_v45, %v11972_v2 }
 0xbba   : > { %v9512_v22 = vpop.eup %9511  ;;  %v6749_v40 = vmul.f32 %v9510_v11, %v11988_v16  ;;  %v12047_v24 = vpop.permute.xlu0 %6124  ;;  %9535 = vtanh.f32 %v6469_v60 }
 0xbbb   : > { %v9514_v14 = vpop.eup %9513  ;;  %v6890_v57 = vadd.f32 %v6889_v48, %v6748_v29  ;;  %v6751_v27 = vmul.f32 %v9512_v22, %v11988_v16  ;;  %v6341_v19 = vpop.f32.mrb[80].mxu0  ;;  %9537 = vtanh.f32 %v6338_v54 }
 0xbbc   : > { %v9516_v12 = vpop.eup %9515  ;;  %v6816_v23 = vadd.f32 %v6815_v13, %v6749_v40  ;;  %v6750_v17 = vmul.f32 %v9514_v14, %v11988_v16  ;;  %v6342_v0 = vadd.f32 %v6341_v19, %v11978_v41  ;;  %v6474_v10 = vpop.f32.mrb[80].mxu1  ;;  %9539 = vtanh.f32 %v6471_v46 }
 0xbbd   : > { %v9518_v34 = vpop.eup %9517  ;;  %v6866_v3 = vadd.f32 %v6865_v26, %v6751_v27  ;;  %v6752_v38 = vmul.f32 %v9516_v12, %v11988_v16  ;;  %v6343_v58 = vpop.f32.mrb[81].mxu0  ;;  %v6475_v6 = vadd.f32 %v6474_v10, %v11978_v41 }
 0xbbe   : > { %v9520_v20 = vpop.eup %9519  ;;  %v6841_v32 = vadd.f32 %v6840_v52, %v6750_v17  ;;  %v6753_v47 = vmul.f32 %v9518_v34, %v11992_v9  ;;  %v6476_v18 = vpop.f32.mrb[81].mxu1  ;;  %9541 = vtanh.f32 %v6342_v0  ;;  %v6344_v16 = vadd.f32 %v6343_v58, %v11978_v41 }
 0xbbf   : > { %v6345_v4 = vpop.f32.mrb[82].mxu0  ;;  %v9522_v2 = vpop.eup %9521  ;;  %v6891_v44 = vadd.f32 %v6890_v57, %v6752_v38  ;;  %v6755_v7 = vmul.f32 %v9520_v20, %v11992_v9  ;;  %9543 = vtanh.f32 %v6475_v6  ;;  %v6477_v36 = vadd.f32 %v6476_v18, %v11978_v41 }
 0xbc0   : > { %v6478_v53 = vpop.f32.mrb[82].mxu1  ;;  %v6347_v50 = vpop.f32.mrb[83].mxu0  ;;  %v6817_v15 = vadd.f32 %v6816_v23, %v6753_v47  ;;  %v6754_v25 = vmul.f32 %v9522_v2, %v11992_v9  ;;  %9545 = vtanh.f32 %v6344_v16  ;;  %v6346_v39 = vadd.f32 %v6345_v4, %v11986_v8 }
 0xbc1   : > { %v9524_v35 = vpop.eup %9523  ;;  %v6480_v30 = vpop.f32.mrb[83].mxu1  ;;  %v6867_v48 = vadd.f32 %v6866_v3, %v6755_v7  ;;  %9547 = vtanh.f32 %v6477_v36  ;;  %v6479_v13 = vadd.f32 %v6478_v53, %v11986_v8  ;;  %v6348_v11 = vadd.f32 %v6347_v50, %v11986_v8 }
 0xbc2   : > { %v9526_v43 = vpop.eup %9525  ;;  %v6756_v61 = vmul.f32 %v9524_v35, %v11992_v9  ;;  %v6842_v37 = vadd.f32 %v6841_v32, %v6754_v25  ;;  %v12063_v49 = vpop.permute.xlu1 %6685  ;;  %9549 = vtanh.f32 %v6346_v39  ;;  %v6481_v22 = vadd.f32 %v6480_v30, %v11986_v8 }
 0xbc3   : > { %v9528_v5 = vpop.eup %9527  ;;  %v6757_v42 = vmul.f32 %v9526_v43, %v11996_v56  ;;  %v12067_v26 = vpop.permute.xlu0 %6129  ;;  %9551 = vtanh.f32 %v6479_v13 }
 0xbc4   : > { %v9530_v63 = vpop.eup %9529  ;;  %v6892_v45 = vadd.f32 %v6891_v44, %v6756_v61  ;;  %v6759_v41 = vmul.f32 %v9528_v5, %v11996_v56  ;;  %v6351_v52 = vpop.f32.mrb[84].mxu0  ;;  %9553 = vtanh.f32 %v6348_v11 }
 0xbc5   : > { %v9532_v9 = vpop.eup %9531  ;;  %v6818_v29 = vadd.f32 %v6817_v15, %v6757_v42  ;;  %v6758_v55 = vmul.f32 %v9530_v63, %v11996_v56  ;;  %v6352_v57 = vadd.f32 %v6351_v52, %v11990_v62  ;;  %v6484_v27 = vpop.f32.mrb[84].mxu1  ;;  %9555 = vtanh.f32 %v6481_v22 }
 0xbc6   : > { %v9534_v40 = vpop.eup %9533  ;;  %v6868_v60 = vadd.f32 %v6867_v48, %v6759_v41  ;;  %v6760_v14 = vmul.f32 %v9532_v9, %v11996_v56  ;;  %v6353_v54 = vpop.f32.mrb[85].mxu0  ;;  %v6485_v46 = vadd.f32 %v6484_v27, %v11990_v62 }
 0xbc7   : > { %v9536_v12 = vpop.eup %9535  ;;  %v6843_v23 = vadd.f32 %v6842_v37, %v6758_v55  ;;  %v6761_v17 = vmul.f32 %v9534_v40, %v12004_v31  ;;  %v6486_v19 = vpop.f32.mrb[85].mxu1  ;;  %9557 = vtanh.f32 %v6352_v57  ;;  %v6354_v56 = vadd.f32 %v6353_v54, %v11990_v62 }
 0xbc8   : > { %v6355_v34 = vpop.f32.mrb[86].mxu0  ;;  %v9538_v8 = vpop.eup %9537  ;;  %v6893_v3 = vadd.f32 %v6892_v45, %v6760_v14  ;;  %v6763_v38 = vmul.f32 %v9536_v12, %v12004_v31  ;;  %9559 = vtanh.f32 %v6485_v46  ;;  %v6487_v47 = vadd.f32 %v6486_v19, %v11990_v62 }
 0xbc9   : > { %v6488_v0 = vpop.f32.mrb[86].mxu1  ;;  %v6357_v10 = vpop.f32.mrb[87].mxu0  ;;  %v6819_v20 = vadd.f32 %v6818_v29, %v6761_v17  ;;  %v6762_v32 = vmul.f32 %v9538_v8, %v12004_v31  ;;  %9561 = vtanh.f32 %v6354_v56  ;;  %v6356_v44 = vadd.f32 %v6355_v34, %v11994_v59 }
 0xbca   : > { %v9540_v58 = vpop.eup %9539  ;;  %v6490_v6 = vpop.f32.mrb[87].mxu1  ;;  %v6869_v4 = vadd.f32 %v6868_v60, %v6763_v38  ;;  %9563 = vtanh.f32 %v6487_v47  ;;  %v6489_v50 = vadd.f32 %v6488_v0, %v11994_v59  ;;  %v6358_v36 = vadd.f32 %v6357_v10, %v11994_v59 }
 0xbcb   : > { %v9542_v18 = vpop.eup %9541  ;;  %v6764_v2 = vmul.f32 %v9540_v58, %v12004_v31  ;;  %v6844_v16 = vadd.f32 %v6843_v23, %v6762_v32  ;;  %v12083_v15 = vpop.permute.xlu1 %6690  ;;  %9565 = vtanh.f32 %v6356_v44  ;;  %v6491_v61 = vadd.f32 %v6490_v6, %v11994_v59 }
 0xbcc   : > { %v9544_v7 = vpop.eup %9543  ;;  %v6765_v53 = vmul.f32 %v9542_v18, %v12025_v33  ;;  %v12087_v30 = vpop.permute.xlu0 %6134  ;;  %9567 = vtanh.f32 %v6489_v50 }
 0xbcd   : > { %v9546_v35 = vpop.eup %9545  ;;  %v6894_v25 = vadd.f32 %v6893_v3, %v6764_v2  ;;  %v6767_v62 = vmul.f32 %v9544_v7, %v12025_v33  ;;  %v6361_v39 = vpop.f32.mrb[88].mxu0  ;;  %9569 = vtanh.f32 %v6358_v36 }
 0xbce   : > { %v9548_v31 = vpop.eup %9547  ;;  %v6820_v43 = vadd.f32 %v6819_v20, %v6765_v53  ;;  %v6766_v48 = vmul.f32 %v9546_v35, %v12025_v33  ;;  %v6362_v13 = vadd.f32 %v6361_v39, %v11998_v28  ;;  %v6494_v63 = vpop.f32.mrb[88].mxu1  ;;  %9571 = vtanh.f32 %v6491_v61 }
 0xbcf   : > { %v9550_v5 = vpop.eup %9549  ;;  %v6870_v37 = vadd.f32 %v6869_v4, %v6767_v62  ;;  %v6768_v42 = vmul.f32 %v9548_v31, %v12025_v33  ;;  %v6363_v45 = vpop.f32.mrb[89].mxu0  ;;  %v6495_v29 = vadd.f32 %v6494_v63, %v11998_v28 }
 0xbd0   : > { %v9552_v41 = vpop.eup %9551  ;;  %v6845_v11 = vadd.f32 %v6844_v16, %v6766_v48  ;;  %v6769_v9 = vmul.f32 %v9550_v5, %v12043_v51  ;;  %v6496_v55 = vpop.f32.mrb[89].mxu1  ;;  %9573 = vtanh.f32 %v6362_v13  ;;  %v6364_v33 = vadd.f32 %v6363_v45, %v11998_v28 }
 0xbd1   : > { %v6365_v22 = vpop.f32.mrb[90].mxu0  ;;  %v9554_v59 = vpop.eup %9553  ;;  %v6895_v52 = vadd.f32 %v6894_v25, %v6768_v42  ;;  %v6771_v40 = vmul.f32 %v9552_v41, %v12043_v51  ;;  %9575 = vtanh.f32 %v6495_v29  ;;  %v6497_v12 = vadd.f32 %v6496_v55, %v11998_v28 }
 0xbd2   : > { %v6498_v60 = vpop.f32.mrb[90].mxu1  ;;  %v6367_v14 = vpop.f32.mrb[91].mxu0  ;;  %v6821_v27 = vadd.f32 %v6820_v43, %v6769_v9  ;;  %v6770_v54 = vmul.f32 %v9554_v59, %v12043_v51  ;;  %9577 = vtanh.f32 %v6364_v33  ;;  %v6366_v34 = vadd.f32 %v6365_v22, %v12006_v1 }
 0xbd3   : > { %v9556_v57 = vpop.eup %9555  ;;  %v6500_v23 = vpop.f32.mrb[91].mxu1  ;;  %v6871_v46 = vadd.f32 %v6870_v37, %v6771_v40  ;;  %9579 = vtanh.f32 %v6497_v12  ;;  %v6499_v56 = vadd.f32 %v6498_v60, %v12006_v1  ;;  %v6368_v20 = vadd.f32 %v6367_v14, %v12006_v1 }
 0xbd4   : > { %v9558_v17 = vpop.eup %9557  ;;  %v6772_v19 = vmul.f32 %v9556_v57, %v12043_v51  ;;  %v6846_v3 = vadd.f32 %v6845_v11, %v6770_v54  ;;  %v12103_v10 = vpop.permute.xlu1 %6695  ;;  %9581 = vtanh.f32 %v6366_v34  ;;  %v6501_v18 = vadd.f32 %v6500_v23, %v12006_v1 }
 0xbd5   : > { %v9560_v8 = vpop.eup %9559  ;;  %v6773_v38 = vmul.f32 %v9558_v17, %v12063_v49  ;;  %v12107_v32 = vpop.permute.xlu0 %6139  ;;  %9583 = vtanh.f32 %v6499_v56 }
 0xbd6   : > { %v9562_v0 = vpop.eup %9561  ;;  %v6896_v58 = vadd.f32 %v6895_v52, %v6772_v19  ;;  %v6775_v28 = vmul.f32 %v9560_v8, %v12063_v49  ;;  %v6371_v4 = vpop.f32.mrb[92].mxu0  ;;  %9585 = vtanh.f32 %v6368_v20 }
 0xbd7   : > { %v9564_v51 = vpop.eup %9563  ;;  %v6822_v47 = vadd.f32 %v6821_v27, %v6773_v38  ;;  %v6774_v6 = vmul.f32 %v9562_v0, %v12063_v49  ;;  %v6372_v16 = vadd.f32 %v6371_v4, %v12028_v21  ;;  %v6504_v53 = vpop.f32.mrb[92].mxu1  ;;  %9587 = vtanh.f32 %v6501_v18 }
 0xbd8   : > { %v9566_v2 = vpop.eup %9565  ;;  %v6872_v44 = vadd.f32 %v6871_v46, %v6775_v28  ;;  %v6776_v7 = vmul.f32 %v9564_v51, %v12063_v49  ;;  %v6373_v50 = vpop.f32.mrb[93].mxu0  ;;  %v6505_v36 = vadd.f32 %v6504_v53, %v12028_v21 }
 0xbd9   : > { %v9568_v35 = vpop.eup %9567  ;;  %v6847_v25 = vadd.f32 %v6846_v3, %v6774_v6  ;;  %v6777_v62 = vmul.f32 %v9566_v2, %v12083_v15  ;;  %v6506_v31 = vpop.f32.mrb[93].mxu1  ;;  %9589 = vtanh.f32 %v6372_v16  ;;  %v6374_v49 = vadd.f32 %v6373_v50, %v12028_v21 }
 0xbda   : > { %v6375_v43 = vpop.f32.mrb[94].mxu0  ;;  %v9570_v1 = vpop.eup %9569  ;;  %v6897_v48 = vadd.f32 %v6896_v58, %v6776_v7  ;;  %v6779_v61 = vmul.f32 %v9568_v35, %v12083_v15  ;;  %9591 = vtanh.f32 %v6505_v36  ;;  %v6507_v63 = vadd.f32 %v6506_v31, %v12028_v21 }
 0xbdb   : > { %v6508_v39 = vpop.f32.mrb[94].mxu1  ;;  %v6377_v5 = vpop.f32.mrb[95].mxu0  ;;  %v6823_v42 = vadd.f32 %v6822_v47, %v6777_v62  ;;  %v6778_v13 = vmul.f32 %v9570_v1, %v12083_v15  ;;  %9593 = vtanh.f32 %v6374_v49  ;;  %v6376_v29 = vadd.f32 %v6375_v43, %v12047_v24 }
 0xbdc   : > { %v9572_v37 = vpop.eup %9571  ;;  %v6510_v45 = vpop.f32.mrb[95].mxu1  ;;  %v6873_v11 = vadd.f32 %v6872_v44, %v6779_v61  ;;  %9595 = vtanh.f32 %v6507_v63  ;;  %v6509_v52 = vadd.f32 %v6508_v39, %v12047_v24  ;;  %v6378_v14 = vadd.f32 %v6377_v5, %v12047_v24 }
 0xbdd   : > { %v9574_v41 = vpop.eup %9573  ;;  %v6780_v9 = vmul.f32 %v9572_v37, %v12083_v15  ;;  %v6848_v22 = vadd.f32 %v6847_v25, %v6778_v13  ;;  %v12123_v33 = vpop.permute.xlu0 %6144  ;;  %9597 = vtanh.f32 %v6376_v29  ;;  %v6511_v12 = vadd.f32 %v6510_v45, %v12047_v24 }
 0xbde   : > { %v9576_v55 = vpop.eup %9575  ;;  %v6781_v59 = vmul.f32 %v9574_v41, %v12103_v10  ;;  %v6701_v57 = vpop.permute.xlu1 %6700  ;;  %9599 = vtanh.f32 %v6509_v52 }
 0xbdf   : > { %v9578_v40 = vpop.eup %9577  ;;  %v6898_v60 = vadd.f32 %v6897_v48, %v6780_v9  ;;  %v6783_v21 = vmul.f32 %v9576_v55, %v12103_v10  ;;  %v6381_v23 = vpop.f32.mrb[96].mxu0  ;;  %9601 = vtanh.f32 %v6378_v14 }
 0xbe0   : > { %v9580_v15 = vpop.eup %9579  ;;  %v6824_v27 = vadd.f32 %v6823_v42, %v6781_v59  ;;  %v6782_v54 = vmul.f32 %v9578_v40, %v12103_v10  ;;  %v6382_v34 = vadd.f32 %v6381_v23, %v12067_v26  ;;  %v6514_v8 = vpop.f32.mrb[96].mxu1  ;;  %9603 = vtanh.f32 %v6511_v12 }
 0xbe1   : > { %v9582_v17 = vpop.eup %9581  ;;  %v6874_v46 = vadd.f32 %v6873_v11, %v6783_v21  ;;  %v6784_v19 = vmul.f32 %v9580_v15, %v12103_v10  ;;  %v6383_v3 = vpop.f32.mrb[97].mxu0  ;;  %v6515_v58 = vadd.f32 %v6514_v8, %v12067_v26 }
 0xbe2   : > { %v9584_v38 = vpop.eup %9583  ;;  %v6849_v56 = vadd.f32 %v6848_v22, %v6782_v54  ;;  %v6785_v0 = vmul.f32 %v9582_v17, %v6701_v57  ;;  %v6516_v28 = vpop.f32.mrb[97].mxu1  ;;  %9605 = vtanh.f32 %v6382_v34  ;;  %v6384_v6 = vadd.f32 %v6383_v3, %v12067_v26 }
 0xbe3   : > { %v6385_v20 = vpop.f32.mrb[98].mxu0  ;;  %v9586_v51 = vpop.eup %9585  ;;  %v6899_v24 = vadd.f32 %v6898_v60, %v6784_v19  ;;  %v6787_v47 = vmul.f32 %v9584_v38, %v6701_v57  ;;  %9607 = vtanh.f32 %v6515_v58  ;;  %v6517_v7 = vadd.f32 %v6516_v28, %v12067_v26 }
 0xbe4   : > { %v6518_v10 = vpop.f32.mrb[98].mxu1  ;;  %v6387_v18 = vpop.f32.mrb[99].mxu0  ;;  %v6825_v2 = vadd.f32 %v6824_v27, %v6785_v0  ;;  %v6786_v44 = vmul.f32 %v9586_v51, %v6701_v57  ;;  %9609 = vtanh.f32 %v6384_v6  ;;  %v6386_v62 = vadd.f32 %v6385_v20, %v12087_v30 }
 0xbe5   : > { %v9588_v4 = vpop.eup %9587  ;;  %v6520_v16 = vpop.f32.mrb[99].mxu1  ;;  %v6875_v35 = vadd.f32 %v6874_v46, %v6787_v47  ;;  %9611 = vtanh.f32 %v6517_v7  ;;  %v6519_v1 = vadd.f32 %v6518_v10, %v12087_v30  ;;  %v6388_v26 = vadd.f32 %v6387_v18, %v12087_v30 }
 0xbe6   : > { %v9590_v53 = vpop.eup %9589  ;;  %v6706_v50 = vpop.permute.xlu0 %6705  ;;  %v6788_v25 = vmul.f32 %v9588_v4, %v6701_v57  ;;  %v6850_v31 = vadd.f32 %v6849_v56, %v6786_v44  ;;  %9613 = vtanh.f32 %v6386_v62  ;;  %v6521_v13 = vadd.f32 %v6520_v16, %v12087_v30 }
 0xbe7   : > { %v9592_v36 = vpop.eup %9591  ;;  %v6789_v43 = vmul.f32 %v9590_v53, %v6706_v50  ;;  %v6711_v5 = vpop.permute.xlu1 %6710  ;;  %9615 = vtanh.f32 %v6519_v1 }
 0xbe8   : > { %v9594_v48 = vpop.eup %9593  ;;  %v6900_v61 = vadd.f32 %v6899_v24, %v6788_v25  ;;  %v6791_v49 = vmul.f32 %v9592_v36, %v6706_v50  ;;  %v6391_v63 = vpop.f32.mrb[100].mxu0  ;;  %9617 = vtanh.f32 %v6388_v26 }
 0xbe9   : > { %v9596_v39 = vpop.eup %9595  ;;  %v6826_v37 = vadd.f32 %v6825_v2, %v6789_v43  ;;  %v6790_v42 = vmul.f32 %v9594_v48, %v6706_v50  ;;  %v6392_v9 = vadd.f32 %v6391_v63, %v12107_v32  ;;  %v6524_v29 = vpop.f32.mrb[100].mxu1  ;;  %9619 = vtanh.f32 %v6521_v13 }
 0xbea   : > { %v9598_v45 = vpop.eup %9597  ;;  %v6876_v41 = vadd.f32 %v6875_v35, %v6791_v49  ;;  %v6792_v11 = vmul.f32 %v9596_v39, %v6706_v50  ;;  %v6393_v55 = vpop.f32.mrb[101].mxu0  ;;  %v6525_v40 = vadd.f32 %v6524_v29, %v12107_v32 }
 0xbeb   : > { %v9600_v22 = vpop.eup %9599  ;;  %v6851_v59 = vadd.f32 %v6850_v31, %v6790_v42  ;;  %v6793_v52 = vmul.f32 %v9598_v45, %v6711_v5  ;;  %v6526_v60 = vpop.f32.mrb[101].mxu1  ;;  %9621 = vtanh.f32 %v6392_v9  ;;  %v6394_v57 = vadd.f32 %v6393_v55, %v12107_v32 }
 0xbec   : > { %v6395_v21 = vpop.f32.mrb[102].mxu0  ;;  %v9602_v14 = vpop.eup %9601  ;;  %v6901_v15 = vadd.f32 %v6900_v61, %v6792_v11  ;;  %v6795_v30 = vmul.f32 %v9600_v22, %v6711_v5  ;;  %9623 = vtanh.f32 %v6525_v40  ;;  %v6527_v46 = vadd.f32 %v6526_v60, %v12107_v32 }
 0xbed   : > { %v6528_v27 = vpop.f32.mrb[102].mxu1  ;;  %v6397_v54 = vpop.f32.mrb[103].mxu0  ;;  %v6827_v23 = vadd.f32 %v6826_v37, %v6793_v52  ;;  %v6794_v17 = vmul.f32 %v9602_v14, %v6711_v5  ;;  %9625 = vtanh.f32 %v6394_v57  ;;  %v6396_v56 = vadd.f32 %v6395_v21, %v12123_v33 }
 0xbee   : > { %v9604_v12 = vpop.eup %9603  ;;  %v6530_v19 = vpop.f32.mrb[103].mxu1  ;;  %v6877_v3 = vadd.f32 %v6876_v41, %v6795_v30  ;;  %9627 = vtanh.f32 %v6527_v46  ;;  %v6529_v20 = vadd.f32 %v6528_v27, %v12123_v33  ;;  %v6398_v32 = vadd.f32 %v6397_v54, %v12123_v33 }
 0xbef   : > { %v9606_v34 = vpop.eup %9605  ;;  %v6716_v8 = vpop.permute.xlu0 %6715  ;;  %v6796_v38 = vmul.f32 %v9604_v12, %v6711_v5  ;;  %v6852_v58 = vadd.f32 %v6851_v59, %v6794_v17  ;;  %9629 = vtanh.f32 %v6396_v56  ;;  %v6531_v4 = vadd.f32 %v6530_v19, %v12123_v33 }
 0xbf0   : > { %v9608_v0 = vpop.eup %9607  ;;  %v6797_v28 = vmul.f32 %v9606_v34, %v6716_v8  ;;  %9631 = vtanh.f32 %v6529_v20  ;;  %v6721_v44 = vpop.permute.xlu1 %6720  ;;  %v9702_v20 = vmov 1966171168  }
 0xbf1   : > { %v9610_v51 = vpop.eup %9609  ;;  %v6902_v24 = vadd.f32 %v6901_v15, %v6796_v38  ;;  %v6799_v47 = vmul.f32 %v9608_v0, %v6716_v8  ;;  %9633 = vtanh.f32 %v6398_v32 }
 0xbf2   : > { %v9612_v6 = vpop.eup %9611  ;;  %v6828_v10 = vadd.f32 %v6827_v23, %v6797_v28  ;;  %v6798_v18 = vmul.f32 %v9610_v51, %v6716_v8  ;;  %9635 = vtanh.f32 %v6531_v4  ;;  %v6934_v51 = vunpack.c.l.s4 %v9702_v20 }
 0xbf3   : > { %v9614_v2 = vpop.eup %9613  ;;  %v6878_v7 = vadd.f32 %v6877_v3, %v6799_v47  ;;  %v6800_v16 = vmul.f32 %v9612_v6, %v6716_v8  ;;  %v6726_v61 = vpop.permute.xlu0 %6725 }
 0xbf4   : > { %v9616_v53 = vpop.eup %9615  ;;  %v6853_v50 = vadd.f32 %v6852_v58, %v6798_v18  ;;  %v6801_v35 = vmul.f32 %v9614_v2, %v6721_v44  ;;  %v6731_v9 = vpop.permute.xlu1 %6730  ;;  %v12371_v2 = vld [vmem:[#allocation6_spill] sm:$0xff] }
 0xbf5   : > { %v9618_v25 = vpop.eup %9617  ;;  %v6903_v62 = vadd.f32 %v6902_v24, %v6800_v16  ;;  %v6803_v36 = vmul.f32 %v9616_v53, %v6721_v44 }
 0xbf6   : > { %v9620_v31 = vpop.eup %9619  ;;  %v6829_v43 = vadd.f32 %v6828_v10, %v6801_v35  ;;  %v6802_v1 = vmul.f32 %v9618_v25, %v6721_v44 }
 0xbf7   : > { %v9622_v48 = vpop.eup %9621  ;;  %v6879_v49 = vadd.f32 %v6878_v7, %v6803_v36  ;;  %v6804_v26 = vmul.f32 %v9620_v31, %v6721_v44  ;;  %v6917_v24 = vpop.permute.xlu0 %6916  ;;  %v12372_v44 = vsub.s32 0, %v12371_v2 }
 0xbf8   : > { %v9624_v33 = vpop.eup %9623  ;;  %v6854_v39 = vadd.f32 %v6853_v50, %v6802_v1  ;;  %v6805_v5 = vmul.f32 %v9622_v48, %v6726_v61  ;;  %v6935_v50 = vunpack.c.0.s8 %v6934_v51 }
 0xbf9   : > { %v9626_v37 = vpop.eup %9625  ;;  %v6904_v42 = vadd.f32 %v6903_v62, %v6804_v26  ;;  %v6807_v13 = vmul.f32 %v9624_v33, %v6726_v61  ;;  %v6922_v7 = vrot.slane %v6917_v24, %v12372_v44 }
 0xbfa   : > { %v9628_v63 = vpop.eup %9627  ;;  %v6830_v45 = vadd.f32 %v6829_v43, %v6805_v5  ;;  %v6806_v41 = vmul.f32 %v9626_v37, %v6726_v61  ;;  %v6938_v48 = vsub.s32 %v6935_v50, %v12371_v2  ;;  %v12373_v37 = vlaneseq }
 0xbfb   : > { %v9630_v11 = vpop.eup %9629  ;;  %v6880_v29 = vadd.f32 %v6879_v49, %v6807_v13  ;;  %v6808_v55 = vmul.f32 %v9628_v63, %v6726_v61 }
 0xbfc   : > { %v9632_v22 = vpop.eup %9631  ;;  %v6855_v59 = vadd.f32 %v6854_v39, %v6806_v41  ;;  %v6809_v52 = vmul.f32 %v9630_v11, %v6731_v9  ;;  %vm6958_vm1 = vcmp.lt.s32.totalorder %v12373_v37, 512 }
 0xbfd   : > { %v9634_v40 = vpop.eup %9633  ;;  %v6905_v60 = vadd.f32 %v6904_v42, %v6808_v55  ;;  %v6811_v21 = vmul.f32 %v9632_v22, %v6731_v9 }
 0xbfe   : > { %v9636_v14 = vpop.eup %9635  ;;  %v6831_v15 = vadd.f32 %v6830_v45, %v6809_v52  ;;  %v6810_v30 = vmul.f32 %v9634_v40, %v6731_v9 }
 0xbff   : > { %v6881_v57 = vadd.f32 %v6880_v29, %v6811_v21  ;;  %v6812_v27 = vmul.f32 %v9636_v14, %v6731_v9 }
 0xc00   : > { %v6832_v54 = vrot.slane %v6831_v15, 4  ;;  %v6856_v12 = vadd.f32 %v6855_v59, %v6810_v30 }
 0xc01   : > { %v6882_v23 = vrot.slane %v6881_v57, 4  ;;  %v6906_v17 = vadd.f32 %v6905_v60, %v6812_v27 }
 0xc02   : > { %v6833_v46 = vadd.f32 %v6832_v54, %v6831_v15  ;;  %v6857_v19 = vrot.slane %v6856_v12, 4 }
 0xc03   : > { %v6883_v34 = vadd.f32 %v6882_v23, %v6881_v57  ;;  %v6907_v8 = vrot.slane %v6906_v17, 4 }
 0xc04   : > { %v6834_v3 = vrot.slane %v6833_v46, 2  ;;  %v6858_v38 = vadd.f32 %v6857_v19, %v6856_v12 }
 0xc05   : > { %v6884_v56 = vrot.slane %v6883_v34, 2  ;;  %v6908_v0 = vadd.f32 %v6907_v8, %v6906_v17 }
 0xc06   : > { %v6835_v58 = vadd.f32 %v6834_v3, %v6833_v46  ;;  %v6859_v28 = vrot.slane %v6858_v38, 2 }
 0xc07   : > { %v6885_v47 = vadd.f32 %v6884_v56, %v6883_v34  ;;  %v6909_v32 = vrot.slane %v6908_v0, 2 }
 0xc08   : > { %v6860_v6 = vadd.f32 %v6859_v28, %v6858_v38  ;;  %v6836_v10 = vrot.slane %v6835_v58, 1 }
 0xc09   : > { %v6910_v18 = vadd.f32 %v6909_v32, %v6908_v0  ;;  %v6886_v4 = vrot.slane %v6885_v47, 1 }
 0xc0a   : > { %v6837_v16 = vadd.f32 %v6836_v10, %v6835_v58  ;;  %v6861_v53 = vrot.slane %v6860_v6, 1 }
 0xc0b   : > { %v6887_v35 = vadd.f32 %v6886_v4, %v6885_v47  ;;  %v6911_v25 = vrot.slane %v6910_v18, 1 }
 0xc0c   : > { %v6862_v62 = vadd.f32 %v6861_v53, %v6860_v6  ;;  %v6923_v36 = vadd.f32 %v6922_v7, %v6837_v16 }
 0xc0d   : > { %v6912_v31 = vadd.f32 %v6911_v25, %v6910_v18  ;;  %v6925_v43 = vadd.f32 %v6922_v7, %v6887_v35 }
 0xc0e   : > { %v6924_v1 = vadd.f32 %v6922_v7, %v6862_v62 }
 0xc0f   : > { %v6926_v61 = vadd.f32 %v6922_v7, %v6912_v31 }
 0xc10   : > { %v6931_v49 = vcombine.low %v6923_v36, %v6924_v1 }
 0xc11   : > { %v6932_v26 = vcombine.low %v6925_v43, %v6926_v61 }
 0xc12   : > { %v6939_v33 = vrot.slane %v6931_v49, %v6938_v48 }
 0xc13   : > { %v6946_v39 = vrot.slane %v6932_v26, %v6938_v48 }
 0xc15   : > { %v6947_v5 = vcombine.low %v6939_v33, %v6946_v39 }
 0xc17   : > { %v6954_v42 = vrot.slane %v6947_v5, %v6938_v48 }
 0xc19   : > { %6960 = vst.msk [vmem:[%s272_s21] sm:$0xf] %vm6958_vm1, %v6954_v42 }
 0xc1a   : > { %9650 = shalt.err (!%p9647_p3)
}
 0xc1b   : > { %s9651_s15 = scalar_lea.hbm %s12155_s30, 64  ;;  %s9655_s18 = scalar_lea.hbm %s12204_s7, 256 }
 0xc1c   : > { %p9652_p4 = scmp.ne.s32.totalorder %s12155_s30, %s9651_s15  ;;  %p9656_p9 = scmp.lt.u32.totalorder %s12155_s30, %s12204_s7 }
 0xc1d   : > { %p9657_p10 = scmp.lt.u32.totalorder %s9655_s18, %s9651_s15  ;;  %p9659_p12 = scmp.lt.u32.totalorder %s9651_s15, %s12155_s30 }
 0xc1e   : > { %p9653_p7 = pnand %p9652_p4, %p9785_p5 }
 0xc1f   : > { %p9658_p11 = por %p9657_p10, %p9656_p9 }
 0xc20   : > { %p9654_p8 = pneg %p9653_p7 }
 0xc21   : > { %p9660_p13 = por %p9659_p12, %p9658_p11 }
 0xc23   : > { %p9661_p0 = pnand %p9660_p13, %p9654_p8 }
 0xc25   : > { %9664 = shalt.err (!%p9661_p0)
}
 0xc26   : > { %7724 = dma.vmem_to_hbm [thread:$0]  (%p9785_p5), %s12157_s22, 64, %s12155_s30, %s6962_s9  }
 0xc27 PF: > { %p7730_p1 = scmp.ge.s32.totalorder %s9699_s29, 2  ;;  %s6988_s21 = sand.u32 1, %s9687_s26  }
 0xc28   : > { %s6989_s24 = scalar_lea.sflag [#allocation4], %s6988_s21 }
 0xc29   : > { %p7727_p2 = pnand %p7730_p1, %p9789_p6 }
 0xc2b   : > { %9682 = dma.done.wait (!%p7727_p2), %s6989_s24, 64  }
 0xc2c   : > { %9684 = vsyncadd (!%p7727_p2), %s6989_s24, 4294967232  ;;  %p19_p3 = scmp.ge.s32.totalorder %s9772_s8, 6   ;;  %s12374_s26 = smov %s9691_s27 }
 0xc2d   : > { %s12375_s27 = smov %s9695_s28  ;;  %s12376_s28 = smov %s9783_s11 }
 0xc2e   : > { %s12377_s29 = smov %s9772_s8  ;;  %21 = sbr.rel (!%p19_p3) target bundleno = 6 (0x6), region = 99 }
 0xc35   :  { %6994 = vsyncpa [#allocation4], 1 }
 0xc36   :  { %6996 = vsyncpa [#allocation4 + $0x1], 1 }

</bundles_post_ra>
